<compile_context>
chip_gen: v7x
topology: tpu7x:2x2x1
jax: 0.10.0
libtpu: 0.0.40
codegen_flags: <defaults>
</compile_context>

<pallas_src>
import functools

import jax
import jax.numpy as jnp
from jax import lax
from jax.experimental import pallas as pl
from jax.experimental.pallas import tpu as pltpu

# Raised scoped-VMEM cap (v5e default is 16 MiB; stays below v7x's 64 MiB physical).
_VMEM_LIMIT = 48 * 1024 * 1024


def _round_up(x, m):
    return ((x + m - 1) // m) * m


# -----------------------------------------------------------------------------
# Kernel 1: fused dual-direction input projection
#   (M, K) @ (K, 8H) + (1, 8H)  ->  gx_f (M, 4H) bf16,  gx_b (M, 4H) bf16
# -----------------------------------------------------------------------------
def _inproj_kernel(x_ref, w_ref, b_ref, gf_ref, gb_ref, *, gate_cols):
    # One MXU matmul per row tile covers BOTH directions (weight stays resident
    # for 8H output columns); accumulate f32, split + cast to bf16 on store.
    g = jnp.dot(x_ref[...].astype(jnp.bfloat16), w_ref[...],
                preferred_element_type=jnp.float32) + b_ref[...]
    gf_ref[...] = g[:, :gate_cols].astype(gf_ref.dtype)
    gb_ref[...] = g[:, gate_cols:].astype(gb_ref.dtype)


def input_projection(flat, w8, b8, hidden, block_rows=256):
    """flat: (M, K); w8: (K, 8H) bf16 = [W_ih_f | W_ih_b]; b8: (1, 8H) f32.

    Returns (gx_f, gx_b), each (M, 4H) bf16.
    """
    M, K = flat.shape
    G = 4 * hidden
    bm = block_rows if M >= block_rows else _round_up(M, 8)
    m_pad = _round_up(M, bm)
    if m_pad != M:                       # padded rows are sliced off below
        flat = jnp.pad(flat, ((0, m_pad - M), (0, 0)))

    gf, gb = pl.pallas_call(
        functools.partial(_inproj_kernel, gate_cols=G),
        out_shape=(jax.ShapeDtypeStruct((m_pad, G), jnp.bfloat16),
                   jax.ShapeDtypeStruct((m_pad, G), jnp.bfloat16)),
        grid_spec=pltpu.PrefetchScalarGridSpec(
            num_scalar_prefetch=0,
            grid=(m_pad // bm,),
            in_specs=[
                pl.BlockSpec((bm, K), lambda i: (i, 0)),
                pl.BlockSpec((K, 2 * G), lambda i: (0, 0)),
                pl.BlockSpec((1, 2 * G), lambda i: (0, 0)),
            ],
            out_specs=[
                pl.BlockSpec((bm, G), lambda i: (i, 0)),
                pl.BlockSpec((bm, G), lambda i: (i, 0)),
            ],
        ),
        compiler_params=pltpu.CompilerParams(
            dimension_semantics=("parallel",),
            vmem_limit_bytes=_VMEM_LIMIT),
    )(flat, w8, b8)
    if m_pad != M:
        gf, gb = gf[:M], gb[:M]
    return gf, gb


# -----------------------------------------------------------------------------
# Kernel 2: fused bidirectional LSTM recurrence for one layer
#   inputs are the precomputed per-step gate preactivations gx = x @ W_ih + b
# -----------------------------------------------------------------------------
def _bilstm_kernel(gxf_ref, gxb_ref, lens_ref, whh_f_ref, whh_b_ref,
                   yf_ref, yb_ref, hf_ref, hb_ref,
                   hf_sc, cf_sc, hb_sc, cb_sc, *, hidden, time_chunk, unroll):
    H, TT = hidden, time_chunk
    i = pl.program_id(0)
    nc = pl.num_programs(0)

    @pl.when(i == 0)
    def _init():
        hf_sc[...] = jnp.zeros_like(hf_sc)
        cf_sc[...] = jnp.zeros_like(cf_sc)
        hb_sc[...] = jnp.zeros_like(hb_sc)
        cb_sc[...] = jnp.zeros_like(cb_sc)

    lens = lens_ref[...]          # (B, 1) int32
    w_f = whh_f_ref[...]          # (H, 4H) bf16, resident for the whole chunk
    w_b = whh_b_ref[...]          # (H, 4H) bf16

    t0_f = i * TT                 # global time offset of the forward chunk
    t0_b = (nc - 1 - i) * TT      # global time offset of the backward chunk

    def cell(pre, h, c, valid):
        # PyTorch gate layout [i, f, g, o]; H = 128 keeps slices lane-aligned.
        ig = jax.nn.sigmoid(pre[:, 0 * H:1 * H])
        fg = jax.nn.sigmoid(pre[:, 1 * H:2 * H])
        gg = jnp.tanh(pre[:, 2 * H:3 * H])
        og = jax.nn.sigmoid(pre[:, 3 * H:4 * H])
        c_new = fg * c + ig * gg
        h_new = og * jnp.tanh(c_new)
        h = jnp.where(valid, h_new, h)    # carry state past padded steps
        c = jnp.where(valid, c_new, c)
        return h, c

    def step(j, carry):
        h_f, c_f, h_b, c_b = carry

        # ---- forward direction: global time t0_f + j ----
        valid_f = (t0_f + j) < lens
        pre_f = gxf_ref[j].astype(jnp.float32) + jnp.dot(
            h_f.astype(jnp.bfloat16), w_f, preferred_element_type=jnp.float32)
        h_f, c_f = cell(pre_f, h_f, c_f, valid_f)
        yf_ref[j] = jnp.where(valid_f, h_f, 0.0).astype(yf_ref.dtype)

        # ---- backward direction: global time t0_b + (TT - 1 - j) ----
        jj = TT - 1 - j
        valid_b = (t0_b + jj) < lens
        pre_b = gxb_ref[jj].astype(jnp.float32) + jnp.dot(
            h_b.astype(jnp.bfloat16), w_b, preferred_element_type=jnp.float32)
        h_b, c_b = cell(pre_b, h_b, c_b, valid_b)
        yb_ref[jj] = jnp.where(valid_b, h_b, 0.0).astype(yb_ref.dtype)

        return h_f, c_f, h_b, c_b

    carry0 = (hf_sc[...], cf_sc[...], hb_sc[...], cb_sc[...])
    h_f, c_f, h_b, c_b = lax.fori_loop(0, TT, step, carry0, unroll=unroll)

    # carry state across time chunks
    hf_sc[...] = h_f
    cf_sc[...] = c_f
    hb_sc[...] = h_b
    cb_sc[...] = c_b

    # final hidden states (constant out block; the last grid step's write wins)
    hf_ref[...] = h_f
    hb_ref[...] = h_b


def _pick_time_chunk(T, target=64):
    """Largest divisor of T that is <= target (bounds per-chunk VMEM)."""
    if T <= target:
        return T
    for tt in range(target, 0, -1):
        if T % tt == 0:
            return tt
    return T


def bilstm_layer(gx_f, gx_b, lens2d, w_hh_f, w_hh_b, time_chunk=None):
    """gx_*: (T, B, 4H) bf16 gate preactivations; lens2d: (B, 1) int32.

    Returns y_fwd (T,B,H) bf16, y_bwd (T,B,H) bf16, h_fwd (B,H) f32, h_bwd (B,H) f32.
    """
    T, B, G = gx_f.shape
    H = G // 4
    assert H % 128 == 0, "gate slices must stay lane-aligned (hidden % 128 == 0)"
    TT = _pick_time_chunk(T) if time_chunk is None else time_chunk
    assert T % TT == 0, "time_chunk must divide T"
    nc = T // TT
    unroll = TT if TT <= 16 else 8     # full unroll only for short chunks

    kernel = functools.partial(_bilstm_kernel, hidden=H, time_chunk=TT,
                               unroll=unroll)
    return pl.pallas_call(
        kernel,
        out_shape=(
            jax.ShapeDtypeStruct((T, B, H), jnp.bfloat16),   # y fwd
            jax.ShapeDtypeStruct((T, B, H), jnp.bfloat16),   # y bwd
            jax.ShapeDtypeStruct((B, H), jnp.float32),       # h fwd final
            jax.ShapeDtypeStruct((B, H), jnp.float32),       # h bwd final
        ),
        grid_spec=pltpu.PrefetchScalarGridSpec(
            num_scalar_prefetch=0,
            grid=(nc,),
            in_specs=[
                pl.BlockSpec((TT, B, G), lambda i: (i, 0, 0)),            # fwd gates
                pl.BlockSpec((TT, B, G), lambda i: (nc - 1 - i, 0, 0)),   # bwd gates (time-reversed)
                pl.BlockSpec((B, 1), lambda i: (0, 0)),                   # lengths
                pl.BlockSpec((H, G), lambda i: (0, 0)),                   # W_hh fwd (bf16)
                pl.BlockSpec((H, G), lambda i: (0, 0)),                   # W_hh bwd (bf16)
            ],
            out_specs=[
                pl.BlockSpec((TT, B, H), lambda i: (i, 0, 0)),            # y fwd
                pl.BlockSpec((TT, B, H), lambda i: (nc - 1 - i, 0, 0)),   # y bwd (original order)
                pl.BlockSpec((B, H), lambda i: (0, 0)),                   # h fwd final
                pl.BlockSpec((B, H), lambda i: (0, 0)),                   # h bwd final
            ],
            scratch_shapes=[pltpu.VMEM((B, H), jnp.float32)] * 4,
        ),
        compiler_params=pltpu.CompilerParams(
            dimension_semantics=("arbitrary",),   # sequential recurrence over time chunks
            vmem_limit_bytes=_VMEM_LIMIT),
    )(gx_f, gx_b, lens2d, w_hh_f, w_hh_b)


# -----------------------------------------------------------------------------
# Model forward (glue in plain JAX, heavy compute in Pallas)
# -----------------------------------------------------------------------------
def lstm_classifier_forward(params, x, lengths, time_chunk=None):
    """x: (B, T, D) float32 (batch_first), lengths: (B,) int -> logits (B, C)."""
    B, T, D = x.shape
    x_t = jnp.transpose(x, (1, 0, 2))                       # (T, B, D) time-major
    lens2d = lengths.astype(jnp.int32).reshape(B, 1)

    inp = x_t
    h_f = h_b = None
    for layer_p in params["lstm"]:
        d_in = inp.shape[-1]
        H = layer_p["w_hh_f"].shape[0]
        flat = inp.reshape(T * B, d_in)
        # One fused projection matmul per layer for both directions (bias = b_ih + b_hh).
        gf, gb = input_projection(flat, layer_p["w_ih"], layer_p["b"], hidden=H)
        gx_f = gf.reshape(T, B, 4 * H)
        gx_b = gb.reshape(T, B, 4 * H)
        y_f, y_b, h_f, h_b = bilstm_layer(gx_f, gx_b, lens2d,
                                          layer_p["w_hh_f"], layer_p["w_hh_b"],
                                          time_chunk=time_chunk)
        # nn.LSTM inter-layer dropout is identity in eval mode.
        inp = jnp.concatenate([y_f, y_b], axis=-1)          # (T, B, 2H) bf16

    h = jnp.concatenate([h_f, h_b], axis=-1)                # (B, 2H) f32
    # self.dropout(h) is identity in eval mode; tiny (B,2H)x(2H,C) head stays
    # in plain XLA (a pallas launch would only add masked 4-wide stores).
    logits = h @ params["fc_w"] + params["fc_b"]
    return logits


# -----------------------------------------------------------------------------
# Deterministic parameter init (mirrors nn.LSTM / nn.Linear shapes)
# -----------------------------------------------------------------------------
def init_params(key, input_size, hidden_size, num_layers, num_classes):
    params = {"lstm": []}
    k = 1.0 / float(hidden_size) ** 0.5
    for layer in range(num_layers):
        d_in = input_size if layer == 0 else 2 * hidden_size
        w_ih, b_sum, w_hh = [], [], []
        for _tag in ("f", "b"):   # forward / reverse direction
            key, k1, k2, k3, k4 = jax.random.split(key, 5)
            w_ih.append(jax.random.uniform(
                k1, (d_in, 4 * hidden_size), jnp.float32, -k, k))
            w_hh.append(jax.random.uniform(
                k2, (hidden_size, 4 * hidden_size), jnp.float32, -k, k))
            b_ih = jax.random.uniform(k3, (4 * hidden_size,), jnp.float32, -k, k)
            b_hh = jax.random.uniform(k4, (4 * hidden_size,), jnp.float32, -k, k)
            b_sum.append(b_ih + b_hh)
        params["lstm"].append({
            # Fused [fwd | bwd] projection weight, bf16 for the fast MXU path.
            "w_ih": jnp.concatenate(w_ih, axis=1).astype(jnp.bfloat16),   # (d_in, 8H)
            "b": jnp.concatenate(b_sum)[None, :],                         # (1, 8H) f32
            "w_hh_f": w_hh[0].astype(jnp.bfloat16),                       # (H, 4H)
            "w_hh_b": w_hh[1].astype(jnp.bfloat16),                       # (H, 4H)
        })

    key, k1, k2 = jax.random.split(key, 3)
    kf = 1.0 / float(2 * hidden_size) ** 0.5
    params["fc_w"] = jax.random.uniform(
        k1, (2 * hidden_size, num_classes), jnp.float32, -kf, kf)
    params["fc_b"] = jax.random.uniform(k2, (num_classes,), jnp.float32, -kf, kf)
    return params


# -----------------------------------------------------------------------------
# Main
# -----------------------------------------------------------------------------
if __name__ == "__main__":
    INPUT_SIZE = 13 + 12      # = 25, as in the training script
    HIDDEN_SIZE = 128         # module's real hidden size; lane-aligned gates
    NUM_LAYERS = 2
    NUM_CLASSES = 4
    B, T = 2, 8               # demo sizes; masking handles any ragged batch

    key = jax.random.PRNGKey(0)
    key, kx = jax.random.split(key)
    x = jax.random.normal(kx, (B, T, INPUT_SIZE), jnp.float32)
    lengths = jnp.array([8, 5], dtype=jnp.int32)

    params = init_params(key, INPUT_SIZE, HIDDEN_SIZE, NUM_LAYERS, NUM_CLASSES)

    fwd = jax.jit(lstm_classifier_forward)
    logits = fwd(params, x, lengths)
    jax.block_until_ready(logits)
    assert logits.shape == (B, NUM_CLASSES)
    print("KERNEL_OK")
</pallas_src>

<mosaic_0001>
module attributes {stable_mosaic.version = 11 : i64} {
  func.func @_inproj_kernel(%arg0: i32, %arg1: memref<16x25xf32, #tpu.memory_space<vmem>>, %arg2: memref<25x1024xbf16, #tpu.memory_space<vmem>>, %arg3: memref<1x1024xf32, #tpu.memory_space<vmem>>, %arg4: memref<16x512xbf16, #tpu.memory_space<vmem>>, %arg5: memref<16x512xbf16, #tpu.memory_space<vmem>>) attributes {dimension_semantics = [#tpu.dimension_semantics<parallel>], iteration_bounds = array<i64: 1>, scalar_prefetch = 0 : i64, scratch_operands = 0 : i64, tpu.core_type = #tpu.core_type<tc>, window_params = [{transform_indices = @transform_0, window_bounds = array<i64: 16, 25>}, {pipeline_mode = #tpu.pipeline_mode<synchronous>, transform_indices = @transform_1, window_bounds = array<i64: 25, 1024>}, {pipeline_mode = #tpu.pipeline_mode<synchronous>, transform_indices = @transform_2, window_bounds = array<i64: 1, 1024>}, {transform_indices = @transform_3, window_bounds = array<i64: 16, 512>}, {transform_indices = @transform_4, window_bounds = array<i64: 16, 512>}]} {
    %c0 = arith.constant 0 : index
    %c0_0 = arith.constant 0 : index
    %0 = vector.load %arg1[%c0, %c0_0] : memref<16x25xf32, #tpu.memory_space<vmem>>, vector<16x25xf32>
    %1 = arith.truncf %0 : vector<16x25xf32> to vector<16x25xbf16>
    %c0_1 = arith.constant 0 : index
    %c0_2 = arith.constant 0 : index
    %2 = vector.load %arg2[%c0_1, %c0_2] : memref<25x1024xbf16, #tpu.memory_space<vmem>>, vector<25x1024xbf16>
    %cst = arith.constant dense<0.000000e+00> : vector<16x1024xf32>
    %3 = tpu.matmul %1, %2, %cst {dimension_numbers = #tpu.dot_dimension_numbers<[1], [0], [0], [1], [0, 0, 1, 1], [], []>} : vector<16x25xbf16>, vector<25x1024xbf16>, vector<16x1024xf32> -> vector<16x1024xf32>
    %c0_3 = arith.constant 0 : index
    %c0_4 = arith.constant 0 : index
    %4 = vector.load %arg3[%c0_3, %c0_4] : memref<1x1024xf32, #tpu.memory_space<vmem>>, vector<1x1024xf32>
    %5 = vector.broadcast %4 : vector<1x1024xf32> to vector<16x1024xf32>
    %6 = arith.addf %3, %5 : vector<16x1024xf32>
    %7 = vector.extract_strided_slice %6 {offsets = [0, 0], sizes = [16, 512], strides = [1, 1]} : vector<16x1024xf32> to vector<16x512xf32>
    %8 = arith.truncf %7 : vector<16x512xf32> to vector<16x512xbf16>
    %c0_5 = arith.constant 0 : index
    %c0_6 = arith.constant 0 : index
    %9 = vector.load %arg4[%c0_5, %c0_6] : memref<16x512xbf16, #tpu.memory_space<vmem>>, vector<16x512xbf16>
    tpu.vector_store %arg4[%c0_5, %c0_6], %8 {strides = array<i32>} : memref<16x512xbf16, #tpu.memory_space<vmem>>, vector<16x512xbf16>,
    %10 = vector.extract_strided_slice %6 {offsets = [0, 512], sizes = [16, 512], strides = [1, 1]} : vector<16x1024xf32> to vector<16x512xf32>
    %11 = arith.truncf %10 : vector<16x512xf32> to vector<16x512xbf16>
    %c0_7 = arith.constant 0 : index
    %c0_8 = arith.constant 0 : index
    %12 = vector.load %arg5[%c0_7, %c0_8] : memref<16x512xbf16, #tpu.memory_space<vmem>>, vector<16x512xbf16>
    tpu.vector_store %arg5[%c0_7, %c0_8], %11 {strides = array<i32>} : memref<16x512xbf16, #tpu.memory_space<vmem>>, vector<16x512xbf16>,
    return
  }
  func.func @transform_0(%arg0: i32) -> (i32, i32) {
    %c0_i32 = arith.constant 0 : i32
    %c0_i32_0 = arith.constant 0 : i32
    return %arg0, %c0_i32 : i32, i32
  }
  func.func @transform_1(%arg0: i32) -> (i32, i32) {
    %c0_i32 = arith.constant 0 : i32
    %c0_i32_0 = arith.constant 0 : i32
    %c0_i32_1 = arith.constant 0 : i32
    return %c0_i32, %c0_i32_0 : i32, i32
  }
  func.func @transform_2(%arg0: i32) -> (i32, i32) {
    %c0_i32 = arith.constant 0 : i32
    %c0_i32_0 = arith.constant 0 : i32
    %c0_i32_1 = arith.constant 0 : i32
    return %c0_i32, %c0_i32_0 : i32, i32
  }
  func.func @transform_3(%arg0: i32) -> (i32, i32) {
    %c0_i32 = arith.constant 0 : i32
    %c0_i32_0 = arith.constant 0 : i32
    return %arg0, %c0_i32 : i32, i32
  }
  func.func @transform_4(%arg0: i32) -> (i32, i32) {
    %c0_i32 = arith.constant 0 : i32
    %c0_i32_0 = arith.constant 0 : i32
    return %arg0, %c0_i32 : i32, i32
  }
}

module attributes {stable_mosaic.version = 11 : i64} {
  func.func @_inproj_kernel(%arg0: i32, %arg1: memref<16x256xbf16, #tpu.memory_space<vmem>>, %arg2: memref<256x1024xbf16, #tpu.memory_space<vmem>>, %arg3: memref<1x1024xf32, #tpu.memory_space<vmem>>, %arg4: memref<16x512xbf16, #tpu.memory_space<vmem>>, %arg5: memref<16x512xbf16, #tpu.memory_space<vmem>>) attributes {dimension_semantics = [#tpu.dimension_semantics<parallel>], iteration_bounds = array<i64: 1>, scalar_prefetch = 0 : i64, scratch_operands = 0 : i64, tpu.core_type = #tpu.core_type<tc>, window_params = [{transform_indices = @transform_0, window_bounds = array<i64: 16, 256>}, {pipeline_mode = #tpu.pipeline_mode<synchronous>, transform_indices = @transform_1, window_bounds = array<i64: 256, 1024>}, {pipeline_mode = #tpu.pipeline_mode<synchronous>, transform_indices = @transform_2, window_bounds = array<i64: 1, 1024>}, {transform_indices = @transform_3, window_bounds = array<i64: 16, 512>}, {transform_indices = @transform_4, window_bounds = array<i64: 16, 512>}]} {
    %c0 = arith.constant 0 : index
    %c0_0 = arith.constant 0 : index
    %0 = vector.load %arg1[%c0, %c0_0] : memref<16x256xbf16, #tpu.memory_space<vmem>>, vector<16x256xbf16>
    %c0_1 = arith.constant 0 : index
    %c0_2 = arith.constant 0 : index
    %1 = vector.load %arg2[%c0_1, %c0_2] : memref<256x1024xbf16, #tpu.memory_space<vmem>>, vector<256x1024xbf16>
    %cst = arith.constant dense<0.000000e+00> : vector<16x1024xf32>
    %2 = tpu.matmul %0, %1, %cst {dimension_numbers = #tpu.dot_dimension_numbers<[1], [0], [0], [1], [0, 0, 1, 1], [], []>} : vector<16x256xbf16>, vector<256x1024xbf16>, vector<16x1024xf32> -> vector<16x1024xf32>
    %c0_3 = arith.constant 0 : index
    %c0_4 = arith.constant 0 : index
    %3 = vector.load %arg3[%c0_3, %c0_4] : memref<1x1024xf32, #tpu.memory_space<vmem>>, vector<1x1024xf32>
    %4 = vector.broadcast %3 : vector<1x1024xf32> to vector<16x1024xf32>
    %5 = arith.addf %2, %4 : vector<16x1024xf32>
    %6 = vector.extract_strided_slice %5 {offsets = [0, 0], sizes = [16, 512], strides = [1, 1]} : vector<16x1024xf32> to vector<16x512xf32>
    %7 = arith.truncf %6 : vector<16x512xf32> to vector<16x512xbf16>
    %c0_5 = arith.constant 0 : index
    %c0_6 = arith.constant 0 : index
    %8 = vector.load %arg4[%c0_5, %c0_6] : memref<16x512xbf16, #tpu.memory_space<vmem>>, vector<16x512xbf16>
    tpu.vector_store %arg4[%c0_5, %c0_6], %7 {strides = array<i32>} : memref<16x512xbf16, #tpu.memory_space<vmem>>, vector<16x512xbf16>,
    %9 = vector.extract_strided_slice %5 {offsets = [0, 512], sizes = [16, 512], strides = [1, 1]} : vector<16x1024xf32> to vector<16x512xf32>
    %10 = arith.truncf %9 : vector<16x512xf32> to vector<16x512xbf16>
    %c0_7 = arith.constant 0 : index
    %c0_8 = arith.constant 0 : index
    %11 = vector.load %arg5[%c0_7, %c0_8] : memref<16x512xbf16, #tpu.memory_space<vmem>>, vector<16x512xbf16>
    tpu.vector_store %arg5[%c0_7, %c0_8], %10 {strides = array<i32>} : memref<16x512xbf16, #tpu.memory_space<vmem>>, vector<16x512xbf16>,
    return
  }
  func.func @transform_0(%arg0: i32) -> (i32, i32) {
    %c0_i32 = arith.constant 0 : i32
    %c0_i32_0 = arith.constant 0 : i32
    return %arg0, %c0_i32 : i32, i32
  }
  func.func @transform_1(%arg0: i32) -> (i32, i32) {
    %c0_i32 = arith.constant 0 : i32
    %c0_i32_0 = arith.constant 0 : i32
    %c0_i32_1 = arith.constant 0 : i32
    return %c0_i32, %c0_i32_0 : i32, i32
  }
  func.func @transform_2(%arg0: i32) -> (i32, i32) {
    %c0_i32 = arith.constant 0 : i32
    %c0_i32_0 = arith.constant 0 : i32
    %c0_i32_1 = arith.constant 0 : i32
    return %c0_i32, %c0_i32_0 : i32, i32
  }
  func.func @transform_3(%arg0: i32) -> (i32, i32) {
    %c0_i32 = arith.constant 0 : i32
    %c0_i32_0 = arith.constant 0 : i32
    return %arg0, %c0_i32 : i32, i32
  }
  func.func @transform_4(%arg0: i32) -> (i32, i32) {
    %c0_i32 = arith.constant 0 : i32
    %c0_i32_0 = arith.constant 0 : i32
    return %arg0, %c0_i32 : i32, i32
  }
}

module attributes {stable_mosaic.version = 11 : i64} {
  func.func @_bilstm_kernel(%arg0: i32, %arg1: memref<8x2x512xbf16, #tpu.memory_space<vmem>>, %arg2: memref<8x2x512xbf16, #tpu.memory_space<vmem>>, %arg3: memref<2x1xi32, #tpu.memory_space<vmem>>, %arg4: memref<128x512xbf16, #tpu.memory_space<vmem>>, %arg5: memref<128x512xbf16, #tpu.memory_space<vmem>>, %arg6: memref<8x2x128xbf16, #tpu.memory_space<vmem>>, %arg7: memref<8x2x128xbf16, #tpu.memory_space<vmem>>, %arg8: memref<2x128xf32, #tpu.memory_space<vmem>>, %arg9: memref<2x128xf32, #tpu.memory_space<vmem>>, %arg10: memref<2x128xf32, #tpu.memory_space<vmem>>, %arg11: memref<2x128xf32, #tpu.memory_space<vmem>>, %arg12: memref<2x128xf32, #tpu.memory_space<vmem>>, %arg13: memref<2x128xf32, #tpu.memory_space<vmem>>) attributes {dimension_semantics = [#tpu.dimension_semantics<arbitrary>], iteration_bounds = array<i64: 1>, scalar_prefetch = 0 : i64, scratch_operands = 4 : i64, tpu.core_type = #tpu.core_type<tc>, window_params = [{transform_indices = @transform_0, window_bounds = array<i64: 8, 2, 512>}, {transform_indices = @transform_1, window_bounds = array<i64: 8, 2, 512>}, {pipeline_mode = #tpu.pipeline_mode<synchronous>, transform_indices = @transform_2, window_bounds = array<i64: 2, 1>}, {pipeline_mode = #tpu.pipeline_mode<synchronous>, transform_indices = @transform_3, window_bounds = array<i64: 128, 512>}, {pipeline_mode = #tpu.pipeline_mode<synchronous>, transform_indices = @transform_4, window_bounds = array<i64: 128, 512>}, {transform_indices = @transform_5, window_bounds = array<i64: 8, 2, 128>}, {transform_indices = @transform_6, window_bounds = array<i64: 8, 2, 128>}, {pipeline_mode = #tpu.pipeline_mode<synchronous>, transform_indices = @transform_7, window_bounds = array<i64: 2, 128>}, {pipeline_mode = #tpu.pipeline_mode<synchronous>, transform_indices = @transform_8, window_bounds = array<i64: 2, 128>}]} {
    %c0_i32 = arith.constant 0 : i32
    %0 = arith.cmpi eq, %arg0, %c0_i32 : i32
    %1 = arith.extui %0 : i1 to i32
    %c0_i32_0 = arith.constant 0 : i32
    %2 = arith.cmpi ne, %1, %c0_i32_0 : i32
    scf.if %2 {
      %cst_181 = arith.constant 0.000000e+00 : f32
      %827 = vector.broadcast %cst_181 : f32 to vector<2x128xf32>
      %c0_182 = arith.constant 0 : index
      %c0_183 = arith.constant 0 : index
      %828 = vector.load %arg10[%c0_182, %c0_183] : memref<2x128xf32, #tpu.memory_space<vmem>>, vector<2x128xf32>
      tpu.vector_store %arg10[%c0_182, %c0_183], %827 {strides = array<i32>} : memref<2x128xf32, #tpu.memory_space<vmem>>, vector<2x128xf32>,
      %cst_184 = arith.constant 0.000000e+00 : f32
      %829 = vector.broadcast %cst_184 : f32 to vector<2x128xf32>
      %c0_185 = arith.constant 0 : index
      %c0_186 = arith.constant 0 : index
      %830 = vector.load %arg11[%c0_185, %c0_186] : memref<2x128xf32, #tpu.memory_space<vmem>>, vector<2x128xf32>
      tpu.vector_store %arg11[%c0_185, %c0_186], %829 {strides = array<i32>} : memref<2x128xf32, #tpu.memory_space<vmem>>, vector<2x128xf32>,
      %cst_187 = arith.constant 0.000000e+00 : f32
      %831 = vector.broadcast %cst_187 : f32 to vector<2x128xf32>
      %c0_188 = arith.constant 0 : index
      %c0_189 = arith.constant 0 : index
      %832 = vector.load %arg12[%c0_188, %c0_189] : memref<2x128xf32, #tpu.memory_space<vmem>>, vector<2x128xf32>
      tpu.vector_store %arg12[%c0_188, %c0_189], %831 {strides = array<i32>} : memref<2x128xf32, #tpu.memory_space<vmem>>, vector<2x128xf32>,
      %cst_190 = arith.constant 0.000000e+00 : f32
      %833 = vector.broadcast %cst_190 : f32 to vector<2x128xf32>
      %c0_191 = arith.constant 0 : index
      %c0_192 = arith.constant 0 : index
      %834 = vector.load %arg13[%c0_191, %c0_192] : memref<2x128xf32, #tpu.memory_space<vmem>>, vector<2x128xf32>
      tpu.vector_store %arg13[%c0_191, %c0_192], %833 {strides = array<i32>} : memref<2x128xf32, #tpu.memory_space<vmem>>, vector<2x128xf32>,
    } else {
    }
    %c0 = arith.constant 0 : index
    %c0_1 = arith.constant 0 : index
    %3 = vector.load %arg3[%c0, %c0_1] : memref<2x1xi32, #tpu.memory_space<vmem>>, vector<2x1xi32>
    %c0_2 = arith.constant 0 : index
    %c0_3 = arith.constant 0 : index
    %4 = vector.load %arg4[%c0_2, %c0_3] : memref<128x512xbf16, #tpu.memory_space<vmem>>, vector<128x512xbf16>
    %c0_4 = arith.constant 0 : index
    %c0_5 = arith.constant 0 : index
    %5 = vector.load %arg5[%c0_4, %c0_5] : memref<128x512xbf16, #tpu.memory_space<vmem>>, vector<128x512xbf16>
    %c8_i32 = arith.constant 8 : i32
    %6 = arith.muli %arg0, %c8_i32 : i32
    %c0_i32_6 = arith.constant 0 : i32
    %7 = arith.subi %c0_i32_6, %arg0 : i32
    %c8_i32_7 = arith.constant 8 : i32
    %8 = arith.muli %7, %c8_i32_7 : i32
    %c0_8 = arith.constant 0 : index
    %c0_9 = arith.constant 0 : index
    %9 = vector.load %arg10[%c0_8, %c0_9] : memref<2x128xf32, #tpu.memory_space<vmem>>, vector<2x128xf32>
    %c0_10 = arith.constant 0 : index
    %c0_11 = arith.constant 0 : index
    %10 = vector.load %arg11[%c0_10, %c0_11] : memref<2x128xf32, #tpu.memory_space<vmem>>, vector<2x128xf32>
    %c0_12 = arith.constant 0 : index
    %c0_13 = arith.constant 0 : index
    %11 = vector.load %arg12[%c0_12, %c0_13] : memref<2x128xf32, #tpu.memory_space<vmem>>, vector<2x128xf32>
    %c0_14 = arith.constant 0 : index
    %c0_15 = arith.constant 0 : index
    %12 = vector.load %arg13[%c0_14, %c0_15] : memref<2x128xf32, #tpu.memory_space<vmem>>, vector<2x128xf32>
    %c0_i32_16 = arith.constant 0 : i32
    %13 = arith.addi %6, %c0_i32_16 : i32
    %14 = vector.broadcast %13 : i32 to vector<2x1xi32>
    %15 = arith.cmpi slt, %14, %3 : vector<2x1xi32>
    %16 = arith.index_cast %c0_i32_16 : i32 to index
    %c0_17 = arith.constant 0 : index
    %c0_18 = arith.constant 0 : index
    %17 = vector.load %arg1[%16, %c0_17, %c0_18] : memref<8x2x512xbf16, #tpu.memory_space<vmem>>, vector<1x2x512xbf16>
    %18 = vector.shape_cast %17 : vector<1x2x512xbf16> to vector<2x512xbf16>
    %19 = arith.extf %18 : vector<2x512xbf16> to vector<2x512xf32>
    %20 = arith.truncf %9 : vector<2x128xf32> to vector<2x128xbf16>
    %cst = arith.constant dense<0.000000e+00> : vector<2x512xf32>
    %21 = tpu.matmul %20, %4, %cst {dimension_numbers = #tpu.dot_dimension_numbers<[1], [0], [0], [1], [0, 0, 1, 1], [], []>} : vector<2x128xbf16>, vector<128x512xbf16>, vector<2x512xf32> -> vector<2x512xf32>
    %22 = arith.addf %19, %21 : vector<2x512xf32>
    %23 = vector.extract_strided_slice %22 {offsets = [0, 0], sizes = [2, 128], strides = [1, 1]} : vector<2x512xf32> to vector<2x128xf32>
    %24 = arith.negf %23 : vector<2x128xf32>
    %25 = math.exp %24 : vector<2x128xf32>
    %cst_19 = arith.constant 1.000000e+00 : f32
    %26 = vector.broadcast %cst_19 : f32 to vector<2x128xf32>
    %27 = arith.addf %26, %25 : vector<2x128xf32>
    %28 = arith.divf %26, %27 : vector<2x128xf32>
    %29 = vector.extract_strided_slice %22 {offsets = [0, 128], sizes = [2, 128], strides = [1, 1]} : vector<2x512xf32> to vector<2x128xf32>
    %30 = arith.negf %29 : vector<2x128xf32>
    %31 = math.exp %30 : vector<2x128xf32>
    %cst_20 = arith.constant 1.000000e+00 : f32
    %32 = vector.broadcast %cst_20 : f32 to vector<2x128xf32>
    %33 = arith.addf %32, %31 : vector<2x128xf32>
    %34 = arith.divf %32, %33 : vector<2x128xf32>
    %35 = vector.extract_strided_slice %22 {offsets = [0, 256], sizes = [2, 128], strides = [1, 1]} : vector<2x512xf32> to vector<2x128xf32>
    %36 = math.tanh %35 : vector<2x128xf32>
    %37 = vector.extract_strided_slice %22 {offsets = [0, 384], sizes = [2, 128], strides = [1, 1]} : vector<2x512xf32> to vector<2x128xf32>
    %38 = arith.negf %37 : vector<2x128xf32>
    %39 = math.exp %38 : vector<2x128xf32>
    %cst_21 = arith.constant 1.000000e+00 : f32
    %40 = vector.broadcast %cst_21 : f32 to vector<2x128xf32>
    %41 = arith.addf %40, %39 : vector<2x128xf32>
    %42 = arith.divf %40, %41 : vector<2x128xf32>
    %43 = arith.mulf %34, %10 : vector<2x128xf32>
    %44 = arith.mulf %28, %36 : vector<2x128xf32>
    %45 = arith.addf %43, %44 : vector<2x128xf32>
    %46 = math.tanh %45 : vector<2x128xf32>
    %47 = arith.mulf %42, %46 : vector<2x128xf32>
    %48 = vector.shape_cast %15 : vector<2x1xi1> to vector<2x1xi1>
    %49 = vector.broadcast %48 : vector<2x1xi1> to vector<2x128xi1>
    %50 = arith.select %49, %47, %9 : vector<2x128xi1>, vector<2x128xf32>
    %51 = vector.shape_cast %15 : vector<2x1xi1> to vector<2x1xi1>
    %52 = vector.broadcast %51 : vector<2x1xi1> to vector<2x128xi1>
    %53 = arith.select %52, %45, %10 : vector<2x128xi1>, vector<2x128xf32>
    %cst_22 = arith.constant 0.000000e+00 : f32
    %54 = vector.shape_cast %15 : vector<2x1xi1> to vector<2x1xi1>
    %55 = vector.broadcast %54 : vector<2x1xi1> to vector<2x128xi1>
    %56 = vector.broadcast %cst_22 : f32 to vector<2x128xf32>
    %57 = arith.select %55, %50, %56 : vector<2x128xi1>, vector<2x128xf32>
    %58 = arith.truncf %57 : vector<2x128xf32> to vector<2x128xbf16>
    %59 = arith.index_cast %c0_i32_16 : i32 to index
    %c0_23 = arith.constant 0 : index
    %c0_24 = arith.constant 0 : index
    %60 = vector.load %arg6[%59, %c0_23, %c0_24] : memref<8x2x128xbf16, #tpu.memory_space<vmem>>, vector<1x2x128xbf16>
    %61 = vector.shape_cast %60 : vector<1x2x128xbf16> to vector<2x128xbf16>
    %62 = vector.shape_cast %58 : vector<2x128xbf16> to vector<1x2x128xbf16>
    tpu.vector_store %arg6[%59, %c0_23, %c0_24], %62 {strides = array<i32>} : memref<8x2x128xbf16, #tpu.memory_space<vmem>>, vector<1x2x128xbf16>,
    %c7_i32 = arith.constant 7 : i32
    %63 = arith.subi %c7_i32, %c0_i32_16 : i32
    %64 = arith.addi %8, %63 : i32
    %65 = vector.broadcast %64 : i32 to vector<2x1xi32>
    %66 = arith.cmpi slt, %65, %3 : vector<2x1xi32>
    %67 = arith.index_cast %63 : i32 to index
    %c0_25 = arith.constant 0 : index
    %c0_26 = arith.constant 0 : index
    %68 = vector.load %arg2[%67, %c0_25, %c0_26] : memref<8x2x512xbf16, #tpu.memory_space<vmem>>, vector<1x2x512xbf16>
    %69 = vector.shape_cast %68 : vector<1x2x512xbf16> to vector<2x512xbf16>
    %70 = arith.extf %69 : vector<2x512xbf16> to vector<2x512xf32>
    %71 = arith.truncf %11 : vector<2x128xf32> to vector<2x128xbf16>
    %cst_27 = arith.constant dense<0.000000e+00> : vector<2x512xf32>
    %72 = tpu.matmul %71, %5, %cst_27 {dimension_numbers = #tpu.dot_dimension_numbers<[1], [0], [0], [1], [0, 0, 1, 1], [], []>} : vector<2x128xbf16>, vector<128x512xbf16>, vector<2x512xf32> -> vector<2x512xf32>
    %73 = arith.addf %70, %72 : vector<2x512xf32>
    %74 = vector.extract_strided_slice %73 {offsets = [0, 0], sizes = [2, 128], strides = [1, 1]} : vector<2x512xf32> to vector<2x128xf32>
    %75 = arith.negf %74 : vector<2x128xf32>
    %76 = math.exp %75 : vector<2x128xf32>
    %cst_28 = arith.constant 1.000000e+00 : f32
    %77 = vector.broadcast %cst_28 : f32 to vector<2x128xf32>
    %78 = arith.addf %77, %76 : vector<2x128xf32>
    %79 = arith.divf %77, %78 : vector<2x128xf32>
    %80 = vector.extract_strided_slice %73 {offsets = [0, 128], sizes = [2, 128], strides = [1, 1]} : vector<2x512xf32> to vector<2x128xf32>
    %81 = arith.negf %80 : vector<2x128xf32>
    %82 = math.exp %81 : vector<2x128xf32>
    %cst_29 = arith.constant 1.000000e+00 : f32
    %83 = vector.broadcast %cst_29 : f32 to vector<2x128xf32>
    %84 = arith.addf %83, %82 : vector<2x128xf32>
    %85 = arith.divf %83, %84 : vector<2x128xf32>
    %86 = vector.extract_strided_slice %73 {offsets = [0, 256], sizes = [2, 128], strides = [1, 1]} : vector<2x512xf32> to vector<2x128xf32>
    %87 = math.tanh %86 : vector<2x128xf32>
    %88 = vector.extract_strided_slice %73 {offsets = [0, 384], sizes = [2, 128], strides = [1, 1]} : vector<2x512xf32> to vector<2x128xf32>
    %89 = arith.negf %88 : vector<2x128xf32>
    %90 = math.exp %89 : vector<2x128xf32>
    %cst_30 = arith.constant 1.000000e+00 : f32
    %91 = vector.broadcast %cst_30 : f32 to vector<2x128xf32>
    %92 = arith.addf %91, %90 : vector<2x128xf32>
    %93 = arith.divf %91, %92 : vector<2x128xf32>
    %94 = arith.mulf %85, %12 : vector<2x128xf32>
    %95 = arith.mulf %79, %87 : vector<2x128xf32>
    %96 = arith.addf %94, %95 : vector<2x128xf32>
    %97 = math.tanh %96 : vector<2x128xf32>
    %98 = arith.mulf %93, %97 : vector<2x128xf32>
    %99 = vector.shape_cast %66 : vector<2x1xi1> to vector<2x1xi1>
    %100 = vector.broadcast %99 : vector<2x1xi1> to vector<2x128xi1>
    %101 = arith.select %100, %98, %11 : vector<2x128xi1>, vector<2x128xf32>
    %102 = vector.shape_cast %66 : vector<2x1xi1> to vector<2x1xi1>
    %103 = vector.broadcast %102 : vector<2x1xi1> to vector<2x128xi1>
    %104 = arith.select %103, %96, %12 : vector<2x128xi1>, vector<2x128xf32>
    %cst_31 = arith.constant 0.000000e+00 : f32
    %105 = vector.shape_cast %66 : vector<2x1xi1> to vector<2x1xi1>
    %106 = vector.broadcast %105 : vector<2x1xi1> to vector<2x128xi1>
    %107 = vector.broadcast %cst_31 : f32 to vector<2x128xf32>
    %108 = arith.select %106, %101, %107 : vector<2x128xi1>, vector<2x128xf32>
    %109 = arith.truncf %108 : vector<2x128xf32> to vector<2x128xbf16>
    %110 = arith.index_cast %63 : i32 to index
    %c0_32 = arith.constant 0 : index
    %c0_33 = arith.constant 0 : index
    %111 = vector.load %arg7[%110, %c0_32, %c0_33] : memref<8x2x128xbf16, #tpu.memory_space<vmem>>, vector<1x2x128xbf16>
    %112 = vector.shape_cast %111 : vector<1x2x128xbf16> to vector<2x128xbf16>
    %113 = vector.shape_cast %109 : vector<2x128xbf16> to vector<1x2x128xbf16>
    tpu.vector_store %arg7[%110, %c0_32, %c0_33], %113 {strides = array<i32>} : memref<8x2x128xbf16, #tpu.memory_space<vmem>>, vector<1x2x128xbf16>,
    %c1_i32 = arith.constant 1 : i32
    %114 = arith.addi %6, %c1_i32 : i32
    %115 = vector.broadcast %114 : i32 to vector<2x1xi32>
    %116 = arith.cmpi slt, %115, %3 : vector<2x1xi32>
    %117 = arith.index_cast %c1_i32 : i32 to index
    %c0_34 = arith.constant 0 : index
    %c0_35 = arith.constant 0 : index
    %118 = vector.load %arg1[%117, %c0_34, %c0_35] : memref<8x2x512xbf16, #tpu.memory_space<vmem>>, vector<1x2x512xbf16>
    %119 = vector.shape_cast %118 : vector<1x2x512xbf16> to vector<2x512xbf16>
    %120 = arith.extf %119 : vector<2x512xbf16> to vector<2x512xf32>
    %121 = arith.truncf %50 : vector<2x128xf32> to vector<2x128xbf16>
    %cst_36 = arith.constant dense<0.000000e+00> : vector<2x512xf32>
    %122 = tpu.matmul %121, %4, %cst_36 {dimension_numbers = #tpu.dot_dimension_numbers<[1], [0], [0], [1], [0, 0, 1, 1], [], []>} : vector<2x128xbf16>, vector<128x512xbf16>, vector<2x512xf32> -> vector<2x512xf32>
    %123 = arith.addf %120, %122 : vector<2x512xf32>
    %124 = vector.extract_strided_slice %123 {offsets = [0, 0], sizes = [2, 128], strides = [1, 1]} : vector<2x512xf32> to vector<2x128xf32>
    %125 = arith.negf %124 : vector<2x128xf32>
    %126 = math.exp %125 : vector<2x128xf32>
    %cst_37 = arith.constant 1.000000e+00 : f32
    %127 = vector.broadcast %cst_37 : f32 to vector<2x128xf32>
    %128 = arith.addf %127, %126 : vector<2x128xf32>
    %129 = arith.divf %127, %128 : vector<2x128xf32>
    %130 = vector.extract_strided_slice %123 {offsets = [0, 128], sizes = [2, 128], strides = [1, 1]} : vector<2x512xf32> to vector<2x128xf32>
    %131 = arith.negf %130 : vector<2x128xf32>
    %132 = math.exp %131 : vector<2x128xf32>
    %cst_38 = arith.constant 1.000000e+00 : f32
    %133 = vector.broadcast %cst_38 : f32 to vector<2x128xf32>
    %134 = arith.addf %133, %132 : vector<2x128xf32>
    %135 = arith.divf %133, %134 : vector<2x128xf32>
    %136 = vector.extract_strided_slice %123 {offsets = [0, 256], sizes = [2, 128], strides = [1, 1]} : vector<2x512xf32> to vector<2x128xf32>
    %137 = math.tanh %136 : vector<2x128xf32>
    %138 = vector.extract_strided_slice %123 {offsets = [0, 384], sizes = [2, 128], strides = [1, 1]} : vector<2x512xf32> to vector<2x128xf32>
    %139 = arith.negf %138 : vector<2x128xf32>
    %140 = math.exp %139 : vector<2x128xf32>
    %cst_39 = arith.constant 1.000000e+00 : f32
    %141 = vector.broadcast %cst_39 : f32 to vector<2x128xf32>
    %142 = arith.addf %141, %140 : vector<2x128xf32>
    %143 = arith.divf %141, %142 : vector<2x128xf32>
    %144 = arith.mulf %135, %53 : vector<2x128xf32>
    %145 = arith.mulf %129, %137 : vector<2x128xf32>
    %146 = arith.addf %144, %145 : vector<2x128xf32>
    %147 = math.tanh %146 : vector<2x128xf32>
    %148 = arith.mulf %143, %147 : vector<2x128xf32>
    %149 = vector.shape_cast %116 : vector<2x1xi1> to vector<2x1xi1>
    %150 = vector.broadcast %149 : vector<2x1xi1> to vector<2x128xi1>
    %151 = arith.select %150, %148, %50 : vector<2x128xi1>, vector<2x128xf32>
    %152 = vector.shape_cast %116 : vector<2x1xi1> to vector<2x1xi1>
    %153 = vector.broadcast %152 : vector<2x1xi1> to vector<2x128xi1>
    %154 = arith.select %153, %146, %53 : vector<2x128xi1>, vector<2x128xf32>
    %cst_40 = arith.constant 0.000000e+00 : f32
    %155 = vector.shape_cast %116 : vector<2x1xi1> to vector<2x1xi1>
    %156 = vector.broadcast %155 : vector<2x1xi1> to vector<2x128xi1>
    %157 = vector.broadcast %cst_40 : f32 to vector<2x128xf32>
    %158 = arith.select %156, %151, %157 : vector<2x128xi1>, vector<2x128xf32>
    %159 = arith.truncf %158 : vector<2x128xf32> to vector<2x128xbf16>
    %160 = arith.index_cast %c1_i32 : i32 to index
    %c0_41 = arith.constant 0 : index
    %c0_42 = arith.constant 0 : index
    %161 = vector.load %arg6[%160, %c0_41, %c0_42] : memref<8x2x128xbf16, #tpu.memory_space<vmem>>, vector<1x2x128xbf16>
    %162 = vector.shape_cast %161 : vector<1x2x128xbf16> to vector<2x128xbf16>
    %163 = vector.shape_cast %159 : vector<2x128xbf16> to vector<1x2x128xbf16>
    tpu.vector_store %arg6[%160, %c0_41, %c0_42], %163 {strides = array<i32>} : memref<8x2x128xbf16, #tpu.memory_space<vmem>>, vector<1x2x128xbf16>,
    %c7_i32_43 = arith.constant 7 : i32
    %164 = arith.subi %c7_i32_43, %c1_i32 : i32
    %165 = arith.addi %8, %164 : i32
    %166 = vector.broadcast %165 : i32 to vector<2x1xi32>
    %167 = arith.cmpi slt, %166, %3 : vector<2x1xi32>
    %168 = arith.index_cast %164 : i32 to index
    %c0_44 = arith.constant 0 : index
    %c0_45 = arith.constant 0 : index
    %169 = vector.load %arg2[%168, %c0_44, %c0_45] : memref<8x2x512xbf16, #tpu.memory_space<vmem>>, vector<1x2x512xbf16>
    %170 = vector.shape_cast %169 : vector<1x2x512xbf16> to vector<2x512xbf16>
    %171 = arith.extf %170 : vector<2x512xbf16> to vector<2x512xf32>
    %172 = arith.truncf %101 : vector<2x128xf32> to vector<2x128xbf16>
    %cst_46 = arith.constant dense<0.000000e+00> : vector<2x512xf32>
    %173 = tpu.matmul %172, %5, %cst_46 {dimension_numbers = #tpu.dot_dimension_numbers<[1], [0], [0], [1], [0, 0, 1, 1], [], []>} : vector<2x128xbf16>, vector<128x512xbf16>, vector<2x512xf32> -> vector<2x512xf32>
    %174 = arith.addf %171, %173 : vector<2x512xf32>
    %175 = vector.extract_strided_slice %174 {offsets = [0, 0], sizes = [2, 128], strides = [1, 1]} : vector<2x512xf32> to vector<2x128xf32>
    %176 = arith.negf %175 : vector<2x128xf32>
    %177 = math.exp %176 : vector<2x128xf32>
    %cst_47 = arith.constant 1.000000e+00 : f32
    %178 = vector.broadcast %cst_47 : f32 to vector<2x128xf32>
    %179 = arith.addf %178, %177 : vector<2x128xf32>
    %180 = arith.divf %178, %179 : vector<2x128xf32>
    %181 = vector.extract_strided_slice %174 {offsets = [0, 128], sizes = [2, 128], strides = [1, 1]} : vector<2x512xf32> to vector<2x128xf32>
    %182 = arith.negf %181 : vector<2x128xf32>
    %183 = math.exp %182 : vector<2x128xf32>
    %cst_48 = arith.constant 1.000000e+00 : f32
    %184 = vector.broadcast %cst_48 : f32 to vector<2x128xf32>
    %185 = arith.addf %184, %183 : vector<2x128xf32>
    %186 = arith.divf %184, %185 : vector<2x128xf32>
    %187 = vector.extract_strided_slice %174 {offsets = [0, 256], sizes = [2, 128], strides = [1, 1]} : vector<2x512xf32> to vector<2x128xf32>
    %188 = math.tanh %187 : vector<2x128xf32>
    %189 = vector.extract_strided_slice %174 {offsets = [0, 384], sizes = [2, 128], strides = [1, 1]} : vector<2x512xf32> to vector<2x128xf32>
    %190 = arith.negf %189 : vector<2x128xf32>
    %191 = math.exp %190 : vector<2x128xf32>
    %cst_49 = arith.constant 1.000000e+00 : f32
    %192 = vector.broadcast %cst_49 : f32 to vector<2x128xf32>
    %193 = arith.addf %192, %191 : vector<2x128xf32>
    %194 = arith.divf %192, %193 : vector<2x128xf32>
    %195 = arith.mulf %186, %104 : vector<2x128xf32>
    %196 = arith.mulf %180, %188 : vector<2x128xf32>
    %197 = arith.addf %195, %196 : vector<2x128xf32>
    %198 = math.tanh %197 : vector<2x128xf32>
    %199 = arith.mulf %194, %198 : vector<2x128xf32>
    %200 = vector.shape_cast %167 : vector<2x1xi1> to vector<2x1xi1>
    %201 = vector.broadcast %200 : vector<2x1xi1> to vector<2x128xi1>
    %202 = arith.select %201, %199, %101 : vector<2x128xi1>, vector<2x128xf32>
    %203 = vector.shape_cast %167 : vector<2x1xi1> to vector<2x1xi1>
    %204 = vector.broadcast %203 : vector<2x1xi1> to vector<2x128xi1>
    %205 = arith.select %204, %197, %104 : vector<2x128xi1>, vector<2x128xf32>
    %cst_50 = arith.constant 0.000000e+00 : f32
    %206 = vector.shape_cast %167 : vector<2x1xi1> to vector<2x1xi1>
    %207 = vector.broadcast %206 : vector<2x1xi1> to vector<2x128xi1>
    %208 = vector.broadcast %cst_50 : f32 to vector<2x128xf32>
    %209 = arith.select %207, %202, %208 : vector<2x128xi1>, vector<2x128xf32>
    %210 = arith.truncf %209 : vector<2x128xf32> to vector<2x128xbf16>
    %211 = arith.index_cast %164 : i32 to index
    %c0_51 = arith.constant 0 : index
    %c0_52 = arith.constant 0 : index
    %212 = vector.load %arg7[%211, %c0_51, %c0_52] : memref<8x2x128xbf16, #tpu.memory_space<vmem>>, vector<1x2x128xbf16>
    %213 = vector.shape_cast %212 : vector<1x2x128xbf16> to vector<2x128xbf16>
    %214 = vector.shape_cast %210 : vector<2x128xbf16> to vector<1x2x128xbf16>
    tpu.vector_store %arg7[%211, %c0_51, %c0_52], %214 {strides = array<i32>} : memref<8x2x128xbf16, #tpu.memory_space<vmem>>, vector<1x2x128xbf16>,
    %c2_i32 = arith.constant 2 : i32
    %215 = arith.addi %6, %c2_i32 : i32
    %216 = vector.broadcast %215 : i32 to vector<2x1xi32>
    %217 = arith.cmpi slt, %216, %3 : vector<2x1xi32>
    %218 = arith.index_cast %c2_i32 : i32 to index
    %c0_53 = arith.constant 0 : index
    %c0_54 = arith.constant 0 : index
    %219 = vector.load %arg1[%218, %c0_53, %c0_54] : memref<8x2x512xbf16, #tpu.memory_space<vmem>>, vector<1x2x512xbf16>
    %220 = vector.shape_cast %219 : vector<1x2x512xbf16> to vector<2x512xbf16>
    %221 = arith.extf %220 : vector<2x512xbf16> to vector<2x512xf32>
    %222 = arith.truncf %151 : vector<2x128xf32> to vector<2x128xbf16>
    %cst_55 = arith.constant dense<0.000000e+00> : vector<2x512xf32>
    %223 = tpu.matmul %222, %4, %cst_55 {dimension_numbers = #tpu.dot_dimension_numbers<[1], [0], [0], [1], [0, 0, 1, 1], [], []>} : vector<2x128xbf16>, vector<128x512xbf16>, vector<2x512xf32> -> vector<2x512xf32>
    %224 = arith.addf %221, %223 : vector<2x512xf32>
    %225 = vector.extract_strided_slice %224 {offsets = [0, 0], sizes = [2, 128], strides = [1, 1]} : vector<2x512xf32> to vector<2x128xf32>
    %226 = arith.negf %225 : vector<2x128xf32>
    %227 = math.exp %226 : vector<2x128xf32>
    %cst_56 = arith.constant 1.000000e+00 : f32
    %228 = vector.broadcast %cst_56 : f32 to vector<2x128xf32>
    %229 = arith.addf %228, %227 : vector<2x128xf32>
    %230 = arith.divf %228, %229 : vector<2x128xf32>
    %231 = vector.extract_strided_slice %224 {offsets = [0, 128], sizes = [2, 128], strides = [1, 1]} : vector<2x512xf32> to vector<2x128xf32>
    %232 = arith.negf %231 : vector<2x128xf32>
    %233 = math.exp %232 : vector<2x128xf32>
    %cst_57 = arith.constant 1.000000e+00 : f32
    %234 = vector.broadcast %cst_57 : f32 to vector<2x128xf32>
    %235 = arith.addf %234, %233 : vector<2x128xf32>
    %236 = arith.divf %234, %235 : vector<2x128xf32>
    %237 = vector.extract_strided_slice %224 {offsets = [0, 256], sizes = [2, 128], strides = [1, 1]} : vector<2x512xf32> to vector<2x128xf32>
    %238 = math.tanh %237 : vector<2x128xf32>
    %239 = vector.extract_strided_slice %224 {offsets = [0, 384], sizes = [2, 128], strides = [1, 1]} : vector<2x512xf32> to vector<2x128xf32>
    %240 = arith.negf %239 : vector<2x128xf32>
    %241 = math.exp %240 : vector<2x128xf32>
    %cst_58 = arith.constant 1.000000e+00 : f32
    %242 = vector.broadcast %cst_58 : f32 to vector<2x128xf32>
    %243 = arith.addf %242, %241 : vector<2x128xf32>
    %244 = arith.divf %242, %243 : vector<2x128xf32>
    %245 = arith.mulf %236, %154 : vector<2x128xf32>
    %246 = arith.mulf %230, %238 : vector<2x128xf32>
    %247 = arith.addf %245, %246 : vector<2x128xf32>
    %248 = math.tanh %247 : vector<2x128xf32>
    %249 = arith.mulf %244, %248 : vector<2x128xf32>
    %250 = vector.shape_cast %217 : vector<2x1xi1> to vector<2x1xi1>
    %251 = vector.broadcast %250 : vector<2x1xi1> to vector<2x128xi1>
    %252 = arith.select %251, %249, %151 : vector<2x128xi1>, vector<2x128xf32>
    %253 = vector.shape_cast %217 : vector<2x1xi1> to vector<2x1xi1>
    %254 = vector.broadcast %253 : vector<2x1xi1> to vector<2x128xi1>
    %255 = arith.select %254, %247, %154 : vector<2x128xi1>, vector<2x128xf32>
    %cst_59 = arith.constant 0.000000e+00 : f32
    %256 = vector.shape_cast %217 : vector<2x1xi1> to vector<2x1xi1>
    %257 = vector.broadcast %256 : vector<2x1xi1> to vector<2x128xi1>
    %258 = vector.broadcast %cst_59 : f32 to vector<2x128xf32>
    %259 = arith.select %257, %252, %258 : vector<2x128xi1>, vector<2x128xf32>
    %260 = arith.truncf %259 : vector<2x128xf32> to vector<2x128xbf16>
    %261 = arith.index_cast %c2_i32 : i32 to index
    %c0_60 = arith.constant 0 : index
    %c0_61 = arith.constant 0 : index
    %262 = vector.load %arg6[%261, %c0_60, %c0_61] : memref<8x2x128xbf16, #tpu.memory_space<vmem>>, vector<1x2x128xbf16>
    %263 = vector.shape_cast %262 : vector<1x2x128xbf16> to vector<2x128xbf16>
    %264 = vector.shape_cast %260 : vector<2x128xbf16> to vector<1x2x128xbf16>
    tpu.vector_store %arg6[%261, %c0_60, %c0_61], %264 {strides = array<i32>} : memref<8x2x128xbf16, #tpu.memory_space<vmem>>, vector<1x2x128xbf16>,
    %c7_i32_62 = arith.constant 7 : i32
    %265 = arith.subi %c7_i32_62, %c2_i32 : i32
    %266 = arith.addi %8, %265 : i32
    %267 = vector.broadcast %266 : i32 to vector<2x1xi32>
    %268 = arith.cmpi slt, %267, %3 : vector<2x1xi32>
    %269 = arith.index_cast %265 : i32 to index
    %c0_63 = arith.constant 0 : index
    %c0_64 = arith.constant 0 : index
    %270 = vector.load %arg2[%269, %c0_63, %c0_64] : memref<8x2x512xbf16, #tpu.memory_space<vmem>>, vector<1x2x512xbf16>
    %271 = vector.shape_cast %270 : vector<1x2x512xbf16> to vector<2x512xbf16>
    %272 = arith.extf %271 : vector<2x512xbf16> to vector<2x512xf32>
    %273 = arith.truncf %202 : vector<2x128xf32> to vector<2x128xbf16>
    %cst_65 = arith.constant dense<0.000000e+00> : vector<2x512xf32>
    %274 = tpu.matmul %273, %5, %cst_65 {dimension_numbers = #tpu.dot_dimension_numbers<[1], [0], [0], [1], [0, 0, 1, 1], [], []>} : vector<2x128xbf16>, vector<128x512xbf16>, vector<2x512xf32> -> vector<2x512xf32>
    %275 = arith.addf %272, %274 : vector<2x512xf32>
    %276 = vector.extract_strided_slice %275 {offsets = [0, 0], sizes = [2, 128], strides = [1, 1]} : vector<2x512xf32> to vector<2x128xf32>
    %277 = arith.negf %276 : vector<2x128xf32>
    %278 = math.exp %277 : vector<2x128xf32>
    %cst_66 = arith.constant 1.000000e+00 : f32
    %279 = vector.broadcast %cst_66 : f32 to vector<2x128xf32>
    %280 = arith.addf %279, %278 : vector<2x128xf32>
    %281 = arith.divf %279, %280 : vector<2x128xf32>
    %282 = vector.extract_strided_slice %275 {offsets = [0, 128], sizes = [2, 128], strides = [1, 1]} : vector<2x512xf32> to vector<2x128xf32>
    %283 = arith.negf %282 : vector<2x128xf32>
    %284 = math.exp %283 : vector<2x128xf32>
    %cst_67 = arith.constant 1.000000e+00 : f32
    %285 = vector.broadcast %cst_67 : f32 to vector<2x128xf32>
    %286 = arith.addf %285, %284 : vector<2x128xf32>
    %287 = arith.divf %285, %286 : vector<2x128xf32>
    %288 = vector.extract_strided_slice %275 {offsets = [0, 256], sizes = [2, 128], strides = [1, 1]} : vector<2x512xf32> to vector<2x128xf32>
    %289 = math.tanh %288 : vector<2x128xf32>
    %290 = vector.extract_strided_slice %275 {offsets = [0, 384], sizes = [2, 128], strides = [1, 1]} : vector<2x512xf32> to vector<2x128xf32>
    %291 = arith.negf %290 : vector<2x128xf32>
    %292 = math.exp %291 : vector<2x128xf32>
    %cst_68 = arith.constant 1.000000e+00 : f32
    %293 = vector.broadcast %cst_68 : f32 to vector<2x128xf32>
    %294 = arith.addf %293, %292 : vector<2x128xf32>
    %295 = arith.divf %293, %294 : vector<2x128xf32>
    %296 = arith.mulf %287, %205 : vector<2x128xf32>
    %297 = arith.mulf %281, %289 : vector<2x128xf32>
    %298 = arith.addf %296, %297 : vector<2x128xf32>
    %299 = math.tanh %298 : vector<2x128xf32>
    %300 = arith.mulf %295, %299 : vector<2x128xf32>
    %301 = vector.shape_cast %268 : vector<2x1xi1> to vector<2x1xi1>
    %302 = vector.broadcast %301 : vector<2x1xi1> to vector<2x128xi1>
    %303 = arith.select %302, %300, %202 : vector<2x128xi1>, vector<2x128xf32>
    %304 = vector.shape_cast %268 : vector<2x1xi1> to vector<2x1xi1>
    %305 = vector.broadcast %304 : vector<2x1xi1> to vector<2x128xi1>
    %306 = arith.select %305, %298, %205 : vector<2x128xi1>, vector<2x128xf32>
    %cst_69 = arith.constant 0.000000e+00 : f32
    %307 = vector.shape_cast %268 : vector<2x1xi1> to vector<2x1xi1>
    %308 = vector.broadcast %307 : vector<2x1xi1> to vector<2x128xi1>
    %309 = vector.broadcast %cst_69 : f32 to vector<2x128xf32>
    %310 = arith.select %308, %303, %309 : vector<2x128xi1>, vector<2x128xf32>
    %311 = arith.truncf %310 : vector<2x128xf32> to vector<2x128xbf16>
    %312 = arith.index_cast %265 : i32 to index
    %c0_70 = arith.constant 0 : index
    %c0_71 = arith.constant 0 : index
    %313 = vector.load %arg7[%312, %c0_70, %c0_71] : memref<8x2x128xbf16, #tpu.memory_space<vmem>>, vector<1x2x128xbf16>
    %314 = vector.shape_cast %313 : vector<1x2x128xbf16> to vector<2x128xbf16>
    %315 = vector.shape_cast %311 : vector<2x128xbf16> to vector<1x2x128xbf16>
    tpu.vector_store %arg7[%312, %c0_70, %c0_71], %315 {strides = array<i32>} : memref<8x2x128xbf16, #tpu.memory_space<vmem>>, vector<1x2x128xbf16>,
    %c3_i32 = arith.constant 3 : i32
    %316 = arith.addi %6, %c3_i32 : i32
    %317 = vector.broadcast %316 : i32 to vector<2x1xi32>
    %318 = arith.cmpi slt, %317, %3 : vector<2x1xi32>
    %319 = arith.index_cast %c3_i32 : i32 to index
    %c0_72 = arith.constant 0 : index
    %c0_73 = arith.constant 0 : index
    %320 = vector.load %arg1[%319, %c0_72, %c0_73] : memref<8x2x512xbf16, #tpu.memory_space<vmem>>, vector<1x2x512xbf16>
    %321 = vector.shape_cast %320 : vector<1x2x512xbf16> to vector<2x512xbf16>
    %322 = arith.extf %321 : vector<2x512xbf16> to vector<2x512xf32>
    %323 = arith.truncf %252 : vector<2x128xf32> to vector<2x128xbf16>
    %cst_74 = arith.constant dense<0.000000e+00> : vector<2x512xf32>
    %324 = tpu.matmul %323, %4, %cst_74 {dimension_numbers = #tpu.dot_dimension_numbers<[1], [0], [0], [1], [0, 0, 1, 1], [], []>} : vector<2x128xbf16>, vector<128x512xbf16>, vector<2x512xf32> -> vector<2x512xf32>
    %325 = arith.addf %322, %324 : vector<2x512xf32>
    %326 = vector.extract_strided_slice %325 {offsets = [0, 0], sizes = [2, 128], strides = [1, 1]} : vector<2x512xf32> to vector<2x128xf32>
    %327 = arith.negf %326 : vector<2x128xf32>
    %328 = math.exp %327 : vector<2x128xf32>
    %cst_75 = arith.constant 1.000000e+00 : f32
    %329 = vector.broadcast %cst_75 : f32 to vector<2x128xf32>
    %330 = arith.addf %329, %328 : vector<2x128xf32>
    %331 = arith.divf %329, %330 : vector<2x128xf32>
    %332 = vector.extract_strided_slice %325 {offsets = [0, 128], sizes = [2, 128], strides = [1, 1]} : vector<2x512xf32> to vector<2x128xf32>
    %333 = arith.negf %332 : vector<2x128xf32>
    %334 = math.exp %333 : vector<2x128xf32>
    %cst_76 = arith.constant 1.000000e+00 : f32
    %335 = vector.broadcast %cst_76 : f32 to vector<2x128xf32>
    %336 = arith.addf %335, %334 : vector<2x128xf32>
    %337 = arith.divf %335, %336 : vector<2x128xf32>
    %338 = vector.extract_strided_slice %325 {offsets = [0, 256], sizes = [2, 128], strides = [1, 1]} : vector<2x512xf32> to vector<2x128xf32>
    %339 = math.tanh %338 : vector<2x128xf32>
    %340 = vector.extract_strided_slice %325 {offsets = [0, 384], sizes = [2, 128], strides = [1, 1]} : vector<2x512xf32> to vector<2x128xf32>
    %341 = arith.negf %340 : vector<2x128xf32>
    %342 = math.exp %341 : vector<2x128xf32>
    %cst_77 = arith.constant 1.000000e+00 : f32
    %343 = vector.broadcast %cst_77 : f32 to vector<2x128xf32>
    %344 = arith.addf %343, %342 : vector<2x128xf32>
    %345 = arith.divf %343, %344 : vector<2x128xf32>
    %346 = arith.mulf %337, %255 : vector<2x128xf32>
    %347 = arith.mulf %331, %339 : vector<2x128xf32>
    %348 = arith.addf %346, %347 : vector<2x128xf32>
    %349 = math.tanh %348 : vector<2x128xf32>
    %350 = arith.mulf %345, %349 : vector<2x128xf32>
    %351 = vector.shape_cast %318 : vector<2x1xi1> to vector<2x1xi1>
    %352 = vector.broadcast %351 : vector<2x1xi1> to vector<2x128xi1>
    %353 = arith.select %352, %350, %252 : vector<2x128xi1>, vector<2x128xf32>
    %354 = vector.shape_cast %318 : vector<2x1xi1> to vector<2x1xi1>
    %355 = vector.broadcast %354 : vector<2x1xi1> to vector<2x128xi1>
    %356 = arith.select %355, %348, %255 : vector<2x128xi1>, vector<2x128xf32>
    %cst_78 = arith.constant 0.000000e+00 : f32
    %357 = vector.shape_cast %318 : vector<2x1xi1> to vector<2x1xi1>
    %358 = vector.broadcast %357 : vector<2x1xi1> to vector<2x128xi1>
    %359 = vector.broadcast %cst_78 : f32 to vector<2x128xf32>
    %360 = arith.select %358, %353, %359 : vector<2x128xi1>, vector<2x128xf32>
    %361 = arith.truncf %360 : vector<2x128xf32> to vector<2x128xbf16>
    %362 = arith.index_cast %c3_i32 : i32 to index
    %c0_79 = arith.constant 0 : index
    %c0_80 = arith.constant 0 : index
    %363 = vector.load %arg6[%362, %c0_79, %c0_80] : memref<8x2x128xbf16, #tpu.memory_space<vmem>>, vector<1x2x128xbf16>
    %364 = vector.shape_cast %363 : vector<1x2x128xbf16> to vector<2x128xbf16>
    %365 = vector.shape_cast %361 : vector<2x128xbf16> to vector<1x2x128xbf16>
    tpu.vector_store %arg6[%362, %c0_79, %c0_80], %365 {strides = array<i32>} : memref<8x2x128xbf16, #tpu.memory_space<vmem>>, vector<1x2x128xbf16>,
    %c7_i32_81 = arith.constant 7 : i32
    %366 = arith.subi %c7_i32_81, %c3_i32 : i32
    %367 = arith.addi %8, %366 : i32
    %368 = vector.broadcast %367 : i32 to vector<2x1xi32>
    %369 = arith.cmpi slt, %368, %3 : vector<2x1xi32>
    %370 = arith.index_cast %366 : i32 to index
    %c0_82 = arith.constant 0 : index
    %c0_83 = arith.constant 0 : index
    %371 = vector.load %arg2[%370, %c0_82, %c0_83] : memref<8x2x512xbf16, #tpu.memory_space<vmem>>, vector<1x2x512xbf16>
    %372 = vector.shape_cast %371 : vector<1x2x512xbf16> to vector<2x512xbf16>
    %373 = arith.extf %372 : vector<2x512xbf16> to vector<2x512xf32>
    %374 = arith.truncf %303 : vector<2x128xf32> to vector<2x128xbf16>
    %cst_84 = arith.constant dense<0.000000e+00> : vector<2x512xf32>
    %375 = tpu.matmul %374, %5, %cst_84 {dimension_numbers = #tpu.dot_dimension_numbers<[1], [0], [0], [1], [0, 0, 1, 1], [], []>} : vector<2x128xbf16>, vector<128x512xbf16>, vector<2x512xf32> -> vector<2x512xf32>
    %376 = arith.addf %373, %375 : vector<2x512xf32>
    %377 = vector.extract_strided_slice %376 {offsets = [0, 0], sizes = [2, 128], strides = [1, 1]} : vector<2x512xf32> to vector<2x128xf32>
    %378 = arith.negf %377 : vector<2x128xf32>
    %379 = math.exp %378 : vector<2x128xf32>
    %cst_85 = arith.constant 1.000000e+00 : f32
    %380 = vector.broadcast %cst_85 : f32 to vector<2x128xf32>
    %381 = arith.addf %380, %379 : vector<2x128xf32>
    %382 = arith.divf %380, %381 : vector<2x128xf32>
    %383 = vector.extract_strided_slice %376 {offsets = [0, 128], sizes = [2, 128], strides = [1, 1]} : vector<2x512xf32> to vector<2x128xf32>
    %384 = arith.negf %383 : vector<2x128xf32>
    %385 = math.exp %384 : vector<2x128xf32>
    %cst_86 = arith.constant 1.000000e+00 : f32
    %386 = vector.broadcast %cst_86 : f32 to vector<2x128xf32>
    %387 = arith.addf %386, %385 : vector<2x128xf32>
    %388 = arith.divf %386, %387 : vector<2x128xf32>
    %389 = vector.extract_strided_slice %376 {offsets = [0, 256], sizes = [2, 128], strides = [1, 1]} : vector<2x512xf32> to vector<2x128xf32>
    %390 = math.tanh %389 : vector<2x128xf32>
    %391 = vector.extract_strided_slice %376 {offsets = [0, 384], sizes = [2, 128], strides = [1, 1]} : vector<2x512xf32> to vector<2x128xf32>
    %392 = arith.negf %391 : vector<2x128xf32>
    %393 = math.exp %392 : vector<2x128xf32>
    %cst_87 = arith.constant 1.000000e+00 : f32
    %394 = vector.broadcast %cst_87 : f32 to vector<2x128xf32>
    %395 = arith.addf %394, %393 : vector<2x128xf32>
    %396 = arith.divf %394, %395 : vector<2x128xf32>
    %397 = arith.mulf %388, %306 : vector<2x128xf32>
    %398 = arith.mulf %382, %390 : vector<2x128xf32>
    %399 = arith.addf %397, %398 : vector<2x128xf32>
    %400 = math.tanh %399 : vector<2x128xf32>
    %401 = arith.mulf %396, %400 : vector<2x128xf32>
    %402 = vector.shape_cast %369 : vector<2x1xi1> to vector<2x1xi1>
    %403 = vector.broadcast %402 : vector<2x1xi1> to vector<2x128xi1>
    %404 = arith.select %403, %401, %303 : vector<2x128xi1>, vector<2x128xf32>
    %405 = vector.shape_cast %369 : vector<2x1xi1> to vector<2x1xi1>
    %406 = vector.broadcast %405 : vector<2x1xi1> to vector<2x128xi1>
    %407 = arith.select %406, %399, %306 : vector<2x128xi1>, vector<2x128xf32>
    %cst_88 = arith.constant 0.000000e+00 : f32
    %408 = vector.shape_cast %369 : vector<2x1xi1> to vector<2x1xi1>
    %409 = vector.broadcast %408 : vector<2x1xi1> to vector<2x128xi1>
    %410 = vector.broadcast %cst_88 : f32 to vector<2x128xf32>
    %411 = arith.select %409, %404, %410 : vector<2x128xi1>, vector<2x128xf32>
    %412 = arith.truncf %411 : vector<2x128xf32> to vector<2x128xbf16>
    %413 = arith.index_cast %366 : i32 to index
    %c0_89 = arith.constant 0 : index
    %c0_90 = arith.constant 0 : index
    %414 = vector.load %arg7[%413, %c0_89, %c0_90] : memref<8x2x128xbf16, #tpu.memory_space<vmem>>, vector<1x2x128xbf16>
    %415 = vector.shape_cast %414 : vector<1x2x128xbf16> to vector<2x128xbf16>
    %416 = vector.shape_cast %412 : vector<2x128xbf16> to vector<1x2x128xbf16>
    tpu.vector_store %arg7[%413, %c0_89, %c0_90], %416 {strides = array<i32>} : memref<8x2x128xbf16, #tpu.memory_space<vmem>>, vector<1x2x128xbf16>,
    %c4_i32 = arith.constant 4 : i32
    %417 = arith.addi %6, %c4_i32 : i32
    %418 = vector.broadcast %417 : i32 to vector<2x1xi32>
    %419 = arith.cmpi slt, %418, %3 : vector<2x1xi32>
    %420 = arith.index_cast %c4_i32 : i32 to index
    %c0_91 = arith.constant 0 : index
    %c0_92 = arith.constant 0 : index
    %421 = vector.load %arg1[%420, %c0_91, %c0_92] : memref<8x2x512xbf16, #tpu.memory_space<vmem>>, vector<1x2x512xbf16>
    %422 = vector.shape_cast %421 : vector<1x2x512xbf16> to vector<2x512xbf16>
    %423 = arith.extf %422 : vector<2x512xbf16> to vector<2x512xf32>
    %424 = arith.truncf %353 : vector<2x128xf32> to vector<2x128xbf16>
    %cst_93 = arith.constant dense<0.000000e+00> : vector<2x512xf32>
    %425 = tpu.matmul %424, %4, %cst_93 {dimension_numbers = #tpu.dot_dimension_numbers<[1], [0], [0], [1], [0, 0, 1, 1], [], []>} : vector<2x128xbf16>, vector<128x512xbf16>, vector<2x512xf32> -> vector<2x512xf32>
    %426 = arith.addf %423, %425 : vector<2x512xf32>
    %427 = vector.extract_strided_slice %426 {offsets = [0, 0], sizes = [2, 128], strides = [1, 1]} : vector<2x512xf32> to vector<2x128xf32>
    %428 = arith.negf %427 : vector<2x128xf32>
    %429 = math.exp %428 : vector<2x128xf32>
    %cst_94 = arith.constant 1.000000e+00 : f32
    %430 = vector.broadcast %cst_94 : f32 to vector<2x128xf32>
    %431 = arith.addf %430, %429 : vector<2x128xf32>
    %432 = arith.divf %430, %431 : vector<2x128xf32>
    %433 = vector.extract_strided_slice %426 {offsets = [0, 128], sizes = [2, 128], strides = [1, 1]} : vector<2x512xf32> to vector<2x128xf32>
    %434 = arith.negf %433 : vector<2x128xf32>
    %435 = math.exp %434 : vector<2x128xf32>
    %cst_95 = arith.constant 1.000000e+00 : f32
    %436 = vector.broadcast %cst_95 : f32 to vector<2x128xf32>
    %437 = arith.addf %436, %435 : vector<2x128xf32>
    %438 = arith.divf %436, %437 : vector<2x128xf32>
    %439 = vector.extract_strided_slice %426 {offsets = [0, 256], sizes = [2, 128], strides = [1, 1]} : vector<2x512xf32> to vector<2x128xf32>
    %440 = math.tanh %439 : vector<2x128xf32>
    %441 = vector.extract_strided_slice %426 {offsets = [0, 384], sizes = [2, 128], strides = [1, 1]} : vector<2x512xf32> to vector<2x128xf32>
    %442 = arith.negf %441 : vector<2x128xf32>
    %443 = math.exp %442 : vector<2x128xf32>
    %cst_96 = arith.constant 1.000000e+00 : f32
    %444 = vector.broadcast %cst_96 : f32 to vector<2x128xf32>
    %445 = arith.addf %444, %443 : vector<2x128xf32>
    %446 = arith.divf %444, %445 : vector<2x128xf32>
    %447 = arith.mulf %438, %356 : vector<2x128xf32>
    %448 = arith.mulf %432, %440 : vector<2x128xf32>
    %449 = arith.addf %447, %448 : vector<2x128xf32>
    %450 = math.tanh %449 : vector<2x128xf32>
    %451 = arith.mulf %446, %450 : vector<2x128xf32>
    %452 = vector.shape_cast %419 : vector<2x1xi1> to vector<2x1xi1>
    %453 = vector.broadcast %452 : vector<2x1xi1> to vector<2x128xi1>
    %454 = arith.select %453, %451, %353 : vector<2x128xi1>, vector<2x128xf32>
    %455 = vector.shape_cast %419 : vector<2x1xi1> to vector<2x1xi1>
    %456 = vector.broadcast %455 : vector<2x1xi1> to vector<2x128xi1>
    %457 = arith.select %456, %449, %356 : vector<2x128xi1>, vector<2x128xf32>
    %cst_97 = arith.constant 0.000000e+00 : f32
    %458 = vector.shape_cast %419 : vector<2x1xi1> to vector<2x1xi1>
    %459 = vector.broadcast %458 : vector<2x1xi1> to vector<2x128xi1>
    %460 = vector.broadcast %cst_97 : f32 to vector<2x128xf32>
    %461 = arith.select %459, %454, %460 : vector<2x128xi1>, vector<2x128xf32>
    %462 = arith.truncf %461 : vector<2x128xf32> to vector<2x128xbf16>
    %463 = arith.index_cast %c4_i32 : i32 to index
    %c0_98 = arith.constant 0 : index
    %c0_99 = arith.constant 0 : index
    %464 = vector.load %arg6[%463, %c0_98, %c0_99] : memref<8x2x128xbf16, #tpu.memory_space<vmem>>, vector<1x2x128xbf16>
    %465 = vector.shape_cast %464 : vector<1x2x128xbf16> to vector<2x128xbf16>
    %466 = vector.shape_cast %462 : vector<2x128xbf16> to vector<1x2x128xbf16>
    tpu.vector_store %arg6[%463, %c0_98, %c0_99], %466 {strides = array<i32>} : memref<8x2x128xbf16, #tpu.memory_space<vmem>>, vector<1x2x128xbf16>,
    %c7_i32_100 = arith.constant 7 : i32
    %467 = arith.subi %c7_i32_100, %c4_i32 : i32
    %468 = arith.addi %8, %467 : i32
    %469 = vector.broadcast %468 : i32 to vector<2x1xi32>
    %470 = arith.cmpi slt, %469, %3 : vector<2x1xi32>
    %471 = arith.index_cast %467 : i32 to index
    %c0_101 = arith.constant 0 : index
    %c0_102 = arith.constant 0 : index
    %472 = vector.load %arg2[%471, %c0_101, %c0_102] : memref<8x2x512xbf16, #tpu.memory_space<vmem>>, vector<1x2x512xbf16>
    %473 = vector.shape_cast %472 : vector<1x2x512xbf16> to vector<2x512xbf16>
    %474 = arith.extf %473 : vector<2x512xbf16> to vector<2x512xf32>
    %475 = arith.truncf %404 : vector<2x128xf32> to vector<2x128xbf16>
    %cst_103 = arith.constant dense<0.000000e+00> : vector<2x512xf32>
    %476 = tpu.matmul %475, %5, %cst_103 {dimension_numbers = #tpu.dot_dimension_numbers<[1], [0], [0], [1], [0, 0, 1, 1], [], []>} : vector<2x128xbf16>, vector<128x512xbf16>, vector<2x512xf32> -> vector<2x512xf32>
    %477 = arith.addf %474, %476 : vector<2x512xf32>
    %478 = vector.extract_strided_slice %477 {offsets = [0, 0], sizes = [2, 128], strides = [1, 1]} : vector<2x512xf32> to vector<2x128xf32>
    %479 = arith.negf %478 : vector<2x128xf32>
    %480 = math.exp %479 : vector<2x128xf32>
    %cst_104 = arith.constant 1.000000e+00 : f32
    %481 = vector.broadcast %cst_104 : f32 to vector<2x128xf32>
    %482 = arith.addf %481, %480 : vector<2x128xf32>
    %483 = arith.divf %481, %482 : vector<2x128xf32>
    %484 = vector.extract_strided_slice %477 {offsets = [0, 128], sizes = [2, 128], strides = [1, 1]} : vector<2x512xf32> to vector<2x128xf32>
    %485 = arith.negf %484 : vector<2x128xf32>
    %486 = math.exp %485 : vector<2x128xf32>
    %cst_105 = arith.constant 1.000000e+00 : f32
    %487 = vector.broadcast %cst_105 : f32 to vector<2x128xf32>
    %488 = arith.addf %487, %486 : vector<2x128xf32>
    %489 = arith.divf %487, %488 : vector<2x128xf32>
    %490 = vector.extract_strided_slice %477 {offsets = [0, 256], sizes = [2, 128], strides = [1, 1]} : vector<2x512xf32> to vector<2x128xf32>
    %491 = math.tanh %490 : vector<2x128xf32>
    %492 = vector.extract_strided_slice %477 {offsets = [0, 384], sizes = [2, 128], strides = [1, 1]} : vector<2x512xf32> to vector<2x128xf32>
    %493 = arith.negf %492 : vector<2x128xf32>
    %494 = math.exp %493 : vector<2x128xf32>
    %cst_106 = arith.constant 1.000000e+00 : f32
    %495 = vector.broadcast %cst_106 : f32 to vector<2x128xf32>
    %496 = arith.addf %495, %494 : vector<2x128xf32>
    %497 = arith.divf %495, %496 : vector<2x128xf32>
    %498 = arith.mulf %489, %407 : vector<2x128xf32>
    %499 = arith.mulf %483, %491 : vector<2x128xf32>
    %500 = arith.addf %498, %499 : vector<2x128xf32>
    %501 = math.tanh %500 : vector<2x128xf32>
    %502 = arith.mulf %497, %501 : vector<2x128xf32>
    %503 = vector.shape_cast %470 : vector<2x1xi1> to vector<2x1xi1>
    %504 = vector.broadcast %503 : vector<2x1xi1> to vector<2x128xi1>
    %505 = arith.select %504, %502, %404 : vector<2x128xi1>, vector<2x128xf32>
    %506 = vector.shape_cast %470 : vector<2x1xi1> to vector<2x1xi1>
    %507 = vector.broadcast %506 : vector<2x1xi1> to vector<2x128xi1>
    %508 = arith.select %507, %500, %407 : vector<2x128xi1>, vector<2x128xf32>
    %cst_107 = arith.constant 0.000000e+00 : f32
    %509 = vector.shape_cast %470 : vector<2x1xi1> to vector<2x1xi1>
    %510 = vector.broadcast %509 : vector<2x1xi1> to vector<2x128xi1>
    %511 = vector.broadcast %cst_107 : f32 to vector<2x128xf32>
    %512 = arith.select %510, %505, %511 : vector<2x128xi1>, vector<2x128xf32>
    %513 = arith.truncf %512 : vector<2x128xf32> to vector<2x128xbf16>
    %514 = arith.index_cast %467 : i32 to index
    %c0_108 = arith.constant 0 : index
    %c0_109 = arith.constant 0 : index
    %515 = vector.load %arg7[%514, %c0_108, %c0_109] : memref<8x2x128xbf16, #tpu.memory_space<vmem>>, vector<1x2x128xbf16>
    %516 = vector.shape_cast %515 : vector<1x2x128xbf16> to vector<2x128xbf16>
    %517 = vector.shape_cast %513 : vector<2x128xbf16> to vector<1x2x128xbf16>
    tpu.vector_store %arg7[%514, %c0_108, %c0_109], %517 {strides = array<i32>} : memref<8x2x128xbf16, #tpu.memory_space<vmem>>, vector<1x2x128xbf16>,
    %c5_i32 = arith.constant 5 : i32
    %518 = arith.addi %6, %c5_i32 : i32
    %519 = vector.broadcast %518 : i32 to vector<2x1xi32>
    %520 = arith.cmpi slt, %519, %3 : vector<2x1xi32>
    %521 = arith.index_cast %c5_i32 : i32 to index
    %c0_110 = arith.constant 0 : index
    %c0_111 = arith.constant 0 : index
    %522 = vector.load %arg1[%521, %c0_110, %c0_111] : memref<8x2x512xbf16, #tpu.memory_space<vmem>>, vector<1x2x512xbf16>
    %523 = vector.shape_cast %522 : vector<1x2x512xbf16> to vector<2x512xbf16>
    %524 = arith.extf %523 : vector<2x512xbf16> to vector<2x512xf32>
    %525 = arith.truncf %454 : vector<2x128xf32> to vector<2x128xbf16>
    %cst_112 = arith.constant dense<0.000000e+00> : vector<2x512xf32>
    %526 = tpu.matmul %525, %4, %cst_112 {dimension_numbers = #tpu.dot_dimension_numbers<[1], [0], [0], [1], [0, 0, 1, 1], [], []>} : vector<2x128xbf16>, vector<128x512xbf16>, vector<2x512xf32> -> vector<2x512xf32>
    %527 = arith.addf %524, %526 : vector<2x512xf32>
    %528 = vector.extract_strided_slice %527 {offsets = [0, 0], sizes = [2, 128], strides = [1, 1]} : vector<2x512xf32> to vector<2x128xf32>
    %529 = arith.negf %528 : vector<2x128xf32>
    %530 = math.exp %529 : vector<2x128xf32>
    %cst_113 = arith.constant 1.000000e+00 : f32
    %531 = vector.broadcast %cst_113 : f32 to vector<2x128xf32>
    %532 = arith.addf %531, %530 : vector<2x128xf32>
    %533 = arith.divf %531, %532 : vector<2x128xf32>
    %534 = vector.extract_strided_slice %527 {offsets = [0, 128], sizes = [2, 128], strides = [1, 1]} : vector<2x512xf32> to vector<2x128xf32>
    %535 = arith.negf %534 : vector<2x128xf32>
    %536 = math.exp %535 : vector<2x128xf32>
    %cst_114 = arith.constant 1.000000e+00 : f32
    %537 = vector.broadcast %cst_114 : f32 to vector<2x128xf32>
    %538 = arith.addf %537, %536 : vector<2x128xf32>
    %539 = arith.divf %537, %538 : vector<2x128xf32>
    %540 = vector.extract_strided_slice %527 {offsets = [0, 256], sizes = [2, 128], strides = [1, 1]} : vector<2x512xf32> to vector<2x128xf32>
    %541 = math.tanh %540 : vector<2x128xf32>
    %542 = vector.extract_strided_slice %527 {offsets = [0, 384], sizes = [2, 128], strides = [1, 1]} : vector<2x512xf32> to vector<2x128xf32>
    %543 = arith.negf %542 : vector<2x128xf32>
    %544 = math.exp %543 : vector<2x128xf32>
    %cst_115 = arith.constant 1.000000e+00 : f32
    %545 = vector.broadcast %cst_115 : f32 to vector<2x128xf32>
    %546 = arith.addf %545, %544 : vector<2x128xf32>
    %547 = arith.divf %545, %546 : vector<2x128xf32>
    %548 = arith.mulf %539, %457 : vector<2x128xf32>
    %549 = arith.mulf %533, %541 : vector<2x128xf32>
    %550 = arith.addf %548, %549 : vector<2x128xf32>
    %551 = math.tanh %550 : vector<2x128xf32>
    %552 = arith.mulf %547, %551 : vector<2x128xf32>
    %553 = vector.shape_cast %520 : vector<2x1xi1> to vector<2x1xi1>
    %554 = vector.broadcast %553 : vector<2x1xi1> to vector<2x128xi1>
    %555 = arith.select %554, %552, %454 : vector<2x128xi1>, vector<2x128xf32>
    %556 = vector.shape_cast %520 : vector<2x1xi1> to vector<2x1xi1>
    %557 = vector.broadcast %556 : vector<2x1xi1> to vector<2x128xi1>
    %558 = arith.select %557, %550, %457 : vector<2x128xi1>, vector<2x128xf32>
    %cst_116 = arith.constant 0.000000e+00 : f32
    %559 = vector.shape_cast %520 : vector<2x1xi1> to vector<2x1xi1>
    %560 = vector.broadcast %559 : vector<2x1xi1> to vector<2x128xi1>
    %561 = vector.broadcast %cst_116 : f32 to vector<2x128xf32>
    %562 = arith.select %560, %555, %561 : vector<2x128xi1>, vector<2x128xf32>
    %563 = arith.truncf %562 : vector<2x128xf32> to vector<2x128xbf16>
    %564 = arith.index_cast %c5_i32 : i32 to index
    %c0_117 = arith.constant 0 : index
    %c0_118 = arith.constant 0 : index
    %565 = vector.load %arg6[%564, %c0_117, %c0_118] : memref<8x2x128xbf16, #tpu.memory_space<vmem>>, vector<1x2x128xbf16>
    %566 = vector.shape_cast %565 : vector<1x2x128xbf16> to vector<2x128xbf16>
    %567 = vector.shape_cast %563 : vector<2x128xbf16> to vector<1x2x128xbf16>
    tpu.vector_store %arg6[%564, %c0_117, %c0_118], %567 {strides = array<i32>} : memref<8x2x128xbf16, #tpu.memory_space<vmem>>, vector<1x2x128xbf16>,
    %c7_i32_119 = arith.constant 7 : i32
    %568 = arith.subi %c7_i32_119, %c5_i32 : i32
    %569 = arith.addi %8, %568 : i32
    %570 = vector.broadcast %569 : i32 to vector<2x1xi32>
    %571 = arith.cmpi slt, %570, %3 : vector<2x1xi32>
    %572 = arith.index_cast %568 : i32 to index
    %c0_120 = arith.constant 0 : index
    %c0_121 = arith.constant 0 : index
    %573 = vector.load %arg2[%572, %c0_120, %c0_121] : memref<8x2x512xbf16, #tpu.memory_space<vmem>>, vector<1x2x512xbf16>
    %574 = vector.shape_cast %573 : vector<1x2x512xbf16> to vector<2x512xbf16>
    %575 = arith.extf %574 : vector<2x512xbf16> to vector<2x512xf32>
    %576 = arith.truncf %505 : vector<2x128xf32> to vector<2x128xbf16>
    %cst_122 = arith.constant dense<0.000000e+00> : vector<2x512xf32>
    %577 = tpu.matmul %576, %5, %cst_122 {dimension_numbers = #tpu.dot_dimension_numbers<[1], [0], [0], [1], [0, 0, 1, 1], [], []>} : vector<2x128xbf16>, vector<128x512xbf16>, vector<2x512xf32> -> vector<2x512xf32>
    %578 = arith.addf %575, %577 : vector<2x512xf32>
    %579 = vector.extract_strided_slice %578 {offsets = [0, 0], sizes = [2, 128], strides = [1, 1]} : vector<2x512xf32> to vector<2x128xf32>
    %580 = arith.negf %579 : vector<2x128xf32>
    %581 = math.exp %580 : vector<2x128xf32>
    %cst_123 = arith.constant 1.000000e+00 : f32
    %582 = vector.broadcast %cst_123 : f32 to vector<2x128xf32>
    %583 = arith.addf %582, %581 : vector<2x128xf32>
    %584 = arith.divf %582, %583 : vector<2x128xf32>
    %585 = vector.extract_strided_slice %578 {offsets = [0, 128], sizes = [2, 128], strides = [1, 1]} : vector<2x512xf32> to vector<2x128xf32>
    %586 = arith.negf %585 : vector<2x128xf32>
    %587 = math.exp %586 : vector<2x128xf32>
    %cst_124 = arith.constant 1.000000e+00 : f32
    %588 = vector.broadcast %cst_124 : f32 to vector<2x128xf32>
    %589 = arith.addf %588, %587 : vector<2x128xf32>
    %590 = arith.divf %588, %589 : vector<2x128xf32>
    %591 = vector.extract_strided_slice %578 {offsets = [0, 256], sizes = [2, 128], strides = [1, 1]} : vector<2x512xf32> to vector<2x128xf32>
    %592 = math.tanh %591 : vector<2x128xf32>
    %593 = vector.extract_strided_slice %578 {offsets = [0, 384], sizes = [2, 128], strides = [1, 1]} : vector<2x512xf32> to vector<2x128xf32>
    %594 = arith.negf %593 : vector<2x128xf32>
    %595 = math.exp %594 : vector<2x128xf32>
    %cst_125 = arith.constant 1.000000e+00 : f32
    %596 = vector.broadcast %cst_125 : f32 to vector<2x128xf32>
    %597 = arith.addf %596, %595 : vector<2x128xf32>
    %598 = arith.divf %596, %597 : vector<2x128xf32>
    %599 = arith.mulf %590, %508 : vector<2x128xf32>
    %600 = arith.mulf %584, %592 : vector<2x128xf32>
    %601 = arith.addf %599, %600 : vector<2x128xf32>
    %602 = math.tanh %601 : vector<2x128xf32>
    %603 = arith.mulf %598, %602 : vector<2x128xf32>
    %604 = vector.shape_cast %571 : vector<2x1xi1> to vector<2x1xi1>
    %605 = vector.broadcast %604 : vector<2x1xi1> to vector<2x128xi1>
    %606 = arith.select %605, %603, %505 : vector<2x128xi1>, vector<2x128xf32>
    %607 = vector.shape_cast %571 : vector<2x1xi1> to vector<2x1xi1>
    %608 = vector.broadcast %607 : vector<2x1xi1> to vector<2x128xi1>
    %609 = arith.select %608, %601, %508 : vector<2x128xi1>, vector<2x128xf32>
    %cst_126 = arith.constant 0.000000e+00 : f32
    %610 = vector.shape_cast %571 : vector<2x1xi1> to vector<2x1xi1>
    %611 = vector.broadcast %610 : vector<2x1xi1> to vector<2x128xi1>
    %612 = vector.broadcast %cst_126 : f32 to vector<2x128xf32>
    %613 = arith.select %611, %606, %612 : vector<2x128xi1>, vector<2x128xf32>
    %614 = arith.truncf %613 : vector<2x128xf32> to vector<2x128xbf16>
    %615 = arith.index_cast %568 : i32 to index
    %c0_127 = arith.constant 0 : index
    %c0_128 = arith.constant 0 : index
    %616 = vector.load %arg7[%615, %c0_127, %c0_128] : memref<8x2x128xbf16, #tpu.memory_space<vmem>>, vector<1x2x128xbf16>
    %617 = vector.shape_cast %616 : vector<1x2x128xbf16> to vector<2x128xbf16>
    %618 = vector.shape_cast %614 : vector<2x128xbf16> to vector<1x2x128xbf16>
    tpu.vector_store %arg7[%615, %c0_127, %c0_128], %618 {strides = array<i32>} : memref<8x2x128xbf16, #tpu.memory_space<vmem>>, vector<1x2x128xbf16>,
    %c6_i32 = arith.constant 6 : i32
    %619 = arith.addi %6, %c6_i32 : i32
    %620 = vector.broadcast %619 : i32 to vector<2x1xi32>
    %621 = arith.cmpi slt, %620, %3 : vector<2x1xi32>
    %622 = arith.index_cast %c6_i32 : i32 to index
    %c0_129 = arith.constant 0 : index
    %c0_130 = arith.constant 0 : index
    %623 = vector.load %arg1[%622, %c0_129, %c0_130] : memref<8x2x512xbf16, #tpu.memory_space<vmem>>, vector<1x2x512xbf16>
    %624 = vector.shape_cast %623 : vector<1x2x512xbf16> to vector<2x512xbf16>
    %625 = arith.extf %624 : vector<2x512xbf16> to vector<2x512xf32>
    %626 = arith.truncf %555 : vector<2x128xf32> to vector<2x128xbf16>
    %cst_131 = arith.constant dense<0.000000e+00> : vector<2x512xf32>
    %627 = tpu.matmul %626, %4, %cst_131 {dimension_numbers = #tpu.dot_dimension_numbers<[1], [0], [0], [1], [0, 0, 1, 1], [], []>} : vector<2x128xbf16>, vector<128x512xbf16>, vector<2x512xf32> -> vector<2x512xf32>
    %628 = arith.addf %625, %627 : vector<2x512xf32>
    %629 = vector.extract_strided_slice %628 {offsets = [0, 0], sizes = [2, 128], strides = [1, 1]} : vector<2x512xf32> to vector<2x128xf32>
    %630 = arith.negf %629 : vector<2x128xf32>
    %631 = math.exp %630 : vector<2x128xf32>
    %cst_132 = arith.constant 1.000000e+00 : f32
    %632 = vector.broadcast %cst_132 : f32 to vector<2x128xf32>
    %633 = arith.addf %632, %631 : vector<2x128xf32>
    %634 = arith.divf %632, %633 : vector<2x128xf32>
    %635 = vector.extract_strided_slice %628 {offsets = [0, 128], sizes = [2, 128], strides = [1, 1]} : vector<2x512xf32> to vector<2x128xf32>
    %636 = arith.negf %635 : vector<2x128xf32>
    %637 = math.exp %636 : vector<2x128xf32>
    %cst_133 = arith.constant 1.000000e+00 : f32
    %638 = vector.broadcast %cst_133 : f32 to vector<2x128xf32>
    %639 = arith.addf %638, %637 : vector<2x128xf32>
    %640 = arith.divf %638, %639 : vector<2x128xf32>
    %641 = vector.extract_strided_slice %628 {offsets = [0, 256], sizes = [2, 128], strides = [1, 1]} : vector<2x512xf32> to vector<2x128xf32>
    %642 = math.tanh %641 : vector<2x128xf32>
    %643 = vector.extract_strided_slice %628 {offsets = [0, 384], sizes = [2, 128], strides = [1, 1]} : vector<2x512xf32> to vector<2x128xf32>
    %644 = arith.negf %643 : vector<2x128xf32>
    %645 = math.exp %644 : vector<2x128xf32>
    %cst_134 = arith.constant 1.000000e+00 : f32
    %646 = vector.broadcast %cst_134 : f32 to vector<2x128xf32>
    %647 = arith.addf %646, %645 : vector<2x128xf32>
    %648 = arith.divf %646, %647 : vector<2x128xf32>
    %649 = arith.mulf %640, %558 : vector<2x128xf32>
    %650 = arith.mulf %634, %642 : vector<2x128xf32>
    %651 = arith.addf %649, %650 : vector<2x128xf32>
    %652 = math.tanh %651 : vector<2x128xf32>
    %653 = arith.mulf %648, %652 : vector<2x128xf32>
    %654 = vector.shape_cast %621 : vector<2x1xi1> to vector<2x1xi1>
    %655 = vector.broadcast %654 : vector<2x1xi1> to vector<2x128xi1>
    %656 = arith.select %655, %653, %555 : vector<2x128xi1>, vector<2x128xf32>
    %657 = vector.shape_cast %621 : vector<2x1xi1> to vector<2x1xi1>
    %658 = vector.broadcast %657 : vector<2x1xi1> to vector<2x128xi1>
    %659 = arith.select %658, %651, %558 : vector<2x128xi1>, vector<2x128xf32>
    %cst_135 = arith.constant 0.000000e+00 : f32
    %660 = vector.shape_cast %621 : vector<2x1xi1> to vector<2x1xi1>
    %661 = vector.broadcast %660 : vector<2x1xi1> to vector<2x128xi1>
    %662 = vector.broadcast %cst_135 : f32 to vector<2x128xf32>
    %663 = arith.select %661, %656, %662 : vector<2x128xi1>, vector<2x128xf32>
    %664 = arith.truncf %663 : vector<2x128xf32> to vector<2x128xbf16>
    %665 = arith.index_cast %c6_i32 : i32 to index
    %c0_136 = arith.constant 0 : index
    %c0_137 = arith.constant 0 : index
    %666 = vector.load %arg6[%665, %c0_136, %c0_137] : memref<8x2x128xbf16, #tpu.memory_space<vmem>>, vector<1x2x128xbf16>
    %667 = vector.shape_cast %666 : vector<1x2x128xbf16> to vector<2x128xbf16>
    %668 = vector.shape_cast %664 : vector<2x128xbf16> to vector<1x2x128xbf16>
    tpu.vector_store %arg6[%665, %c0_136, %c0_137], %668 {strides = array<i32>} : memref<8x2x128xbf16, #tpu.memory_space<vmem>>, vector<1x2x128xbf16>,
    %c7_i32_138 = arith.constant 7 : i32
    %669 = arith.subi %c7_i32_138, %c6_i32 : i32
    %670 = arith.addi %8, %669 : i32
    %671 = vector.broadcast %670 : i32 to vector<2x1xi32>
    %672 = arith.cmpi slt, %671, %3 : vector<2x1xi32>
    %673 = arith.index_cast %669 : i32 to index
    %c0_139 = arith.constant 0 : index
    %c0_140 = arith.constant 0 : index
    %674 = vector.load %arg2[%673, %c0_139, %c0_140] : memref<8x2x512xbf16, #tpu.memory_space<vmem>>, vector<1x2x512xbf16>
    %675 = vector.shape_cast %674 : vector<1x2x512xbf16> to vector<2x512xbf16>
    %676 = arith.extf %675 : vector<2x512xbf16> to vector<2x512xf32>
    %677 = arith.truncf %606 : vector<2x128xf32> to vector<2x128xbf16>
    %cst_141 = arith.constant dense<0.000000e+00> : vector<2x512xf32>
    %678 = tpu.matmul %677, %5, %cst_141 {dimension_numbers = #tpu.dot_dimension_numbers<[1], [0], [0], [1], [0, 0, 1, 1], [], []>} : vector<2x128xbf16>, vector<128x512xbf16>, vector<2x512xf32> -> vector<2x512xf32>
    %679 = arith.addf %676, %678 : vector<2x512xf32>
    %680 = vector.extract_strided_slice %679 {offsets = [0, 0], sizes = [2, 128], strides = [1, 1]} : vector<2x512xf32> to vector<2x128xf32>
    %681 = arith.negf %680 : vector<2x128xf32>
    %682 = math.exp %681 : vector<2x128xf32>
    %cst_142 = arith.constant 1.000000e+00 : f32
    %683 = vector.broadcast %cst_142 : f32 to vector<2x128xf32>
    %684 = arith.addf %683, %682 : vector<2x128xf32>
    %685 = arith.divf %683, %684 : vector<2x128xf32>
    %686 = vector.extract_strided_slice %679 {offsets = [0, 128], sizes = [2, 128], strides = [1, 1]} : vector<2x512xf32> to vector<2x128xf32>
    %687 = arith.negf %686 : vector<2x128xf32>
    %688 = math.exp %687 : vector<2x128xf32>
    %cst_143 = arith.constant 1.000000e+00 : f32
    %689 = vector.broadcast %cst_143 : f32 to vector<2x128xf32>
    %690 = arith.addf %689, %688 : vector<2x128xf32>
    %691 = arith.divf %689, %690 : vector<2x128xf32>
    %692 = vector.extract_strided_slice %679 {offsets = [0, 256], sizes = [2, 128], strides = [1, 1]} : vector<2x512xf32> to vector<2x128xf32>
    %693 = math.tanh %692 : vector<2x128xf32>
    %694 = vector.extract_strided_slice %679 {offsets = [0, 384], sizes = [2, 128], strides = [1, 1]} : vector<2x512xf32> to vector<2x128xf32>
    %695 = arith.negf %694 : vector<2x128xf32>
    %696 = math.exp %695 : vector<2x128xf32>
    %cst_144 = arith.constant 1.000000e+00 : f32
    %697 = vector.broadcast %cst_144 : f32 to vector<2x128xf32>
    %698 = arith.addf %697, %696 : vector<2x128xf32>
    %699 = arith.divf %697, %698 : vector<2x128xf32>
    %700 = arith.mulf %691, %609 : vector<2x128xf32>
    %701 = arith.mulf %685, %693 : vector<2x128xf32>
    %702 = arith.addf %700, %701 : vector<2x128xf32>
    %703 = math.tanh %702 : vector<2x128xf32>
    %704 = arith.mulf %699, %703 : vector<2x128xf32>
    %705 = vector.shape_cast %672 : vector<2x1xi1> to vector<2x1xi1>
    %706 = vector.broadcast %705 : vector<2x1xi1> to vector<2x128xi1>
    %707 = arith.select %706, %704, %606 : vector<2x128xi1>, vector<2x128xf32>
    %708 = vector.shape_cast %672 : vector<2x1xi1> to vector<2x1xi1>
    %709 = vector.broadcast %708 : vector<2x1xi1> to vector<2x128xi1>
    %710 = arith.select %709, %702, %609 : vector<2x128xi1>, vector<2x128xf32>
    %cst_145 = arith.constant 0.000000e+00 : f32
    %711 = vector.shape_cast %672 : vector<2x1xi1> to vector<2x1xi1>
    %712 = vector.broadcast %711 : vector<2x1xi1> to vector<2x128xi1>
    %713 = vector.broadcast %cst_145 : f32 to vector<2x128xf32>
    %714 = arith.select %712, %707, %713 : vector<2x128xi1>, vector<2x128xf32>
    %715 = arith.truncf %714 : vector<2x128xf32> to vector<2x128xbf16>
    %716 = arith.index_cast %669 : i32 to index
    %c0_146 = arith.constant 0 : index
    %c0_147 = arith.constant 0 : index
    %717 = vector.load %arg7[%716, %c0_146, %c0_147] : memref<8x2x128xbf16, #tpu.memory_space<vmem>>, vector<1x2x128xbf16>
    %718 = vector.shape_cast %717 : vector<1x2x128xbf16> to vector<2x128xbf16>
    %719 = vector.shape_cast %715 : vector<2x128xbf16> to vector<1x2x128xbf16>
    tpu.vector_store %arg7[%716, %c0_146, %c0_147], %719 {strides = array<i32>} : memref<8x2x128xbf16, #tpu.memory_space<vmem>>, vector<1x2x128xbf16>,
    %c7_i32_148 = arith.constant 7 : i32
    %720 = arith.addi %6, %c7_i32_148 : i32
    %721 = vector.broadcast %720 : i32 to vector<2x1xi32>
    %722 = arith.cmpi slt, %721, %3 : vector<2x1xi32>
    %723 = arith.index_cast %c7_i32_148 : i32 to index
    %c0_149 = arith.constant 0 : index
    %c0_150 = arith.constant 0 : index
    %724 = vector.load %arg1[%723, %c0_149, %c0_150] : memref<8x2x512xbf16, #tpu.memory_space<vmem>>, vector<1x2x512xbf16>
    %725 = vector.shape_cast %724 : vector<1x2x512xbf16> to vector<2x512xbf16>
    %726 = arith.extf %725 : vector<2x512xbf16> to vector<2x512xf32>
    %727 = arith.truncf %656 : vector<2x128xf32> to vector<2x128xbf16>
    %cst_151 = arith.constant dense<0.000000e+00> : vector<2x512xf32>
    %728 = tpu.matmul %727, %4, %cst_151 {dimension_numbers = #tpu.dot_dimension_numbers<[1], [0], [0], [1], [0, 0, 1, 1], [], []>} : vector<2x128xbf16>, vector<128x512xbf16>, vector<2x512xf32> -> vector<2x512xf32>
    %729 = arith.addf %726, %728 : vector<2x512xf32>
    %730 = vector.extract_strided_slice %729 {offsets = [0, 0], sizes = [2, 128], strides = [1, 1]} : vector<2x512xf32> to vector<2x128xf32>
    %731 = arith.negf %730 : vector<2x128xf32>
    %732 = math.exp %731 : vector<2x128xf32>
    %cst_152 = arith.constant 1.000000e+00 : f32
    %733 = vector.broadcast %cst_152 : f32 to vector<2x128xf32>
    %734 = arith.addf %733, %732 : vector<2x128xf32>
    %735 = arith.divf %733, %734 : vector<2x128xf32>
    %736 = vector.extract_strided_slice %729 {offsets = [0, 128], sizes = [2, 128], strides = [1, 1]} : vector<2x512xf32> to vector<2x128xf32>
    %737 = arith.negf %736 : vector<2x128xf32>
    %738 = math.exp %737 : vector<2x128xf32>
    %cst_153 = arith.constant 1.000000e+00 : f32
    %739 = vector.broadcast %cst_153 : f32 to vector<2x128xf32>
    %740 = arith.addf %739, %738 : vector<2x128xf32>
    %741 = arith.divf %739, %740 : vector<2x128xf32>
    %742 = vector.extract_strided_slice %729 {offsets = [0, 256], sizes = [2, 128], strides = [1, 1]} : vector<2x512xf32> to vector<2x128xf32>
    %743 = math.tanh %742 : vector<2x128xf32>
    %744 = vector.extract_strided_slice %729 {offsets = [0, 384], sizes = [2, 128], strides = [1, 1]} : vector<2x512xf32> to vector<2x128xf32>
    %745 = arith.negf %744 : vector<2x128xf32>
    %746 = math.exp %745 : vector<2x128xf32>
    %cst_154 = arith.constant 1.000000e+00 : f32
    %747 = vector.broadcast %cst_154 : f32 to vector<2x128xf32>
    %748 = arith.addf %747, %746 : vector<2x128xf32>
    %749 = arith.divf %747, %748 : vector<2x128xf32>
    %750 = arith.mulf %741, %659 : vector<2x128xf32>
    %751 = arith.mulf %735, %743 : vector<2x128xf32>
    %752 = arith.addf %750, %751 : vector<2x128xf32>
    %753 = math.tanh %752 : vector<2x128xf32>
    %754 = arith.mulf %749, %753 : vector<2x128xf32>
    %755 = vector.shape_cast %722 : vector<2x1xi1> to vector<2x1xi1>
    %756 = vector.broadcast %755 : vector<2x1xi1> to vector<2x128xi1>
    %757 = arith.select %756, %754, %656 : vector<2x128xi1>, vector<2x128xf32>
    %758 = vector.shape_cast %722 : vector<2x1xi1> to vector<2x1xi1>
    %759 = vector.broadcast %758 : vector<2x1xi1> to vector<2x128xi1>
    %760 = arith.select %759, %752, %659 : vector<2x128xi1>, vector<2x128xf32>
    %cst_155 = arith.constant 0.000000e+00 : f32
    %761 = vector.shape_cast %722 : vector<2x1xi1> to vector<2x1xi1>
    %762 = vector.broadcast %761 : vector<2x1xi1> to vector<2x128xi1>
    %763 = vector.broadcast %cst_155 : f32 to vector<2x128xf32>
    %764 = arith.select %762, %757, %763 : vector<2x128xi1>, vector<2x128xf32>
    %765 = arith.truncf %764 : vector<2x128xf32> to vector<2x128xbf16>
    %766 = arith.index_cast %c7_i32_148 : i32 to index
    %c0_156 = arith.constant 0 : index
    %c0_157 = arith.constant 0 : index
    %767 = vector.load %arg6[%766, %c0_156, %c0_157] : memref<8x2x128xbf16, #tpu.memory_space<vmem>>, vector<1x2x128xbf16>
    %768 = vector.shape_cast %767 : vector<1x2x128xbf16> to vector<2x128xbf16>
    %769 = vector.shape_cast %765 : vector<2x128xbf16> to vector<1x2x128xbf16>
    tpu.vector_store %arg6[%766, %c0_156, %c0_157], %769 {strides = array<i32>} : memref<8x2x128xbf16, #tpu.memory_space<vmem>>, vector<1x2x128xbf16>,
    %c7_i32_158 = arith.constant 7 : i32
    %770 = arith.subi %c7_i32_158, %c7_i32_148 : i32
    %771 = arith.addi %8, %770 : i32
    %772 = vector.broadcast %771 : i32 to vector<2x1xi32>
    %773 = arith.cmpi slt, %772, %3 : vector<2x1xi32>
    %774 = arith.index_cast %770 : i32 to index
    %c0_159 = arith.constant 0 : index
    %c0_160 = arith.constant 0 : index
    %775 = vector.load %arg2[%774, %c0_159, %c0_160] : memref<8x2x512xbf16, #tpu.memory_space<vmem>>, vector<1x2x512xbf16>
    %776 = vector.shape_cast %775 : vector<1x2x512xbf16> to vector<2x512xbf16>
    %777 = arith.extf %776 : vector<2x512xbf16> to vector<2x512xf32>
    %778 = arith.truncf %707 : vector<2x128xf32> to vector<2x128xbf16>
    %cst_161 = arith.constant dense<0.000000e+00> : vector<2x512xf32>
    %779 = tpu.matmul %778, %5, %cst_161 {dimension_numbers = #tpu.dot_dimension_numbers<[1], [0], [0], [1], [0, 0, 1, 1], [], []>} : vector<2x128xbf16>, vector<128x512xbf16>, vector<2x512xf32> -> vector<2x512xf32>
    %780 = arith.addf %777, %779 : vector<2x512xf32>
    %781 = vector.extract_strided_slice %780 {offsets = [0, 0], sizes = [2, 128], strides = [1, 1]} : vector<2x512xf32> to vector<2x128xf32>
    %782 = arith.negf %781 : vector<2x128xf32>
    %783 = math.exp %782 : vector<2x128xf32>
    %cst_162 = arith.constant 1.000000e+00 : f32
    %784 = vector.broadcast %cst_162 : f32 to vector<2x128xf32>
    %785 = arith.addf %784, %783 : vector<2x128xf32>
    %786 = arith.divf %784, %785 : vector<2x128xf32>
    %787 = vector.extract_strided_slice %780 {offsets = [0, 128], sizes = [2, 128], strides = [1, 1]} : vector<2x512xf32> to vector<2x128xf32>
    %788 = arith.negf %787 : vector<2x128xf32>
    %789 = math.exp %788 : vector<2x128xf32>
    %cst_163 = arith.constant 1.000000e+00 : f32
    %790 = vector.broadcast %cst_163 : f32 to vector<2x128xf32>
    %791 = arith.addf %790, %789 : vector<2x128xf32>
    %792 = arith.divf %790, %791 : vector<2x128xf32>
    %793 = vector.extract_strided_slice %780 {offsets = [0, 256], sizes = [2, 128], strides = [1, 1]} : vector<2x512xf32> to vector<2x128xf32>
    %794 = math.tanh %793 : vector<2x128xf32>
    %795 = vector.extract_strided_slice %780 {offsets = [0, 384], sizes = [2, 128], strides = [1, 1]} : vector<2x512xf32> to vector<2x128xf32>
    %796 = arith.negf %795 : vector<2x128xf32>
    %797 = math.exp %796 : vector<2x128xf32>
    %cst_164 = arith.constant 1.000000e+00 : f32
    %798 = vector.broadcast %cst_164 : f32 to vector<2x128xf32>
    %799 = arith.addf %798, %797 : vector<2x128xf32>
    %800 = arith.divf %798, %799 : vector<2x128xf32>
    %801 = arith.mulf %792, %710 : vector<2x128xf32>
    %802 = arith.mulf %786, %794 : vector<2x128xf32>
    %803 = arith.addf %801, %802 : vector<2x128xf32>
    %804 = math.tanh %803 : vector<2x128xf32>
    %805 = arith.mulf %800, %804 : vector<2x128xf32>
    %806 = vector.shape_cast %773 : vector<2x1xi1> to vector<2x1xi1>
    %807 = vector.broadcast %806 : vector<2x1xi1> to vector<2x128xi1>
    %808 = arith.select %807, %805, %707 : vector<2x128xi1>, vector<2x128xf32>
    %809 = vector.shape_cast %773 : vector<2x1xi1> to vector<2x1xi1>
    %810 = vector.broadcast %809 : vector<2x1xi1> to vector<2x128xi1>
    %811 = arith.select %810, %803, %710 : vector<2x128xi1>, vector<2x128xf32>
    %cst_165 = arith.constant 0.000000e+00 : f32
    %812 = vector.shape_cast %773 : vector<2x1xi1> to vector<2x1xi1>
    %813 = vector.broadcast %812 : vector<2x1xi1> to vector<2x128xi1>
    %814 = vector.broadcast %cst_165 : f32 to vector<2x128xf32>
    %815 = arith.select %813, %808, %814 : vector<2x128xi1>, vector<2x128xf32>
    %816 = arith.truncf %815 : vector<2x128xf32> to vector<2x128xbf16>
    %817 = arith.index_cast %770 : i32 to index
    %c0_166 = arith.constant 0 : index
    %c0_167 = arith.constant 0 : index
    %818 = vector.load %arg7[%817, %c0_166, %c0_167] : memref<8x2x128xbf16, #tpu.memory_space<vmem>>, vector<1x2x128xbf16>
    %819 = vector.shape_cast %818 : vector<1x2x128xbf16> to vector<2x128xbf16>
    %820 = vector.shape_cast %816 : vector<2x128xbf16> to vector<1x2x128xbf16>
    tpu.vector_store %arg7[%817, %c0_166, %c0_167], %820 {strides = array<i32>} : memref<8x2x128xbf16, #tpu.memory_space<vmem>>, vector<1x2x128xbf16>,
    %c8_i32_168 = arith.constant 8 : i32
    %c0_169 = arith.constant 0 : index
    %c0_170 = arith.constant 0 : index
    %821 = vector.load %arg10[%c0_169, %c0_170] : memref<2x128xf32, #tpu.memory_space<vmem>>, vector<2x128xf32>
    tpu.vector_store %arg10[%c0_169, %c0_170], %757 {strides = array<i32>} : memref<2x128xf32, #tpu.memory_space<vmem>>, vector<2x128xf32>,
    %c0_171 = arith.constant 0 : index
    %c0_172 = arith.constant 0 : index
    %822 = vector.load %arg11[%c0_171, %c0_172] : memref<2x128xf32, #tpu.memory_space<vmem>>, vector<2x128xf32>
    tpu.vector_store %arg11[%c0_171, %c0_172], %760 {strides = array<i32>} : memref<2x128xf32, #tpu.memory_space<vmem>>, vector<2x128xf32>,
    %c0_173 = arith.constant 0 : index
    %c0_174 = arith.constant 0 : index
    %823 = vector.load %arg12[%c0_173, %c0_174] : memref<2x128xf32, #tpu.memory_space<vmem>>, vector<2x128xf32>
    tpu.vector_store %arg12[%c0_173, %c0_174], %808 {strides = array<i32>} : memref<2x128xf32, #tpu.memory_space<vmem>>, vector<2x128xf32>,
    %c0_175 = arith.constant 0 : index
    %c0_176 = arith.constant 0 : index
    %824 = vector.load %arg13[%c0_175, %c0_176] : memref<2x128xf32, #tpu.memory_space<vmem>>, vector<2x128xf32>
    tpu.vector_store %arg13[%c0_175, %c0_176], %811 {strides = array<i32>} : memref<2x128xf32, #tpu.memory_space<vmem>>, vector<2x128xf32>,
    %c0_177 = arith.constant 0 : index
    %c0_178 = arith.constant 0 : index
    %825 = vector.load %arg8[%c0_177, %c0_178] : memref<2x128xf32, #tpu.memory_space<vmem>>, vector<2x128xf32>
    tpu.vector_store %arg8[%c0_177, %c0_178], %757 {strides = array<i32>} : memref<2x128xf32, #tpu.memory_space<vmem>>, vector<2x128xf32>,
    %c0_179 = arith.constant 0 : index
    %c0_180 = arith.constant 0 : index
    %826 = vector.load %arg9[%c0_179, %c0_180] : memref<2x128xf32, #tpu.memory_space<vmem>>, vector<2x128xf32>
    tpu.vector_store %arg9[%c0_179, %c0_180], %808 {strides = array<i32>} : memref<2x128xf32, #tpu.memory_space<vmem>>, vector<2x128xf32>,
    return
  }
  func.func @transform_0(%arg0: i32) -> (i32, i32, i32) {
    %c0_i32 = arith.constant 0 : i32
    %c0_i32_0 = arith.constant 0 : i32
    %c0_i32_1 = arith.constant 0 : i32
    return %arg0, %c0_i32, %c0_i32_0 : i32, i32, i32
  }
  func.func @transform_1(%arg0: i32) -> (i32, i32, i32) {
    %c0_i32 = arith.constant 0 : i32
    %0 = arith.subi %c0_i32, %arg0 : i32
    %c0_i32_0 = arith.constant 0 : i32
    %c0_i32_1 = arith.constant 0 : i32
    %c0_i32_2 = arith.constant 0 : i32
    return %0, %c0_i32_0, %c0_i32_1 : i32, i32, i32
  }
  func.func @transform_2(%arg0: i32) -> (i32, i32) {
    %c0_i32 = arith.constant 0 : i32
    %c0_i32_0 = arith.constant 0 : i32
    %c0_i32_1 = arith.constant 0 : i32
    return %c0_i32, %c0_i32_0 : i32, i32
  }
  func.func @transform_3(%arg0: i32) -> (i32, i32) {
    %c0_i32 = arith.constant 0 : i32
    %c0_i32_0 = arith.constant 0 : i32
    %c0_i32_1 = arith.constant 0 : i32
    return %c0_i32, %c0_i32_0 : i32, i32
  }
  func.func @transform_4(%arg0: i32) -> (i32, i32) {
    %c0_i32 = arith.constant 0 : i32
    %c0_i32_0 = arith.constant 0 : i32
    %c0_i32_1 = arith.constant 0 : i32
    return %c0_i32, %c0_i32_0 : i32, i32
  }
  func.func @transform_5(%arg0: i32) -> (i32, i32, i32) {
    %c0_i32 = arith.constant 0 : i32
    %c0_i32_0 = arith.constant 0 : i32
    %c0_i32_1 = arith.constant 0 : i32
    return %arg0, %c0_i32, %c0_i32_0 : i32, i32, i32
  }
  func.func @transform_6(%arg0: i32) -> (i32, i32, i32) {
    %c0_i32 = arith.constant 0 : i32
    %0 = arith.subi %c0_i32, %arg0 : i32
    %c0_i32_0 = arith.constant 0 : i32
    %c0_i32_1 = arith.constant 0 : i32
    %c0_i32_2 = arith.constant 0 : i32
    return %0, %c0_i32_0, %c0_i32_1 : i32, i32, i32
  }
  func.func @transform_7(%arg0: i32) -> (i32, i32) {
    %c0_i32 = arith.constant 0 : i32
    %c0_i32_0 = arith.constant 0 : i32
    %c0_i32_1 = arith.constant 0 : i32
    return %c0_i32, %c0_i32_0 : i32, i32
  }
  func.func @transform_8(%arg0: i32) -> (i32, i32) {
    %c0_i32 = arith.constant 0 : i32
    %c0_i32_0 = arith.constant 0 : i32
    %c0_i32_1 = arith.constant 0 : i32
    return %c0_i32, %c0_i32_0 : i32, i32
  }
}

module attributes {stable_mosaic.version = 11 : i64} {
  func.func @_bilstm_kernel(%arg0: i32, %arg1: memref<8x2x512xbf16, #tpu.memory_space<vmem>>, %arg2: memref<8x2x512xbf16, #tpu.memory_space<vmem>>, %arg3: memref<2x1xi32, #tpu.memory_space<vmem>>, %arg4: memref<128x512xbf16, #tpu.memory_space<vmem>>, %arg5: memref<128x512xbf16, #tpu.memory_space<vmem>>, %arg6: memref<8x2x128xbf16, #tpu.memory_space<vmem>>, %arg7: memref<8x2x128xbf16, #tpu.memory_space<vmem>>, %arg8: memref<2x128xf32, #tpu.memory_space<vmem>>, %arg9: memref<2x128xf32, #tpu.memory_space<vmem>>, %arg10: memref<2x128xf32, #tpu.memory_space<vmem>>, %arg11: memref<2x128xf32, #tpu.memory_space<vmem>>, %arg12: memref<2x128xf32, #tpu.memory_space<vmem>>, %arg13: memref<2x128xf32, #tpu.memory_space<vmem>>) attributes {dimension_semantics = [#tpu.dimension_semantics<arbitrary>], iteration_bounds = array<i64: 1>, scalar_prefetch = 0 : i64, scratch_operands = 4 : i64, tpu.core_type = #tpu.core_type<tc>, window_params = [{transform_indices = @transform_0, window_bounds = array<i64: 8, 2, 512>}, {transform_indices = @transform_1, window_bounds = array<i64: 8, 2, 512>}, {pipeline_mode = #tpu.pipeline_mode<synchronous>, transform_indices = @transform_2, window_bounds = array<i64: 2, 1>}, {pipeline_mode = #tpu.pipeline_mode<synchronous>, transform_indices = @transform_3, window_bounds = array<i64: 128, 512>}, {pipeline_mode = #tpu.pipeline_mode<synchronous>, transform_indices = @transform_4, window_bounds = array<i64: 128, 512>}, {transform_indices = @transform_5, window_bounds = array<i64: 8, 2, 128>}, {transform_indices = @transform_6, window_bounds = array<i64: 8, 2, 128>}, {pipeline_mode = #tpu.pipeline_mode<synchronous>, transform_indices = @transform_7, window_bounds = array<i64: 2, 128>}, {pipeline_mode = #tpu.pipeline_mode<synchronous>, transform_indices = @transform_8, window_bounds = array<i64: 2, 128>}]} {
    %c0_i32 = arith.constant 0 : i32
    %0 = arith.cmpi eq, %arg0, %c0_i32 : i32
    %1 = arith.extui %0 : i1 to i32
    %c0_i32_0 = arith.constant 0 : i32
    %2 = arith.cmpi ne, %1, %c0_i32_0 : i32
    scf.if %2 {
      %cst_181 = arith.constant 0.000000e+00 : f32
      %827 = vector.broadcast %cst_181 : f32 to vector<2x128xf32>
      %c0_182 = arith.constant 0 : index
      %c0_183 = arith.constant 0 : index
      %828 = vector.load %arg10[%c0_182, %c0_183] : memref<2x128xf32, #tpu.memory_space<vmem>>, vector<2x128xf32>
      tpu.vector_store %arg10[%c0_182, %c0_183], %827 {strides = array<i32>} : memref<2x128xf32, #tpu.memory_space<vmem>>, vector<2x128xf32>,
      %cst_184 = arith.constant 0.000000e+00 : f32
      %829 = vector.broadcast %cst_184 : f32 to vector<2x128xf32>
      %c0_185 = arith.constant 0 : index
      %c0_186 = arith.constant 0 : index
      %830 = vector.load %arg11[%c0_185, %c0_186] : memref<2x128xf32, #tpu.memory_space<vmem>>, vector<2x128xf32>
      tpu.vector_store %arg11[%c0_185, %c0_186], %829 {strides = array<i32>} : memref<2x128xf32, #tpu.memory_space<vmem>>, vector<2x128xf32>,
      %cst_187 = arith.constant 0.000000e+00 : f32
      %831 = vector.broadcast %cst_187 : f32 to vector<2x128xf32>
      %c0_188 = arith.constant 0 : index
      %c0_189 = arith.constant 0 : index
      %832 = vector.load %arg12[%c0_188, %c0_189] : memref<2x128xf32, #tpu.memory_space<vmem>>, vector<2x128xf32>
      tpu.vector_store %arg12[%c0_188, %c0_189], %831 {strides = array<i32>} : memref<2x128xf32, #tpu.memory_space<vmem>>, vector<2x128xf32>,
      %cst_190 = arith.constant 0.000000e+00 : f32
      %833 = vector.broadcast %cst_190 : f32 to vector<2x128xf32>
      %c0_191 = arith.constant 0 : index
      %c0_192 = arith.constant 0 : index
      %834 = vector.load %arg13[%c0_191, %c0_192] : memref<2x128xf32, #tpu.memory_space<vmem>>, vector<2x128xf32>
      tpu.vector_store %arg13[%c0_191, %c0_192], %833 {strides = array<i32>} : memref<2x128xf32, #tpu.memory_space<vmem>>, vector<2x128xf32>,
    } else {
    }
    %c0 = arith.constant 0 : index
    %c0_1 = arith.constant 0 : index
    %3 = vector.load %arg3[%c0, %c0_1] : memref<2x1xi32, #tpu.memory_space<vmem>>, vector<2x1xi32>
    %c0_2 = arith.constant 0 : index
    %c0_3 = arith.constant 0 : index
    %4 = vector.load %arg4[%c0_2, %c0_3] : memref<128x512xbf16, #tpu.memory_space<vmem>>, vector<128x512xbf16>
    %c0_4 = arith.constant 0 : index
    %c0_5 = arith.constant 0 : index
    %5 = vector.load %arg5[%c0_4, %c0_5] : memref<128x512xbf16, #tpu.memory_space<vmem>>, vector<128x512xbf16>
    %c8_i32 = arith.constant 8 : i32
    %6 = arith.muli %arg0, %c8_i32 : i32
    %c0_i32_6 = arith.constant 0 : i32
    %7 = arith.subi %c0_i32_6, %arg0 : i32
    %c8_i32_7 = arith.constant 8 : i32
    %8 = arith.muli %7, %c8_i32_7 : i32
    %c0_8 = arith.constant 0 : index
    %c0_9 = arith.constant 0 : index
    %9 = vector.load %arg10[%c0_8, %c0_9] : memref<2x128xf32, #tpu.memory_space<vmem>>, vector<2x128xf32>
    %c0_10 = arith.constant 0 : index
    %c0_11 = arith.constant 0 : index
    %10 = vector.load %arg11[%c0_10, %c0_11] : memref<2x128xf32, #tpu.memory_space<vmem>>, vector<2x128xf32>
    %c0_12 = arith.constant 0 : index
    %c0_13 = arith.constant 0 : index
    %11 = vector.load %arg12[%c0_12, %c0_13] : memref<2x128xf32, #tpu.memory_space<vmem>>, vector<2x128xf32>
    %c0_14 = arith.constant 0 : index
    %c0_15 = arith.constant 0 : index
    %12 = vector.load %arg13[%c0_14, %c0_15] : memref<2x128xf32, #tpu.memory_space<vmem>>, vector<2x128xf32>
    %c0_i32_16 = arith.constant 0 : i32
    %13 = arith.addi %6, %c0_i32_16 : i32
    %14 = vector.broadcast %13 : i32 to vector<2x1xi32>
    %15 = arith.cmpi slt, %14, %3 : vector<2x1xi32>
    %16 = arith.index_cast %c0_i32_16 : i32 to index
    %c0_17 = arith.constant 0 : index
    %c0_18 = arith.constant 0 : index
    %17 = vector.load %arg1[%16, %c0_17, %c0_18] : memref<8x2x512xbf16, #tpu.memory_space<vmem>>, vector<1x2x512xbf16>
    %18 = vector.shape_cast %17 : vector<1x2x512xbf16> to vector<2x512xbf16>
    %19 = arith.extf %18 : vector<2x512xbf16> to vector<2x512xf32>
    %20 = arith.truncf %9 : vector<2x128xf32> to vector<2x128xbf16>
    %cst = arith.constant dense<0.000000e+00> : vector<2x512xf32>
    %21 = tpu.matmul %20, %4, %cst {dimension_numbers = #tpu.dot_dimension_numbers<[1], [0], [0], [1], [0, 0, 1, 1], [], []>} : vector<2x128xbf16>, vector<128x512xbf16>, vector<2x512xf32> -> vector<2x512xf32>
    %22 = arith.addf %19, %21 : vector<2x512xf32>
    %23 = vector.extract_strided_slice %22 {offsets = [0, 0], sizes = [2, 128], strides = [1, 1]} : vector<2x512xf32> to vector<2x128xf32>
    %24 = arith.negf %23 : vector<2x128xf32>
    %25 = math.exp %24 : vector<2x128xf32>
    %cst_19 = arith.constant 1.000000e+00 : f32
    %26 = vector.broadcast %cst_19 : f32 to vector<2x128xf32>
    %27 = arith.addf %26, %25 : vector<2x128xf32>
    %28 = arith.divf %26, %27 : vector<2x128xf32>
    %29 = vector.extract_strided_slice %22 {offsets = [0, 128], sizes = [2, 128], strides = [1, 1]} : vector<2x512xf32> to vector<2x128xf32>
    %30 = arith.negf %29 : vector<2x128xf32>
    %31 = math.exp %30 : vector<2x128xf32>
    %cst_20 = arith.constant 1.000000e+00 : f32
    %32 = vector.broadcast %cst_20 : f32 to vector<2x128xf32>
    %33 = arith.addf %32, %31 : vector<2x128xf32>
    %34 = arith.divf %32, %33 : vector<2x128xf32>
    %35 = vector.extract_strided_slice %22 {offsets = [0, 256], sizes = [2, 128], strides = [1, 1]} : vector<2x512xf32> to vector<2x128xf32>
    %36 = math.tanh %35 : vector<2x128xf32>
    %37 = vector.extract_strided_slice %22 {offsets = [0, 384], sizes = [2, 128], strides = [1, 1]} : vector<2x512xf32> to vector<2x128xf32>
    %38 = arith.negf %37 : vector<2x128xf32>
    %39 = math.exp %38 : vector<2x128xf32>
    %cst_21 = arith.constant 1.000000e+00 : f32
    %40 = vector.broadcast %cst_21 : f32 to vector<2x128xf32>
    %41 = arith.addf %40, %39 : vector<2x128xf32>
    %42 = arith.divf %40, %41 : vector<2x128xf32>
    %43 = arith.mulf %34, %10 : vector<2x128xf32>
    %44 = arith.mulf %28, %36 : vector<2x128xf32>
    %45 = arith.addf %43, %44 : vector<2x128xf32>
    %46 = math.tanh %45 : vector<2x128xf32>
    %47 = arith.mulf %42, %46 : vector<2x128xf32>
    %48 = vector.shape_cast %15 : vector<2x1xi1> to vector<2x1xi1>
    %49 = vector.broadcast %48 : vector<2x1xi1> to vector<2x128xi1>
    %50 = arith.select %49, %47, %9 : vector<2x128xi1>, vector<2x128xf32>
    %51 = vector.shape_cast %15 : vector<2x1xi1> to vector<2x1xi1>
    %52 = vector.broadcast %51 : vector<2x1xi1> to vector<2x128xi1>
    %53 = arith.select %52, %45, %10 : vector<2x128xi1>, vector<2x128xf32>
    %cst_22 = arith.constant 0.000000e+00 : f32
    %54 = vector.shape_cast %15 : vector<2x1xi1> to vector<2x1xi1>
    %55 = vector.broadcast %54 : vector<2x1xi1> to vector<2x128xi1>
    %56 = vector.broadcast %cst_22 : f32 to vector<2x128xf32>
    %57 = arith.select %55, %50, %56 : vector<2x128xi1>, vector<2x128xf32>
    %58 = arith.truncf %57 : vector<2x128xf32> to vector<2x128xbf16>
    %59 = arith.index_cast %c0_i32_16 : i32 to index
    %c0_23 = arith.constant 0 : index
    %c0_24 = arith.constant 0 : index
    %60 = vector.load %arg6[%59, %c0_23, %c0_24] : memref<8x2x128xbf16, #tpu.memory_space<vmem>>, vector<1x2x128xbf16>
    %61 = vector.shape_cast %60 : vector<1x2x128xbf16> to vector<2x128xbf16>
    %62 = vector.shape_cast %58 : vector<2x128xbf16> to vector<1x2x128xbf16>
    tpu.vector_store %arg6[%59, %c0_23, %c0_24], %62 {strides = array<i32>} : memref<8x2x128xbf16, #tpu.memory_space<vmem>>, vector<1x2x128xbf16>,
    %c7_i32 = arith.constant 7 : i32
    %63 = arith.subi %c7_i32, %c0_i32_16 : i32
    %64 = arith.addi %8, %63 : i32
    %65 = vector.broadcast %64 : i32 to vector<2x1xi32>
    %66 = arith.cmpi slt, %65, %3 : vector<2x1xi32>
    %67 = arith.index_cast %63 : i32 to index
    %c0_25 = arith.constant 0 : index
    %c0_26 = arith.constant 0 : index
    %68 = vector.load %arg2[%67, %c0_25, %c0_26] : memref<8x2x512xbf16, #tpu.memory_space<vmem>>, vector<1x2x512xbf16>
    %69 = vector.shape_cast %68 : vector<1x2x512xbf16> to vector<2x512xbf16>
    %70 = arith.extf %69 : vector<2x512xbf16> to vector<2x512xf32>
    %71 = arith.truncf %11 : vector<2x128xf32> to vector<2x128xbf16>
    %cst_27 = arith.constant dense<0.000000e+00> : vector<2x512xf32>
    %72 = tpu.matmul %71, %5, %cst_27 {dimension_numbers = #tpu.dot_dimension_numbers<[1], [0], [0], [1], [0, 0, 1, 1], [], []>} : vector<2x128xbf16>, vector<128x512xbf16>, vector<2x512xf32> -> vector<2x512xf32>
    %73 = arith.addf %70, %72 : vector<2x512xf32>
    %74 = vector.extract_strided_slice %73 {offsets = [0, 0], sizes = [2, 128], strides = [1, 1]} : vector<2x512xf32> to vector<2x128xf32>
    %75 = arith.negf %74 : vector<2x128xf32>
    %76 = math.exp %75 : vector<2x128xf32>
    %cst_28 = arith.constant 1.000000e+00 : f32
    %77 = vector.broadcast %cst_28 : f32 to vector<2x128xf32>
    %78 = arith.addf %77, %76 : vector<2x128xf32>
    %79 = arith.divf %77, %78 : vector<2x128xf32>
    %80 = vector.extract_strided_slice %73 {offsets = [0, 128], sizes = [2, 128], strides = [1, 1]} : vector<2x512xf32> to vector<2x128xf32>
    %81 = arith.negf %80 : vector<2x128xf32>
    %82 = math.exp %81 : vector<2x128xf32>
    %cst_29 = arith.constant 1.000000e+00 : f32
    %83 = vector.broadcast %cst_29 : f32 to vector<2x128xf32>
    %84 = arith.addf %83, %82 : vector<2x128xf32>
    %85 = arith.divf %83, %84 : vector<2x128xf32>
    %86 = vector.extract_strided_slice %73 {offsets = [0, 256], sizes = [2, 128], strides = [1, 1]} : vector<2x512xf32> to vector<2x128xf32>
    %87 = math.tanh %86 : vector<2x128xf32>
    %88 = vector.extract_strided_slice %73 {offsets = [0, 384], sizes = [2, 128], strides = [1, 1]} : vector<2x512xf32> to vector<2x128xf32>
    %89 = arith.negf %88 : vector<2x128xf32>
    %90 = math.exp %89 : vector<2x128xf32>
    %cst_30 = arith.constant 1.000000e+00 : f32
    %91 = vector.broadcast %cst_30 : f32 to vector<2x128xf32>
    %92 = arith.addf %91, %90 : vector<2x128xf32>
    %93 = arith.divf %91, %92 : vector<2x128xf32>
    %94 = arith.mulf %85, %12 : vector<2x128xf32>
    %95 = arith.mulf %79, %87 : vector<2x128xf32>
    %96 = arith.addf %94, %95 : vector<2x128xf32>
    %97 = math.tanh %96 : vector<2x128xf32>
    %98 = arith.mulf %93, %97 : vector<2x128xf32>
    %99 = vector.shape_cast %66 : vector<2x1xi1> to vector<2x1xi1>
    %100 = vector.broadcast %99 : vector<2x1xi1> to vector<2x128xi1>
    %101 = arith.select %100, %98, %11 : vector<2x128xi1>, vector<2x128xf32>
    %102 = vector.shape_cast %66 : vector<2x1xi1> to vector<2x1xi1>
    %103 = vector.broadcast %102 : vector<2x1xi1> to vector<2x128xi1>
    %104 = arith.select %103, %96, %12 : vector<2x128xi1>, vector<2x128xf32>
    %cst_31 = arith.constant 0.000000e+00 : f32
    %105 = vector.shape_cast %66 : vector<2x1xi1> to vector<2x1xi1>
    %106 = vector.broadcast %105 : vector<2x1xi1> to vector<2x128xi1>
    %107 = vector.broadcast %cst_31 : f32 to vector<2x128xf32>
    %108 = arith.select %106, %101, %107 : vector<2x128xi1>, vector<2x128xf32>
    %109 = arith.truncf %108 : vector<2x128xf32> to vector<2x128xbf16>
    %110 = arith.index_cast %63 : i32 to index
    %c0_32 = arith.constant 0 : index
    %c0_33 = arith.constant 0 : index
    %111 = vector.load %arg7[%110, %c0_32, %c0_33] : memref<8x2x128xbf16, #tpu.memory_space<vmem>>, vector<1x2x128xbf16>
    %112 = vector.shape_cast %111 : vector<1x2x128xbf16> to vector<2x128xbf16>
    %113 = vector.shape_cast %109 : vector<2x128xbf16> to vector<1x2x128xbf16>
    tpu.vector_store %arg7[%110, %c0_32, %c0_33], %113 {strides = array<i32>} : memref<8x2x128xbf16, #tpu.memory_space<vmem>>, vector<1x2x128xbf16>,
    %c1_i32 = arith.constant 1 : i32
    %114 = arith.addi %6, %c1_i32 : i32
    %115 = vector.broadcast %114 : i32 to vector<2x1xi32>
    %116 = arith.cmpi slt, %115, %3 : vector<2x1xi32>
    %117 = arith.index_cast %c1_i32 : i32 to index
    %c0_34 = arith.constant 0 : index
    %c0_35 = arith.constant 0 : index
    %118 = vector.load %arg1[%117, %c0_34, %c0_35] : memref<8x2x512xbf16, #tpu.memory_space<vmem>>, vector<1x2x512xbf16>
    %119 = vector.shape_cast %118 : vector<1x2x512xbf16> to vector<2x512xbf16>
    %120 = arith.extf %119 : vector<2x512xbf16> to vector<2x512xf32>
    %121 = arith.truncf %50 : vector<2x128xf32> to vector<2x128xbf16>
    %cst_36 = arith.constant dense<0.000000e+00> : vector<2x512xf32>
    %122 = tpu.matmul %121, %4, %cst_36 {dimension_numbers = #tpu.dot_dimension_numbers<[1], [0], [0], [1], [0, 0, 1, 1], [], []>} : vector<2x128xbf16>, vector<128x512xbf16>, vector<2x512xf32> -> vector<2x512xf32>
    %123 = arith.addf %120, %122 : vector<2x512xf32>
    %124 = vector.extract_strided_slice %123 {offsets = [0, 0], sizes = [2, 128], strides = [1, 1]} : vector<2x512xf32> to vector<2x128xf32>
    %125 = arith.negf %124 : vector<2x128xf32>
    %126 = math.exp %125 : vector<2x128xf32>
    %cst_37 = arith.constant 1.000000e+00 : f32
    %127 = vector.broadcast %cst_37 : f32 to vector<2x128xf32>
    %128 = arith.addf %127, %126 : vector<2x128xf32>
    %129 = arith.divf %127, %128 : vector<2x128xf32>
    %130 = vector.extract_strided_slice %123 {offsets = [0, 128], sizes = [2, 128], strides = [1, 1]} : vector<2x512xf32> to vector<2x128xf32>
    %131 = arith.negf %130 : vector<2x128xf32>
    %132 = math.exp %131 : vector<2x128xf32>
    %cst_38 = arith.constant 1.000000e+00 : f32
    %133 = vector.broadcast %cst_38 : f32 to vector<2x128xf32>
    %134 = arith.addf %133, %132 : vector<2x128xf32>
    %135 = arith.divf %133, %134 : vector<2x128xf32>
    %136 = vector.extract_strided_slice %123 {offsets = [0, 256], sizes = [2, 128], strides = [1, 1]} : vector<2x512xf32> to vector<2x128xf32>
    %137 = math.tanh %136 : vector<2x128xf32>
    %138 = vector.extract_strided_slice %123 {offsets = [0, 384], sizes = [2, 128], strides = [1, 1]} : vector<2x512xf32> to vector<2x128xf32>
    %139 = arith.negf %138 : vector<2x128xf32>
    %140 = math.exp %139 : vector<2x128xf32>
    %cst_39 = arith.constant 1.000000e+00 : f32
    %141 = vector.broadcast %cst_39 : f32 to vector<2x128xf32>
    %142 = arith.addf %141, %140 : vector<2x128xf32>
    %143 = arith.divf %141, %142 : vector<2x128xf32>
    %144 = arith.mulf %135, %53 : vector<2x128xf32>
    %145 = arith.mulf %129, %137 : vector<2x128xf32>
    %146 = arith.addf %144, %145 : vector<2x128xf32>
    %147 = math.tanh %146 : vector<2x128xf32>
    %148 = arith.mulf %143, %147 : vector<2x128xf32>
    %149 = vector.shape_cast %116 : vector<2x1xi1> to vector<2x1xi1>
    %150 = vector.broadcast %149 : vector<2x1xi1> to vector<2x128xi1>
    %151 = arith.select %150, %148, %50 : vector<2x128xi1>, vector<2x128xf32>
    %152 = vector.shape_cast %116 : vector<2x1xi1> to vector<2x1xi1>
    %153 = vector.broadcast %152 : vector<2x1xi1> to vector<2x128xi1>
    %154 = arith.select %153, %146, %53 : vector<2x128xi1>, vector<2x128xf32>
    %cst_40 = arith.constant 0.000000e+00 : f32
    %155 = vector.shape_cast %116 : vector<2x1xi1> to vector<2x1xi1>
    %156 = vector.broadcast %155 : vector<2x1xi1> to vector<2x128xi1>
    %157 = vector.broadcast %cst_40 : f32 to vector<2x128xf32>
    %158 = arith.select %156, %151, %157 : vector<2x128xi1>, vector<2x128xf32>
    %159 = arith.truncf %158 : vector<2x128xf32> to vector<2x128xbf16>
    %160 = arith.index_cast %c1_i32 : i32 to index
    %c0_41 = arith.constant 0 : index
    %c0_42 = arith.constant 0 : index
    %161 = vector.load %arg6[%160, %c0_41, %c0_42] : memref<8x2x128xbf16, #tpu.memory_space<vmem>>, vector<1x2x128xbf16>
    %162 = vector.shape_cast %161 : vector<1x2x128xbf16> to vector<2x128xbf16>
    %163 = vector.shape_cast %159 : vector<2x128xbf16> to vector<1x2x128xbf16>
    tpu.vector_store %arg6[%160, %c0_41, %c0_42], %163 {strides = array<i32>} : memref<8x2x128xbf16, #tpu.memory_space<vmem>>, vector<1x2x128xbf16>,
    %c7_i32_43 = arith.constant 7 : i32
    %164 = arith.subi %c7_i32_43, %c1_i32 : i32
    %165 = arith.addi %8, %164 : i32
    %166 = vector.broadcast %165 : i32 to vector<2x1xi32>
    %167 = arith.cmpi slt, %166, %3 : vector<2x1xi32>
    %168 = arith.index_cast %164 : i32 to index
    %c0_44 = arith.constant 0 : index
    %c0_45 = arith.constant 0 : index
    %169 = vector.load %arg2[%168, %c0_44, %c0_45] : memref<8x2x512xbf16, #tpu.memory_space<vmem>>, vector<1x2x512xbf16>
    %170 = vector.shape_cast %169 : vector<1x2x512xbf16> to vector<2x512xbf16>
    %171 = arith.extf %170 : vector<2x512xbf16> to vector<2x512xf32>
    %172 = arith.truncf %101 : vector<2x128xf32> to vector<2x128xbf16>
    %cst_46 = arith.constant dense<0.000000e+00> : vector<2x512xf32>
    %173 = tpu.matmul %172, %5, %cst_46 {dimension_numbers = #tpu.dot_dimension_numbers<[1], [0], [0], [1], [0, 0, 1, 1], [], []>} : vector<2x128xbf16>, vector<128x512xbf16>, vector<2x512xf32> -> vector<2x512xf32>
    %174 = arith.addf %171, %173 : vector<2x512xf32>
    %175 = vector.extract_strided_slice %174 {offsets = [0, 0], sizes = [2, 128], strides = [1, 1]} : vector<2x512xf32> to vector<2x128xf32>
    %176 = arith.negf %175 : vector<2x128xf32>
    %177 = math.exp %176 : vector<2x128xf32>
    %cst_47 = arith.constant 1.000000e+00 : f32
    %178 = vector.broadcast %cst_47 : f32 to vector<2x128xf32>
    %179 = arith.addf %178, %177 : vector<2x128xf32>
    %180 = arith.divf %178, %179 : vector<2x128xf32>
    %181 = vector.extract_strided_slice %174 {offsets = [0, 128], sizes = [2, 128], strides = [1, 1]} : vector<2x512xf32> to vector<2x128xf32>
    %182 = arith.negf %181 : vector<2x128xf32>
    %183 = math.exp %182 : vector<2x128xf32>
    %cst_48 = arith.constant 1.000000e+00 : f32
    %184 = vector.broadcast %cst_48 : f32 to vector<2x128xf32>
    %185 = arith.addf %184, %183 : vector<2x128xf32>
    %186 = arith.divf %184, %185 : vector<2x128xf32>
    %187 = vector.extract_strided_slice %174 {offsets = [0, 256], sizes = [2, 128], strides = [1, 1]} : vector<2x512xf32> to vector<2x128xf32>
    %188 = math.tanh %187 : vector<2x128xf32>
    %189 = vector.extract_strided_slice %174 {offsets = [0, 384], sizes = [2, 128], strides = [1, 1]} : vector<2x512xf32> to vector<2x128xf32>
    %190 = arith.negf %189 : vector<2x128xf32>
    %191 = math.exp %190 : vector<2x128xf32>
    %cst_49 = arith.constant 1.000000e+00 : f32
    %192 = vector.broadcast %cst_49 : f32 to vector<2x128xf32>
    %193 = arith.addf %192, %191 : vector<2x128xf32>
    %194 = arith.divf %192, %193 : vector<2x128xf32>
    %195 = arith.mulf %186, %104 : vector<2x128xf32>
    %196 = arith.mulf %180, %188 : vector<2x128xf32>
    %197 = arith.addf %195, %196 : vector<2x128xf32>
    %198 = math.tanh %197 : vector<2x128xf32>
    %199 = arith.mulf %194, %198 : vector<2x128xf32>
    %200 = vector.shape_cast %167 : vector<2x1xi1> to vector<2x1xi1>
    %201 = vector.broadcast %200 : vector<2x1xi1> to vector<2x128xi1>
    %202 = arith.select %201, %199, %101 : vector<2x128xi1>, vector<2x128xf32>
    %203 = vector.shape_cast %167 : vector<2x1xi1> to vector<2x1xi1>
    %204 = vector.broadcast %203 : vector<2x1xi1> to vector<2x128xi1>
    %205 = arith.select %204, %197, %104 : vector<2x128xi1>, vector<2x128xf32>
    %cst_50 = arith.constant 0.000000e+00 : f32
    %206 = vector.shape_cast %167 : vector<2x1xi1> to vector<2x1xi1>
    %207 = vector.broadcast %206 : vector<2x1xi1> to vector<2x128xi1>
    %208 = vector.broadcast %cst_50 : f32 to vector<2x128xf32>
    %209 = arith.select %207, %202, %208 : vector<2x128xi1>, vector<2x128xf32>
    %210 = arith.truncf %209 : vector<2x128xf32> to vector<2x128xbf16>
    %211 = arith.index_cast %164 : i32 to index
    %c0_51 = arith.constant 0 : index
    %c0_52 = arith.constant 0 : index
    %212 = vector.load %arg7[%211, %c0_51, %c0_52] : memref<8x2x128xbf16, #tpu.memory_space<vmem>>, vector<1x2x128xbf16>
    %213 = vector.shape_cast %212 : vector<1x2x128xbf16> to vector<2x128xbf16>
    %214 = vector.shape_cast %210 : vector<2x128xbf16> to vector<1x2x128xbf16>
    tpu.vector_store %arg7[%211, %c0_51, %c0_52], %214 {strides = array<i32>} : memref<8x2x128xbf16, #tpu.memory_space<vmem>>, vector<1x2x128xbf16>,
    %c2_i32 = arith.constant 2 : i32
    %215 = arith.addi %6, %c2_i32 : i32
    %216 = vector.broadcast %215 : i32 to vector<2x1xi32>
    %217 = arith.cmpi slt, %216, %3 : vector<2x1xi32>
    %218 = arith.index_cast %c2_i32 : i32 to index
    %c0_53 = arith.constant 0 : index
    %c0_54 = arith.constant 0 : index
    %219 = vector.load %arg1[%218, %c0_53, %c0_54] : memref<8x2x512xbf16, #tpu.memory_space<vmem>>, vector<1x2x512xbf16>
    %220 = vector.shape_cast %219 : vector<1x2x512xbf16> to vector<2x512xbf16>
    %221 = arith.extf %220 : vector<2x512xbf16> to vector<2x512xf32>
    %222 = arith.truncf %151 : vector<2x128xf32> to vector<2x128xbf16>
    %cst_55 = arith.constant dense<0.000000e+00> : vector<2x512xf32>
    %223 = tpu.matmul %222, %4, %cst_55 {dimension_numbers = #tpu.dot_dimension_numbers<[1], [0], [0], [1], [0, 0, 1, 1], [], []>} : vector<2x128xbf16>, vector<128x512xbf16>, vector<2x512xf32> -> vector<2x512xf32>
    %224 = arith.addf %221, %223 : vector<2x512xf32>
    %225 = vector.extract_strided_slice %224 {offsets = [0, 0], sizes = [2, 128], strides = [1, 1]} : vector<2x512xf32> to vector<2x128xf32>
    %226 = arith.negf %225 : vector<2x128xf32>
    %227 = math.exp %226 : vector<2x128xf32>
    %cst_56 = arith.constant 1.000000e+00 : f32
    %228 = vector.broadcast %cst_56 : f32 to vector<2x128xf32>
    %229 = arith.addf %228, %227 : vector<2x128xf32>
    %230 = arith.divf %228, %229 : vector<2x128xf32>
    %231 = vector.extract_strided_slice %224 {offsets = [0, 128], sizes = [2, 128], strides = [1, 1]} : vector<2x512xf32> to vector<2x128xf32>
    %232 = arith.negf %231 : vector<2x128xf32>
    %233 = math.exp %232 : vector<2x128xf32>
    %cst_57 = arith.constant 1.000000e+00 : f32
    %234 = vector.broadcast %cst_57 : f32 to vector<2x128xf32>
    %235 = arith.addf %234, %233 : vector<2x128xf32>
    %236 = arith.divf %234, %235 : vector<2x128xf32>
    %237 = vector.extract_strided_slice %224 {offsets = [0, 256], sizes = [2, 128], strides = [1, 1]} : vector<2x512xf32> to vector<2x128xf32>
    %238 = math.tanh %237 : vector<2x128xf32>
    %239 = vector.extract_strided_slice %224 {offsets = [0, 384], sizes = [2, 128], strides = [1, 1]} : vector<2x512xf32> to vector<2x128xf32>
    %240 = arith.negf %239 : vector<2x128xf32>
    %241 = math.exp %240 : vector<2x128xf32>
    %cst_58 = arith.constant 1.000000e+00 : f32
    %242 = vector.broadcast %cst_58 : f32 to vector<2x128xf32>
    %243 = arith.addf %242, %241 : vector<2x128xf32>
    %244 = arith.divf %242, %243 : vector<2x128xf32>
    %245 = arith.mulf %236, %154 : vector<2x128xf32>
    %246 = arith.mulf %230, %238 : vector<2x128xf32>
    %247 = arith.addf %245, %246 : vector<2x128xf32>
    %248 = math.tanh %247 : vector<2x128xf32>
    %249 = arith.mulf %244, %248 : vector<2x128xf32>
    %250 = vector.shape_cast %217 : vector<2x1xi1> to vector<2x1xi1>
    %251 = vector.broadcast %250 : vector<2x1xi1> to vector<2x128xi1>
    %252 = arith.select %251, %249, %151 : vector<2x128xi1>, vector<2x128xf32>
    %253 = vector.shape_cast %217 : vector<2x1xi1> to vector<2x1xi1>
    %254 = vector.broadcast %253 : vector<2x1xi1> to vector<2x128xi1>
    %255 = arith.select %254, %247, %154 : vector<2x128xi1>, vector<2x128xf32>
    %cst_59 = arith.constant 0.000000e+00 : f32
    %256 = vector.shape_cast %217 : vector<2x1xi1> to vector<2x1xi1>
    %257 = vector.broadcast %256 : vector<2x1xi1> to vector<2x128xi1>
    %258 = vector.broadcast %cst_59 : f32 to vector<2x128xf32>
    %259 = arith.select %257, %252, %258 : vector<2x128xi1>, vector<2x128xf32>
    %260 = arith.truncf %259 : vector<2x128xf32> to vector<2x128xbf16>
    %261 = arith.index_cast %c2_i32 : i32 to index
    %c0_60 = arith.constant 0 : index
    %c0_61 = arith.constant 0 : index
    %262 = vector.load %arg6[%261, %c0_60, %c0_61] : memref<8x2x128xbf16, #tpu.memory_space<vmem>>, vector<1x2x128xbf16>
    %263 = vector.shape_cast %262 : vector<1x2x128xbf16> to vector<2x128xbf16>
    %264 = vector.shape_cast %260 : vector<2x128xbf16> to vector<1x2x128xbf16>
    tpu.vector_store %arg6[%261, %c0_60, %c0_61], %264 {strides = array<i32>} : memref<8x2x128xbf16, #tpu.memory_space<vmem>>, vector<1x2x128xbf16>,
    %c7_i32_62 = arith.constant 7 : i32
    %265 = arith.subi %c7_i32_62, %c2_i32 : i32
    %266 = arith.addi %8, %265 : i32
    %267 = vector.broadcast %266 : i32 to vector<2x1xi32>
    %268 = arith.cmpi slt, %267, %3 : vector<2x1xi32>
    %269 = arith.index_cast %265 : i32 to index
    %c0_63 = arith.constant 0 : index
    %c0_64 = arith.constant 0 : index
    %270 = vector.load %arg2[%269, %c0_63, %c0_64] : memref<8x2x512xbf16, #tpu.memory_space<vmem>>, vector<1x2x512xbf16>
    %271 = vector.shape_cast %270 : vector<1x2x512xbf16> to vector<2x512xbf16>
    %272 = arith.extf %271 : vector<2x512xbf16> to vector<2x512xf32>
    %273 = arith.truncf %202 : vector<2x128xf32> to vector<2x128xbf16>
    %cst_65 = arith.constant dense<0.000000e+00> : vector<2x512xf32>
    %274 = tpu.matmul %273, %5, %cst_65 {dimension_numbers = #tpu.dot_dimension_numbers<[1], [0], [0], [1], [0, 0, 1, 1], [], []>} : vector<2x128xbf16>, vector<128x512xbf16>, vector<2x512xf32> -> vector<2x512xf32>
    %275 = arith.addf %272, %274 : vector<2x512xf32>
    %276 = vector.extract_strided_slice %275 {offsets = [0, 0], sizes = [2, 128], strides = [1, 1]} : vector<2x512xf32> to vector<2x128xf32>
    %277 = arith.negf %276 : vector<2x128xf32>
    %278 = math.exp %277 : vector<2x128xf32>
    %cst_66 = arith.constant 1.000000e+00 : f32
    %279 = vector.broadcast %cst_66 : f32 to vector<2x128xf32>
    %280 = arith.addf %279, %278 : vector<2x128xf32>
    %281 = arith.divf %279, %280 : vector<2x128xf32>
    %282 = vector.extract_strided_slice %275 {offsets = [0, 128], sizes = [2, 128], strides = [1, 1]} : vector<2x512xf32> to vector<2x128xf32>
    %283 = arith.negf %282 : vector<2x128xf32>
    %284 = math.exp %283 : vector<2x128xf32>
    %cst_67 = arith.constant 1.000000e+00 : f32
    %285 = vector.broadcast %cst_67 : f32 to vector<2x128xf32>
    %286 = arith.addf %285, %284 : vector<2x128xf32>
    %287 = arith.divf %285, %286 : vector<2x128xf32>
    %288 = vector.extract_strided_slice %275 {offsets = [0, 256], sizes = [2, 128], strides = [1, 1]} : vector<2x512xf32> to vector<2x128xf32>
    %289 = math.tanh %288 : vector<2x128xf32>
    %290 = vector.extract_strided_slice %275 {offsets = [0, 384], sizes = [2, 128], strides = [1, 1]} : vector<2x512xf32> to vector<2x128xf32>
    %291 = arith.negf %290 : vector<2x128xf32>
    %292 = math.exp %291 : vector<2x128xf32>
    %cst_68 = arith.constant 1.000000e+00 : f32
    %293 = vector.broadcast %cst_68 : f32 to vector<2x128xf32>
    %294 = arith.addf %293, %292 : vector<2x128xf32>
    %295 = arith.divf %293, %294 : vector<2x128xf32>
    %296 = arith.mulf %287, %205 : vector<2x128xf32>
    %297 = arith.mulf %281, %289 : vector<2x128xf32>
    %298 = arith.addf %296, %297 : vector<2x128xf32>
    %299 = math.tanh %298 : vector<2x128xf32>
    %300 = arith.mulf %295, %299 : vector<2x128xf32>
    %301 = vector.shape_cast %268 : vector<2x1xi1> to vector<2x1xi1>
    %302 = vector.broadcast %301 : vector<2x1xi1> to vector<2x128xi1>
    %303 = arith.select %302, %300, %202 : vector<2x128xi1>, vector<2x128xf32>
    %304 = vector.shape_cast %268 : vector<2x1xi1> to vector<2x1xi1>
    %305 = vector.broadcast %304 : vector<2x1xi1> to vector<2x128xi1>
    %306 = arith.select %305, %298, %205 : vector<2x128xi1>, vector<2x128xf32>
    %cst_69 = arith.constant 0.000000e+00 : f32
    %307 = vector.shape_cast %268 : vector<2x1xi1> to vector<2x1xi1>
    %308 = vector.broadcast %307 : vector<2x1xi1> to vector<2x128xi1>
    %309 = vector.broadcast %cst_69 : f32 to vector<2x128xf32>
    %310 = arith.select %308, %303, %309 : vector<2x128xi1>, vector<2x128xf32>
    %311 = arith.truncf %310 : vector<2x128xf32> to vector<2x128xbf16>
    %312 = arith.index_cast %265 : i32 to index
    %c0_70 = arith.constant 0 : index
    %c0_71 = arith.constant 0 : index
    %313 = vector.load %arg7[%312, %c0_70, %c0_71] : memref<8x2x128xbf16, #tpu.memory_space<vmem>>, vector<1x2x128xbf16>
    %314 = vector.shape_cast %313 : vector<1x2x128xbf16> to vector<2x128xbf16>
    %315 = vector.shape_cast %311 : vector<2x128xbf16> to vector<1x2x128xbf16>
    tpu.vector_store %arg7[%312, %c0_70, %c0_71], %315 {strides = array<i32>} : memref<8x2x128xbf16, #tpu.memory_space<vmem>>, vector<1x2x128xbf16>,
    %c3_i32 = arith.constant 3 : i32
    %316 = arith.addi %6, %c3_i32 : i32
    %317 = vector.broadcast %316 : i32 to vector<2x1xi32>
    %318 = arith.cmpi slt, %317, %3 : vector<2x1xi32>
    %319 = arith.index_cast %c3_i32 : i32 to index
    %c0_72 = arith.constant 0 : index
    %c0_73 = arith.constant 0 : index
    %320 = vector.load %arg1[%319, %c0_72, %c0_73] : memref<8x2x512xbf16, #tpu.memory_space<vmem>>, vector<1x2x512xbf16>
    %321 = vector.shape_cast %320 : vector<1x2x512xbf16> to vector<2x512xbf16>
    %322 = arith.extf %321 : vector<2x512xbf16> to vector<2x512xf32>
    %323 = arith.truncf %252 : vector<2x128xf32> to vector<2x128xbf16>
    %cst_74 = arith.constant dense<0.000000e+00> : vector<2x512xf32>
    %324 = tpu.matmul %323, %4, %cst_74 {dimension_numbers = #tpu.dot_dimension_numbers<[1], [0], [0], [1], [0, 0, 1, 1], [], []>} : vector<2x128xbf16>, vector<128x512xbf16>, vector<2x512xf32> -> vector<2x512xf32>
    %325 = arith.addf %322, %324 : vector<2x512xf32>
    %326 = vector.extract_strided_slice %325 {offsets = [0, 0], sizes = [2, 128], strides = [1, 1]} : vector<2x512xf32> to vector<2x128xf32>
    %327 = arith.negf %326 : vector<2x128xf32>
    %328 = math.exp %327 : vector<2x128xf32>
    %cst_75 = arith.constant 1.000000e+00 : f32
    %329 = vector.broadcast %cst_75 : f32 to vector<2x128xf32>
    %330 = arith.addf %329, %328 : vector<2x128xf32>
    %331 = arith.divf %329, %330 : vector<2x128xf32>
    %332 = vector.extract_strided_slice %325 {offsets = [0, 128], sizes = [2, 128], strides = [1, 1]} : vector<2x512xf32> to vector<2x128xf32>
    %333 = arith.negf %332 : vector<2x128xf32>
    %334 = math.exp %333 : vector<2x128xf32>
    %cst_76 = arith.constant 1.000000e+00 : f32
    %335 = vector.broadcast %cst_76 : f32 to vector<2x128xf32>
    %336 = arith.addf %335, %334 : vector<2x128xf32>
    %337 = arith.divf %335, %336 : vector<2x128xf32>
    %338 = vector.extract_strided_slice %325 {offsets = [0, 256], sizes = [2, 128], strides = [1, 1]} : vector<2x512xf32> to vector<2x128xf32>
    %339 = math.tanh %338 : vector<2x128xf32>
    %340 = vector.extract_strided_slice %325 {offsets = [0, 384], sizes = [2, 128], strides = [1, 1]} : vector<2x512xf32> to vector<2x128xf32>
    %341 = arith.negf %340 : vector<2x128xf32>
    %342 = math.exp %341 : vector<2x128xf32>
    %cst_77 = arith.constant 1.000000e+00 : f32
    %343 = vector.broadcast %cst_77 : f32 to vector<2x128xf32>
    %344 = arith.addf %343, %342 : vector<2x128xf32>
    %345 = arith.divf %343, %344 : vector<2x128xf32>
    %346 = arith.mulf %337, %255 : vector<2x128xf32>
    %347 = arith.mulf %331, %339 : vector<2x128xf32>
    %348 = arith.addf %346, %347 : vector<2x128xf32>
    %349 = math.tanh %348 : vector<2x128xf32>
    %350 = arith.mulf %345, %349 : vector<2x128xf32>
    %351 = vector.shape_cast %318 : vector<2x1xi1> to vector<2x1xi1>
    %352 = vector.broadcast %351 : vector<2x1xi1> to vector<2x128xi1>
    %353 = arith.select %352, %350, %252 : vector<2x128xi1>, vector<2x128xf32>
    %354 = vector.shape_cast %318 : vector<2x1xi1> to vector<2x1xi1>
    %355 = vector.broadcast %354 : vector<2x1xi1> to vector<2x128xi1>
    %356 = arith.select %355, %348, %255 : vector<2x128xi1>, vector<2x128xf32>
    %cst_78 = arith.constant 0.000000e+00 : f32
    %357 = vector.shape_cast %318 : vector<2x1xi1> to vector<2x1xi1>
    %358 = vector.broadcast %357 : vector<2x1xi1> to vector<2x128xi1>
    %359 = vector.broadcast %cst_78 : f32 to vector<2x128xf32>
    %360 = arith.select %358, %353, %359 : vector<2x128xi1>, vector<2x128xf32>
    %361 = arith.truncf %360 : vector<2x128xf32> to vector<2x128xbf16>
    %362 = arith.index_cast %c3_i32 : i32 to index
    %c0_79 = arith.constant 0 : index
    %c0_80 = arith.constant 0 : index
    %363 = vector.load %arg6[%362, %c0_79, %c0_80] : memref<8x2x128xbf16, #tpu.memory_space<vmem>>, vector<1x2x128xbf16>
    %364 = vector.shape_cast %363 : vector<1x2x128xbf16> to vector<2x128xbf16>
    %365 = vector.shape_cast %361 : vector<2x128xbf16> to vector<1x2x128xbf16>
    tpu.vector_store %arg6[%362, %c0_79, %c0_80], %365 {strides = array<i32>} : memref<8x2x128xbf16, #tpu.memory_space<vmem>>, vector<1x2x128xbf16>,
    %c7_i32_81 = arith.constant 7 : i32
    %366 = arith.subi %c7_i32_81, %c3_i32 : i32
    %367 = arith.addi %8, %366 : i32
    %368 = vector.broadcast %367 : i32 to vector<2x1xi32>
    %369 = arith.cmpi slt, %368, %3 : vector<2x1xi32>
    %370 = arith.index_cast %366 : i32 to index
    %c0_82 = arith.constant 0 : index
    %c0_83 = arith.constant 0 : index
    %371 = vector.load %arg2[%370, %c0_82, %c0_83] : memref<8x2x512xbf16, #tpu.memory_space<vmem>>, vector<1x2x512xbf16>
    %372 = vector.shape_cast %371 : vector<1x2x512xbf16> to vector<2x512xbf16>
    %373 = arith.extf %372 : vector<2x512xbf16> to vector<2x512xf32>
    %374 = arith.truncf %303 : vector<2x128xf32> to vector<2x128xbf16>
    %cst_84 = arith.constant dense<0.000000e+00> : vector<2x512xf32>
    %375 = tpu.matmul %374, %5, %cst_84 {dimension_numbers = #tpu.dot_dimension_numbers<[1], [0], [0], [1], [0, 0, 1, 1], [], []>} : vector<2x128xbf16>, vector<128x512xbf16>, vector<2x512xf32> -> vector<2x512xf32>
    %376 = arith.addf %373, %375 : vector<2x512xf32>
    %377 = vector.extract_strided_slice %376 {offsets = [0, 0], sizes = [2, 128], strides = [1, 1]} : vector<2x512xf32> to vector<2x128xf32>
    %378 = arith.negf %377 : vector<2x128xf32>
    %379 = math.exp %378 : vector<2x128xf32>
    %cst_85 = arith.constant 1.000000e+00 : f32
    %380 = vector.broadcast %cst_85 : f32 to vector<2x128xf32>
    %381 = arith.addf %380, %379 : vector<2x128xf32>
    %382 = arith.divf %380, %381 : vector<2x128xf32>
    %383 = vector.extract_strided_slice %376 {offsets = [0, 128], sizes = [2, 128], strides = [1, 1]} : vector<2x512xf32> to vector<2x128xf32>
    %384 = arith.negf %383 : vector<2x128xf32>
    %385 = math.exp %384 : vector<2x128xf32>
    %cst_86 = arith.constant 1.000000e+00 : f32
    %386 = vector.broadcast %cst_86 : f32 to vector<2x128xf32>
    %387 = arith.addf %386, %385 : vector<2x128xf32>
    %388 = arith.divf %386, %387 : vector<2x128xf32>
    %389 = vector.extract_strided_slice %376 {offsets = [0, 256], sizes = [2, 128], strides = [1, 1]} : vector<2x512xf32> to vector<2x128xf32>
    %390 = math.tanh %389 : vector<2x128xf32>
    %391 = vector.extract_strided_slice %376 {offsets = [0, 384], sizes = [2, 128], strides = [1, 1]} : vector<2x512xf32> to vector<2x128xf32>
    %392 = arith.negf %391 : vector<2x128xf32>
    %393 = math.exp %392 : vector<2x128xf32>
    %cst_87 = arith.constant 1.000000e+00 : f32
    %394 = vector.broadcast %cst_87 : f32 to vector<2x128xf32>
    %395 = arith.addf %394, %393 : vector<2x128xf32>
    %396 = arith.divf %394, %395 : vector<2x128xf32>
    %397 = arith.mulf %388, %306 : vector<2x128xf32>
    %398 = arith.mulf %382, %390 : vector<2x128xf32>
    %399 = arith.addf %397, %398 : vector<2x128xf32>
    %400 = math.tanh %399 : vector<2x128xf32>
    %401 = arith.mulf %396, %400 : vector<2x128xf32>
    %402 = vector.shape_cast %369 : vector<2x1xi1> to vector<2x1xi1>
    %403 = vector.broadcast %402 : vector<2x1xi1> to vector<2x128xi1>
    %404 = arith.select %403, %401, %303 : vector<2x128xi1>, vector<2x128xf32>
    %405 = vector.shape_cast %369 : vector<2x1xi1> to vector<2x1xi1>
    %406 = vector.broadcast %405 : vector<2x1xi1> to vector<2x128xi1>
    %407 = arith.select %406, %399, %306 : vector<2x128xi1>, vector<2x128xf32>
    %cst_88 = arith.constant 0.000000e+00 : f32
    %408 = vector.shape_cast %369 : vector<2x1xi1> to vector<2x1xi1>
    %409 = vector.broadcast %408 : vector<2x1xi1> to vector<2x128xi1>
    %410 = vector.broadcast %cst_88 : f32 to vector<2x128xf32>
    %411 = arith.select %409, %404, %410 : vector<2x128xi1>, vector<2x128xf32>
    %412 = arith.truncf %411 : vector<2x128xf32> to vector<2x128xbf16>
    %413 = arith.index_cast %366 : i32 to index
    %c0_89 = arith.constant 0 : index
    %c0_90 = arith.constant 0 : index
    %414 = vector.load %arg7[%413, %c0_89, %c0_90] : memref<8x2x128xbf16, #tpu.memory_space<vmem>>, vector<1x2x128xbf16>
    %415 = vector.shape_cast %414 : vector<1x2x128xbf16> to vector<2x128xbf16>
    %416 = vector.shape_cast %412 : vector<2x128xbf16> to vector<1x2x128xbf16>
    tpu.vector_store %arg7[%413, %c0_89, %c0_90], %416 {strides = array<i32>} : memref<8x2x128xbf16, #tpu.memory_space<vmem>>, vector<1x2x128xbf16>,
    %c4_i32 = arith.constant 4 : i32
    %417 = arith.addi %6, %c4_i32 : i32
    %418 = vector.broadcast %417 : i32 to vector<2x1xi32>
    %419 = arith.cmpi slt, %418, %3 : vector<2x1xi32>
    %420 = arith.index_cast %c4_i32 : i32 to index
    %c0_91 = arith.constant 0 : index
    %c0_92 = arith.constant 0 : index
    %421 = vector.load %arg1[%420, %c0_91, %c0_92] : memref<8x2x512xbf16, #tpu.memory_space<vmem>>, vector<1x2x512xbf16>
    %422 = vector.shape_cast %421 : vector<1x2x512xbf16> to vector<2x512xbf16>
    %423 = arith.extf %422 : vector<2x512xbf16> to vector<2x512xf32>
    %424 = arith.truncf %353 : vector<2x128xf32> to vector<2x128xbf16>
    %cst_93 = arith.constant dense<0.000000e+00> : vector<2x512xf32>
    %425 = tpu.matmul %424, %4, %cst_93 {dimension_numbers = #tpu.dot_dimension_numbers<[1], [0], [0], [1], [0, 0, 1, 1], [], []>} : vector<2x128xbf16>, vector<128x512xbf16>, vector<2x512xf32> -> vector<2x512xf32>
    %426 = arith.addf %423, %425 : vector<2x512xf32>
    %427 = vector.extract_strided_slice %426 {offsets = [0, 0], sizes = [2, 128], strides = [1, 1]} : vector<2x512xf32> to vector<2x128xf32>
    %428 = arith.negf %427 : vector<2x128xf32>
    %429 = math.exp %428 : vector<2x128xf32>
    %cst_94 = arith.constant 1.000000e+00 : f32
    %430 = vector.broadcast %cst_94 : f32 to vector<2x128xf32>
    %431 = arith.addf %430, %429 : vector<2x128xf32>
    %432 = arith.divf %430, %431 : vector<2x128xf32>
    %433 = vector.extract_strided_slice %426 {offsets = [0, 128], sizes = [2, 128], strides = [1, 1]} : vector<2x512xf32> to vector<2x128xf32>
    %434 = arith.negf %433 : vector<2x128xf32>
    %435 = math.exp %434 : vector<2x128xf32>
    %cst_95 = arith.constant 1.000000e+00 : f32
    %436 = vector.broadcast %cst_95 : f32 to vector<2x128xf32>
    %437 = arith.addf %436, %435 : vector<2x128xf32>
    %438 = arith.divf %436, %437 : vector<2x128xf32>
    %439 = vector.extract_strided_slice %426 {offsets = [0, 256], sizes = [2, 128], strides = [1, 1]} : vector<2x512xf32> to vector<2x128xf32>
    %440 = math.tanh %439 : vector<2x128xf32>
    %441 = vector.extract_strided_slice %426 {offsets = [0, 384], sizes = [2, 128], strides = [1, 1]} : vector<2x512xf32> to vector<2x128xf32>
    %442 = arith.negf %441 : vector<2x128xf32>
    %443 = math.exp %442 : vector<2x128xf32>
    %cst_96 = arith.constant 1.000000e+00 : f32
    %444 = vector.broadcast %cst_96 : f32 to vector<2x128xf32>
    %445 = arith.addf %444, %443 : vector<2x128xf32>
    %446 = arith.divf %444, %445 : vector<2x128xf32>
    %447 = arith.mulf %438, %356 : vector<2x128xf32>
    %448 = arith.mulf %432, %440 : vector<2x128xf32>
    %449 = arith.addf %447, %448 : vector<2x128xf32>
    %450 = math.tanh %449 : vector<2x128xf32>
    %451 = arith.mulf %446, %450 : vector<2x128xf32>
    %452 = vector.shape_cast %419 : vector<2x1xi1> to vector<2x1xi1>
    %453 = vector.broadcast %452 : vector<2x1xi1> to vector<2x128xi1>
    %454 = arith.select %453, %451, %353 : vector<2x128xi1>, vector<2x128xf32>
    %455 = vector.shape_cast %419 : vector<2x1xi1> to vector<2x1xi1>
    %456 = vector.broadcast %455 : vector<2x1xi1> to vector<2x128xi1>
    %457 = arith.select %456, %449, %356 : vector<2x128xi1>, vector<2x128xf32>
    %cst_97 = arith.constant 0.000000e+00 : f32
    %458 = vector.shape_cast %419 : vector<2x1xi1> to vector<2x1xi1>
    %459 = vector.broadcast %458 : vector<2x1xi1> to vector<2x128xi1>
    %460 = vector.broadcast %cst_97 : f32 to vector<2x128xf32>
    %461 = arith.select %459, %454, %460 : vector<2x128xi1>, vector<2x128xf32>
    %462 = arith.truncf %461 : vector<2x128xf32> to vector<2x128xbf16>
    %463 = arith.index_cast %c4_i32 : i32 to index
    %c0_98 = arith.constant 0 : index
    %c0_99 = arith.constant 0 : index
    %464 = vector.load %arg6[%463, %c0_98, %c0_99] : memref<8x2x128xbf16, #tpu.memory_space<vmem>>, vector<1x2x128xbf16>
    %465 = vector.shape_cast %464 : vector<1x2x128xbf16> to vector<2x128xbf16>
    %466 = vector.shape_cast %462 : vector<2x128xbf16> to vector<1x2x128xbf16>
    tpu.vector_store %arg6[%463, %c0_98, %c0_99], %466 {strides = array<i32>} : memref<8x2x128xbf16, #tpu.memory_space<vmem>>, vector<1x2x128xbf16>,
    %c7_i32_100 = arith.constant 7 : i32
    %467 = arith.subi %c7_i32_100, %c4_i32 : i32
    %468 = arith.addi %8, %467 : i32
    %469 = vector.broadcast %468 : i32 to vector<2x1xi32>
    %470 = arith.cmpi slt, %469, %3 : vector<2x1xi32>
    %471 = arith.index_cast %467 : i32 to index
    %c0_101 = arith.constant 0 : index
    %c0_102 = arith.constant 0 : index
    %472 = vector.load %arg2[%471, %c0_101, %c0_102] : memref<8x2x512xbf16, #tpu.memory_space<vmem>>, vector<1x2x512xbf16>
    %473 = vector.shape_cast %472 : vector<1x2x512xbf16> to vector<2x512xbf16>
    %474 = arith.extf %473 : vector<2x512xbf16> to vector<2x512xf32>
    %475 = arith.truncf %404 : vector<2x128xf32> to vector<2x128xbf16>
    %cst_103 = arith.constant dense<0.000000e+00> : vector<2x512xf32>
    %476 = tpu.matmul %475, %5, %cst_103 {dimension_numbers = #tpu.dot_dimension_numbers<[1], [0], [0], [1], [0, 0, 1, 1], [], []>} : vector<2x128xbf16>, vector<128x512xbf16>, vector<2x512xf32> -> vector<2x512xf32>
    %477 = arith.addf %474, %476 : vector<2x512xf32>
    %478 = vector.extract_strided_slice %477 {offsets = [0, 0], sizes = [2, 128], strides = [1, 1]} : vector<2x512xf32> to vector<2x128xf32>
    %479 = arith.negf %478 : vector<2x128xf32>
    %480 = math.exp %479 : vector<2x128xf32>
    %cst_104 = arith.constant 1.000000e+00 : f32
    %481 = vector.broadcast %cst_104 : f32 to vector<2x128xf32>
    %482 = arith.addf %481, %480 : vector<2x128xf32>
    %483 = arith.divf %481, %482 : vector<2x128xf32>
    %484 = vector.extract_strided_slice %477 {offsets = [0, 128], sizes = [2, 128], strides = [1, 1]} : vector<2x512xf32> to vector<2x128xf32>
    %485 = arith.negf %484 : vector<2x128xf32>
    %486 = math.exp %485 : vector<2x128xf32>
    %cst_105 = arith.constant 1.000000e+00 : f32
    %487 = vector.broadcast %cst_105 : f32 to vector<2x128xf32>
    %488 = arith.addf %487, %486 : vector<2x128xf32>
    %489 = arith.divf %487, %488 : vector<2x128xf32>
    %490 = vector.extract_strided_slice %477 {offsets = [0, 256], sizes = [2, 128], strides = [1, 1]} : vector<2x512xf32> to vector<2x128xf32>
    %491 = math.tanh %490 : vector<2x128xf32>
    %492 = vector.extract_strided_slice %477 {offsets = [0, 384], sizes = [2, 128], strides = [1, 1]} : vector<2x512xf32> to vector<2x128xf32>
    %493 = arith.negf %492 : vector<2x128xf32>
    %494 = math.exp %493 : vector<2x128xf32>
    %cst_106 = arith.constant 1.000000e+00 : f32
    %495 = vector.broadcast %cst_106 : f32 to vector<2x128xf32>
    %496 = arith.addf %495, %494 : vector<2x128xf32>
    %497 = arith.divf %495, %496 : vector<2x128xf32>
    %498 = arith.mulf %489, %407 : vector<2x128xf32>
    %499 = arith.mulf %483, %491 : vector<2x128xf32>
    %500 = arith.addf %498, %499 : vector<2x128xf32>
    %501 = math.tanh %500 : vector<2x128xf32>
    %502 = arith.mulf %497, %501 : vector<2x128xf32>
    %503 = vector.shape_cast %470 : vector<2x1xi1> to vector<2x1xi1>
    %504 = vector.broadcast %503 : vector<2x1xi1> to vector<2x128xi1>
    %505 = arith.select %504, %502, %404 : vector<2x128xi1>, vector<2x128xf32>
    %506 = vector.shape_cast %470 : vector<2x1xi1> to vector<2x1xi1>
    %507 = vector.broadcast %506 : vector<2x1xi1> to vector<2x128xi1>
    %508 = arith.select %507, %500, %407 : vector<2x128xi1>, vector<2x128xf32>
    %cst_107 = arith.constant 0.000000e+00 : f32
    %509 = vector.shape_cast %470 : vector<2x1xi1> to vector<2x1xi1>
    %510 = vector.broadcast %509 : vector<2x1xi1> to vector<2x128xi1>
    %511 = vector.broadcast %cst_107 : f32 to vector<2x128xf32>
    %512 = arith.select %510, %505, %511 : vector<2x128xi1>, vector<2x128xf32>
    %513 = arith.truncf %512 : vector<2x128xf32> to vector<2x128xbf16>
    %514 = arith.index_cast %467 : i32 to index
    %c0_108 = arith.constant 0 : index
    %c0_109 = arith.constant 0 : index
    %515 = vector.load %arg7[%514, %c0_108, %c0_109] : memref<8x2x128xbf16, #tpu.memory_space<vmem>>, vector<1x2x128xbf16>
    %516 = vector.shape_cast %515 : vector<1x2x128xbf16> to vector<2x128xbf16>
    %517 = vector.shape_cast %513 : vector<2x128xbf16> to vector<1x2x128xbf16>
    tpu.vector_store %arg7[%514, %c0_108, %c0_109], %517 {strides = array<i32>} : memref<8x2x128xbf16, #tpu.memory_space<vmem>>, vector<1x2x128xbf16>,
    %c5_i32 = arith.constant 5 : i32
    %518 = arith.addi %6, %c5_i32 : i32
    %519 = vector.broadcast %518 : i32 to vector<2x1xi32>
    %520 = arith.cmpi slt, %519, %3 : vector<2x1xi32>
    %521 = arith.index_cast %c5_i32 : i32 to index
    %c0_110 = arith.constant 0 : index
    %c0_111 = arith.constant 0 : index
    %522 = vector.load %arg1[%521, %c0_110, %c0_111] : memref<8x2x512xbf16, #tpu.memory_space<vmem>>, vector<1x2x512xbf16>
    %523 = vector.shape_cast %522 : vector<1x2x512xbf16> to vector<2x512xbf16>
    %524 = arith.extf %523 : vector<2x512xbf16> to vector<2x512xf32>
    %525 = arith.truncf %454 : vector<2x128xf32> to vector<2x128xbf16>
    %cst_112 = arith.constant dense<0.000000e+00> : vector<2x512xf32>
    %526 = tpu.matmul %525, %4, %cst_112 {dimension_numbers = #tpu.dot_dimension_numbers<[1], [0], [0], [1], [0, 0, 1, 1], [], []>} : vector<2x128xbf16>, vector<128x512xbf16>, vector<2x512xf32> -> vector<2x512xf32>
    %527 = arith.addf %524, %526 : vector<2x512xf32>
    %528 = vector.extract_strided_slice %527 {offsets = [0, 0], sizes = [2, 128], strides = [1, 1]} : vector<2x512xf32> to vector<2x128xf32>
    %529 = arith.negf %528 : vector<2x128xf32>
    %530 = math.exp %529 : vector<2x128xf32>
    %cst_113 = arith.constant 1.000000e+00 : f32
    %531 = vector.broadcast %cst_113 : f32 to vector<2x128xf32>
    %532 = arith.addf %531, %530 : vector<2x128xf32>
    %533 = arith.divf %531, %532 : vector<2x128xf32>
    %534 = vector.extract_strided_slice %527 {offsets = [0, 128], sizes = [2, 128], strides = [1, 1]} : vector<2x512xf32> to vector<2x128xf32>
    %535 = arith.negf %534 : vector<2x128xf32>
    %536 = math.exp %535 : vector<2x128xf32>
    %cst_114 = arith.constant 1.000000e+00 : f32
    %537 = vector.broadcast %cst_114 : f32 to vector<2x128xf32>
    %538 = arith.addf %537, %536 : vector<2x128xf32>
    %539 = arith.divf %537, %538 : vector<2x128xf32>
    %540 = vector.extract_strided_slice %527 {offsets = [0, 256], sizes = [2, 128], strides = [1, 1]} : vector<2x512xf32> to vector<2x128xf32>
    %541 = math.tanh %540 : vector<2x128xf32>
    %542 = vector.extract_strided_slice %527 {offsets = [0, 384], sizes = [2, 128], strides = [1, 1]} : vector<2x512xf32> to vector<2x128xf32>
    %543 = arith.negf %542 : vector<2x128xf32>
    %544 = math.exp %543 : vector<2x128xf32>
    %cst_115 = arith.constant 1.000000e+00 : f32
    %545 = vector.broadcast %cst_115 : f32 to vector<2x128xf32>
    %546 = arith.addf %545, %544 : vector<2x128xf32>
    %547 = arith.divf %545, %546 : vector<2x128xf32>
    %548 = arith.mulf %539, %457 : vector<2x128xf32>
    %549 = arith.mulf %533, %541 : vector<2x128xf32>
    %550 = arith.addf %548, %549 : vector<2x128xf32>
    %551 = math.tanh %550 : vector<2x128xf32>
    %552 = arith.mulf %547, %551 : vector<2x128xf32>
    %553 = vector.shape_cast %520 : vector<2x1xi1> to vector<2x1xi1>
    %554 = vector.broadcast %553 : vector<2x1xi1> to vector<2x128xi1>
    %555 = arith.select %554, %552, %454 : vector<2x128xi1>, vector<2x128xf32>
    %556 = vector.shape_cast %520 : vector<2x1xi1> to vector<2x1xi1>
    %557 = vector.broadcast %556 : vector<2x1xi1> to vector<2x128xi1>
    %558 = arith.select %557, %550, %457 : vector<2x128xi1>, vector<2x128xf32>
    %cst_116 = arith.constant 0.000000e+00 : f32
    %559 = vector.shape_cast %520 : vector<2x1xi1> to vector<2x1xi1>
    %560 = vector.broadcast %559 : vector<2x1xi1> to vector<2x128xi1>
    %561 = vector.broadcast %cst_116 : f32 to vector<2x128xf32>
    %562 = arith.select %560, %555, %561 : vector<2x128xi1>, vector<2x128xf32>
    %563 = arith.truncf %562 : vector<2x128xf32> to vector<2x128xbf16>
    %564 = arith.index_cast %c5_i32 : i32 to index
    %c0_117 = arith.constant 0 : index
    %c0_118 = arith.constant 0 : index
    %565 = vector.load %arg6[%564, %c0_117, %c0_118] : memref<8x2x128xbf16, #tpu.memory_space<vmem>>, vector<1x2x128xbf16>
    %566 = vector.shape_cast %565 : vector<1x2x128xbf16> to vector<2x128xbf16>
    %567 = vector.shape_cast %563 : vector<2x128xbf16> to vector<1x2x128xbf16>
    tpu.vector_store %arg6[%564, %c0_117, %c0_118], %567 {strides = array<i32>} : memref<8x2x128xbf16, #tpu.memory_space<vmem>>, vector<1x2x128xbf16>,
    %c7_i32_119 = arith.constant 7 : i32
    %568 = arith.subi %c7_i32_119, %c5_i32 : i32
    %569 = arith.addi %8, %568 : i32
    %570 = vector.broadcast %569 : i32 to vector<2x1xi32>
    %571 = arith.cmpi slt, %570, %3 : vector<2x1xi32>
    %572 = arith.index_cast %568 : i32 to index
    %c0_120 = arith.constant 0 : index
    %c0_121 = arith.constant 0 : index
    %573 = vector.load %arg2[%572, %c0_120, %c0_121] : memref<8x2x512xbf16, #tpu.memory_space<vmem>>, vector<1x2x512xbf16>
    %574 = vector.shape_cast %573 : vector<1x2x512xbf16> to vector<2x512xbf16>
    %575 = arith.extf %574 : vector<2x512xbf16> to vector<2x512xf32>
    %576 = arith.truncf %505 : vector<2x128xf32> to vector<2x128xbf16>
    %cst_122 = arith.constant dense<0.000000e+00> : vector<2x512xf32>
    %577 = tpu.matmul %576, %5, %cst_122 {dimension_numbers = #tpu.dot_dimension_numbers<[1], [0], [0], [1], [0, 0, 1, 1], [], []>} : vector<2x128xbf16>, vector<128x512xbf16>, vector<2x512xf32> -> vector<2x512xf32>
    %578 = arith.addf %575, %577 : vector<2x512xf32>
    %579 = vector.extract_strided_slice %578 {offsets = [0, 0], sizes = [2, 128], strides = [1, 1]} : vector<2x512xf32> to vector<2x128xf32>
    %580 = arith.negf %579 : vector<2x128xf32>
    %581 = math.exp %580 : vector<2x128xf32>
    %cst_123 = arith.constant 1.000000e+00 : f32
    %582 = vector.broadcast %cst_123 : f32 to vector<2x128xf32>
    %583 = arith.addf %582, %581 : vector<2x128xf32>
    %584 = arith.divf %582, %583 : vector<2x128xf32>
    %585 = vector.extract_strided_slice %578 {offsets = [0, 128], sizes = [2, 128], strides = [1, 1]} : vector<2x512xf32> to vector<2x128xf32>
    %586 = arith.negf %585 : vector<2x128xf32>
    %587 = math.exp %586 : vector<2x128xf32>
    %cst_124 = arith.constant 1.000000e+00 : f32
    %588 = vector.broadcast %cst_124 : f32 to vector<2x128xf32>
    %589 = arith.addf %588, %587 : vector<2x128xf32>
    %590 = arith.divf %588, %589 : vector<2x128xf32>
    %591 = vector.extract_strided_slice %578 {offsets = [0, 256], sizes = [2, 128], strides = [1, 1]} : vector<2x512xf32> to vector<2x128xf32>
    %592 = math.tanh %591 : vector<2x128xf32>
    %593 = vector.extract_strided_slice %578 {offsets = [0, 384], sizes = [2, 128], strides = [1, 1]} : vector<2x512xf32> to vector<2x128xf32>
    %594 = arith.negf %593 : vector<2x128xf32>
    %595 = math.exp %594 : vector<2x128xf32>
    %cst_125 = arith.constant 1.000000e+00 : f32
    %596 = vector.broadcast %cst_125 : f32 to vector<2x128xf32>
    %597 = arith.addf %596, %595 : vector<2x128xf32>
    %598 = arith.divf %596, %597 : vector<2x128xf32>
    %599 = arith.mulf %590, %508 : vector<2x128xf32>
    %600 = arith.mulf %584, %592 : vector<2x128xf32>
    %601 = arith.addf %599, %600 : vector<2x128xf32>
    %602 = math.tanh %601 : vector<2x128xf32>
    %603 = arith.mulf %598, %602 : vector<2x128xf32>
    %604 = vector.shape_cast %571 : vector<2x1xi1> to vector<2x1xi1>
    %605 = vector.broadcast %604 : vector<2x1xi1> to vector<2x128xi1>
    %606 = arith.select %605, %603, %505 : vector<2x128xi1>, vector<2x128xf32>
    %607 = vector.shape_cast %571 : vector<2x1xi1> to vector<2x1xi1>
    %608 = vector.broadcast %607 : vector<2x1xi1> to vector<2x128xi1>
    %609 = arith.select %608, %601, %508 : vector<2x128xi1>, vector<2x128xf32>
    %cst_126 = arith.constant 0.000000e+00 : f32
    %610 = vector.shape_cast %571 : vector<2x1xi1> to vector<2x1xi1>
    %611 = vector.broadcast %610 : vector<2x1xi1> to vector<2x128xi1>
    %612 = vector.broadcast %cst_126 : f32 to vector<2x128xf32>
    %613 = arith.select %611, %606, %612 : vector<2x128xi1>, vector<2x128xf32>
    %614 = arith.truncf %613 : vector<2x128xf32> to vector<2x128xbf16>
    %615 = arith.index_cast %568 : i32 to index
    %c0_127 = arith.constant 0 : index
    %c0_128 = arith.constant 0 : index
    %616 = vector.load %arg7[%615, %c0_127, %c0_128] : memref<8x2x128xbf16, #tpu.memory_space<vmem>>, vector<1x2x128xbf16>
    %617 = vector.shape_cast %616 : vector<1x2x128xbf16> to vector<2x128xbf16>
    %618 = vector.shape_cast %614 : vector<2x128xbf16> to vector<1x2x128xbf16>
    tpu.vector_store %arg7[%615, %c0_127, %c0_128], %618 {strides = array<i32>} : memref<8x2x128xbf16, #tpu.memory_space<vmem>>, vector<1x2x128xbf16>,
    %c6_i32 = arith.constant 6 : i32
    %619 = arith.addi %6, %c6_i32 : i32
    %620 = vector.broadcast %619 : i32 to vector<2x1xi32>
    %621 = arith.cmpi slt, %620, %3 : vector<2x1xi32>
    %622 = arith.index_cast %c6_i32 : i32 to index
    %c0_129 = arith.constant 0 : index
    %c0_130 = arith.constant 0 : index
    %623 = vector.load %arg1[%622, %c0_129, %c0_130] : memref<8x2x512xbf16, #tpu.memory_space<vmem>>, vector<1x2x512xbf16>
    %624 = vector.shape_cast %623 : vector<1x2x512xbf16> to vector<2x512xbf16>
    %625 = arith.extf %624 : vector<2x512xbf16> to vector<2x512xf32>
    %626 = arith.truncf %555 : vector<2x128xf32> to vector<2x128xbf16>
    %cst_131 = arith.constant dense<0.000000e+00> : vector<2x512xf32>
    %627 = tpu.matmul %626, %4, %cst_131 {dimension_numbers = #tpu.dot_dimension_numbers<[1], [0], [0], [1], [0, 0, 1, 1], [], []>} : vector<2x128xbf16>, vector<128x512xbf16>, vector<2x512xf32> -> vector<2x512xf32>
    %628 = arith.addf %625, %627 : vector<2x512xf32>
    %629 = vector.extract_strided_slice %628 {offsets = [0, 0], sizes = [2, 128], strides = [1, 1]} : vector<2x512xf32> to vector<2x128xf32>
    %630 = arith.negf %629 : vector<2x128xf32>
    %631 = math.exp %630 : vector<2x128xf32>
    %cst_132 = arith.constant 1.000000e+00 : f32
    %632 = vector.broadcast %cst_132 : f32 to vector<2x128xf32>
    %633 = arith.addf %632, %631 : vector<2x128xf32>
    %634 = arith.divf %632, %633 : vector<2x128xf32>
    %635 = vector.extract_strided_slice %628 {offsets = [0, 128], sizes = [2, 128], strides = [1, 1]} : vector<2x512xf32> to vector<2x128xf32>
    %636 = arith.negf %635 : vector<2x128xf32>
    %637 = math.exp %636 : vector<2x128xf32>
    %cst_133 = arith.constant 1.000000e+00 : f32
    %638 = vector.broadcast %cst_133 : f32 to vector<2x128xf32>
    %639 = arith.addf %638, %637 : vector<2x128xf32>
    %640 = arith.divf %638, %639 : vector<2x128xf32>
    %641 = vector.extract_strided_slice %628 {offsets = [0, 256], sizes = [2, 128], strides = [1, 1]} : vector<2x512xf32> to vector<2x128xf32>
    %642 = math.tanh %641 : vector<2x128xf32>
    %643 = vector.extract_strided_slice %628 {offsets = [0, 384], sizes = [2, 128], strides = [1, 1]} : vector<2x512xf32> to vector<2x128xf32>
    %644 = arith.negf %643 : vector<2x128xf32>
    %645 = math.exp %644 : vector<2x128xf32>
    %cst_134 = arith.constant 1.000000e+00 : f32
    %646 = vector.broadcast %cst_134 : f32 to vector<2x128xf32>
    %647 = arith.addf %646, %645 : vector<2x128xf32>
    %648 = arith.divf %646, %647 : vector<2x128xf32>
    %649 = arith.mulf %640, %558 : vector<2x128xf32>
    %650 = arith.mulf %634, %642 : vector<2x128xf32>
    %651 = arith.addf %649, %650 : vector<2x128xf32>
    %652 = math.tanh %651 : vector<2x128xf32>
    %653 = arith.mulf %648, %652 : vector<2x128xf32>
    %654 = vector.shape_cast %621 : vector<2x1xi1> to vector<2x1xi1>
    %655 = vector.broadcast %654 : vector<2x1xi1> to vector<2x128xi1>
    %656 = arith.select %655, %653, %555 : vector<2x128xi1>, vector<2x128xf32>
    %657 = vector.shape_cast %621 : vector<2x1xi1> to vector<2x1xi1>
    %658 = vector.broadcast %657 : vector<2x1xi1> to vector<2x128xi1>
    %659 = arith.select %658, %651, %558 : vector<2x128xi1>, vector<2x128xf32>
    %cst_135 = arith.constant 0.000000e+00 : f32
    %660 = vector.shape_cast %621 : vector<2x1xi1> to vector<2x1xi1>
    %661 = vector.broadcast %660 : vector<2x1xi1> to vector<2x128xi1>
    %662 = vector.broadcast %cst_135 : f32 to vector<2x128xf32>
    %663 = arith.select %661, %656, %662 : vector<2x128xi1>, vector<2x128xf32>
    %664 = arith.truncf %663 : vector<2x128xf32> to vector<2x128xbf16>
    %665 = arith.index_cast %c6_i32 : i32 to index
    %c0_136 = arith.constant 0 : index
    %c0_137 = arith.constant 0 : index
    %666 = vector.load %arg6[%665, %c0_136, %c0_137] : memref<8x2x128xbf16, #tpu.memory_space<vmem>>, vector<1x2x128xbf16>
    %667 = vector.shape_cast %666 : vector<1x2x128xbf16> to vector<2x128xbf16>
    %668 = vector.shape_cast %664 : vector<2x128xbf16> to vector<1x2x128xbf16>
    tpu.vector_store %arg6[%665, %c0_136, %c0_137], %668 {strides = array<i32>} : memref<8x2x128xbf16, #tpu.memory_space<vmem>>, vector<1x2x128xbf16>,
    %c7_i32_138 = arith.constant 7 : i32
    %669 = arith.subi %c7_i32_138, %c6_i32 : i32
    %670 = arith.addi %8, %669 : i32
    %671 = vector.broadcast %670 : i32 to vector<2x1xi32>
    %672 = arith.cmpi slt, %671, %3 : vector<2x1xi32>
    %673 = arith.index_cast %669 : i32 to index
    %c0_139 = arith.constant 0 : index
    %c0_140 = arith.constant 0 : index
    %674 = vector.load %arg2[%673, %c0_139, %c0_140] : memref<8x2x512xbf16, #tpu.memory_space<vmem>>, vector<1x2x512xbf16>
    %675 = vector.shape_cast %674 : vector<1x2x512xbf16> to vector<2x512xbf16>
    %676 = arith.extf %675 : vector<2x512xbf16> to vector<2x512xf32>
    %677 = arith.truncf %606 : vector<2x128xf32> to vector<2x128xbf16>
    %cst_141 = arith.constant dense<0.000000e+00> : vector<2x512xf32>
    %678 = tpu.matmul %677, %5, %cst_141 {dimension_numbers = #tpu.dot_dimension_numbers<[1], [0], [0], [1], [0, 0, 1, 1], [], []>} : vector<2x128xbf16>, vector<128x512xbf16>, vector<2x512xf32> -> vector<2x512xf32>
    %679 = arith.addf %676, %678 : vector<2x512xf32>
    %680 = vector.extract_strided_slice %679 {offsets = [0, 0], sizes = [2, 128], strides = [1, 1]} : vector<2x512xf32> to vector<2x128xf32>
    %681 = arith.negf %680 : vector<2x128xf32>
    %682 = math.exp %681 : vector<2x128xf32>
    %cst_142 = arith.constant 1.000000e+00 : f32
    %683 = vector.broadcast %cst_142 : f32 to vector<2x128xf32>
    %684 = arith.addf %683, %682 : vector<2x128xf32>
    %685 = arith.divf %683, %684 : vector<2x128xf32>
    %686 = vector.extract_strided_slice %679 {offsets = [0, 128], sizes = [2, 128], strides = [1, 1]} : vector<2x512xf32> to vector<2x128xf32>
    %687 = arith.negf %686 : vector<2x128xf32>
    %688 = math.exp %687 : vector<2x128xf32>
    %cst_143 = arith.constant 1.000000e+00 : f32
    %689 = vector.broadcast %cst_143 : f32 to vector<2x128xf32>
    %690 = arith.addf %689, %688 : vector<2x128xf32>
    %691 = arith.divf %689, %690 : vector<2x128xf32>
    %692 = vector.extract_strided_slice %679 {offsets = [0, 256], sizes = [2, 128], strides = [1, 1]} : vector<2x512xf32> to vector<2x128xf32>
    %693 = math.tanh %692 : vector<2x128xf32>
    %694 = vector.extract_strided_slice %679 {offsets = [0, 384], sizes = [2, 128], strides = [1, 1]} : vector<2x512xf32> to vector<2x128xf32>
    %695 = arith.negf %694 : vector<2x128xf32>
    %696 = math.exp %695 : vector<2x128xf32>
    %cst_144 = arith.constant 1.000000e+00 : f32
    %697 = vector.broadcast %cst_144 : f32 to vector<2x128xf32>
    %698 = arith.addf %697, %696 : vector<2x128xf32>
    %699 = arith.divf %697, %698 : vector<2x128xf32>
    %700 = arith.mulf %691, %609 : vector<2x128xf32>
    %701 = arith.mulf %685, %693 : vector<2x128xf32>
    %702 = arith.addf %700, %701 : vector<2x128xf32>
    %703 = math.tanh %702 : vector<2x128xf32>
    %704 = arith.mulf %699, %703 : vector<2x128xf32>
    %705 = vector.shape_cast %672 : vector<2x1xi1> to vector<2x1xi1>
    %706 = vector.broadcast %705 : vector<2x1xi1> to vector<2x128xi1>
    %707 = arith.select %706, %704, %606 : vector<2x128xi1>, vector<2x128xf32>
    %708 = vector.shape_cast %672 : vector<2x1xi1> to vector<2x1xi1>
    %709 = vector.broadcast %708 : vector<2x1xi1> to vector<2x128xi1>
    %710 = arith.select %709, %702, %609 : vector<2x128xi1>, vector<2x128xf32>
    %cst_145 = arith.constant 0.000000e+00 : f32
    %711 = vector.shape_cast %672 : vector<2x1xi1> to vector<2x1xi1>
    %712 = vector.broadcast %711 : vector<2x1xi1> to vector<2x128xi1>
    %713 = vector.broadcast %cst_145 : f32 to vector<2x128xf32>
    %714 = arith.select %712, %707, %713 : vector<2x128xi1>, vector<2x128xf32>
    %715 = arith.truncf %714 : vector<2x128xf32> to vector<2x128xbf16>
    %716 = arith.index_cast %669 : i32 to index
    %c0_146 = arith.constant 0 : index
    %c0_147 = arith.constant 0 : index
    %717 = vector.load %arg7[%716, %c0_146, %c0_147] : memref<8x2x128xbf16, #tpu.memory_space<vmem>>, vector<1x2x128xbf16>
    %718 = vector.shape_cast %717 : vector<1x2x128xbf16> to vector<2x128xbf16>
    %719 = vector.shape_cast %715 : vector<2x128xbf16> to vector<1x2x128xbf16>
    tpu.vector_store %arg7[%716, %c0_146, %c0_147], %719 {strides = array<i32>} : memref<8x2x128xbf16, #tpu.memory_space<vmem>>, vector<1x2x128xbf16>,
    %c7_i32_148 = arith.constant 7 : i32
    %720 = arith.addi %6, %c7_i32_148 : i32
    %721 = vector.broadcast %720 : i32 to vector<2x1xi32>
    %722 = arith.cmpi slt, %721, %3 : vector<2x1xi32>
    %723 = arith.index_cast %c7_i32_148 : i32 to index
    %c0_149 = arith.constant 0 : index
    %c0_150 = arith.constant 0 : index
    %724 = vector.load %arg1[%723, %c0_149, %c0_150] : memref<8x2x512xbf16, #tpu.memory_space<vmem>>, vector<1x2x512xbf16>
    %725 = vector.shape_cast %724 : vector<1x2x512xbf16> to vector<2x512xbf16>
    %726 = arith.extf %725 : vector<2x512xbf16> to vector<2x512xf32>
    %727 = arith.truncf %656 : vector<2x128xf32> to vector<2x128xbf16>
    %cst_151 = arith.constant dense<0.000000e+00> : vector<2x512xf32>
    %728 = tpu.matmul %727, %4, %cst_151 {dimension_numbers = #tpu.dot_dimension_numbers<[1], [0], [0], [1], [0, 0, 1, 1], [], []>} : vector<2x128xbf16>, vector<128x512xbf16>, vector<2x512xf32> -> vector<2x512xf32>
    %729 = arith.addf %726, %728 : vector<2x512xf32>
    %730 = vector.extract_strided_slice %729 {offsets = [0, 0], sizes = [2, 128], strides = [1, 1]} : vector<2x512xf32> to vector<2x128xf32>
    %731 = arith.negf %730 : vector<2x128xf32>
    %732 = math.exp %731 : vector<2x128xf32>
    %cst_152 = arith.constant 1.000000e+00 : f32
    %733 = vector.broadcast %cst_152 : f32 to vector<2x128xf32>
    %734 = arith.addf %733, %732 : vector<2x128xf32>
    %735 = arith.divf %733, %734 : vector<2x128xf32>
    %736 = vector.extract_strided_slice %729 {offsets = [0, 128], sizes = [2, 128], strides = [1, 1]} : vector<2x512xf32> to vector<2x128xf32>
    %737 = arith.negf %736 : vector<2x128xf32>
    %738 = math.exp %737 : vector<2x128xf32>
    %cst_153 = arith.constant 1.000000e+00 : f32
    %739 = vector.broadcast %cst_153 : f32 to vector<2x128xf32>
    %740 = arith.addf %739, %738 : vector<2x128xf32>
    %741 = arith.divf %739, %740 : vector<2x128xf32>
    %742 = vector.extract_strided_slice %729 {offsets = [0, 256], sizes = [2, 128], strides = [1, 1]} : vector<2x512xf32> to vector<2x128xf32>
    %743 = math.tanh %742 : vector<2x128xf32>
    %744 = vector.extract_strided_slice %729 {offsets = [0, 384], sizes = [2, 128], strides = [1, 1]} : vector<2x512xf32> to vector<2x128xf32>
    %745 = arith.negf %744 : vector<2x128xf32>
    %746 = math.exp %745 : vector<2x128xf32>
    %cst_154 = arith.constant 1.000000e+00 : f32
    %747 = vector.broadcast %cst_154 : f32 to vector<2x128xf32>
    %748 = arith.addf %747, %746 : vector<2x128xf32>
    %749 = arith.divf %747, %748 : vector<2x128xf32>
    %750 = arith.mulf %741, %659 : vector<2x128xf32>
    %751 = arith.mulf %735, %743 : vector<2x128xf32>
    %752 = arith.addf %750, %751 : vector<2x128xf32>
    %753 = math.tanh %752 : vector<2x128xf32>
    %754 = arith.mulf %749, %753 : vector<2x128xf32>
    %755 = vector.shape_cast %722 : vector<2x1xi1> to vector<2x1xi1>
    %756 = vector.broadcast %755 : vector<2x1xi1> to vector<2x128xi1>
    %757 = arith.select %756, %754, %656 : vector<2x128xi1>, vector<2x128xf32>
    %758 = vector.shape_cast %722 : vector<2x1xi1> to vector<2x1xi1>
    %759 = vector.broadcast %758 : vector<2x1xi1> to vector<2x128xi1>
    %760 = arith.select %759, %752, %659 : vector<2x128xi1>, vector<2x128xf32>
    %cst_155 = arith.constant 0.000000e+00 : f32
    %761 = vector.shape_cast %722 : vector<2x1xi1> to vector<2x1xi1>
    %762 = vector.broadcast %761 : vector<2x1xi1> to vector<2x128xi1>
    %763 = vector.broadcast %cst_155 : f32 to vector<2x128xf32>
    %764 = arith.select %762, %757, %763 : vector<2x128xi1>, vector<2x128xf32>
    %765 = arith.truncf %764 : vector<2x128xf32> to vector<2x128xbf16>
    %766 = arith.index_cast %c7_i32_148 : i32 to index
    %c0_156 = arith.constant 0 : index
    %c0_157 = arith.constant 0 : index
    %767 = vector.load %arg6[%766, %c0_156, %c0_157] : memref<8x2x128xbf16, #tpu.memory_space<vmem>>, vector<1x2x128xbf16>
    %768 = vector.shape_cast %767 : vector<1x2x128xbf16> to vector<2x128xbf16>
    %769 = vector.shape_cast %765 : vector<2x128xbf16> to vector<1x2x128xbf16>
    tpu.vector_store %arg6[%766, %c0_156, %c0_157], %769 {strides = array<i32>} : memref<8x2x128xbf16, #tpu.memory_space<vmem>>, vector<1x2x128xbf16>,
    %c7_i32_158 = arith.constant 7 : i32
    %770 = arith.subi %c7_i32_158, %c7_i32_148 : i32
    %771 = arith.addi %8, %770 : i32
    %772 = vector.broadcast %771 : i32 to vector<2x1xi32>
    %773 = arith.cmpi slt, %772, %3 : vector<2x1xi32>
    %774 = arith.index_cast %770 : i32 to index
    %c0_159 = arith.constant 0 : index
    %c0_160 = arith.constant 0 : index
    %775 = vector.load %arg2[%774, %c0_159, %c0_160] : memref<8x2x512xbf16, #tpu.memory_space<vmem>>, vector<1x2x512xbf16>
    %776 = vector.shape_cast %775 : vector<1x2x512xbf16> to vector<2x512xbf16>
    %777 = arith.extf %776 : vector<2x512xbf16> to vector<2x512xf32>
    %778 = arith.truncf %707 : vector<2x128xf32> to vector<2x128xbf16>
    %cst_161 = arith.constant dense<0.000000e+00> : vector<2x512xf32>
    %779 = tpu.matmul %778, %5, %cst_161 {dimension_numbers = #tpu.dot_dimension_numbers<[1], [0], [0], [1], [0, 0, 1, 1], [], []>} : vector<2x128xbf16>, vector<128x512xbf16>, vector<2x512xf32> -> vector<2x512xf32>
    %780 = arith.addf %777, %779 : vector<2x512xf32>
    %781 = vector.extract_strided_slice %780 {offsets = [0, 0], sizes = [2, 128], strides = [1, 1]} : vector<2x512xf32> to vector<2x128xf32>
    %782 = arith.negf %781 : vector<2x128xf32>
    %783 = math.exp %782 : vector<2x128xf32>
    %cst_162 = arith.constant 1.000000e+00 : f32
    %784 = vector.broadcast %cst_162 : f32 to vector<2x128xf32>
    %785 = arith.addf %784, %783 : vector<2x128xf32>
    %786 = arith.divf %784, %785 : vector<2x128xf32>
    %787 = vector.extract_strided_slice %780 {offsets = [0, 128], sizes = [2, 128], strides = [1, 1]} : vector<2x512xf32> to vector<2x128xf32>
    %788 = arith.negf %787 : vector<2x128xf32>
    %789 = math.exp %788 : vector<2x128xf32>
    %cst_163 = arith.constant 1.000000e+00 : f32
    %790 = vector.broadcast %cst_163 : f32 to vector<2x128xf32>
    %791 = arith.addf %790, %789 : vector<2x128xf32>
    %792 = arith.divf %790, %791 : vector<2x128xf32>
    %793 = vector.extract_strided_slice %780 {offsets = [0, 256], sizes = [2, 128], strides = [1, 1]} : vector<2x512xf32> to vector<2x128xf32>
    %794 = math.tanh %793 : vector<2x128xf32>
    %795 = vector.extract_strided_slice %780 {offsets = [0, 384], sizes = [2, 128], strides = [1, 1]} : vector<2x512xf32> to vector<2x128xf32>
    %796 = arith.negf %795 : vector<2x128xf32>
    %797 = math.exp %796 : vector<2x128xf32>
    %cst_164 = arith.constant 1.000000e+00 : f32
    %798 = vector.broadcast %cst_164 : f32 to vector<2x128xf32>
    %799 = arith.addf %798, %797 : vector<2x128xf32>
    %800 = arith.divf %798, %799 : vector<2x128xf32>
    %801 = arith.mulf %792, %710 : vector<2x128xf32>
    %802 = arith.mulf %786, %794 : vector<2x128xf32>
    %803 = arith.addf %801, %802 : vector<2x128xf32>
    %804 = math.tanh %803 : vector<2x128xf32>
    %805 = arith.mulf %800, %804 : vector<2x128xf32>
    %806 = vector.shape_cast %773 : vector<2x1xi1> to vector<2x1xi1>
    %807 = vector.broadcast %806 : vector<2x1xi1> to vector<2x128xi1>
    %808 = arith.select %807, %805, %707 : vector<2x128xi1>, vector<2x128xf32>
    %809 = vector.shape_cast %773 : vector<2x1xi1> to vector<2x1xi1>
    %810 = vector.broadcast %809 : vector<2x1xi1> to vector<2x128xi1>
    %811 = arith.select %810, %803, %710 : vector<2x128xi1>, vector<2x128xf32>
    %cst_165 = arith.constant 0.000000e+00 : f32
    %812 = vector.shape_cast %773 : vector<2x1xi1> to vector<2x1xi1>
    %813 = vector.broadcast %812 : vector<2x1xi1> to vector<2x128xi1>
    %814 = vector.broadcast %cst_165 : f32 to vector<2x128xf32>
    %815 = arith.select %813, %808, %814 : vector<2x128xi1>, vector<2x128xf32>
    %816 = arith.truncf %815 : vector<2x128xf32> to vector<2x128xbf16>
    %817 = arith.index_cast %770 : i32 to index
    %c0_166 = arith.constant 0 : index
    %c0_167 = arith.constant 0 : index
    %818 = vector.load %arg7[%817, %c0_166, %c0_167] : memref<8x2x128xbf16, #tpu.memory_space<vmem>>, vector<1x2x128xbf16>
    %819 = vector.shape_cast %818 : vector<1x2x128xbf16> to vector<2x128xbf16>
    %820 = vector.shape_cast %816 : vector<2x128xbf16> to vector<1x2x128xbf16>
    tpu.vector_store %arg7[%817, %c0_166, %c0_167], %820 {strides = array<i32>} : memref<8x2x128xbf16, #tpu.memory_space<vmem>>, vector<1x2x128xbf16>,
    %c8_i32_168 = arith.constant 8 : i32
    %c0_169 = arith.constant 0 : index
    %c0_170 = arith.constant 0 : index
    %821 = vector.load %arg10[%c0_169, %c0_170] : memref<2x128xf32, #tpu.memory_space<vmem>>, vector<2x128xf32>
    tpu.vector_store %arg10[%c0_169, %c0_170], %757 {strides = array<i32>} : memref<2x128xf32, #tpu.memory_space<vmem>>, vector<2x128xf32>,
    %c0_171 = arith.constant 0 : index
    %c0_172 = arith.constant 0 : index
    %822 = vector.load %arg11[%c0_171, %c0_172] : memref<2x128xf32, #tpu.memory_space<vmem>>, vector<2x128xf32>
    tpu.vector_store %arg11[%c0_171, %c0_172], %760 {strides = array<i32>} : memref<2x128xf32, #tpu.memory_space<vmem>>, vector<2x128xf32>,
    %c0_173 = arith.constant 0 : index
    %c0_174 = arith.constant 0 : index
    %823 = vector.load %arg12[%c0_173, %c0_174] : memref<2x128xf32, #tpu.memory_space<vmem>>, vector<2x128xf32>
    tpu.vector_store %arg12[%c0_173, %c0_174], %808 {strides = array<i32>} : memref<2x128xf32, #tpu.memory_space<vmem>>, vector<2x128xf32>,
    %c0_175 = arith.constant 0 : index
    %c0_176 = arith.constant 0 : index
    %824 = vector.load %arg13[%c0_175, %c0_176] : memref<2x128xf32, #tpu.memory_space<vmem>>, vector<2x128xf32>
    tpu.vector_store %arg13[%c0_175, %c0_176], %811 {strides = array<i32>} : memref<2x128xf32, #tpu.memory_space<vmem>>, vector<2x128xf32>,
    %c0_177 = arith.constant 0 : index
    %c0_178 = arith.constant 0 : index
    %825 = vector.load %arg8[%c0_177, %c0_178] : memref<2x128xf32, #tpu.memory_space<vmem>>, vector<2x128xf32>
    tpu.vector_store %arg8[%c0_177, %c0_178], %757 {strides = array<i32>} : memref<2x128xf32, #tpu.memory_space<vmem>>, vector<2x128xf32>,
    %c0_179 = arith.constant 0 : index
    %c0_180 = arith.constant 0 : index
    %826 = vector.load %arg9[%c0_179, %c0_180] : memref<2x128xf32, #tpu.memory_space<vmem>>, vector<2x128xf32>
    tpu.vector_store %arg9[%c0_179, %c0_180], %808 {strides = array<i32>} : memref<2x128xf32, #tpu.memory_space<vmem>>, vector<2x128xf32>,
    return
  }
  func.func @transform_0(%arg0: i32) -> (i32, i32, i32) {
    %c0_i32 = arith.constant 0 : i32
    %c0_i32_0 = arith.constant 0 : i32
    %c0_i32_1 = arith.constant 0 : i32
    return %arg0, %c0_i32, %c0_i32_0 : i32, i32, i32
  }
  func.func @transform_1(%arg0: i32) -> (i32, i32, i32) {
    %c0_i32 = arith.constant 0 : i32
    %0 = arith.subi %c0_i32, %arg0 : i32
    %c0_i32_0 = arith.constant 0 : i32
    %c0_i32_1 = arith.constant 0 : i32
    %c0_i32_2 = arith.constant 0 : i32
    return %0, %c0_i32_0, %c0_i32_1 : i32, i32, i32
  }
  func.func @transform_2(%arg0: i32) -> (i32, i32) {
    %c0_i32 = arith.constant 0 : i32
    %c0_i32_0 = arith.constant 0 : i32
    %c0_i32_1 = arith.constant 0 : i32
    return %c0_i32, %c0_i32_0 : i32, i32
  }
  func.func @transform_3(%arg0: i32) -> (i32, i32) {
    %c0_i32 = arith.constant 0 : i32
    %c0_i32_0 = arith.constant 0 : i32
    %c0_i32_1 = arith.constant 0 : i32
    return %c0_i32, %c0_i32_0 : i32, i32
  }
  func.func @transform_4(%arg0: i32) -> (i32, i32) {
    %c0_i32 = arith.constant 0 : i32
    %c0_i32_0 = arith.constant 0 : i32
    %c0_i32_1 = arith.constant 0 : i32
    return %c0_i32, %c0_i32_0 : i32, i32
  }
  func.func @transform_5(%arg0: i32) -> (i32, i32, i32) {
    %c0_i32 = arith.constant 0 : i32
    %c0_i32_0 = arith.constant 0 : i32
    %c0_i32_1 = arith.constant 0 : i32
    return %arg0, %c0_i32, %c0_i32_0 : i32, i32, i32
  }
  func.func @transform_6(%arg0: i32) -> (i32, i32, i32) {
    %c0_i32 = arith.constant 0 : i32
    %0 = arith.subi %c0_i32, %arg0 : i32
    %c0_i32_0 = arith.constant 0 : i32
    %c0_i32_1 = arith.constant 0 : i32
    %c0_i32_2 = arith.constant 0 : i32
    return %0, %c0_i32_0, %c0_i32_1 : i32, i32, i32
  }
  func.func @transform_7(%arg0: i32) -> (i32, i32) {
    %c0_i32 = arith.constant 0 : i32
    %c0_i32_0 = arith.constant 0 : i32
    %c0_i32_1 = arith.constant 0 : i32
    return %c0_i32, %c0_i32_0 : i32, i32
  }
  func.func @transform_8(%arg0: i32) -> (i32, i32) {
    %c0_i32 = arith.constant 0 : i32
    %c0_i32_0 = arith.constant 0 : i32
    %c0_i32_1 = arith.constant 0 : i32
    return %c0_i32, %c0_i32_0 : i32, i32
  }
}

</mosaic_0001>

<bundles_post_ra>
// kernel: lstm_classifier_forward.4
= control target key start
LH: loop header
LB: loop body
LE: loop exit
PB: predicated region body
PF: predicated region fallthrough
CT: control target
= control target key end

     0   :  { %10 = vsyncpa [#allocation3], 0  ;;  %s629_s0 = inlined_call_operand.vmem [shape: f32[16,25], index: 0, kind: input, shape index: {}]   ;;  %s630_s1 = inlined_call_operand.hbm [shape: bf16[25,1024], index: 1, kind: input, shape index: {}]   ;;  %s631_s2 = inlined_call_operand.hbm [shape: f32[1,1024], index: 2, kind: input, shape index: {}]   ;;  %s632_s3 = inlined_call_operand.vmem [shape: bf16[16,512], index: 3, kind: output, shape index: {0}]   ;;  %s633_s4 = inlined_call_operand.vmem [shape: bf16[16,512], index: 4, kind: output, shape index: {1}]  }
   0x1   :  { %11 = vsyncpa [#allocation5], 0  ;;  %s536_s15 = smov [#allocation2]   ;;  %s488_s19 = scalar_lea.hbm %s630_s1, 2048 }
   0x2   :  { %s19_s16 = sshll.u32 %s536_s15, 4  ;;  %p489_p0 = scmp.ne.s32.totalorder %s630_s1, %s488_s19  ;;  %s20_s16 = int_to_ptr.vmem [resolvable:$true] %s19_s16 }
   0x3   :  { %p492_p1 = scmp.lt.u32.totalorder %s488_s19, %s630_s1 }
   0x5   :  { %p494_p2 = pnand %p492_p1, %p489_p0 }
   0x7   :  { %497 = shalt.err (!%p494_p2)
}
   0x8   :  { %s498_s24 = scalar_lea.vmem %s20_s16, 2048  ;;  %p503_p4 = scmp.lt.s32.totalorder %s20_s16, %s20_s16 }
   0x9   :  { %p499_p3 = scmp.ne.s32.totalorder %s20_s16, %s498_s24  ;;  %p504_p5 = scmp.lt.s32.totalorder %s498_s24, %s498_s24 }
   0xb   :  { %p505_p6 = por %p504_p5, %p503_p4 }
   0xd   :  { %p506_p7 = pnand %p505_p6, %p499_p3 }
   0xf   :  { %509 = shalt.err (!%p506_p7)
}
  0x10   :  { %s537_s25 = smov 512   ;;  %s538_s26 = smov 32  }
  0x11   :  { %25 = dma.hbm_to_vmem [thread:$0]  %s630_s1, 2048, %s20_s16, [#allocation3], %s537_s25, %s537_s25, %s538_s26  }
  0x12   :  { %s539_s29 = smov [#allocation4]   ;;  %s510_s7 = scalar_lea.hbm %s631_s2, 128 }
  0x13   :  { %s32_s30 = sshll.u32 %s539_s29, 4  ;;  %p511_p8 = scmp.ne.s32.totalorder %s631_s2, %s510_s7  ;;  %s33_s30 = int_to_ptr.vmem [resolvable:$true] %s32_s30 }
  0x14   :  { %p514_p9 = scmp.lt.u32.totalorder %s510_s7, %s631_s2 }
  0x16   :  { %p516_p10 = pnand %p514_p9, %p511_p8 }
  0x18   :  { %519 = shalt.err (!%p516_p10)
}
  0x19   :  { %s520_s12 = scalar_lea.vmem %s33_s30, 128  ;;  %p525_p12 = scmp.lt.s32.totalorder %s33_s30, %s33_s30 }
  0x1a   :  { %p521_p11 = scmp.ne.s32.totalorder %s33_s30, %s520_s12  ;;  %p526_p13 = scmp.lt.s32.totalorder %s520_s12, %s520_s12 }
  0x1c   :  { %p527_p0 = por %p526_p13, %p525_p12 }
  0x1e   :  { %p528_p1 = pnand %p527_p0, %p521_p11 }
  0x20   :  { %531 = shalt.err (!%p528_p1)
}
  0x21   :  { %35 = dma.hbm_to_vmem [thread:$0]  %s631_s2, 128, %s33_s30, [#allocation5]  }
  0x22   :  { %532 = dma.done.wait [#allocation3], 2048  }
  0x23   :  { %533 = vsyncadd [#allocation3], 4294965248 }
  0x24   :  { %534 = dma.done.wait [#allocation5], 128  }
  0x25   :  { %535 = vsyncadd [#allocation5], 4294967168  ;;  %v540_v0 = vmov 0   ;;  %vm180_vm0 = vcmask 1043456   ;;  %vm181_vm1 = vcmask 1044480   ;;  %v541_v1 = vmov 65535  }
  0x26   :  { %240 = vmatprep.mubr.bf16.mxu0 %v540_v0  ;;  %283 = vmatprep.mubr.bf16.mxu1 %v540_v0  ;;  %v182_v2 = vsel %vm180_vm0, 4294967295, %v541_v1  ;;  %v46_v3 = vld [vmem:[#allocation2] sm:$0xff]  ;;  %v47_v5 = vld [vmem:[#allocation2 + $0x8] sm:$0xff]  ;;  %v48_v22 = vld [vmem:[#allocation2 + $0x10] sm:$0xff]  ;;  %vm176_vm2 = vcmask 203776   ;;  %v64_v47 = vlaneseq }
  0x27   :  { %v50_v4 = vld [vmem:[#allocation2 + $0x20] sm:$0xff]  ;;  %v51_v7 = vld [vmem:[#allocation2 + $0x28] sm:$0xff]  ;;  %v183_v11 = vsel %vm181_vm1, %v182_v2, 0  ;;  %v52_v23 = vld [vmem:[#allocation2 + $0x30] sm:$0xff] }
  0x28   :  { %v447_v6 = vcombine.high %v46_v3, %v50_v4  ;;  %v446_v8 = vcombine.low %v46_v3, %v50_v4  ;;  %v54_v9 = vld [vmem:[#allocation2 + $0x40] sm:$0xff]  ;;  %v449_v12 = vcombine.high %v47_v5, %v51_v7  ;;  %v448_v13 = vcombine.low %v47_v5, %v51_v7  ;;  %v55_v15 = vld [vmem:[#allocation2 + $0x48] sm:$0xff]  ;;  %v49_v26 = vld [vmem:[#allocation2 + $0x18] sm:$0xff] }
  0x29   :  { %v58_v10 = vld [vmem:[#allocation2 + $0x60] sm:$0x11]  ;;  %v59_v16 = vld [vmem:[#allocation2 + $0x68] sm:$0x11]  ;;  %v53_v27 = vld [vmem:[#allocation2 + $0x38] sm:$0xff]  ;;  %v451_v31 = vcombine.high %v48_v22, %v52_v23  ;;  %v450_v39 = vcombine.low %v48_v22, %v52_v23  ;;  %v65_v48 = vshrl.u32 %v64_v47, 7 }
  0x2a   :  { %v455_v14 = vcombine.high %v54_v9, %v58_v10  ;;  %v454_v17 = vcombine.low %v54_v9, %v58_v10  ;;  %v43_v18 = vld [vmem:[%s629_s0] sm:$0xff]  ;;  %208 = vmatprep.subr.bf16.mxu0 %v447_v6  ;;  %v457_v19 = vcombine.high %v55_v15, %v59_v16  ;;  %v456_v20 = vcombine.low %v55_v15, %v59_v16  ;;  %v44_v21 = vld [vmem:[%s629_s0 + $0x8] sm:$0xff]  ;;  %v56_v28 = vld [vmem:[#allocation2 + $0x50] sm:$0xff] }
  0x2b   :  { %251 = vmatprep.subr.bf16.mxu1 %v449_v12  ;;  %209 = vmatpush1.bf16.msra.mxu0 %v446_v8  ;;  %v60_v32 = vld [vmem:[#allocation2 + $0x70] sm:$0x11]  ;;  %v57_v33 = vld [vmem:[#allocation2 + $0x58] sm:$0xff]  ;;  %v453_v35 = vcombine.high %v49_v26, %v53_v27  ;;  %v45_v37 = vpack.c.bf16 %v44_v21, %v43_v18  ;;  %v452_v41 = vcombine.low %v49_v26, %v53_v27  ;;  %v66_v49 = vsub.s32 0, %v65_v48  ;;  %v62_v50 = vld [vmem:[#allocation4] sm:$0xff] }
  0x2c   :  { %v188_v24 = vand.u32 %v455_v14, %v183_v11  ;;  %v185_v25 = vand.u32 %v454_v17, %v183_v11  ;;  %252 = vmatpush1.bf16.msra.mxu1 %v448_v13  ;;  %v194_v29 = vand.u32 %v457_v19, %v183_v11  ;;  %v191_v30 = vand.u32 %v456_v20, %v183_v11  ;;  %v61_v34 = vld [vmem:[#allocation2 + $0x78] sm:$0x11] }
  0x2d   :  { %v459_v36 = vcombine.high %v56_v28, %v60_v32  ;;  %v461_v38 = vcombine.high %v57_v33, %v61_v34  ;;  %v458_v40 = vcombine.low %v56_v28, %v60_v32  ;;  %v460_v43 = vcombine.low %v57_v33, %v61_v34 }
  0x2e   :  { %210 = vmatprep.subr.bf16.mxu0 %v188_v24  ;;  %253 = vmatprep.subr.bf16.mxu1 %v194_v29  ;;  %v74_v51 = vsub.s32 2, %v65_v48  ;;  %v70_v52 = vsub.s32 1, %v65_v48  ;;  %v78_v53 = vsub.s32 3, %v65_v48  ;;  %v67_v54 = vrot.slane %v62_v50, %v66_v49 }
  0x2f   :  { %211 = vmatpush1.bf16.msra.mxu0 %v185_v25  ;;  %v200_v42 = vand.u32 %v459_v36, %v183_v11  ;;  %v206_v44 = vand.u32 %v461_v38, %v183_v11  ;;  %v197_v45 = vand.u32 %v458_v40, %v183_v11  ;;  %v203_v46 = vand.u32 %v460_v43, %v183_v11 }
  0x30   :  { %254 = vmatpush1.bf16.msra.mxu1 %v191_v30  ;;  %294 = vmatprep.subr.bf16.mxu0 %v451_v31  ;;  %v75_v55 = vrot.slane %v62_v50, %v74_v51  ;;  %v71_v56 = vrot.slane %v62_v50, %v70_v52  ;;  %v79_v57 = vrot.slane %v62_v50, %v78_v53  ;;  %v82_v62 = vsub.s32 4, %v65_v48 }
  0x31   :  { %337 = vmatprep.subr.bf16.mxu1 %v453_v35  ;;  %v90_v3 = vsub.s32 6, %v65_v48  ;;  %v86_v4 = vsub.s32 5, %v65_v48  ;;  %v94_v9 = vsub.s32 7, %v65_v48 }
  0x32   :  { %462 = vmatmul.mubr.msk.bf16.vlgmr.msra.gmra.mrb[0].mxu0 %vm176_vm2, %v45_v37  ;;  %v83_v16 = vrot.slane %v62_v50, %v82_v62 }
  0x33   :  { %463 = vmatmul.mubr.msk.bf16.vlgmr.msra.gmra.mrb[0].mxu1 %vm176_vm2, %v45_v37  ;;  %295 = vmatpush1.bf16.msra.mxu0 %v450_v39  ;;  %v91_v18 = vrot.slane %v62_v50, %v90_v3  ;;  %v87_v19 = vrot.slane %v62_v50, %v86_v4  ;;  %v95_v21 = vrot.slane %v62_v50, %v94_v9 }
  0x34   :  { %338 = vmatpush1.bf16.msra.mxu1 %v452_v41  ;;  %296 = vmatprep.subr.bf16.mxu0 %v200_v42 }
  0x35   :  { %339 = vmatprep.subr.bf16.mxu1 %v206_v44  ;;  %326 = vmatprep.mubr.bf16.mxu0 %v540_v0 }
  0x36   :  { %369 = vmatprep.mubr.bf16.mxu1 %v540_v0 }
  0x37   :  { %297 = vmatpush1.bf16.msra.mxu0 %v197_v45 }
  0x38   :  { %340 = vmatpush1.bf16.msra.mxu1 %v203_v46 }
  0x3a   :  { %464 = vmatmul.mubr.msk.bf16.vlgmr.msra.gmra.mrb[4].mxu0 %vm176_vm2, %v45_v37 }
  0x3b   :  { %465 = vmatmul.mubr.msk.bf16.vlgmr.msra.gmra.mrb[4].mxu1 %vm176_vm2, %v45_v37 }
 0x105   :  { %v242_v58 = vpop.f32.mrb[0].mxu0 }
 0x106   :  { %v243_v59 = vadd.f32 %v242_v58, %v67_v54  ;;  %v285_v60 = vpop.f32.mrb[0].mxu1  ;;  %v244_v61 = vpop.f32.mrb[1].mxu0 }
 0x107   :  { %v286_v63 = vadd.f32 %v285_v60, %v75_v55  ;;  %v245_v0 = vadd.f32 %v244_v61, %v71_v56  ;;  %v287_v1 = vpop.f32.mrb[1].mxu1  ;;  %v246_v2 = vpop.f32.mrb[2].mxu0 }
 0x108   :  { %v288_v5 = vadd.f32 %v287_v1, %v79_v57  ;;  %v247_v6 = vadd.f32 %v246_v2, %v67_v54  ;;  %v289_v7 = vpop.f32.mrb[2].mxu1  ;;  %v248_v8 = vpop.f32.mrb[3].mxu0 }
 0x109   :  { %v474_v10 = vpack.c.bf16 %v245_v0, %v243_v59  ;;  %v290_v11 = vadd.f32 %v289_v7, %v75_v55  ;;  %v249_v12 = vadd.f32 %v248_v8, %v71_v56  ;;  %v291_v13 = vpop.f32.mrb[3].mxu1 }
 0x10a   :  { %v475_v14 = vpack.c.bf16 %v288_v5, %v286_v63  ;;  %v292_v15 = vadd.f32 %v291_v13, %v79_v57 }
 0x10b   :  { %404 = vst [vmem:[%s632_s3] sm:$0xff] %v474_v10  ;;  %v476_v17 = vpack.c.bf16 %v249_v12, %v247_v6 }
 0x10c   :  { %405 = vst [vmem:[%s632_s3 + $0x8] sm:$0xff] %v475_v14  ;;  %v477_v20 = vpack.c.bf16 %v292_v15, %v290_v11 }
 0x10d   :  { %406 = vst [vmem:[%s632_s3 + $0x10] sm:$0xff] %v476_v17  ;;  %v328_v22 = vpop.f32.mrb[4].mxu0 }
 0x10e   :  { %407 = vst [vmem:[%s632_s3 + $0x18] sm:$0xff] %v477_v20  ;;  %v329_v23 = vadd.f32 %v328_v22, %v83_v16  ;;  %v371_v24 = vpop.f32.mrb[4].mxu1  ;;  %v330_v25 = vpop.f32.mrb[5].mxu0 }
 0x10f   :  { %v372_v26 = vadd.f32 %v371_v24, %v91_v18  ;;  %v331_v27 = vadd.f32 %v330_v25, %v87_v19  ;;  %v373_v28 = vpop.f32.mrb[5].mxu1  ;;  %v332_v29 = vpop.f32.mrb[6].mxu0 }
 0x110   :  { %v374_v30 = vadd.f32 %v373_v28, %v95_v21  ;;  %v333_v31 = vadd.f32 %v332_v29, %v83_v16  ;;  %v375_v32 = vpop.f32.mrb[6].mxu1  ;;  %v334_v33 = vpop.f32.mrb[7].mxu0 }
 0x111   :  { %v478_v34 = vpack.c.bf16 %v331_v27, %v329_v23  ;;  %v376_v35 = vadd.f32 %v375_v32, %v91_v18  ;;  %v335_v36 = vadd.f32 %v334_v33, %v87_v19  ;;  %v377_v37 = vpop.f32.mrb[7].mxu1 }
 0x112   :  { %v479_v38 = vpack.c.bf16 %v374_v30, %v372_v26  ;;  %v378_v39 = vadd.f32 %v377_v37, %v95_v21 }
 0x113   :  { %432 = vst [vmem:[%s633_s4] sm:$0xff] %v478_v34  ;;  %v480_v40 = vpack.c.bf16 %v335_v36, %v333_v31 }
 0x114   :  { %433 = vst [vmem:[%s633_s4 + $0x8] sm:$0xff] %v479_v38  ;;  %v481_v41 = vpack.c.bf16 %v378_v39, %v376_v35 }
 0x115   :  { %434 = vst [vmem:[%s633_s4 + $0x10] sm:$0xff] %v480_v40 }
 0x116   :  { %435 = vst [vmem:[%s633_s4 + $0x18] sm:$0xff] %v481_v41 }
 0x117   :  { %444 = vsyncpa [#allocation3], 1 }
 0x118   :  { %445 = vsyncpa [#allocation5], 1 }

// kernel: lstm_classifier_forward.6
= control target key start
LH: loop header
LB: loop body
LE: loop exit
PB: predicated region body
PF: predicated region fallthrough
CT: control target
= control target key end

     0   :  { %10 = vsyncpa [#allocation3], 0  ;;  %s1265_s15 = smov [#allocation2]   ;;  %s1350_s0 = inlined_call_operand.vmem [shape: bf16[16,256], index: 0, kind: input, shape index: {}]   ;;  %s1351_s1 = inlined_call_operand.hbm [shape: bf16[256,1024], index: 1, kind: input, shape index: {}]   ;;  %s1352_s2 = inlined_call_operand.vmem [shape: f32[1,1024], index: 2, kind: input, shape index: {}]   ;;  %s1353_s3 = inlined_call_operand.vmem [shape: bf16[16,512], index: 3, kind: output, shape index: {0}]   ;;  %s1354_s4 = inlined_call_operand.vmem [shape: bf16[16,512], index: 4, kind: output, shape index: {1}]  }
   0x1   :  { %s18_s16 = sshll.u32 %s1265_s15, 4  ;;  %s1241_s19 = scalar_lea.hbm %s1351_s1, 16384  ;;  %s19_s16 = int_to_ptr.vmem [resolvable:$true] %s18_s16 }
   0x2   :  { %p1242_p0 = scmp.ne.s32.totalorder %s1351_s1, %s1241_s19  ;;  %p1245_p1 = scmp.lt.u32.totalorder %s1241_s19, %s1351_s1 }
   0x4   :  { %p1247_p2 = pnand %p1245_p1, %p1242_p0 }
   0x6   :  { %1250 = shalt.err (!%p1247_p2)
}
   0x7   :  { %s1251_s24 = scalar_lea.vmem %s19_s16, 16384  ;;  %p1256_p4 = scmp.lt.s32.totalorder %s19_s16, %s19_s16 }
   0x8   :  { %p1252_p3 = scmp.ne.s32.totalorder %s19_s16, %s1251_s24  ;;  %p1257_p5 = scmp.lt.s32.totalorder %s1251_s24, %s1251_s24 }
   0xa   :  { %p1258_p6 = por %p1257_p5, %p1256_p4 }
   0xc   :  { %p1259_p7 = pnand %p1258_p6, %p1252_p3 }
   0xe   :  { %1262 = shalt.err (!%p1259_p7)
}
   0xf   :  { %s1266_s25 = smov 512   ;;  %s1267_s26 = smov 32  }
  0x10   :  { %24 = dma.hbm_to_vmem [thread:$0]  %s1351_s1, 16384, %s19_s16, [#allocation3], %s1266_s25, %s1266_s25, %s1267_s26  }
  0x11   :  { %1263 = dma.done.wait [#allocation3], 16384  }
  0x12   :  { %1264 = vsyncadd [#allocation3], 4294950912  ;;  %v32_v0 = vld [vmem:[#allocation2] sm:$0xff]  ;;  %v33_v2 = vld [vmem:[#allocation2 + $0x8] sm:$0xff] }
  0x13   :  { %v36_v1 = vld [vmem:[#allocation2 + $0x20] sm:$0xff]  ;;  %v37_v4 = vld [vmem:[#allocation2 + $0x28] sm:$0xff] }
  0x14   :  { %v1092_v3 = vcombine.high %v32_v0, %v36_v1  ;;  %v1091_v5 = vcombine.low %v32_v0, %v36_v1  ;;  %v40_v6 = vld [vmem:[#allocation2 + $0x40] sm:$0xff]  ;;  %v1094_v8 = vcombine.high %v33_v2, %v37_v4  ;;  %v1093_v9 = vcombine.low %v33_v2, %v37_v4  ;;  %v41_v11 = vld [vmem:[#allocation2 + $0x48] sm:$0xff] }
  0x15   :  { %v44_v7 = vld [vmem:[#allocation2 + $0x60] sm:$0xff]  ;;  %v45_v12 = vld [vmem:[#allocation2 + $0x68] sm:$0xff] }
  0x16   :  { %v1100_v10 = vcombine.high %v40_v6, %v44_v7  ;;  %v48_v13 = vld [vmem:[#allocation2 + $0x80] sm:$0xff]  ;;  %852 = vmatprep.subr.bf16.mxu0 %v1092_v3  ;;  %v1102_v14 = vcombine.high %v41_v11, %v45_v12  ;;  %v49_v16 = vld [vmem:[#allocation2 + $0x88] sm:$0xff]  ;;  %895 = vmatprep.subr.bf16.mxu1 %v1094_v8  ;;  %v1099_v18 = vcombine.low %v40_v6, %v44_v7 }
  0x17   :  { %v52_v15 = vld [vmem:[#allocation2 + $0xa0] sm:$0xff]  ;;  %v53_v17 = vld [vmem:[#allocation2 + $0xa8] sm:$0xff]  ;;  %853 = vmatpush1.bf16.msra.mxu0 %v1091_v5  ;;  %896 = vmatpush1.bf16.msra.mxu1 %v1093_v9  ;;  %v1101_v19 = vcombine.low %v41_v11, %v45_v12 }
  0x18   :  { %854 = vmatprep.subr.bf16.mxu0 %v1100_v10  ;;  %v1108_v20 = vcombine.high %v48_v13, %v52_v15  ;;  %897 = vmatprep.subr.bf16.mxu1 %v1102_v14  ;;  %v1110_v21 = vcombine.high %v49_v16, %v53_v17  ;;  %v56_v22 = vld [vmem:[#allocation2 + $0xc0] sm:$0xff]  ;;  %v57_v24 = vld [vmem:[#allocation2 + $0xc8] sm:$0xff]  ;;  %v1107_v26 = vcombine.low %v48_v13, %v52_v15 }
  0x19   :  { %v60_v23 = vld [vmem:[#allocation2 + $0xe0] sm:$0xff]  ;;  %v61_v25 = vld [vmem:[#allocation2 + $0xe8] sm:$0xff]  ;;  %v1109_v27 = vcombine.low %v49_v16, %v53_v17 }
  0x1a   :  { %v1116_v28 = vcombine.high %v56_v22, %v60_v23  ;;  %v1118_v29 = vcombine.high %v57_v24, %v61_v25  ;;  %v64_v30 = vld [vmem:[#allocation2 + $0x100] sm:$0xff]  ;;  %v65_v32 = vld [vmem:[#allocation2 + $0x108] sm:$0xff]  ;;  %v1115_v34 = vcombine.low %v56_v22, %v60_v23  ;;  %v1117_v35 = vcombine.low %v57_v24, %v61_v25 }
  0x1b   :  { %855 = vmatpush1.bf16.msra.mxu0 %v1099_v18  ;;  %898 = vmatpush1.bf16.msra.mxu1 %v1101_v19  ;;  %v68_v31 = vld [vmem:[#allocation2 + $0x120] sm:$0xff]  ;;  %v69_v33 = vld [vmem:[#allocation2 + $0x128] sm:$0xff] }
  0x1c   :  { %856 = vmatprep.subr.bf16.mxu0 %v1108_v20  ;;  %899 = vmatprep.subr.bf16.mxu1 %v1110_v21  ;;  %v1124_v36 = vcombine.high %v64_v30, %v68_v31  ;;  %v1126_v37 = vcombine.high %v65_v32, %v69_v33  ;;  %v72_v38 = vld [vmem:[#allocation2 + $0x140] sm:$0xff]  ;;  %v73_v40 = vld [vmem:[#allocation2 + $0x148] sm:$0xff]  ;;  %v1123_v42 = vcombine.low %v64_v30, %v68_v31 }
  0x1d   :  { %v76_v39 = vld [vmem:[#allocation2 + $0x160] sm:$0xff]  ;;  %v77_v41 = vld [vmem:[#allocation2 + $0x168] sm:$0xff]  ;;  %v1125_v43 = vcombine.low %v65_v32, %v69_v33 }
  0x1e   :  { %v1132_v44 = vcombine.high %v72_v38, %v76_v39  ;;  %v1134_v45 = vcombine.high %v73_v40, %v77_v41  ;;  %v80_v46 = vld [vmem:[#allocation2 + $0x180] sm:$0xff]  ;;  %v81_v48 = vld [vmem:[#allocation2 + $0x188] sm:$0xff]  ;;  %v1131_v50 = vcombine.low %v72_v38, %v76_v39  ;;  %v1133_v51 = vcombine.low %v73_v40, %v77_v41 }
  0x1f   :  { %857 = vmatpush1.bf16.msra.mxu0 %v1107_v26  ;;  %900 = vmatpush1.bf16.msra.mxu1 %v1109_v27  ;;  %v84_v47 = vld [vmem:[#allocation2 + $0x1a0] sm:$0xff]  ;;  %v85_v49 = vld [vmem:[#allocation2 + $0x1a8] sm:$0xff] }
  0x20   :  { %858 = vmatprep.subr.bf16.mxu0 %v1116_v28  ;;  %901 = vmatprep.subr.bf16.mxu1 %v1118_v29  ;;  %v1140_v52 = vcombine.high %v80_v46, %v84_v47  ;;  %v1142_v53 = vcombine.high %v81_v48, %v85_v49  ;;  %v88_v54 = vld [vmem:[#allocation2 + $0x1c0] sm:$0xff]  ;;  %v89_v57 = vld [vmem:[#allocation2 + $0x1c8] sm:$0xff]  ;;  %v1139_v59 = vcombine.low %v80_v46, %v84_v47 }
  0x21   :  { %v92_v55 = vld [vmem:[#allocation2 + $0x1e0] sm:$0xff]  ;;  %v93_v58 = vld [vmem:[#allocation2 + $0x1e8] sm:$0xff]  ;;  %v1141_v60 = vcombine.low %v81_v48, %v85_v49 }
  0x22   :  { %v1308_v56 = vld [vmem:[%s1350_s0 + $0x4] ss:$8 sps:$4 sm:$0xff]   ;;  %v1148_v61 = vcombine.high %v88_v54, %v92_v55  ;;  %v1150_v62 = vcombine.high %v89_v57, %v93_v58  ;;  %v1147_v3 = vcombine.low %v88_v54, %v92_v55  ;;  %v1149_v4 = vcombine.low %v89_v57, %v93_v58 }
  0x23   :  { %859 = vmatpush1.bf16.msra.mxu0 %v1115_v34  ;;  %902 = vmatpush1.bf16.msra.mxu1 %v1117_v35  ;;  %v96_v63 = vld [vmem:[#allocation2 + $0x200] sm:$0xff]  ;;  %v97_v1 = vld [vmem:[#allocation2 + $0x208] sm:$0xff] }
  0x24   :  { %860 = vmatprep.subr.bf16.mxu0 %v1124_v36  ;;  %903 = vmatprep.subr.bf16.mxu1 %v1126_v37  ;;  %v100_v0 = vld [vmem:[#allocation2 + $0x220] sm:$0xff]  ;;  %v101_v2 = vld [vmem:[#allocation2 + $0x228] sm:$0xff] }
  0x25   :  { %884 = vmatprep.mubr.bf16.mxu0 %v1308_v56  ;;  %927 = vmatprep.mubr.bf16.mxu1 %v1308_v56  ;;  %v1156_v5 = vcombine.high %v96_v63, %v100_v0  ;;  %v1158_v6 = vcombine.high %v97_v1, %v101_v2  ;;  %v104_v7 = vld [vmem:[#allocation2 + $0x240] sm:$0xff]  ;;  %v105_v9 = vld [vmem:[#allocation2 + $0x248] sm:$0xff]  ;;  %v1155_v11 = vcombine.low %v96_v63, %v100_v0  ;;  %v34_v0 = vld [vmem:[#allocation2 + $0x10] sm:$0xff] }
  0x26   :  { %v108_v8 = vld [vmem:[#allocation2 + $0x260] sm:$0xff]  ;;  %v109_v10 = vld [vmem:[#allocation2 + $0x268] sm:$0xff]  ;;  %v1157_v12 = vcombine.low %v97_v1, %v101_v2  ;;  %v38_v1 = vld [vmem:[#allocation2 + $0x30] sm:$0xff] }
  0x27   :  { %861 = vmatpush1.bf16.msra.mxu0 %v1123_v42  ;;  %904 = vmatpush1.bf16.msra.mxu1 %v1125_v43  ;;  %v1164_v13 = vcombine.high %v104_v7, %v108_v8  ;;  %v1166_v14 = vcombine.high %v105_v9, %v109_v10  ;;  %v112_v15 = vld [vmem:[#allocation2 + $0x280] sm:$0xff]  ;;  %v113_v17 = vld [vmem:[#allocation2 + $0x288] sm:$0xff]  ;;  %v1163_v19 = vcombine.low %v104_v7, %v108_v8  ;;  %v35_v2 = vld [vmem:[#allocation2 + $0x18] sm:$0xff] }
  0x28   :  { %862 = vmatprep.subr.bf16.mxu0 %v1132_v44  ;;  %905 = vmatprep.subr.bf16.mxu1 %v1134_v45  ;;  %v116_v16 = vld [vmem:[#allocation2 + $0x2a0] sm:$0xff]  ;;  %v117_v18 = vld [vmem:[#allocation2 + $0x2a8] sm:$0xff]  ;;  %v1165_v20 = vcombine.low %v105_v9, %v109_v10  ;;  %v42_v8 = vld [vmem:[#allocation2 + $0x50] sm:$0xff] }
  0x29   :  { %v1172_v21 = vcombine.high %v112_v15, %v116_v16  ;;  %v1174_v22 = vcombine.high %v113_v17, %v117_v18  ;;  %v120_v23 = vld [vmem:[#allocation2 + $0x2c0] sm:$0xff]  ;;  %v121_v25 = vld [vmem:[#allocation2 + $0x2c8] sm:$0xff]  ;;  %v1171_v27 = vcombine.low %v112_v15, %v116_v16  ;;  %v1173_v28 = vcombine.low %v113_v17, %v117_v18  ;;  %v46_v9 = vld [vmem:[#allocation2 + $0x70] sm:$0xff] }
  0x2a   :  { %v124_v24 = vld [vmem:[#allocation2 + $0x2e0] sm:$0xff]  ;;  %v125_v26 = vld [vmem:[#allocation2 + $0x2e8] sm:$0xff]  ;;  %v1104_v15 = vcombine.high %v42_v8, %v46_v9  ;;  %v50_v17 = vld [vmem:[#allocation2 + $0x90] sm:$0xff] }
  0x2b   :  { %863 = vmatpush1.bf16.msra.mxu0 %v1131_v50  ;;  %906 = vmatpush1.bf16.msra.mxu1 %v1133_v51  ;;  %v1180_v29 = vcombine.high %v120_v23, %v124_v24  ;;  %v1182_v30 = vcombine.high %v121_v25, %v125_v26  ;;  %v128_v31 = vld [vmem:[#allocation2 + $0x300] sm:$0xff]  ;;  %v129_v33 = vld [vmem:[#allocation2 + $0x308] sm:$0xff]  ;;  %v1179_v35 = vcombine.low %v120_v23, %v124_v24  ;;  %v54_v18 = vld [vmem:[#allocation2 + $0xb0] sm:$0xff] }
  0x2c   :  { %864 = vmatprep.subr.bf16.mxu0 %v1140_v52  ;;  %907 = vmatprep.subr.bf16.mxu1 %v1142_v53  ;;  %v132_v32 = vld [vmem:[#allocation2 + $0x320] sm:$0xff]  ;;  %v133_v34 = vld [vmem:[#allocation2 + $0x328] sm:$0xff]  ;;  %v1181_v36 = vcombine.low %v121_v25, %v125_v26  ;;  %v1112_v23 = vcombine.high %v50_v17, %v54_v18  ;;  %v58_v25 = vld [vmem:[#allocation2 + $0xd0] sm:$0xff] }
  0x2d   :  { %v1188_v37 = vcombine.high %v128_v31, %v132_v32  ;;  %v1190_v38 = vcombine.high %v129_v33, %v133_v34  ;;  %v136_v39 = vld [vmem:[#allocation2 + $0x340] sm:$0xff]  ;;  %v137_v41 = vld [vmem:[#allocation2 + $0x348] sm:$0xff]  ;;  %v1187_v43 = vcombine.low %v128_v31, %v132_v32  ;;  %v1189_v44 = vcombine.low %v129_v33, %v133_v34  ;;  %v62_v26 = vld [vmem:[#allocation2 + $0xf0] sm:$0xff] }
  0x2e   :  { %v140_v40 = vld [vmem:[#allocation2 + $0x360] sm:$0xff]  ;;  %v141_v42 = vld [vmem:[#allocation2 + $0x368] sm:$0xff]  ;;  %v1120_v31 = vcombine.high %v58_v25, %v62_v26  ;;  %v66_v33 = vld [vmem:[#allocation2 + $0x110] sm:$0xff] }
  0x2f   :  { %865 = vmatpush1.bf16.msra.mxu0 %v1139_v59  ;;  %908 = vmatpush1.bf16.msra.mxu1 %v1141_v60  ;;  %v1196_v45 = vcombine.high %v136_v39, %v140_v40  ;;  %v1198_v46 = vcombine.high %v137_v41, %v141_v42  ;;  %v144_v47 = vld [vmem:[#allocation2 + $0x380] sm:$0xff]  ;;  %v145_v49 = vld [vmem:[#allocation2 + $0x388] sm:$0xff]  ;;  %v1195_v51 = vcombine.low %v136_v39, %v140_v40  ;;  %v70_v34 = vld [vmem:[#allocation2 + $0x130] sm:$0xff] }
  0x30   :  { %866 = vmatprep.subr.bf16.mxu0 %v1148_v61  ;;  %909 = vmatprep.subr.bf16.mxu1 %v1150_v62  ;;  %v148_v48 = vld [vmem:[#allocation2 + $0x3a0] sm:$0xff]  ;;  %v149_v50 = vld [vmem:[#allocation2 + $0x3a8] sm:$0xff]  ;;  %v1197_v52 = vcombine.low %v137_v41, %v141_v42  ;;  %v1128_v39 = vcombine.high %v66_v33, %v70_v34  ;;  %v74_v40 = vld [vmem:[#allocation2 + $0x150] sm:$0xff] }
  0x31   :  { %v1204_v53 = vcombine.high %v144_v47, %v148_v48  ;;  %v1206_v54 = vcombine.high %v145_v49, %v149_v50  ;;  %v152_v55 = vld [vmem:[#allocation2 + $0x3c0] sm:$0xff]  ;;  %v153_v58 = vld [vmem:[#allocation2 + $0x3c8] sm:$0xff]  ;;  %v1203_v60 = vcombine.low %v144_v47, %v148_v48  ;;  %v1205_v61 = vcombine.low %v145_v49, %v149_v50  ;;  %v78_v41 = vld [vmem:[#allocation2 + $0x170] sm:$0xff] }
  0x32   :  { %v156_v57 = vld [vmem:[#allocation2 + $0x3e0] sm:$0xff]  ;;  %v157_v59 = vld [vmem:[#allocation2 + $0x3e8] sm:$0xff]  ;;  %v75_v42 = vld [vmem:[#allocation2 + $0x158] sm:$0xff] }
  0x33   :  { %867 = vmatpush1.bf16.msra.mxu0 %v1147_v3  ;;  %910 = vmatpush1.bf16.msra.mxu1 %v1149_v4  ;;  %v1212_v62 = vcombine.high %v152_v55, %v156_v57  ;;  %v1214_v63 = vcombine.high %v153_v58, %v157_v59  ;;  %v39_v3 = vld [vmem:[#allocation2 + $0x38] sm:$0xff]  ;;  %v1211_v4 = vcombine.low %v152_v55, %v156_v57  ;;  %v1315_v10 = vld [vmem:[%s1350_s0] ss:$8 sps:$4 sm:$0xff]   ;;  %v82_v48 = vld [vmem:[#allocation2 + $0x190] sm:$0xff] }
  0x34   :  { %868 = vmatprep.subr.bf16.mxu0 %v1156_v5  ;;  %911 = vmatprep.subr.bf16.mxu1 %v1158_v6  ;;  %v1213_v5 = vcombine.low %v153_v58, %v157_v59  ;;  %v1096_v6 = vcombine.high %v34_v0, %v38_v1  ;;  %v1098_v7 = vcombine.high %v35_v2, %v39_v3  ;;  %v86_v49 = vld [vmem:[#allocation2 + $0x1b0] sm:$0xff]  ;;  %v83_v50 = vld [vmem:[#allocation2 + $0x198] sm:$0xff] }
  0x35   :  { %v90_v57 = vld [vmem:[#allocation2 + $0x1d0] sm:$0xff]  ;;  %v91_v59 = vld [vmem:[#allocation2 + $0x1d8] sm:$0xff] }
  0x36   :  { %v94_v58 = vld [vmem:[#allocation2 + $0x1f0] sm:$0xff] }
  0x37   :  { %869 = vmatpush1.bf16.msra.mxu0 %v1155_v11  ;;  %912 = vmatpush1.bf16.msra.mxu1 %v1157_v12  ;;  %v43_v11 = vld [vmem:[#allocation2 + $0x58] sm:$0xff] }
  0x38   :  { %870 = vmatprep.subr.bf16.mxu0 %v1164_v13  ;;  %913 = vmatprep.subr.bf16.mxu1 %v1166_v14  ;;  %v47_v12 = vld [vmem:[#allocation2 + $0x78] sm:$0xff]  ;;  %v1095_v13 = vcombine.low %v34_v0, %v38_v1  ;;  %v1097_v14 = vcombine.low %v35_v2, %v39_v3  ;;  %v98_v1 = vld [vmem:[#allocation2 + $0x210] sm:$0xff] }
  0x39   :  { %v1106_v16 = vcombine.high %v43_v11, %v47_v12  ;;  %v102_v2 = vld [vmem:[#allocation2 + $0x230] sm:$0xff]  ;;  %v99_v3 = vld [vmem:[#allocation2 + $0x218] sm:$0xff] }
  0x3b   :  { %871 = vmatpush1.bf16.msra.mxu0 %v1163_v19  ;;  %914 = vmatpush1.bf16.msra.mxu1 %v1165_v20  ;;  %v51_v19 = vld [vmem:[#allocation2 + $0x98] sm:$0xff] }
  0x3c   :  { %872 = vmatprep.subr.bf16.mxu0 %v1172_v21  ;;  %915 = vmatprep.subr.bf16.mxu1 %v1174_v22  ;;  %v55_v20 = vld [vmem:[#allocation2 + $0xb8] sm:$0xff]  ;;  %v1103_v21 = vcombine.low %v42_v8, %v46_v9  ;;  %v1105_v22 = vcombine.low %v43_v11, %v47_v12  ;;  %v106_v9 = vld [vmem:[#allocation2 + $0x250] sm:$0xff] }
  0x3d   :  { %v1114_v24 = vcombine.high %v51_v19, %v55_v20  ;;  %v110_v11 = vld [vmem:[#allocation2 + $0x270] sm:$0xff]  ;;  %v107_v12 = vld [vmem:[#allocation2 + $0x258] sm:$0xff] }
  0x3f   :  { %873 = vmatpush1.bf16.msra.mxu0 %v1171_v27  ;;  %916 = vmatpush1.bf16.msra.mxu1 %v1173_v28  ;;  %v59_v27 = vld [vmem:[#allocation2 + $0xd8] sm:$0xff] }
  0x40   :  { %874 = vmatprep.subr.bf16.mxu0 %v1180_v29  ;;  %917 = vmatprep.subr.bf16.mxu1 %v1182_v30  ;;  %v63_v28 = vld [vmem:[#allocation2 + $0xf8] sm:$0xff]  ;;  %v1111_v29 = vcombine.low %v50_v17, %v54_v18  ;;  %v1113_v30 = vcombine.low %v51_v19, %v55_v20  ;;  %v114_v18 = vld [vmem:[#allocation2 + $0x290] sm:$0xff] }
  0x41   :  { %v1122_v32 = vcombine.high %v59_v27, %v63_v28  ;;  %v118_v19 = vld [vmem:[#allocation2 + $0x2b0] sm:$0xff]  ;;  %v115_v20 = vld [vmem:[#allocation2 + $0x298] sm:$0xff] }
  0x43   :  { %875 = vmatpush1.bf16.msra.mxu0 %v1179_v35  ;;  %918 = vmatpush1.bf16.msra.mxu1 %v1181_v36  ;;  %v67_v35 = vld [vmem:[#allocation2 + $0x118] sm:$0xff] }
  0x44   :  { %876 = vmatprep.subr.bf16.mxu0 %v1188_v37  ;;  %919 = vmatprep.subr.bf16.mxu1 %v1190_v38  ;;  %v71_v36 = vld [vmem:[#allocation2 + $0x138] sm:$0xff]  ;;  %v1119_v37 = vcombine.low %v58_v25, %v62_v26  ;;  %v1121_v38 = vcombine.low %v59_v27, %v63_v28  ;;  %v122_v26 = vld [vmem:[#allocation2 + $0x2d0] sm:$0xff] }
  0x45   :  { %v126_v27 = vld [vmem:[#allocation2 + $0x2f0] sm:$0xff]  ;;  %v123_v28 = vld [vmem:[#allocation2 + $0x2d8] sm:$0xff] }
  0x47   :  { %877 = vmatpush1.bf16.msra.mxu0 %v1187_v43  ;;  %920 = vmatpush1.bf16.msra.mxu1 %v1189_v44  ;;  %v79_v43 = vld [vmem:[#allocation2 + $0x178] sm:$0xff]  ;;  %v1127_v44 = vcombine.low %v66_v33, %v70_v34  ;;  %v130_v34 = vld [vmem:[#allocation2 + $0x310] sm:$0xff] }
  0x48   :  { %878 = vmatprep.subr.bf16.mxu0 %v1196_v45  ;;  %921 = vmatprep.subr.bf16.mxu1 %v1198_v46  ;;  %v1129_v45 = vcombine.low %v67_v35, %v71_v36  ;;  %v1136_v46 = vcombine.high %v74_v40, %v78_v41  ;;  %v1138_v47 = vcombine.high %v75_v42, %v79_v43 }
  0x4b   :  { %879 = vmatpush1.bf16.msra.mxu0 %v1195_v51  ;;  %922 = vmatpush1.bf16.msra.mxu1 %v1197_v52  ;;  %v87_v51 = vld [vmem:[#allocation2 + $0x1b8] sm:$0xff]  ;;  %v1135_v52 = vcombine.low %v74_v40, %v78_v41  ;;  %v138_v41 = vld [vmem:[#allocation2 + $0x350] sm:$0xff] }
  0x4c   :  { %880 = vmatprep.subr.bf16.mxu0 %v1204_v53  ;;  %923 = vmatprep.subr.bf16.mxu1 %v1206_v54  ;;  %v1137_v53 = vcombine.low %v75_v42, %v79_v43  ;;  %v1144_v54 = vcombine.high %v82_v48, %v86_v49  ;;  %v1146_v55 = vcombine.high %v83_v50, %v87_v51  ;;  %v142_v42 = vld [vmem:[#allocation2 + $0x370] sm:$0xff]  ;;  %v139_v43 = vld [vmem:[#allocation2 + $0x358] sm:$0xff] }
  0x4f   :  { %881 = vmatpush1.bf16.msra.mxu0 %v1203_v60  ;;  %924 = vmatpush1.bf16.msra.mxu1 %v1205_v61  ;;  %v95_v60 = vld [vmem:[#allocation2 + $0x1f8] sm:$0xff]  ;;  %v1143_v61 = vcombine.low %v82_v48, %v86_v49  ;;  %v146_v49 = vld [vmem:[#allocation2 + $0x390] sm:$0xff] }
  0x50   :  { %882 = vmatprep.subr.bf16.mxu0 %v1212_v62  ;;  %925 = vmatprep.subr.bf16.mxu1 %v1214_v63  ;;  %v1145_v62 = vcombine.low %v83_v50, %v87_v51  ;;  %v1152_v63 = vcombine.high %v90_v57, %v94_v58  ;;  %v1154_v0 = vcombine.high %v91_v59, %v95_v60  ;;  %v150_v50 = vld [vmem:[#allocation2 + $0x3b0] sm:$0xff]  ;;  %v147_v51 = vld [vmem:[#allocation2 + $0x398] sm:$0xff] }
  0x53   :  { %883 = vmatpush1.bf16.msra.mxu0 %v1211_v4  ;;  %926 = vmatpush1.bf16.msra.mxu1 %v1213_v5  ;;  %v103_v4 = vld [vmem:[#allocation2 + $0x238] sm:$0xff]  ;;  %v1151_v5 = vcombine.low %v90_v57, %v94_v58  ;;  %v154_v58 = vld [vmem:[#allocation2 + $0x3d0] sm:$0xff] }
  0x54   :  { %938 = vmatprep.subr.bf16.mxu0 %v1096_v6  ;;  %981 = vmatprep.subr.bf16.mxu1 %v1098_v7  ;;  %v1153_v6 = vcombine.low %v91_v59, %v95_v60  ;;  %v1160_v7 = vcombine.high %v98_v1, %v102_v2  ;;  %v1162_v8 = vcombine.high %v99_v3, %v103_v4  ;;  %v158_v59 = vld [vmem:[#allocation2 + $0x3f0] sm:$0xff]  ;;  %v155_v60 = vld [vmem:[#allocation2 + $0x3d8] sm:$0xff] }
  0x56   :  { %885 = vmatmul.mubr.bf16.vlgmr.msra.gmra.mrb[0].mxu0 %v1315_v10  ;;  %928 = vmatmul.mubr.bf16.vlgmr.msra.gmra.mrb[0].mxu1 %v1315_v10 }
  0x57   :  { %939 = vmatpush1.bf16.msra.mxu0 %v1095_v13  ;;  %982 = vmatpush1.bf16.msra.mxu1 %v1097_v14  ;;  %v111_v13 = vld [vmem:[#allocation2 + $0x278] sm:$0xff]  ;;  %v1159_v14 = vcombine.low %v98_v1, %v102_v2  ;;  %v1215_v2 = vcombine.low %v154_v58, %v158_v59 }
  0x58   :  { %940 = vmatprep.subr.bf16.mxu0 %v1104_v15  ;;  %983 = vmatprep.subr.bf16.mxu1 %v1106_v16  ;;  %v1161_v15 = vcombine.low %v99_v3, %v103_v4  ;;  %v1168_v16 = vcombine.high %v106_v9, %v110_v11  ;;  %v1170_v17 = vcombine.high %v107_v12, %v111_v13  ;;  %v162_v4 = vlaneseq }
  0x59   :  { %970 = vmatprep.mubr.bf16.mxu0 %v1308_v56  ;;  %1013 = vmatprep.mubr.bf16.mxu1 %v1308_v56  ;;  %v1130_v56 = vcombine.high %v67_v35, %v71_v36  ;;  %v134_v35 = vld [vmem:[#allocation2 + $0x330] sm:$0xff]  ;;  %v131_v36 = vld [vmem:[#allocation2 + $0x318] sm:$0xff] }
  0x5b   :  { %941 = vmatpush1.bf16.msra.mxu0 %v1103_v21  ;;  %984 = vmatpush1.bf16.msra.mxu1 %v1105_v22  ;;  %v119_v21 = vld [vmem:[#allocation2 + $0x2b8] sm:$0xff]  ;;  %v1167_v22 = vcombine.low %v106_v9, %v110_v11 }
  0x5c   :  { %942 = vmatprep.subr.bf16.mxu0 %v1112_v23  ;;  %985 = vmatprep.subr.bf16.mxu1 %v1114_v24  ;;  %v1169_v23 = vcombine.low %v107_v12, %v111_v13  ;;  %v1176_v24 = vcombine.high %v114_v18, %v118_v19  ;;  %v1178_v25 = vcombine.high %v115_v20, %v119_v21 }
  0x5f   :  { %943 = vmatpush1.bf16.msra.mxu0 %v1111_v29  ;;  %986 = vmatpush1.bf16.msra.mxu1 %v1113_v30  ;;  %v127_v29 = vld [vmem:[#allocation2 + $0x2f8] sm:$0xff]  ;;  %v1175_v30 = vcombine.low %v114_v18, %v118_v19 }
  0x60   :  { %944 = vmatprep.subr.bf16.mxu0 %v1120_v31  ;;  %987 = vmatprep.subr.bf16.mxu1 %v1122_v32  ;;  %v1177_v31 = vcombine.low %v115_v20, %v119_v21  ;;  %v1184_v32 = vcombine.high %v122_v26, %v126_v27  ;;  %v1186_v33 = vcombine.high %v123_v28, %v127_v29 }
  0x63   :  { %945 = vmatpush1.bf16.msra.mxu0 %v1119_v37  ;;  %988 = vmatpush1.bf16.msra.mxu1 %v1121_v38  ;;  %v135_v37 = vld [vmem:[#allocation2 + $0x338] sm:$0xff]  ;;  %v1183_v38 = vcombine.low %v122_v26, %v126_v27 }
  0x64   :  { %946 = vmatprep.subr.bf16.mxu0 %v1128_v39  ;;  %989 = vmatprep.subr.bf16.mxu1 %v1130_v56  ;;  %v1185_v39 = vcombine.low %v123_v28, %v127_v29  ;;  %v1192_v56 = vcombine.high %v130_v34, %v134_v35  ;;  %v1194_v40 = vcombine.high %v131_v36, %v135_v37 }
  0x67   :  { %947 = vmatpush1.bf16.msra.mxu0 %v1127_v44  ;;  %990 = vmatpush1.bf16.msra.mxu1 %v1129_v45  ;;  %v143_v44 = vld [vmem:[#allocation2 + $0x378] sm:$0xff]  ;;  %v1191_v45 = vcombine.low %v130_v34, %v134_v35 }
  0x68   :  { %948 = vmatprep.subr.bf16.mxu0 %v1136_v46  ;;  %991 = vmatprep.subr.bf16.mxu1 %v1138_v47  ;;  %v1193_v46 = vcombine.low %v131_v36, %v135_v37  ;;  %v1200_v47 = vcombine.high %v138_v41, %v142_v42  ;;  %v1202_v48 = vcombine.high %v139_v43, %v143_v44 }
  0x6b   :  { %949 = vmatpush1.bf16.msra.mxu0 %v1135_v52  ;;  %992 = vmatpush1.bf16.msra.mxu1 %v1137_v53  ;;  %v151_v52 = vld [vmem:[#allocation2 + $0x3b8] sm:$0xff]  ;;  %v1199_v53 = vcombine.low %v138_v41, %v142_v42 }
  0x6c   :  { %950 = vmatprep.subr.bf16.mxu0 %v1144_v54  ;;  %993 = vmatprep.subr.bf16.mxu1 %v1146_v55  ;;  %v1201_v54 = vcombine.low %v139_v43, %v143_v44  ;;  %v1208_v55 = vcombine.high %v146_v49, %v150_v50  ;;  %v1210_v57 = vcombine.high %v147_v51, %v151_v52 }
  0x6f   :  { %951 = vmatpush1.bf16.msra.mxu0 %v1143_v61  ;;  %994 = vmatpush1.bf16.msra.mxu1 %v1145_v62  ;;  %v159_v61 = vld [vmem:[#allocation2 + $0x3f8] sm:$0xff]  ;;  %v1207_v62 = vcombine.low %v146_v49, %v150_v50 }
  0x70   :  { %952 = vmatprep.subr.bf16.mxu0 %v1152_v63  ;;  %995 = vmatprep.subr.bf16.mxu1 %v1154_v0  ;;  %v1209_v63 = vcombine.low %v147_v51, %v151_v52  ;;  %v1216_v0 = vcombine.high %v154_v58, %v158_v59  ;;  %v1218_v1 = vcombine.high %v155_v60, %v159_v61 }
  0x71   :  { %v1217_v3 = vcombine.low %v155_v60, %v159_v61 }
  0x73   :  { %953 = vmatpush1.bf16.msra.mxu0 %v1151_v5  ;;  %996 = vmatpush1.bf16.msra.mxu1 %v1153_v6  ;;  %v163_v5 = vshrl.u32 %v162_v4, 7 }
  0x74   :  { %954 = vmatprep.subr.bf16.mxu0 %v1160_v7  ;;  %997 = vmatprep.subr.bf16.mxu1 %v1162_v8  ;;  %v160_v7 = vld [vmem:[%s1352_s2] sm:$0xff] }
  0x75   :  { %v164_v6 = vsub.s32 0, %v163_v5  ;;  %v172_v8 = vsub.s32 2, %v163_v5  ;;  %v168_v9 = vsub.s32 1, %v163_v5  ;;  %v176_v11 = vsub.s32 3, %v163_v5 }
  0x76   :  { %v180_v35 = vsub.s32 4, %v163_v5  ;;  %v188_v36 = vsub.s32 6, %v163_v5  ;;  %v184_v37 = vsub.s32 5, %v163_v5 }
  0x77   :  { %955 = vmatpush1.bf16.msra.mxu0 %v1159_v14  ;;  %998 = vmatpush1.bf16.msra.mxu1 %v1161_v15  ;;  %v165_v12 = vrot.slane %v160_v7, %v164_v6  ;;  %v173_v13 = vrot.slane %v160_v7, %v172_v8  ;;  %v169_v14 = vrot.slane %v160_v7, %v168_v9 }
  0x78   :  { %956 = vmatprep.subr.bf16.mxu0 %v1168_v16  ;;  %999 = vmatprep.subr.bf16.mxu1 %v1170_v17  ;;  %v177_v15 = vrot.slane %v160_v7, %v176_v11 }
  0x7b   :  { %957 = vmatpush1.bf16.msra.mxu0 %v1167_v22  ;;  %1000 = vmatpush1.bf16.msra.mxu1 %v1169_v23 }
  0x7c   :  { %958 = vmatprep.subr.bf16.mxu0 %v1176_v24  ;;  %1001 = vmatprep.subr.bf16.mxu1 %v1178_v25 }
  0x7f   :  { %959 = vmatpush1.bf16.msra.mxu0 %v1175_v30  ;;  %1002 = vmatpush1.bf16.msra.mxu1 %v1177_v31 }
  0x80   :  { %960 = vmatprep.subr.bf16.mxu0 %v1184_v32  ;;  %1003 = vmatprep.subr.bf16.mxu1 %v1186_v33 }
  0x83   :  { %961 = vmatpush1.bf16.msra.mxu0 %v1183_v38  ;;  %1004 = vmatpush1.bf16.msra.mxu1 %v1185_v39  ;;  %v192_v38 = vsub.s32 7, %v163_v5  ;;  %v181_v39 = vrot.slane %v160_v7, %v180_v35 }
  0x84   :  { %962 = vmatprep.subr.bf16.mxu0 %v1192_v56  ;;  %1005 = vmatprep.subr.bf16.mxu1 %v1194_v40  ;;  %v189_v56 = vrot.slane %v160_v7, %v188_v36  ;;  %v185_v40 = vrot.slane %v160_v7, %v184_v37 }
  0x85   :  { %v193_v41 = vrot.slane %v160_v7, %v192_v38 }
  0x87   :  { %963 = vmatpush1.bf16.msra.mxu0 %v1191_v45  ;;  %1006 = vmatpush1.bf16.msra.mxu1 %v1193_v46 }
  0x88   :  { %964 = vmatprep.subr.bf16.mxu0 %v1200_v47  ;;  %1007 = vmatprep.subr.bf16.mxu1 %v1202_v48 }
  0x8b   :  { %965 = vmatpush1.bf16.msra.mxu0 %v1199_v53  ;;  %1008 = vmatpush1.bf16.msra.mxu1 %v1201_v54 }
  0x8c   :  { %966 = vmatprep.subr.bf16.mxu0 %v1208_v55  ;;  %1009 = vmatprep.subr.bf16.mxu1 %v1210_v57 }
  0x8f   :  { %967 = vmatpush1.bf16.msra.mxu0 %v1207_v62  ;;  %1010 = vmatpush1.bf16.msra.mxu1 %v1209_v63 }
  0x90   :  { %968 = vmatprep.subr.bf16.mxu0 %v1216_v0  ;;  %1011 = vmatprep.subr.bf16.mxu1 %v1218_v1 }
  0x93   :  { %969 = vmatpush1.bf16.msra.mxu0 %v1215_v2  ;;  %1012 = vmatpush1.bf16.msra.mxu1 %v1217_v3 }
  0x96   :  { %971 = vmatmul.mubr.bf16.vlgmr.msra.gmra.mrb[4].mxu0 %v1315_v10  ;;  %1014 = vmatmul.mubr.bf16.vlgmr.msra.gmra.mrb[4].mxu1 %v1315_v10 }
 0x129   :  { %v886_v16 = vpop.f32.mrb[0].mxu0  ;;  %v929_v18 = vpop.f32.mrb[0].mxu1 }
 0x12a   :  { %v887_v17 = vadd.f32 %v886_v16, %v165_v12  ;;  %v888_v19 = vpop.f32.mrb[1].mxu0  ;;  %v930_v20 = vadd.f32 %v929_v18, %v173_v13  ;;  %v931_v21 = vpop.f32.mrb[1].mxu1 }
 0x12b   :  { %v889_v10 = vadd.f32 %v888_v19, %v169_v14  ;;  %v890_v22 = vpop.f32.mrb[2].mxu0  ;;  %v932_v23 = vadd.f32 %v931_v21, %v177_v15  ;;  %v933_v25 = vpop.f32.mrb[2].mxu1 }
 0x12c   :  { %v891_v24 = vadd.f32 %v890_v22, %v165_v12  ;;  %v892_v26 = vpop.f32.mrb[3].mxu0  ;;  %v934_v28 = vadd.f32 %v933_v25, %v173_v13  ;;  %v935_v30 = vpop.f32.mrb[3].mxu1 }
 0x12d   :  { %v1227_v27 = vpack.c.bf16 %v889_v10, %v887_v17  ;;  %v893_v29 = vadd.f32 %v892_v26, %v169_v14  ;;  %v1228_v31 = vpack.c.bf16 %v932_v23, %v930_v20  ;;  %v936_v32 = vadd.f32 %v935_v30, %v177_v15 }
 0x12f   :  { %1048 = vst [vmem:[%s1353_s3] sm:$0xff] %v1227_v27  ;;  %v1229_v33 = vpack.c.bf16 %v893_v29, %v891_v24  ;;  %1049 = vst [vmem:[%s1353_s3 + $0x8] sm:$0xff] %v1228_v31  ;;  %v1230_v34 = vpack.c.bf16 %v936_v32, %v934_v28 }
 0x131   :  { %1050 = vst [vmem:[%s1353_s3 + $0x10] sm:$0xff] %v1229_v33  ;;  %1051 = vst [vmem:[%s1353_s3 + $0x18] sm:$0xff] %v1230_v34 }
 0x169   :  { %v972_v42 = vpop.f32.mrb[4].mxu0  ;;  %v1015_v44 = vpop.f32.mrb[4].mxu1 }
 0x16a   :  { %v973_v43 = vadd.f32 %v972_v42, %v181_v39  ;;  %v974_v45 = vpop.f32.mrb[5].mxu0  ;;  %v1016_v46 = vadd.f32 %v1015_v44, %v189_v56  ;;  %v1017_v48 = vpop.f32.mrb[5].mxu1 }
 0x16b   :  { %v975_v47 = vadd.f32 %v974_v45, %v185_v40  ;;  %v976_v49 = vpop.f32.mrb[6].mxu0  ;;  %v1018_v50 = vadd.f32 %v1017_v48, %v193_v41  ;;  %v1019_v52 = vpop.f32.mrb[6].mxu1 }
 0x16c   :  { %v977_v51 = vadd.f32 %v976_v49, %v181_v39  ;;  %v978_v53 = vpop.f32.mrb[7].mxu0  ;;  %v1020_v55 = vadd.f32 %v1019_v52, %v189_v56  ;;  %v1021_v58 = vpop.f32.mrb[7].mxu1 }
 0x16d   :  { %v1231_v54 = vpack.c.bf16 %v975_v47, %v973_v43  ;;  %v979_v57 = vadd.f32 %v978_v53, %v185_v40  ;;  %v1232_v59 = vpack.c.bf16 %v1018_v50, %v1016_v46  ;;  %v1022_v60 = vadd.f32 %v1021_v58, %v193_v41 }
 0x16f   :  { %1076 = vst [vmem:[%s1354_s4] sm:$0xff] %v1231_v54  ;;  %v1233_v61 = vpack.c.bf16 %v979_v57, %v977_v51  ;;  %1077 = vst [vmem:[%s1354_s4 + $0x8] sm:$0xff] %v1232_v59  ;;  %v1234_v62 = vpack.c.bf16 %v1022_v60, %v1020_v55 }
 0x171   :  { %1078 = vst [vmem:[%s1354_s4 + $0x10] sm:$0xff] %v1233_v61  ;;  %1079 = vst [vmem:[%s1354_s4 + $0x18] sm:$0xff] %v1234_v62 }
 0x172   :  { %1088 = vsyncpa [#allocation3], 1 }

// kernel: lstm_classifier_forward.5
= control target key start
LH: loop header
LB: loop body
LE: loop exit
PB: predicated region body
PF: predicated region fallthrough
CT: control target
= control target key end

     0   :  { %14 = vsyncpa [#allocation7], 0  ;;  %s5379_s0 = inlined_call_operand.vmem [shape: bf16[8,2,512], index: 0, kind: input, shape index: {}]   ;;  %s5380_s1 = inlined_call_operand.vmem [shape: bf16[8,2,512], index: 1, kind: input, shape index: {}]   ;;  %s5381_s2 = inlined_call_operand.vmem [shape: s32[2,1], index: 2, kind: input, shape index: {}]   ;;  %s5382_s3 = inlined_call_operand.vmem [shape: bf16[128,512], index: 3, kind: input, shape index: {}]   ;;  %s5383_s4 = inlined_call_operand.hbm [shape: bf16[128,512], index: 4, kind: input, shape index: {}]   ;;  %s5384_s5 = inlined_call_operand.vmem [shape: bf16[8,2,128], index: 5, kind: output, shape index: {0}]   ;;  %s5385_s6 = inlined_call_operand.vmem [shape: bf16[8,2,128], index: 6, kind: output, shape index: {1}]   ;;  %s5386_s7 = inlined_call_operand.hbm [shape: f32[2,128], index: 7, kind: output, shape index: {2}]   ;;  %s5387_s8 = inlined_call_operand.hbm [shape: f32[2,128], index: 8, kind: output, shape index: {3}]  }
   0x1   :  { %15 = vsyncpa [#allocation8], 0 }
   0x2   :  { %16 = vsyncpa [#allocation11], 0  ;;  %s3716_s27 = smov [#allocation6]   ;;  %s3644_s9 = scalar_lea.hbm %s5383_s4, 4096 }
   0x3   :  { %s38_s28 = sshll.u32 %s3716_s27, 4  ;;  %p3645_p0 = scmp.ne.s32.totalorder %s5383_s4, %s3644_s9  ;;  %s39_s28 = int_to_ptr.vmem [resolvable:$true] %s38_s28 }
   0x4   :  { %p3648_p1 = scmp.lt.u32.totalorder %s3644_s9, %s5383_s4 }
   0x6   :  { %p3650_p2 = pnand %p3648_p1, %p3645_p0 }
   0x8   :  { %3653 = shalt.err (!%p3650_p2)
}
   0x9   :  { %s3654_s14 = scalar_lea.vmem %s39_s28, 4096  ;;  %p3659_p4 = scmp.lt.s32.totalorder %s39_s28, %s39_s28 }
   0xa   :  { %p3655_p3 = scmp.ne.s32.totalorder %s39_s28, %s3654_s14  ;;  %p3660_p5 = scmp.lt.s32.totalorder %s3654_s14, %s3654_s14 }
   0xc   :  { %p3661_p6 = por %p3660_p5, %p3659_p4 }
   0xe   :  { %p3662_p7 = pnand %p3661_p6, %p3655_p3 }
  0x10   :  { %3665 = shalt.err (!%p3662_p7)
}
  0x11   :  { %s3717_s15 = smov 256   ;;  %s3718_s16 = smov 16  }
  0x12   :  { %44 = dma.hbm_to_vmem [thread:$0]  %s5383_s4, 4096, %s39_s28, [#allocation7], %s3717_s15, %s3717_s15, %s3718_s16  }
  0x13   :  { %3710 = dma.done.wait [#allocation7], 4096  }
  0x14   :  { %3711 = vsyncadd [#allocation7], 4294963200  ;;  %v5398_v0 = vmov 0   ;;  %v3720_v1 = vmov 0.0   ;;  %v3788_v2 = vld [vmem:[%s5382_s3 + $0x4] ss:$16 sps:$4 sm:$0xff]  }
  0x15   :  { %352 = vmatprep.mubr.bf16.mxu0 %v5398_v0  ;;  %393 = vmatprep.mubr.bf16.mxu1 %v5398_v0  ;;  %79 = vst [vmem:[#allocation2] sm:$0x3] %v3720_v1  ;;  %82 = vst [vmem:[#allocation5] sm:$0x3] %v3720_v1  ;;  %v3793_v3 = vld [vmem:[%s5382_s3 + $0xc] ss:$16 sps:$4 sm:$0xff]  }
  0x16   :  { %80 = vst [vmem:[#allocation3] sm:$0x3] %v3720_v1  ;;  %81 = vst [vmem:[#allocation4] sm:$0x3] %v3720_v1  ;;  %3162 = vset.pattern.permute.xlu0 %v5398_v0  ;;  %3163 = vset.pattern.permute.xlu1 %v5398_v0  ;;  %v3799_v4 = vld [vmem:[%s5382_s3] ss:$16 sps:$4 sm:$0xff]  }
  0x17   :  { %320 = vmatprep.subr.bf16.mxu0 %v3788_v2  ;;  %v3804_v5 = vld [vmem:[%s5382_s3 + $0x8] ss:$16 sps:$4 sm:$0xff]   ;;  %361 = vmatprep.subr.bf16.mxu1 %v3793_v3  ;;  %v3810_v6 = vld [vmem:[%s5382_s3 + $0x24] ss:$16 sps:$4 sm:$0xff]   ;;  %v3817_v7 = vld [vmem:[%s5382_s3 + $0x2c] ss:$16 sps:$4 sm:$0xff]  }
  0x18   :  { %321 = vmatpush1.bf16.msra.mxu0 %v3799_v4  ;;  %362 = vmatpush1.bf16.msra.mxu1 %v3804_v5  ;;  %v3822_v8 = vld [vmem:[%s5382_s3 + $0x20] ss:$16 sps:$4 sm:$0xff]   ;;  %v3828_v9 = vld [vmem:[%s5382_s3 + $0x28] ss:$16 sps:$4 sm:$0xff]   ;;  %v3834_v10 = vld [vmem:[%s5382_s3 + $0x44] ss:$16 sps:$4 sm:$0xff]  }
  0x19   :  { %322 = vmatprep.subr.bf16.mxu0 %v3810_v6  ;;  %363 = vmatprep.subr.bf16.mxu1 %v3817_v7  ;;  %v3839_v11 = vld [vmem:[%s5382_s3 + $0x4c] ss:$16 sps:$4 sm:$0xff]   ;;  %v3844_v12 = vld [vmem:[%s5382_s3 + $0x40] ss:$16 sps:$4 sm:$0xff]   ;;  %v3849_v13 = vld [vmem:[%s5382_s3 + $0x48] ss:$16 sps:$4 sm:$0xff]  }
  0x1a   :  { %v3856_v14 = vld [vmem:[%s5382_s3 + $0x64] ss:$16 sps:$4 sm:$0xff]   ;;  %v3863_v15 = vld [vmem:[%s5382_s3 + $0x6c] ss:$16 sps:$4 sm:$0xff]   ;;  %v3868_v16 = vld [vmem:[%s5382_s3 + $0x60] ss:$16 sps:$4 sm:$0xff]  }
  0x1b   :  { %v3875_v17 = vld [vmem:[%s5382_s3 + $0x68] ss:$16 sps:$4 sm:$0xff]   ;;  %v3880_v18 = vld [vmem:[%s5382_s3 + $0x84] ss:$16 sps:$4 sm:$0xff]   ;;  %v3887_v19 = vld [vmem:[%s5382_s3 + $0x8c] ss:$16 sps:$4 sm:$0xff]  }
  0x1c   :  { %323 = vmatpush1.bf16.msra.mxu0 %v3822_v8  ;;  %364 = vmatpush1.bf16.msra.mxu1 %v3828_v9  ;;  %v3892_v20 = vld [vmem:[%s5382_s3 + $0x80] ss:$16 sps:$4 sm:$0xff]   ;;  %v3897_v21 = vld [vmem:[%s5382_s3 + $0x88] ss:$16 sps:$4 sm:$0xff]   ;;  %v3904_v22 = vld [vmem:[%s5382_s3 + $0xa4] ss:$16 sps:$4 sm:$0xff]  }
  0x1d   :  { %324 = vmatprep.subr.bf16.mxu0 %v3834_v10  ;;  %365 = vmatprep.subr.bf16.mxu1 %v3839_v11  ;;  %5488 = vst [vmem:[#allocation15_spill] sm:$0xff] %v3897_v21  ;;  %5489 = vst [vmem:[#allocation16_spill] sm:$0xff] %v3904_v22  ;;  %v3911_v23 = vld [vmem:[%s5382_s3 + $0xac] ss:$16 sps:$4 sm:$0xff]   ;;  %v3918_v24 = vld [vmem:[%s5382_s3 + $0xa0] ss:$16 sps:$4 sm:$0xff]  }
  0x1e   :  { %5490 = vst [vmem:[#allocation17_spill] sm:$0xff] %v3911_v23  ;;  %5491 = vst [vmem:[#allocation18_spill] sm:$0xff] %v3918_v24  ;;  %v3923_v25 = vld [vmem:[%s5382_s3 + $0xa8] ss:$16 sps:$4 sm:$0xff]   ;;  %v3930_v26 = vld [vmem:[%s5382_s3 + $0xc4] ss:$16 sps:$4 sm:$0xff]  }
  0x1f   :  { %5492 = vst [vmem:[#allocation19_spill] sm:$0xff] %v3923_v25  ;;  %5493 = vst [vmem:[#allocation20_spill] sm:$0xff] %v3930_v26  ;;  %v3935_v27 = vld [vmem:[%s5382_s3 + $0xcc] ss:$16 sps:$4 sm:$0xff]   ;;  %v3940_v28 = vld [vmem:[%s5382_s3 + $0xc0] ss:$16 sps:$4 sm:$0xff]  }
  0x20   :  { %325 = vmatpush1.bf16.msra.mxu0 %v3844_v12  ;;  %366 = vmatpush1.bf16.msra.mxu1 %v3849_v13  ;;  %5494 = vst [vmem:[#allocation21_spill] sm:$0xff] %v3935_v27  ;;  %5495 = vst [vmem:[#allocation22_spill] sm:$0xff] %v3940_v28  ;;  %v3945_v29 = vld [vmem:[%s5382_s3 + $0xc8] ss:$16 sps:$4 sm:$0xff]   ;;  %v3952_v30 = vld [vmem:[%s5382_s3 + $0xe4] ss:$16 sps:$4 sm:$0xff]  }
  0x21   :  { %326 = vmatprep.subr.bf16.mxu0 %v3856_v14  ;;  %367 = vmatprep.subr.bf16.mxu1 %v3863_v15  ;;  %5496 = vst [vmem:[#allocation23_spill] sm:$0xff] %v3945_v29  ;;  %5497 = vst [vmem:[#allocation24_spill] sm:$0xff] %v3952_v30  ;;  %v3959_v31 = vld [vmem:[%s5382_s3 + $0xec] ss:$16 sps:$4 sm:$0xff]   ;;  %v3964_v32 = vld [vmem:[%s5382_s3 + $0xe0] ss:$16 sps:$4 sm:$0xff]  }
  0x22   :  { %5498 = vst [vmem:[#allocation25_spill] sm:$0xff] %v3959_v31  ;;  %5499 = vst [vmem:[#allocation26_spill] sm:$0xff] %v3964_v32  ;;  %v3969_v33 = vld [vmem:[%s5382_s3 + $0xe8] ss:$16 sps:$4 sm:$0xff]   ;;  %v3973_v34 = vld [vmem:[#allocation2] sm:$0x3] }
  0x23   :  { %5500 = vst [vmem:[#allocation27_spill] sm:$0xff] %v3969_v33  ;;  %v3977_v35 = vld [vmem:[#allocation6 + $0x4] ss:$16 sps:$4 sm:$0xff]   ;;  %v3979_v36 = vld [vmem:[#allocation6 + $0xc] ss:$16 sps:$4 sm:$0xff]   ;;  %v159_v37 = vpack.c.bf16 %v3973_v34, %v3973_v34  ;;  %s3722_s16 = smov [#allocation9]  }
  0x24   :  { %327 = vmatpush1.bf16.msra.mxu0 %v3868_v16  ;;  %368 = vmatpush1.bf16.msra.mxu1 %v3875_v17  ;;  %5501 = vst [vmem:[#allocation28_spill] sm:$0xff] %v3977_v35  ;;  %5502 = vst [vmem:[#allocation29_spill] sm:$0xff] %v3979_v36  ;;  %v3983_v38 = vld [vmem:[#allocation6] ss:$16 sps:$4 sm:$0xff]   ;;  %v3985_v39 = vld [vmem:[#allocation6 + $0x8] ss:$16 sps:$4 sm:$0xff]  }
  0x25   :  { %328 = vmatprep.subr.bf16.mxu0 %v3880_v18  ;;  %369 = vmatprep.subr.bf16.mxu1 %v3887_v19  ;;  %v3989_v40 = vld [vmem:[#allocation6 + $0x24] ss:$16 sps:$4 sm:$0xff]   ;;  %v3993_v41 = vld [vmem:[#allocation6 + $0x2c] ss:$16 sps:$4 sm:$0xff]   ;;  %v3995_v42 = vld [vmem:[#allocation6 + $0x20] ss:$16 sps:$4 sm:$0xff]  }
  0x26   :  { %v3999_v43 = vld [vmem:[#allocation6 + $0x28] ss:$16 sps:$4 sm:$0xff]   ;;  %v4003_v44 = vld [vmem:[#allocation6 + $0x44] ss:$16 sps:$4 sm:$0xff]   ;;  %v4005_v45 = vld [vmem:[#allocation6 + $0x4c] ss:$16 sps:$4 sm:$0xff]  }
  0x27   :  { %v4009_v46 = vld [vmem:[#allocation6 + $0x40] ss:$16 sps:$4 sm:$0xff]   ;;  %v4011_v47 = vld [vmem:[#allocation6 + $0x48] ss:$16 sps:$4 sm:$0xff]   ;;  %v4015_v48 = vld [vmem:[#allocation6 + $0x64] ss:$16 sps:$4 sm:$0xff]  }
  0x28   :  { %329 = vmatpush1.bf16.msra.mxu0 %v3892_v20  ;;  %370 = vmatpush1.bf16.msra.mxu1 %v3897_v21  ;;  %v4019_v49 = vld [vmem:[#allocation6 + $0x6c] ss:$16 sps:$4 sm:$0xff]   ;;  %v4024_v50 = vld [vmem:[%s5381_s2] sm:$0x3]  ;;  %v4028_v51 = vld [vmem:[#allocation6 + $0x60] ss:$16 sps:$4 sm:$0xff]  }
  0x29   :  { %330 = vmatprep.subr.bf16.mxu0 %v3904_v22  ;;  %371 = vmatprep.subr.bf16.mxu1 %v3911_v23  ;;  %v4030_v52 = vld [vmem:[#allocation6 + $0x68] ss:$16 sps:$4 sm:$0xff]   ;;  %vm2998_vm0 = vcmp.gt.s32.totalorder %v4024_v50, 0  ;;  %vm3034_vm1 = vcmp.gt.s32.totalorder %v4024_v50, 7  ;;  %v4036_v53 = vld [vmem:[#allocation6 + $0x84] ss:$16 sps:$4 sm:$0xff]  }
  0x2a   :  { %5503 = vst [vmem:[#allocation30_spill] sm:$0xff] %v4030_v52  ;;  %5504 = vst [vmem:[#allocation31_spill] sm:$0xff] %v4036_v53  ;;  %v4038_v54 = vld [vmem:[#allocation6 + $0x8c] ss:$16 sps:$4 sm:$0xff]   ;;  %v4041_v55 = vsel %vm2998_vm0, 1, %v5398_v0  ;;  %v4045_v56 = vsel %vm3034_vm1, 1, %v5398_v0 }
  0x2b   :  { %5505 = vst [vmem:[#allocation32_spill] sm:$0xff] %v4038_v54  ;;  %458 = vperm.xlu0 %3162, %v4041_v55   ;;  %v4049_v57 = vld [vmem:[#allocation6 + $0x80] ss:$16 sps:$4 sm:$0xff]   ;;  %v4051_v58 = vld [vmem:[#allocation6 + $0x88] ss:$16 sps:$4 sm:$0xff]   ;;  %vm3084_vm2 = vcmp.gt.s32.totalorder %v4024_v50, 2 }
  0x2c   :  { %331 = vmatpush1.bf16.msra.mxu0 %v3918_v24  ;;  %372 = vmatpush1.bf16.msra.mxu1 %v3923_v25  ;;  %5506 = vst [vmem:[#allocation33_spill] sm:$0xff] %v4049_v57  ;;  %5507 = vst [vmem:[#allocation34_spill] sm:$0xff] %v4051_v58  ;;  %v4056_v59 = vld [vmem:[#allocation6 + $0xa4] ss:$16 sps:$4 sm:$0xff]   ;;  %v4058_v60 = vld [vmem:[#allocation6 + $0xac] ss:$16 sps:$4 sm:$0xff]  }
  0x2d   :  { %332 = vmatprep.subr.bf16.mxu0 %v3930_v26  ;;  %373 = vmatprep.subr.bf16.mxu1 %v3935_v27  ;;  %5508 = vst [vmem:[#allocation35_spill] sm:$0xff] %v4056_v59  ;;  %5509 = vst [vmem:[#allocation36_spill] sm:$0xff] %v4058_v60  ;;  %v4062_v61 = vsel %vm3084_vm2, 1, %v5398_v0  ;;  %v4066_v62 = vld [vmem:[#allocation6 + $0xa0] ss:$16 sps:$4 sm:$0xff]   ;;  %vm3096_vm3 = vcmp.gt.s32.totalorder %v4024_v50, 3 }
  0x2e   :  { %5510 = vst [vmem:[#allocation37_spill] sm:$0xff] %v4066_v62  ;;  %v4068_v63 = vld [vmem:[#allocation6 + $0xa8] ss:$16 sps:$4 sm:$0xff]   ;;  %v4073_v1 = vld [vmem:[#allocation6 + $0xc4] ss:$16 sps:$4 sm:$0xff]   ;;  %vm3102_vm4 = vcmp.gt.s32.totalorder %v4024_v50, 4 }
  0x2f   :  { %771 = vperm.xlu0 %3162, %v4045_v56   ;;  %5511 = vst [vmem:[#allocation38_spill] sm:$0xff] %v4068_v63  ;;  %5512 = vst [vmem:[#allocation39_spill] sm:$0xff] %v4073_v1  ;;  %vm3090_vm5 = vcmp.gt.s32.totalorder %v4024_v50, 5  ;;  %vm3078_vm6 = vcmp.gt.s32.totalorder %v4024_v50, 6  ;;  %vm3072_vm7 = vcmp.gt.s32.totalorder %v4024_v50, 1  ;;  %s2956_s17 = sshll.u32 %s3722_s16, 4  ;;  %s2957_s17 = int_to_ptr.vmem [resolvable:$true] %s2956_s17 }
  0x30   :  { %333 = vmatpush1.bf16.msra.mxu0 %v3940_v28  ;;  %374 = vmatpush1.bf16.msra.mxu1 %v3945_v29  ;;  %s3666_s18 = scalar_lea.vmem %s2957_s17, 32  ;;  %p3671_p9 = scmp.lt.s32.totalorder %s2957_s17, %s2957_s17 }
  0x31   :  { %334 = vmatprep.subr.bf16.mxu0 %v3952_v30  ;;  %375 = vmatprep.subr.bf16.mxu1 %v3959_v31  ;;  %p3667_p8 = scmp.ne.s32.totalorder %s2957_s17, %s3666_s18  ;;  %p3672_p10 = scmp.lt.s32.totalorder %s3666_s18, %s3666_s18 }
  0x33   :  { %1233 = vperm.xlu0 %3162, %v4062_v61   ;;  %p3673_p11 = por %p3672_p10, %p3671_p9 }
  0x34   :  { %335 = vmatpush1.bf16.msra.mxu0 %v3964_v32  ;;  %376 = vmatpush1.bf16.msra.mxu1 %v3969_v33 }
  0x35   :  { %633 = vmatprep.subr.bf16.mxu0 %v3977_v35  ;;  %674 = vmatprep.subr.bf16.mxu1 %v3979_v36  ;;  %p3674_p12 = pnand %p3673_p11, %p3667_p8 }
  0x37   :  { %353 = vmatmul.mubr.bf16.vlgmr.msra.gmra.mrb[0].mxu0 %v159_v37  ;;  %394 = vmatmul.mubr.bf16.vlgmr.msra.gmra.mrb[0].mxu1 %v159_v37  ;;  %v4075_v37 = vld [vmem:[#allocation6 + $0xcc] ss:$16 sps:$4 sm:$0xff]  }
  0x38   :  { %634 = vmatpush1.bf16.msra.mxu0 %v3983_v38  ;;  %675 = vmatpush1.bf16.msra.mxu1 %v3985_v39  ;;  %5513 = vst [vmem:[#allocation40_spill] sm:$0xff] %v4075_v37 }
  0x39   :  { %635 = vmatprep.subr.bf16.mxu0 %v3989_v40  ;;  %676 = vmatprep.subr.bf16.mxu1 %v3993_v41 }
  0x3a   :  { %665 = vmatprep.mubr.bf16.mxu0 %v5398_v0  ;;  %706 = vmatprep.mubr.bf16.mxu1 %v5398_v0 }
  0x3c   :  { %636 = vmatpush1.bf16.msra.mxu0 %v3995_v42  ;;  %677 = vmatpush1.bf16.msra.mxu1 %v3999_v43 }
  0x3d   :  { %637 = vmatprep.subr.bf16.mxu0 %v4003_v44  ;;  %678 = vmatprep.subr.bf16.mxu1 %v4005_v45 }
  0x40   :  { %638 = vmatpush1.bf16.msra.mxu0 %v4009_v46  ;;  %679 = vmatpush1.bf16.msra.mxu1 %v4011_v47 }
  0x41   :  { %639 = vmatprep.subr.bf16.mxu0 %v4015_v48  ;;  %680 = vmatprep.subr.bf16.mxu1 %v4019_v49 }
  0x44   :  { %640 = vmatpush1.bf16.msra.mxu0 %v4028_v51  ;;  %681 = vmatpush1.bf16.msra.mxu1 %v4030_v52  ;;  %v4102_v52 = vld [vmem:[#allocation4] sm:$0x3] }
  0x45   :  { %641 = vmatprep.subr.bf16.mxu0 %v4036_v53  ;;  %682 = vmatprep.subr.bf16.mxu1 %v4038_v54  ;;  %v4085_v54 = vld [vmem:[#allocation6 + $0xc8] ss:$16 sps:$4 sm:$0xff]  }
  0x46   :  { %v4100_v53 = vld [vmem:[#allocation6 + $0xe8] ss:$16 sps:$4 sm:$0xff]  }
  0x48   :  { %642 = vmatpush1.bf16.msra.mxu0 %v4049_v57  ;;  %683 = vmatpush1.bf16.msra.mxu1 %v4051_v58  ;;  %v4079_v57 = vsel %vm3096_vm3, 1, %v5398_v0  ;;  %v4083_v58 = vld [vmem:[#allocation6 + $0xc0] ss:$16 sps:$4 sm:$0xff]  }
  0x49   :  { %643 = vmatprep.subr.bf16.mxu0 %v4056_v59  ;;  %684 = vmatprep.subr.bf16.mxu1 %v4058_v60  ;;  %v4090_v60 = vld [vmem:[#allocation6 + $0xe4] ss:$16 sps:$4 sm:$0xff]   ;;  %v4092_v59 = vld [vmem:[#allocation6 + $0xec] ss:$16 sps:$4 sm:$0xff]   ;;  %v4095_v0 = vld [vmem:[#allocation6 + $0xe0] ss:$16 sps:$4 sm:$0xff]  }
  0x4a   :  { %5514 = vst [vmem:[#allocation41_spill] sm:$0xff] %v4092_v59  ;;  %1541 = vperm.xlu0 %3162, %v4079_v57  }
  0x4c   :  { %644 = vmatpush1.bf16.msra.mxu0 %v4066_v62  ;;  %685 = vmatpush1.bf16.msra.mxu1 %v4068_v63  ;;  %v5515_v62 = vmov 0  }
  0x4d   :  { %645 = vmatprep.subr.bf16.mxu0 %v4073_v1  ;;  %686 = vmatprep.subr.bf16.mxu1 %v4075_v37  ;;  %v1693_v63 = vsel %vm3102_vm4, 1, %v5515_v62  ;;  %v472_v37 = vpack.c.bf16 %v4102_v52, %v4102_v52  ;;  %v1385_v1 = vsel %vm3090_vm5, 1, %v5515_v62 }
  0x4e   :  { %1849 = vperm.xlu0 %3162, %v1693_v63  }
  0x50   :  { %646 = vmatpush1.bf16.msra.mxu0 %v4083_v58  ;;  %687 = vmatpush1.bf16.msra.mxu1 %v4085_v54 }
  0x51   :  { %647 = vmatprep.subr.bf16.mxu0 %v4090_v60  ;;  %688 = vmatprep.subr.bf16.mxu1 %v4092_v59  ;;  %v1077_v59 = vsel %vm3078_vm6, 1, %v5515_v62 }
  0x52   :  { %2157 = vperm.xlu0 %3162, %v1385_v1  }
  0x54   :  { %648 = vmatpush1.bf16.msra.mxu0 %v4095_v0  ;;  %689 = vmatpush1.bf16.msra.mxu1 %v4100_v53 }
  0x55   :  { %787 = vmatprep.subr.bf16.mxu0 %v3788_v2  ;;  %828 = vmatprep.subr.bf16.mxu1 %v3793_v3 }
  0x56   :  { %2465 = vperm.xlu0 %3162, %v1077_v59  }
  0x57   :  { %666 = vmatmul.mubr.bf16.vlgmr.msra.gmra.mrb[4].mxu0 %v472_v37  ;;  %707 = vmatmul.mubr.bf16.vlgmr.msra.gmra.mrb[4].mxu1 %v472_v37  ;;  %v3721_v37 = vmov 1983009808  }
  0x58   :  { %788 = vmatpush1.bf16.msra.mxu0 %v3799_v4  ;;  %829 = vmatpush1.bf16.msra.mxu1 %v3804_v5 }
  0x59   :  { %789 = vmatprep.subr.bf16.mxu0 %v3810_v6  ;;  %830 = vmatprep.subr.bf16.mxu1 %v3817_v7 }
  0x5a   :  { %819 = vmatprep.mubr.bf16.mxu0 %v5515_v62  ;;  %860 = vmatprep.mubr.bf16.mxu1 %v5515_v62 }
  0x5b   :  { %2773 = vperm.xlu0 %3162, %v4045_v56   ;;  %v923_v56 = vsel %vm3072_vm7, 1, %v5515_v62 }
  0x5c   :  { %790 = vmatpush1.bf16.msra.mxu0 %v3822_v8  ;;  %831 = vmatpush1.bf16.msra.mxu1 %v3828_v9 }
  0x5d   :  { %791 = vmatprep.subr.bf16.mxu0 %v3834_v10  ;;  %832 = vmatprep.subr.bf16.mxu1 %v3839_v11 }
  0x5e   :  { %925 = vperm.xlu1 %3163, %v923_v56  }
  0x60   :  { %792 = vmatpush1.bf16.msra.mxu0 %v3844_v12  ;;  %833 = vmatpush1.bf16.msra.mxu1 %v3849_v13 }
  0x61   :  { %793 = vmatprep.subr.bf16.mxu0 %v3856_v14  ;;  %834 = vmatprep.subr.bf16.mxu1 %v3863_v15 }
  0x62   :  { %1079 = vperm.xlu1 %3163, %v1077_v59   ;;  %v4161_v59 = vld [vmem:[%s5379_s0] sm:$0xff]  }
  0x63   :  { %5516 = vst [vmem:[#allocation42_spill] sm:$0xff] %v4161_v59 }
  0x64   :  { %794 = vmatpush1.bf16.msra.mxu0 %v3868_v16  ;;  %835 = vmatpush1.bf16.msra.mxu1 %v3875_v17 }
  0x65   :  { %795 = vmatprep.subr.bf16.mxu0 %v3880_v18  ;;  %836 = vmatprep.subr.bf16.mxu1 %v3887_v19 }
  0x66   :  { %1387 = vperm.xlu1 %3163, %v1385_v1  }
  0x68   :  { %796 = vmatpush1.bf16.msra.mxu0 %v3892_v20  ;;  %837 = vmatpush1.bf16.msra.mxu1 %v3897_v21 }
  0x69   :  { %797 = vmatprep.subr.bf16.mxu0 %v3904_v22  ;;  %838 = vmatprep.subr.bf16.mxu1 %v3911_v23 }
  0x6a   :  { %1695 = vperm.xlu1 %3163, %v1693_v63  }
  0x6c   :  { %798 = vmatpush1.bf16.msra.mxu0 %v3918_v24  ;;  %839 = vmatpush1.bf16.msra.mxu1 %v3923_v25 }
  0x6d   :  { %799 = vmatprep.subr.bf16.mxu0 %v3930_v26  ;;  %840 = vmatprep.subr.bf16.mxu1 %v3935_v27 }
  0x6e   :  { %2003 = vperm.xlu1 %3163, %v4079_v57  }
  0x70   :  { %800 = vmatpush1.bf16.msra.mxu0 %v3940_v28  ;;  %841 = vmatpush1.bf16.msra.mxu1 %v3945_v29 }
  0x71   :  { %801 = vmatprep.subr.bf16.mxu0 %v3952_v30  ;;  %842 = vmatprep.subr.bf16.mxu1 %v3959_v31 }
  0x72   :  { %2311 = vperm.xlu1 %3163, %v4062_v61  }
  0x74   :  { %802 = vmatpush1.bf16.msra.mxu0 %v3964_v32  ;;  %843 = vmatpush1.bf16.msra.mxu1 %v3969_v33  ;;  %v409_v32 = vunpack.c.l.s4 %v3721_v37  ;;  %v411_v33 = vlaneseq }
  0x75   :  { %941 = vmatprep.subr.bf16.mxu0 %v3977_v35  ;;  %982 = vmatprep.subr.bf16.mxu1 %v3979_v36 }
  0x76   :  { %2619 = vperm.xlu1 %3163, %v923_v56   ;;  %v410_v35 = vunpack.c.0.s8 %v409_v32  ;;  %v412_v36 = vshrl.u32 %v411_v33, 7  ;;  %v158_v33 = vunpack.c.l.bf16 %v4161_v59 }
  0x78   :  { %v4156_v30 = vsub.s32 %v410_v35, %v412_v36 }
  0x7a   :  { %2925 = vperm.xlu1 %3163, %v4041_v55  }
  0xaa   :  { %v459_v23 = vpop.permute.xlu0 %458 }
  0xab   :  { %vm460_vm8 = vcmp.eq.s32.totalorder %v459_v23, 1 }
 0x10a   :  { %v354_v31 = vpop.f32.mrb[0].mxu0  ;;  %v395_v50 = vpop.f32.mrb[0].mxu1 }
 0x10b   :  { %v356_v29 = vpop.f32.mrb[1].mxu0  ;;  %v397_v57 = vpop.f32.mrb[1].mxu1 }
 0x10c   :  { %v406_v61 = vcombine.low %v354_v31, %v356_v29  ;;  %v407_v63 = vcombine.low %v395_v50, %v397_v57  ;;  %v358_v1 = vpop.f32.mrb[2].mxu0  ;;  %v399_v56 = vpop.f32.mrb[2].mxu1 }
 0x10d   :  { %v359_v37 = vpop.f32.mrb[3].mxu0  ;;  %v400_v28 = vpop.f32.mrb[3].mxu1 }
 0x10e   :  { %v414_v32 = vrot.slane %v406_v61, %v4156_v30  ;;  %v421_v35 = vrot.slane %v407_v63, %v4156_v30 }
 0x110   :  { %v422_v36 = vcombine.low %v414_v32, %v421_v35 }
 0x112   :  { %v424_v55 = vadd.f32 %v422_v36, %v158_v33  ;;  %v152_v36 = vld [vmem:[#allocation3] sm:$0x3] }
 0x114   :  { %v3031_v27 = vmul.f32 -1.442695, %v424_v55  ;;  %v432_v26 = vrot.slane %v424_v55, 2  ;;  %v443_v24 = vrot.slane %v424_v55, 6  ;;  %v440_v50 = vrot.slane %v424_v55, 4 }
 0x116   :  { %3260 = vpow2.f32 %v3031_v27  ;;  %v3032_v25 = vmul.f32 -1.442695, %v432_v26  ;;  %v3033_v29 = vmul.f32 -1.442695, %v443_v24  ;;  %v4169_v27 = vld [vmem:[%s5380_s1 + $0x18] sm:$0xff]  }
 0x118   :  { %3262 = vpow2.f32 %v3032_v25 }
 0x119   :  { %3264 = vpow2.f32 %v3033_v29 }
 0x120   :  { %v3261_v31 = vpop.eup %3260 }
 0x121   :  { %v428_v57 = vadd.f32 1.0, %v3261_v31 }
 0x122   :  { %v3263_v1 = vpop.eup %3262 }
 0x123   :  { %3266 = vrcp.f32 %v428_v57  ;;  %v437_v28 = vadd.f32 1.0, %v3263_v1  ;;  %v3265_v26 = vpop.eup %3264  ;;  %v471_v57 = vunpack.c.h.bf16 %v4169_v27 }
 0x124   :  { %3268 = vtanh.f32 %v440_v50  ;;  %v448_v59 = vadd.f32 1.0, %v3265_v26 }
 0x125   :  { %3270 = vrcp.f32 %v437_v28 }
 0x126   :  { %3272 = vrcp.f32 %v448_v59 }
 0x12a   :  { %v667_v61 = vpop.f32.mrb[4].mxu0  ;;  %v708_v63 = vpop.f32.mrb[4].mxu1 }
 0x12b   :  { %v669_v56 = vpop.f32.mrb[5].mxu0  ;;  %v710_v25 = vpop.f32.mrb[5].mxu1 }
 0x12c   :  { %v719_v24 = vcombine.low %v667_v61, %v669_v56  ;;  %v720_v37 = vcombine.low %v708_v63, %v710_v25  ;;  %v671_v32 = vpop.f32.mrb[6].mxu0  ;;  %v712_v33 = vpop.f32.mrb[6].mxu1 }
 0x12d   :  { %v3267_v35 = vpop.eup %3266  ;;  %v672_v55 = vpop.f32.mrb[7].mxu0 }
 0x12e   :  { %v713_v29 = vpop.f32.mrb[7].mxu1  ;;  %v3269_v31 = vpop.eup %3268  ;;  %v727_v50 = vrot.slane %v719_v24, %v4156_v30  ;;  %v734_v1 = vrot.slane %v720_v37, %v4156_v30 }
 0x12f   :  { %v3271_v28 = vpop.eup %3270  ;;  %v452_v21 = vmul.f32 %v3269_v31, %v3267_v35 }
 0x130   :  { %v451_v22 = vmul.f32 %v3271_v28, %v152_v36  ;;  %v735_v61 = vcombine.low %v727_v50, %v734_v1  ;;  %v3273_v55 = vpop.eup %3272 }
 0x132   :  { %v453_v63 = vadd.f32 %v452_v21, %v451_v22  ;;  %v737_v56 = vadd.f32 %v735_v61, %v471_v57  ;;  %v154_v61 = vld [vmem:[#allocation5] sm:$0x3] }
 0x134   :  { %3274 = vtanh.f32 %v453_v63  ;;  %v4175_v25 = vsel %vm460_vm8, %v453_v63, %v152_v36  ;;  %v3068_v32 = vmul.f32 -1.442695, %v737_v56  ;;  %v745_v24 = vrot.slane %v737_v56, 2 }
 0x135   :  { %v756_v37 = vrot.slane %v737_v56, 6  ;;  %v753_v31 = vrot.slane %v737_v56, 4 }
 0x136   :  { %3276 = vpow2.f32 %v3068_v32  ;;  %v3069_v33 = vmul.f32 -1.442695, %v745_v24 }
 0x137   :  { %v3070_v29 = vmul.f32 -1.442695, %v756_v37  ;;  %v5517_v37 = vld [vmem:[#allocation30_spill] sm:$0xff] }
 0x138   :  { %3278 = vpow2.f32 %v3069_v33 }
 0x139   :  { %3280 = vpow2.f32 %v3070_v29  ;;  %v5519_v29 = vld [vmem:[#allocation32_spill] sm:$0xff] }
 0x13e   :  { %v3275_v26 = vpop.eup %3274 }
 0x13f   :  { %v455_v28 = vmul.f32 %v3275_v26, %v3273_v55  ;;  %v772_v55 = vpop.permute.xlu0 %771  ;;  %v5518_v26 = vld [vmem:[#allocation31_spill] sm:$0xff] }
 0x140   :  { %v3277_v35 = vpop.eup %3276  ;;  %vm773_vm9 = vcmp.eq.s32.totalorder %v772_v55, 1 }
 0x141   :  { %v4179_v21 = vsel %vm460_vm8, %v455_v28, %v3973_v34  ;;  %v463_v22 = vsel %vm460_vm8, %v455_v28, 0.0  ;;  %v741_v59 = vadd.f32 1.0, %v3277_v35 }
 0x142   :  { %v3279_v36 = vpop.eup %3278  ;;  %v464_v50 = vpack.c.bf16 %v463_v22, %v463_v22  ;;  %v786_v57 = vpack.c.bf16 %v4179_v21, %v4179_v21  ;;  %v5521_v22 = vld [vmem:[#allocation34_spill] sm:$0xff] }
 0x143   :  { %3282 = vrcp.f32 %v741_v59  ;;  %v750_v1 = vadd.f32 1.0, %v3279_v36  ;;  %v3281_v23 = vpop.eup %3280  ;;  %v5522_v59 = vld [vmem:[#allocation35_spill] sm:$0xff]  ;;  %v5523_v36 = vld [vmem:[#allocation36_spill] sm:$0xff] }
 0x144   :  { %465 = vst [vmem:[%s5384_s5] sm:$0x1] %v464_v50  ;;  %3284 = vtanh.f32 %v753_v31  ;;  %820 = vmatmul.mubr.bf16.vlgmr.msra.gmra.mrb[8].mxu0 %v786_v57  ;;  %861 = vmatmul.mubr.bf16.vlgmr.msra.gmra.mrb[8].mxu1 %v786_v57  ;;  %v761_v32 = vadd.f32 1.0, %v3281_v23  ;;  %v5520_v31 = vld [vmem:[#allocation33_spill] sm:$0xff]  ;;  %v5525_v57 = vld [vmem:[#allocation38_spill] sm:$0xff]  ;;  %v5527_v23 = vld [vmem:[#allocation40_spill] sm:$0xff] }
 0x145   :  { %3286 = vrcp.f32 %v750_v1  ;;  %942 = vmatpush1.bf16.msra.mxu0 %v3983_v38  ;;  %983 = vmatpush1.bf16.msra.mxu1 %v3985_v39  ;;  %v5524_v50 = vld [vmem:[#allocation37_spill] sm:$0xff]  ;;  %v5526_v1 = vld [vmem:[#allocation39_spill] sm:$0xff] }
 0x146   :  { %943 = vmatprep.subr.bf16.mxu0 %v3989_v40  ;;  %984 = vmatprep.subr.bf16.mxu1 %v3993_v41  ;;  %3288 = vrcp.f32 %v761_v32 }
 0x147   :  { %973 = vmatprep.mubr.bf16.mxu0 %v5515_v62  ;;  %1014 = vmatprep.mubr.bf16.mxu1 %v5515_v62 }
 0x149   :  { %944 = vmatpush1.bf16.msra.mxu0 %v3995_v42  ;;  %985 = vmatpush1.bf16.msra.mxu1 %v3999_v43 }
 0x14a   :  { %945 = vmatprep.subr.bf16.mxu0 %v4003_v44  ;;  %986 = vmatprep.subr.bf16.mxu1 %v4005_v45 }
 0x14d   :  { %v3283_v34 = vpop.eup %3282  ;;  %946 = vmatpush1.bf16.msra.mxu0 %v4009_v46  ;;  %987 = vmatpush1.bf16.msra.mxu1 %v4011_v47 }
 0x14e   :  { %v3285_v63 = vpop.eup %3284  ;;  %947 = vmatprep.subr.bf16.mxu0 %v4015_v48  ;;  %988 = vmatprep.subr.bf16.mxu1 %v4019_v49 }
 0x14f   :  { %v3287_v56 = vpop.eup %3286  ;;  %v765_v24 = vmul.f32 %v3285_v63, %v3283_v34  ;;  %v5528_v63 = vld [vmem:[#allocation41_spill] sm:$0xff] }
 0x150   :  { %v764_v33 = vmul.f32 %v3287_v56, %v154_v61  ;;  %v3289_v34 = vpop.eup %3288 }
 0x151   :  { %948 = vmatpush1.bf16.msra.mxu0 %v4028_v51  ;;  %989 = vmatpush1.bf16.msra.mxu1 %v5517_v37 }
 0x152   :  { %949 = vmatprep.subr.bf16.mxu0 %v5518_v26  ;;  %990 = vmatprep.subr.bf16.mxu1 %v5519_v29  ;;  %v766_v28 = vadd.f32 %v765_v24, %v764_v33 }
 0x154   :  { %3290 = vtanh.f32 %v766_v28  ;;  %v4206_v35 = vsel %vm773_vm9, %v766_v28, %v154_v61 }
 0x155   :  { %950 = vmatpush1.bf16.msra.mxu0 %v5520_v31  ;;  %991 = vmatpush1.bf16.msra.mxu1 %v5521_v22 }
 0x156   :  { %951 = vmatprep.subr.bf16.mxu0 %v5522_v59  ;;  %992 = vmatprep.subr.bf16.mxu1 %v5523_v36 }
 0x159   :  { %952 = vmatpush1.bf16.msra.mxu0 %v5524_v50  ;;  %993 = vmatpush1.bf16.msra.mxu1 %v5525_v57 }
 0x15a   :  { %953 = vmatprep.subr.bf16.mxu0 %v5526_v1  ;;  %994 = vmatprep.subr.bf16.mxu1 %v5527_v23 }
 0x15d   :  { %954 = vmatpush1.bf16.msra.mxu0 %v4083_v58  ;;  %995 = vmatpush1.bf16.msra.mxu1 %v4085_v54 }
 0x15e   :  { %v3291_v61 = vpop.eup %3290  ;;  %955 = vmatprep.subr.bf16.mxu0 %v4090_v60  ;;  %996 = vmatprep.subr.bf16.mxu1 %v5528_v63 }
 0x15f   :  { %v768_v56 = vmul.f32 %v3291_v61, %v3289_v34 }
 0x161   :  { %956 = vmatpush1.bf16.msra.mxu0 %v4095_v0  ;;  %997 = vmatpush1.bf16.msra.mxu1 %v4100_v53  ;;  %v4224_v32 = vsel %vm773_vm9, %v768_v56, %v4102_v52  ;;  %v776_v24 = vsel %vm773_vm9, %v768_v56, 0.0 }
 0x162   :  { %v777_v33 = vpack.c.bf16 %v776_v24, %v776_v24  ;;  %v940_v28 = vpack.c.bf16 %v4224_v32, %v4224_v32  ;;  %1095 = vmatprep.subr.bf16.mxu0 %v3788_v2  ;;  %1136 = vmatprep.subr.bf16.mxu1 %v3793_v3  ;;  %v5529_v2 = vld [vmem:[#allocation15_spill] sm:$0xff]  ;;  %v5530_v3 = vld [vmem:[#allocation16_spill] sm:$0xff] }
 0x164   :  { %3071 = vst [vmem:[%s5385_s6 + $0x7] sm:$0x1] %v777_v33  ;;  %974 = vmatmul.mubr.bf16.vlgmr.msra.gmra.mrb[12].mxu0 %v940_v28  ;;  %1015 = vmatmul.mubr.bf16.vlgmr.msra.gmra.mrb[12].mxu1 %v940_v28  ;;  %v5544_v28 = vld [vmem:[#allocation42_spill] sm:$0xff] }
 0x165   :  { %1096 = vmatpush1.bf16.msra.mxu0 %v3799_v4  ;;  %1137 = vmatpush1.bf16.msra.mxu1 %v3804_v5  ;;  %v5531_v4 = vld [vmem:[#allocation17_spill] sm:$0xff]  ;;  %v5532_v5 = vld [vmem:[#allocation18_spill] sm:$0xff] }
 0x166   :  { %1097 = vmatprep.subr.bf16.mxu0 %v3810_v6  ;;  %1138 = vmatprep.subr.bf16.mxu1 %v3817_v7  ;;  %v5533_v6 = vld [vmem:[#allocation19_spill] sm:$0xff]  ;;  %v5534_v7 = vld [vmem:[#allocation20_spill] sm:$0xff] }
 0x167   :  { %1127 = vmatprep.mubr.bf16.mxu0 %v5515_v62  ;;  %1168 = vmatprep.mubr.bf16.mxu1 %v5515_v62 }
 0x169   :  { %1098 = vmatpush1.bf16.msra.mxu0 %v3822_v8  ;;  %1139 = vmatpush1.bf16.msra.mxu1 %v3828_v9  ;;  %v5535_v8 = vld [vmem:[#allocation21_spill] sm:$0xff]  ;;  %v5536_v9 = vld [vmem:[#allocation22_spill] sm:$0xff] }
 0x16a   :  { %1099 = vmatprep.subr.bf16.mxu0 %v3834_v10  ;;  %1140 = vmatprep.subr.bf16.mxu1 %v3839_v11  ;;  %v5537_v10 = vld [vmem:[#allocation23_spill] sm:$0xff]  ;;  %v5538_v11 = vld [vmem:[#allocation24_spill] sm:$0xff] }
 0x16d   :  { %1100 = vmatpush1.bf16.msra.mxu0 %v3844_v12  ;;  %1141 = vmatpush1.bf16.msra.mxu1 %v3849_v13  ;;  %v5539_v12 = vld [vmem:[#allocation25_spill] sm:$0xff]  ;;  %v5540_v13 = vld [vmem:[#allocation26_spill] sm:$0xff] }
 0x16e   :  { %1101 = vmatprep.subr.bf16.mxu0 %v3856_v14  ;;  %1142 = vmatprep.subr.bf16.mxu1 %v3863_v15  ;;  %v5541_v14 = vld [vmem:[#allocation27_spill] sm:$0xff]  ;;  %v5542_v15 = vld [vmem:[#allocation28_spill] sm:$0xff] }
 0x171   :  { %1102 = vmatpush1.bf16.msra.mxu0 %v3868_v16  ;;  %1143 = vmatpush1.bf16.msra.mxu1 %v3875_v17  ;;  %v5543_v16 = vld [vmem:[#allocation29_spill] sm:$0xff] }
 0x172   :  { %1103 = vmatprep.subr.bf16.mxu0 %v3880_v18  ;;  %1144 = vmatprep.subr.bf16.mxu1 %v3887_v19 }
 0x175   :  { %1104 = vmatpush1.bf16.msra.mxu0 %v3892_v20  ;;  %1145 = vmatpush1.bf16.msra.mxu1 %v5529_v2  ;;  %v785_v2 = vunpack.c.h.bf16 %v5544_v28 }
 0x176   :  { %1105 = vmatprep.subr.bf16.mxu0 %v5530_v3  ;;  %1146 = vmatprep.subr.bf16.mxu1 %v5531_v4 }
 0x179   :  { %1106 = vmatpush1.bf16.msra.mxu0 %v5532_v5  ;;  %1147 = vmatpush1.bf16.msra.mxu1 %v5533_v6 }
 0x17a   :  { %1107 = vmatprep.subr.bf16.mxu0 %v5534_v7  ;;  %1148 = vmatprep.subr.bf16.mxu1 %v5535_v8 }
 0x17d   :  { %1108 = vmatpush1.bf16.msra.mxu0 %v5536_v9  ;;  %1149 = vmatpush1.bf16.msra.mxu1 %v5537_v10 }
 0x17e   :  { %1109 = vmatprep.subr.bf16.mxu0 %v5538_v11  ;;  %1150 = vmatprep.subr.bf16.mxu1 %v5539_v12 }
 0x181   :  { %1110 = vmatpush1.bf16.msra.mxu0 %v5540_v13  ;;  %1151 = vmatpush1.bf16.msra.mxu1 %v5541_v14 }
 0x182   :  { %1249 = vmatprep.subr.bf16.mxu0 %v5542_v15  ;;  %1290 = vmatprep.subr.bf16.mxu1 %v5543_v16 }
 0x217   :  { %v821_v17 = vpop.f32.mrb[8].mxu0  ;;  %v862_v18 = vpop.f32.mrb[8].mxu1 }
 0x218   :  { %v823_v19 = vpop.f32.mrb[9].mxu0  ;;  %v864_v20 = vpop.f32.mrb[9].mxu1 }
 0x219   :  { %v873_v52 = vcombine.low %v821_v17, %v823_v19  ;;  %v874_v55 = vcombine.low %v862_v18, %v864_v20  ;;  %v825_v34 = vpop.f32.mrb[10].mxu0  ;;  %v866_v61 = vpop.f32.mrb[10].mxu1 }
 0x21a   :  { %v826_v56 = vpop.f32.mrb[11].mxu0  ;;  %v867_v24 = vpop.f32.mrb[11].mxu1 }
 0x21b   :  { %v881_v33 = vrot.slane %v873_v52, %v4156_v30  ;;  %v888_v3 = vrot.slane %v874_v55, %v4156_v30 }
 0x21d   :  { %v889_v4 = vcombine.low %v881_v33, %v888_v3  ;;  %v939_v3 = vunpack.c.l.bf16 %v4169_v27 }
 0x21f   :  { %v891_v5 = vadd.f32 %v889_v4, %v785_v2 }
 0x221   :  { %v3074_v6 = vmul.f32 -1.442695, %v891_v5  ;;  %v899_v7 = vrot.slane %v891_v5, 2  ;;  %v910_v9 = vrot.slane %v891_v5, 6  ;;  %v907_v12 = vrot.slane %v891_v5, 4 }
 0x223   :  { %3292 = vpow2.f32 %v3074_v6  ;;  %v3075_v8 = vmul.f32 -1.442695, %v899_v7  ;;  %v3076_v10 = vmul.f32 -1.442695, %v910_v9  ;;  %v926_v7 = vpop.permute.xlu1 %925 }
 0x224   :  { %vm927_vm10 = vcmp.eq.s32.totalorder %v926_v7, 1  ;;  %v4467_v7 = vld [vmem:[%s5382_s3 + $0xac] ss:$16 sps:$4 sm:$0xff]  }
 0x225   :  { %3294 = vpow2.f32 %v3075_v8 }
 0x226   :  { %3296 = vpow2.f32 %v3076_v10 }
 0x22d   :  { %v3293_v11 = vpop.eup %3292 }
 0x22e   :  { %v895_v13 = vadd.f32 1.0, %v3293_v11 }
 0x22f   :  { %v3295_v14 = vpop.eup %3294 }
 0x230   :  { %3298 = vrcp.f32 %v895_v13  ;;  %v904_v15 = vadd.f32 1.0, %v3295_v14  ;;  %v3297_v20 = vpop.eup %3296 }
 0x231   :  { %3300 = vtanh.f32 %v907_v12  ;;  %v915_v6 = vadd.f32 1.0, %v3297_v20 }
 0x232   :  { %3302 = vrcp.f32 %v904_v15 }
 0x233   :  { %3304 = vrcp.f32 %v915_v6  ;;  %v4461_v6 = vld [vmem:[%s5382_s3 + $0xa4] ss:$16 sps:$4 sm:$0xff]  }
 0x237   :  { %v975_v16 = vpop.f32.mrb[12].mxu0  ;;  %v1016_v17 = vpop.f32.mrb[12].mxu1 }
 0x238   :  { %v977_v18 = vpop.f32.mrb[13].mxu0  ;;  %v1018_v19 = vpop.f32.mrb[13].mxu1 }
 0x239   :  { %v1027_v52 = vcombine.low %v975_v16, %v977_v18  ;;  %v1028_v55 = vcombine.low %v1016_v17, %v1018_v19  ;;  %v979_v34 = vpop.f32.mrb[14].mxu0  ;;  %v1020_v61 = vpop.f32.mrb[14].mxu1 }
 0x23a   :  { %v3299_v56 = vpop.eup %3298  ;;  %v980_v24 = vpop.f32.mrb[15].mxu0 }
 0x23b   :  { %v1021_v33 = vpop.f32.mrb[15].mxu1  ;;  %v3301_v28 = vpop.eup %3300  ;;  %v1035_v2 = vrot.slane %v1027_v52, %v4156_v30  ;;  %v1042_v4 = vrot.slane %v1028_v55, %v4156_v30 }
 0x23c   :  { %v3303_v5 = vpop.eup %3302  ;;  %v919_v9 = vmul.f32 %v3301_v28, %v3299_v56 }
 0x23d   :  { %v918_v8 = vmul.f32 %v3303_v5, %v4175_v25  ;;  %v1043_v10 = vcombine.low %v1035_v2, %v1042_v4  ;;  %v3305_v17 = vpop.eup %3304  ;;  %v4437_v2 = vld [vmem:[%s5382_s3 + $0x84] ss:$16 sps:$4 sm:$0xff]   ;;  %v4449_v4 = vld [vmem:[%s5382_s3 + $0x80] ss:$16 sps:$4 sm:$0xff]   ;;  %v4455_v5 = vld [vmem:[%s5382_s3 + $0x88] ss:$16 sps:$4 sm:$0xff]  }
 0x23f   :  { %v920_v11 = vadd.f32 %v919_v9, %v918_v8  ;;  %v1045_v12 = vadd.f32 %v1043_v10, %v939_v3  ;;  %v4443_v3 = vld [vmem:[%s5382_s3 + $0x8c] ss:$16 sps:$4 sm:$0xff]   ;;  %v4473_v8 = vld [vmem:[%s5382_s3 + $0xa0] ss:$16 sps:$4 sm:$0xff]   ;;  %v4479_v9 = vld [vmem:[%s5382_s3 + $0xa8] ss:$16 sps:$4 sm:$0xff]  }
 0x240   :  { %5545 = vst [vmem:[#allocation30_spill] sm:$0xff] %v4473_v8  ;;  %5546 = vst [vmem:[#allocation31_spill] sm:$0xff] %v4479_v9  ;;  %v4485_v10 = vld [vmem:[%s5382_s3 + $0xc4] ss:$16 sps:$4 sm:$0xff]  }
 0x241   :  { %3306 = vtanh.f32 %v920_v11  ;;  %v4277_v13 = vsel %vm927_vm10, %v920_v11, %v4175_v25  ;;  %v3080_v14 = vmul.f32 -1.442695, %v1045_v12  ;;  %v1053_v27 = vrot.slane %v1045_v12, 2  ;;  %5547 = vst [vmem:[#allocation32_spill] sm:$0xff] %v4485_v10  ;;  %v4491_v11 = vld [vmem:[%s5382_s3 + $0xcc] ss:$16 sps:$4 sm:$0xff]  }
 0x242   :  { %v1064_v16 = vrot.slane %v1045_v12, 6  ;;  %v1061_v55 = vrot.slane %v1045_v12, 4  ;;  %5548 = vst [vmem:[#allocation33_spill] sm:$0xff] %v4491_v11  ;;  %v4497_v12 = vld [vmem:[%s5382_s3 + $0xc0] ss:$16 sps:$4 sm:$0xff]  }
 0x243   :  { %3308 = vpow2.f32 %v3080_v14  ;;  %v3081_v15 = vmul.f32 -1.442695, %v1053_v27  ;;  %5549 = vst [vmem:[#allocation34_spill] sm:$0xff] %v4497_v12  ;;  %v4503_v14 = vld [vmem:[%s5382_s3 + $0xc8] ss:$16 sps:$4 sm:$0xff]  }
 0x244   :  { %v3082_v19 = vmul.f32 -1.442695, %v1064_v16  ;;  %5550 = vst [vmem:[#allocation35_spill] sm:$0xff] %v4503_v14  ;;  %v4509_v27 = vld [vmem:[%s5382_s3 + $0xe4] ss:$16 sps:$4 sm:$0xff]  }
 0x245   :  { %3310 = vpow2.f32 %v3081_v15  ;;  %5551 = vst [vmem:[#allocation36_spill] sm:$0xff] %v4509_v27  ;;  %v4515_v15 = vld [vmem:[%s5382_s3 + $0xec] ss:$16 sps:$4 sm:$0xff]   ;;  %v4521_v16 = vld [vmem:[%s5382_s3 + $0xe0] ss:$16 sps:$4 sm:$0xff]  }
 0x246   :  { %3312 = vpow2.f32 %v3082_v19  ;;  %5552 = vst [vmem:[#allocation37_spill] sm:$0xff] %v4515_v15  ;;  %5553 = vst [vmem:[#allocation38_spill] sm:$0xff] %v4521_v16  ;;  %v4533_v19 = vld [vmem:[#allocation6 + $0xc] ss:$16 sps:$4 sm:$0xff]  }
 0x247   :  { %5556 = vst [vmem:[#allocation41_spill] sm:$0xff] %v4533_v19 }
 0x24b   :  { %v3307_v18 = vpop.eup %3306 }
 0x24c   :  { %v922_v20 = vmul.f32 %v3307_v18, %v3305_v17  ;;  %v4527_v17 = vld [vmem:[%s5382_s3 + $0xe8] ss:$16 sps:$4 sm:$0xff]   ;;  %v4530_v18 = vld [vmem:[#allocation6 + $0x4] ss:$16 sps:$4 sm:$0xff]  }
 0x24d   :  { %v3309_v52 = vpop.eup %3308  ;;  %5554 = vst [vmem:[#allocation39_spill] sm:$0xff] %v4527_v17  ;;  %5555 = vst [vmem:[#allocation40_spill] sm:$0xff] %v4530_v18 }
 0x24e   :  { %v4281_v34 = vsel %vm927_vm10, %v922_v20, %v4179_v21  ;;  %v930_v61 = vsel %vm927_vm10, %v922_v20, 0.0  ;;  %v1049_v25 = vadd.f32 1.0, %v3309_v52 }
 0x24f   :  { %v3311_v56 = vpop.eup %3310  ;;  %v931_v24 = vpack.c.bf16 %v930_v61, %v930_v61  ;;  %v1094_v33 = vpack.c.bf16 %v4281_v34, %v4281_v34  ;;  %v4539_v61 = vld [vmem:[%s5379_s0 + $0x8] sm:$0xff]  }
 0x250   :  { %3314 = vrcp.f32 %v1049_v25  ;;  %v1058_v28 = vadd.f32 1.0, %v3311_v56  ;;  %v3313_v21 = vpop.eup %3312 }
 0x251   :  { %3077 = vst [vmem:[%s5384_s5 + $0x1] sm:$0x1] %v931_v24  ;;  %3316 = vtanh.f32 %v1061_v55  ;;  %1128 = vmatmul.mubr.bf16.vlgmr.msra.gmra.mrb[16].mxu0 %v1094_v33  ;;  %1169 = vmatmul.mubr.bf16.vlgmr.msra.gmra.mrb[16].mxu1 %v1094_v33 }
 0x252   :  { %3318 = vrcp.f32 %v1058_v28  ;;  %1250 = vmatpush1.bf16.msra.mxu0 %v3983_v38  ;;  %1291 = vmatpush1.bf16.msra.mxu1 %v3985_v39 }
 0x253   :  { %1251 = vmatprep.subr.bf16.mxu0 %v3989_v40  ;;  %1292 = vmatprep.subr.bf16.mxu1 %v3993_v41  ;;  %v1069_v41 = vadd.f32 1.0, %v3313_v21 }
 0x254   :  { %1281 = vmatprep.mubr.bf16.mxu0 %v5515_v62  ;;  %1322 = vmatprep.mubr.bf16.mxu1 %v5515_v62 }
 0x255   :  { %3320 = vrcp.f32 %v1069_v41 }
 0x256   :  { %1252 = vmatpush1.bf16.msra.mxu0 %v3995_v42  ;;  %1293 = vmatpush1.bf16.msra.mxu1 %v3999_v43 }
 0x257   :  { %1253 = vmatprep.subr.bf16.mxu0 %v4003_v44  ;;  %1294 = vmatprep.subr.bf16.mxu1 %v4005_v45  ;;  %v1080_v44 = vpop.permute.xlu1 %1079 }
 0x258   :  { %vm1081_vm11 = vcmp.eq.s32.totalorder %v1080_v44, 1 }
 0x25a   :  { %v3315_v38 = vpop.eup %3314  ;;  %1254 = vmatpush1.bf16.msra.mxu0 %v4009_v46  ;;  %1295 = vmatpush1.bf16.msra.mxu1 %v4011_v47 }
 0x25b   :  { %v3317_v39 = vpop.eup %3316  ;;  %1255 = vmatprep.subr.bf16.mxu0 %v4015_v48  ;;  %1296 = vmatprep.subr.bf16.mxu1 %v4019_v49 }
 0x25c   :  { %v3319_v40 = vpop.eup %3318  ;;  %v1073_v42 = vmul.f32 %v3317_v39, %v3315_v38 }
 0x25d   :  { %v1072_v43 = vmul.f32 %v3319_v40, %v4206_v35  ;;  %v1093_v40 = vunpack.c.l.bf16 %v4539_v61 }
 0x25e   :  { %1256 = vmatpush1.bf16.msra.mxu0 %v4028_v51  ;;  %1297 = vmatpush1.bf16.msra.mxu1 %v5517_v37 }
 0x25f   :  { %1257 = vmatprep.subr.bf16.mxu0 %v5518_v26  ;;  %1298 = vmatprep.subr.bf16.mxu1 %v5519_v29  ;;  %v1074_v45 = vadd.f32 %v1073_v42, %v1072_v43  ;;  %v3321_v47 = vpop.eup %3320  ;;  %v4363_v29 = vld [vmem:[%s5382_s3 + $0x24] ss:$16 sps:$4 sm:$0xff]  }
 0x261   :  { %3322 = vtanh.f32 %v1074_v45  ;;  %v4310_v46 = vsel %vm1081_vm11, %v1074_v45, %v4206_v35  ;;  %v4369_v35 = vld [vmem:[%s5382_s3 + $0x2c] ss:$16 sps:$4 sm:$0xff]  }
 0x262   :  { %1258 = vmatpush1.bf16.msra.mxu0 %v5520_v31  ;;  %1299 = vmatpush1.bf16.msra.mxu1 %v5521_v22  ;;  %v4377_v31 = vld [vmem:[%s5382_s3 + $0x20] ss:$16 sps:$4 sm:$0xff]   ;;  %v4383_v22 = vld [vmem:[%s5382_s3 + $0x28] ss:$16 sps:$4 sm:$0xff]  }
 0x263   :  { %1259 = vmatprep.subr.bf16.mxu0 %v5522_v59  ;;  %1300 = vmatprep.subr.bf16.mxu1 %v5523_v36  ;;  %v4389_v59 = vld [vmem:[%s5382_s3 + $0x44] ss:$16 sps:$4 sm:$0xff]   ;;  %v4395_v36 = vld [vmem:[%s5382_s3 + $0x4c] ss:$16 sps:$4 sm:$0xff]  }
 0x266   :  { %1260 = vmatpush1.bf16.msra.mxu0 %v5524_v50  ;;  %1301 = vmatpush1.bf16.msra.mxu1 %v5525_v57  ;;  %v4401_v50 = vld [vmem:[%s5382_s3 + $0x40] ss:$16 sps:$4 sm:$0xff]   ;;  %v4407_v57 = vld [vmem:[%s5382_s3 + $0x48] ss:$16 sps:$4 sm:$0xff]  }
 0x267   :  { %1261 = vmatprep.subr.bf16.mxu0 %v5526_v1  ;;  %1302 = vmatprep.subr.bf16.mxu1 %v5527_v23  ;;  %v4413_v1 = vld [vmem:[%s5382_s3 + $0x64] ss:$16 sps:$4 sm:$0xff]   ;;  %v4419_v23 = vld [vmem:[%s5382_s3 + $0x6c] ss:$16 sps:$4 sm:$0xff]  }
 0x26a   :  { %1262 = vmatpush1.bf16.msra.mxu0 %v4083_v58  ;;  %1303 = vmatpush1.bf16.msra.mxu1 %v4085_v54  ;;  %v4336_v58 = vld [vmem:[%s5382_s3 + $0x4] ss:$16 sps:$4 sm:$0xff]  }
 0x26b   :  { %v3323_v48 = vpop.eup %3322  ;;  %1263 = vmatprep.subr.bf16.mxu0 %v4090_v60  ;;  %1304 = vmatprep.subr.bf16.mxu1 %v5528_v63  ;;  %v4357_v60 = vld [vmem:[%s5382_s3 + $0x8] ss:$16 sps:$4 sm:$0xff]   ;;  %v4425_v63 = vld [vmem:[%s5382_s3 + $0x60] ss:$16 sps:$4 sm:$0xff]  }
 0x26c   :  { %v1076_v49 = vmul.f32 %v3323_v48, %v3321_v47 }
 0x26e   :  { %1264 = vmatpush1.bf16.msra.mxu0 %v4095_v0  ;;  %1305 = vmatpush1.bf16.msra.mxu1 %v4100_v53  ;;  %v4328_v51 = vsel %vm1081_vm11, %v1076_v49, %v4224_v32  ;;  %v1084_v37 = vsel %vm1081_vm11, %v1076_v49, 0.0  ;;  %v4342_v0 = vld [vmem:[%s5382_s3 + $0xc] ss:$16 sps:$4 sm:$0xff]   ;;  %v4351_v53 = vld [vmem:[%s5382_s3] ss:$16 sps:$4 sm:$0xff]  }
 0x26f   :  { %v1085_v26 = vpack.c.bf16 %v1084_v37, %v1084_v37  ;;  %v1248_v54 = vpack.c.bf16 %v4328_v51, %v4328_v51  ;;  %1403 = vmatprep.subr.bf16.mxu0 %v4336_v58  ;;  %1444 = vmatprep.subr.bf16.mxu1 %v4342_v0  ;;  %v4431_v32 = vld [vmem:[%s5382_s3 + $0x68] ss:$16 sps:$4 sm:$0xff]  }
 0x271   :  { %3083 = vst [vmem:[%s5385_s6 + $0x6] sm:$0x1] %v1085_v26  ;;  %1282 = vmatmul.mubr.bf16.vlgmr.msra.gmra.mrb[20].mxu0 %v1248_v54  ;;  %1323 = vmatmul.mubr.bf16.vlgmr.msra.gmra.mrb[20].mxu1 %v1248_v54 }
 0x272   :  { %1404 = vmatpush1.bf16.msra.mxu0 %v4351_v53  ;;  %1445 = vmatpush1.bf16.msra.mxu1 %v4357_v60 }
 0x273   :  { %1405 = vmatprep.subr.bf16.mxu0 %v4363_v29  ;;  %1446 = vmatprep.subr.bf16.mxu1 %v4369_v35 }
 0x274   :  { %1435 = vmatprep.mubr.bf16.mxu0 %v5515_v62  ;;  %1476 = vmatprep.mubr.bf16.mxu1 %v5515_v62 }
 0x276   :  { %1406 = vmatpush1.bf16.msra.mxu0 %v4377_v31  ;;  %1447 = vmatpush1.bf16.msra.mxu1 %v4383_v22 }
 0x277   :  { %1407 = vmatprep.subr.bf16.mxu0 %v4389_v59  ;;  %1448 = vmatprep.subr.bf16.mxu1 %v4395_v36 }
 0x27a   :  { %1408 = vmatpush1.bf16.msra.mxu0 %v4401_v50  ;;  %1449 = vmatpush1.bf16.msra.mxu1 %v4407_v57 }
 0x27b   :  { %1409 = vmatprep.subr.bf16.mxu0 %v4413_v1  ;;  %1450 = vmatprep.subr.bf16.mxu1 %v4419_v23 }
 0x27e   :  { %1410 = vmatpush1.bf16.msra.mxu0 %v4425_v63  ;;  %1451 = vmatpush1.bf16.msra.mxu1 %v4431_v32 }
 0x27f   :  { %1411 = vmatprep.subr.bf16.mxu0 %v4437_v2  ;;  %1452 = vmatprep.subr.bf16.mxu1 %v4443_v3 }
 0x282   :  { %1412 = vmatpush1.bf16.msra.mxu0 %v4449_v4  ;;  %1453 = vmatpush1.bf16.msra.mxu1 %v4455_v5 }
 0x283   :  { %1413 = vmatprep.subr.bf16.mxu0 %v4461_v6  ;;  %1454 = vmatprep.subr.bf16.mxu1 %v4467_v7 }
 0x286   :  { %1414 = vmatpush1.bf16.msra.mxu0 %v4473_v8  ;;  %1455 = vmatpush1.bf16.msra.mxu1 %v4479_v9 }
 0x287   :  { %1415 = vmatprep.subr.bf16.mxu0 %v4485_v10  ;;  %1456 = vmatprep.subr.bf16.mxu1 %v4491_v11 }
 0x28a   :  { %1416 = vmatpush1.bf16.msra.mxu0 %v4497_v12  ;;  %1457 = vmatpush1.bf16.msra.mxu1 %v4503_v14 }
 0x28b   :  { %1417 = vmatprep.subr.bf16.mxu0 %v4509_v27  ;;  %1458 = vmatprep.subr.bf16.mxu1 %v4515_v15 }
 0x28e   :  { %1418 = vmatpush1.bf16.msra.mxu0 %v4521_v16  ;;  %1459 = vmatpush1.bf16.msra.mxu1 %v4527_v17 }
 0x28f   :  { %1557 = vmatprep.subr.bf16.mxu0 %v4530_v18  ;;  %1598 = vmatprep.subr.bf16.mxu1 %v4533_v19 }
 0x324   :  { %v1129_v20 = vpop.f32.mrb[16].mxu0  ;;  %v1170_v52 = vpop.f32.mrb[16].mxu1 }
 0x325   :  { %v1131_v55 = vpop.f32.mrb[17].mxu0  ;;  %v1172_v25 = vpop.f32.mrb[17].mxu1 }
 0x326   :  { %v1181_v56 = vcombine.low %v1129_v20, %v1131_v55  ;;  %v1182_v24 = vcombine.low %v1170_v52, %v1172_v25  ;;  %v1133_v33 = vpop.f32.mrb[18].mxu0  ;;  %v1174_v28 = vpop.f32.mrb[18].mxu1 }
 0x327   :  { %v1134_v21 = vpop.f32.mrb[19].mxu0  ;;  %v1175_v38 = vpop.f32.mrb[19].mxu1 }
 0x328   :  { %v1189_v39 = vrot.slane %v1181_v56, %v4156_v30  ;;  %v1196_v41 = vrot.slane %v1182_v24, %v4156_v30  ;;  %v4547_v24 = vld [vmem:[%s5380_s1 + $0x10] sm:$0xff]  }
 0x32a   :  { %v1197_v42 = vcombine.low %v1189_v39, %v1196_v41 }
 0x32c   :  { %v1199_v43 = vadd.f32 %v1197_v42, %v1093_v40 }
 0x32e   :  { %v3086_v44 = vmul.f32 -1.442695, %v1199_v43  ;;  %v1207_v45 = vrot.slane %v1199_v43, 2  ;;  %v1218_v48 = vrot.slane %v1199_v43, 6  ;;  %v1215_v26 = vrot.slane %v1199_v43, 4 }
 0x330   :  { %3324 = vpow2.f32 %v3086_v44  ;;  %v3087_v47 = vmul.f32 -1.442695, %v1207_v45  ;;  %v3088_v49 = vmul.f32 -1.442695, %v1218_v48 }
 0x332   :  { %3326 = vpow2.f32 %v3087_v47  ;;  %v1247_v47 = vunpack.c.h.bf16 %v4547_v24 }
 0x333   :  { %3328 = vpow2.f32 %v3088_v49 }
 0x33a   :  { %v3325_v37 = vpop.eup %3324 }
 0x33b   :  { %v1203_v54 = vadd.f32 1.0, %v3325_v37 }
 0x33c   :  { %v3327_v20 = vpop.eup %3326 }
 0x33d   :  { %3330 = vrcp.f32 %v1203_v54  ;;  %v1212_v52 = vadd.f32 1.0, %v3327_v20  ;;  %v3329_v28 = vpop.eup %3328 }
 0x33e   :  { %3332 = vtanh.f32 %v1215_v26  ;;  %v1223_v37 = vadd.f32 1.0, %v3329_v28 }
 0x33f   :  { %3334 = vrcp.f32 %v1212_v52 }
 0x340   :  { %3336 = vrcp.f32 %v1223_v37 }
 0x344   :  { %v1283_v55 = vpop.f32.mrb[20].mxu0  ;;  %v1324_v25 = vpop.f32.mrb[20].mxu1 }
 0x345   :  { %v1285_v56 = vpop.f32.mrb[21].mxu0  ;;  %v1326_v33 = vpop.f32.mrb[21].mxu1 }
 0x346   :  { %v1335_v21 = vcombine.low %v1283_v55, %v1285_v56  ;;  %v1336_v38 = vcombine.low %v1324_v25, %v1326_v33  ;;  %v1287_v39 = vpop.f32.mrb[22].mxu0  ;;  %v1328_v40 = vpop.f32.mrb[22].mxu1 }
 0x347   :  { %v3331_v41 = vpop.eup %3330  ;;  %v1288_v42 = vpop.f32.mrb[23].mxu0 }
 0x348   :  { %v1329_v43 = vpop.f32.mrb[23].mxu1  ;;  %v3333_v44 = vpop.eup %3332  ;;  %v1343_v45 = vrot.slane %v1335_v21, %v4156_v30  ;;  %v1350_v48 = vrot.slane %v1336_v38, %v4156_v30 }
 0x349   :  { %v3335_v49 = vpop.eup %3334  ;;  %v1227_v26 = vmul.f32 %v3333_v44, %v3331_v41  ;;  %v1234_v25 = vpop.permute.xlu0 %1233 }
 0x34a   :  { %v1351_v54 = vcombine.low %v1343_v45, %v1350_v48  ;;  %v1226_v20 = vmul.f32 %v3335_v49, %v4277_v13  ;;  %vm1235_vm12 = vcmp.eq.s32.totalorder %v1234_v25, 1  ;;  %v3337_v39 = vpop.eup %3336  ;;  %v4584_v25 = vld [vmem:[#allocation6 + $0x28] ss:$16 sps:$4 sm:$0xff]  }
 0x34c   :  { %v1353_v52 = vadd.f32 %v1351_v54, %v1247_v47  ;;  %v1228_v55 = vadd.f32 %v1227_v26, %v1226_v20  ;;  %v4567_v54 = vld [vmem:[#allocation6] ss:$16 sps:$4 sm:$0xff]   ;;  %v4573_v20 = vld [vmem:[#allocation6 + $0x24] ss:$16 sps:$4 sm:$0xff]  }
 0x34e   :  { %v3092_v56 = vmul.f32 -1.442695, %v1353_v52  ;;  %v1361_v33 = vrot.slane %v1353_v52, 2  ;;  %3338 = vtanh.f32 %v1228_v55  ;;  %v4555_v21 = vsel %vm1235_vm12, %v1228_v55, %v4277_v13  ;;  %v4581_v55 = vld [vmem:[#allocation6 + $0x20] ss:$16 sps:$4 sm:$0xff]  }
 0x34f   :  { %v1372_v28 = vrot.slane %v1353_v52, 6  ;;  %v1369_v43 = vrot.slane %v1353_v52, 4  ;;  %v4576_v52 = vld [vmem:[#allocation6 + $0x2c] ss:$16 sps:$4 sm:$0xff]  }
 0x350   :  { %3340 = vpow2.f32 %v3092_v56  ;;  %v3093_v38 = vmul.f32 -1.442695, %v1361_v33  ;;  %v4587_v56 = vld [vmem:[#allocation6 + $0x44] ss:$16 sps:$4 sm:$0xff]   ;;  %v4590_v33 = vld [vmem:[#allocation6 + $0x4c] ss:$16 sps:$4 sm:$0xff]  }
 0x351   :  { %v3094_v40 = vmul.f32 -1.442695, %v1372_v28 }
 0x352   :  { %3342 = vpow2.f32 %v3093_v38 }
 0x353   :  { %3344 = vpow2.f32 %v3094_v40  ;;  %v4593_v40 = vld [vmem:[#allocation6 + $0x40] ss:$16 sps:$4 sm:$0xff]  }
 0x358   :  { %v3339_v41 = vpop.eup %3338 }
 0x359   :  { %v1230_v44 = vmul.f32 %v3339_v41, %v3337_v39  ;;  %v4596_v41 = vld [vmem:[#allocation6 + $0x48] ss:$16 sps:$4 sm:$0xff]  }
 0x35a   :  { %v3341_v42 = vpop.eup %3340 }
 0x35b   :  { %v1357_v45 = vadd.f32 1.0, %v3341_v42  ;;  %v4559_v48 = vsel %vm1235_vm12, %v1230_v44, %v4281_v34  ;;  %v1238_v13 = vsel %vm1235_vm12, %v1230_v44, 0.0  ;;  %v4570_v34 = vld [vmem:[#allocation6 + $0x8] ss:$16 sps:$4 sm:$0xff]   ;;  %v4599_v44 = vld [vmem:[#allocation6 + $0x64] ss:$16 sps:$4 sm:$0xff]  }
 0x35c   :  { %v3343_v47 = vpop.eup %3342  ;;  %v1239_v37 = vpack.c.bf16 %v1238_v13, %v1238_v13  ;;  %v1402_v26 = vpack.c.bf16 %v4559_v48, %v4559_v48  ;;  %5557 = vst [vmem:[#allocation15_spill] sm:$0xff] %v4599_v44 }
 0x35d   :  { %3346 = vrcp.f32 %v1357_v45  ;;  %v1366_v49 = vadd.f32 1.0, %v3343_v47  ;;  %v3345_v38 = vpop.eup %3344  ;;  %v4602_v45 = vld [vmem:[#allocation6 + $0x6c] ss:$16 sps:$4 sm:$0xff]  }
 0x35e   :  { %3348 = vtanh.f32 %v1369_v43  ;;  %3089 = vst [vmem:[%s5384_s5 + $0x2] sm:$0x1] %v1239_v37  ;;  %1436 = vmatmul.mubr.bf16.vlgmr.msra.gmra.mrb[24].mxu0 %v1402_v26  ;;  %1477 = vmatmul.mubr.bf16.vlgmr.msra.gmra.mrb[24].mxu1 %v1402_v26  ;;  %v1377_v43 = vadd.f32 1.0, %v3345_v38  ;;  %5558 = vst [vmem:[#allocation16_spill] sm:$0xff] %v4602_v45  ;;  %v4606_v37 = vld [vmem:[#allocation6 + $0x60] ss:$16 sps:$4 sm:$0xff]  }
 0x35f   :  { %3350 = vrcp.f32 %v1366_v49  ;;  %1558 = vmatpush1.bf16.msra.mxu0 %v4567_v54  ;;  %1599 = vmatpush1.bf16.msra.mxu1 %v4570_v34  ;;  %v1388_v49 = vpop.permute.xlu1 %1387  ;;  %v4609_v26 = vld [vmem:[#allocation6 + $0x68] ss:$16 sps:$4 sm:$0xff]  }
 0x360   :  { %1559 = vmatprep.subr.bf16.mxu0 %v4573_v20  ;;  %1600 = vmatprep.subr.bf16.mxu1 %v4576_v52  ;;  %5559 = vst [vmem:[#allocation17_spill] sm:$0xff] %v4609_v26  ;;  %vm1389_vm13 = vcmp.eq.s32.totalorder %v1388_v49, 1  ;;  %3352 = vrcp.f32 %v1377_v43  ;;  %v4628_v43 = vld [vmem:[#allocation6 + $0xa4] ss:$16 sps:$4 sm:$0xff]  }
 0x361   :  { %1589 = vmatprep.mubr.bf16.mxu0 %v5515_v62  ;;  %1630 = vmatprep.mubr.bf16.mxu1 %v5515_v62  ;;  %5564 = vst [vmem:[#allocation22_spill] sm:$0xff] %v4628_v43 }
 0x363   :  { %1560 = vmatpush1.bf16.msra.mxu0 %v4581_v55  ;;  %1601 = vmatpush1.bf16.msra.mxu1 %v4584_v25 }
 0x364   :  { %1561 = vmatprep.subr.bf16.mxu0 %v4587_v56  ;;  %1602 = vmatprep.subr.bf16.mxu1 %v4590_v33 }
 0x367   :  { %v3347_v28 = vpop.eup %3346  ;;  %1562 = vmatpush1.bf16.msra.mxu0 %v4593_v40  ;;  %1603 = vmatpush1.bf16.msra.mxu1 %v4596_v41 }
 0x368   :  { %v3349_v39 = vpop.eup %3348  ;;  %1563 = vmatprep.subr.bf16.mxu0 %v4599_v44  ;;  %1604 = vmatprep.subr.bf16.mxu1 %v4602_v45  ;;  %v4612_v44 = vld [vmem:[#allocation6 + $0x84] ss:$16 sps:$4 sm:$0xff]   ;;  %v4615_v45 = vld [vmem:[#allocation6 + $0x8c] ss:$16 sps:$4 sm:$0xff]  }
 0x369   :  { %v3351_v42 = vpop.eup %3350  ;;  %v1381_v47 = vmul.f32 %v3349_v39, %v3347_v28  ;;  %5560 = vst [vmem:[#allocation18_spill] sm:$0xff] %v4612_v44  ;;  %5561 = vst [vmem:[#allocation19_spill] sm:$0xff] %v4615_v45  ;;  %v4622_v39 = vld [vmem:[#allocation6 + $0x80] ss:$16 sps:$4 sm:$0xff]  }
 0x36a   :  { %v1380_v13 = vmul.f32 %v3351_v42, %v4310_v46  ;;  %5562 = vst [vmem:[#allocation20_spill] sm:$0xff] %v4622_v39  ;;  %v4625_v42 = vld [vmem:[#allocation6 + $0x88] ss:$16 sps:$4 sm:$0xff]  }
 0x36b   :  { %1564 = vmatpush1.bf16.msra.mxu0 %v4606_v37  ;;  %1605 = vmatpush1.bf16.msra.mxu1 %v4609_v26  ;;  %5563 = vst [vmem:[#allocation21_spill] sm:$0xff] %v4625_v42 }
 0x36c   :  { %v1382_v38 = vadd.f32 %v1381_v47, %v1380_v13  ;;  %1565 = vmatprep.subr.bf16.mxu0 %v4612_v44  ;;  %1606 = vmatprep.subr.bf16.mxu1 %v4615_v45  ;;  %v4631_v47 = vld [vmem:[#allocation6 + $0xac] ss:$16 sps:$4 sm:$0xff]   ;;  %v4634_v13 = vld [vmem:[#allocation6 + $0xa0] ss:$16 sps:$4 sm:$0xff]  }
 0x36d   :  { %5565 = vst [vmem:[#allocation23_spill] sm:$0xff] %v4631_v47  ;;  %5566 = vst [vmem:[#allocation24_spill] sm:$0xff] %v4634_v13  ;;  %v4646_v45 = vld [vmem:[#allocation6 + $0xc0] ss:$16 sps:$4 sm:$0xff]  }
 0x36e   :  { %3354 = vtanh.f32 %v1382_v38  ;;  %v4620_v28 = vsel %vm1389_vm13, %v1382_v38, %v4310_v46  ;;  %v4637_v46 = vld [vmem:[#allocation6 + $0xa8] ss:$16 sps:$4 sm:$0xff]   ;;  %v4640_v38 = vld [vmem:[#allocation6 + $0xc4] ss:$16 sps:$4 sm:$0xff]   ;;  %5570 = vst [vmem:[#allocation28_spill] sm:$0xff] %v4646_v45 }
 0x36f   :  { %1566 = vmatpush1.bf16.msra.mxu0 %v4622_v39  ;;  %1607 = vmatpush1.bf16.msra.mxu1 %v4625_v42  ;;  %5567 = vst [vmem:[#allocation25_spill] sm:$0xff] %v4637_v46  ;;  %5568 = vst [vmem:[#allocation26_spill] sm:$0xff] %v4640_v38  ;;  %v4643_v42 = vld [vmem:[#allocation6 + $0xcc] ss:$16 sps:$4 sm:$0xff]  }
 0x370   :  { %1567 = vmatprep.subr.bf16.mxu0 %v4628_v43  ;;  %1608 = vmatprep.subr.bf16.mxu1 %v4631_v47  ;;  %5569 = vst [vmem:[#allocation27_spill] sm:$0xff] %v4643_v42  ;;  %v3353_v43 = vpop.eup %3352  ;;  %v4649_v47 = vld [vmem:[#allocation6 + $0xc8] ss:$16 sps:$4 sm:$0xff]  }
 0x371   :  { %5571 = vst [vmem:[#allocation29_spill] sm:$0xff] %v4649_v47 }
 0x373   :  { %1568 = vmatpush1.bf16.msra.mxu0 %v4634_v13  ;;  %1609 = vmatpush1.bf16.msra.mxu1 %v4637_v46  ;;  %v4652_v13 = vld [vmem:[#allocation6 + $0xe4] ss:$16 sps:$4 sm:$0xff]   ;;  %v4655_v46 = vld [vmem:[#allocation6 + $0xec] ss:$16 sps:$4 sm:$0xff]  }
 0x374   :  { %1569 = vmatprep.subr.bf16.mxu0 %v4640_v38  ;;  %1610 = vmatprep.subr.bf16.mxu1 %v4643_v42  ;;  %5572 = vst [vmem:[#allocation42_spill] sm:$0xff] %v4652_v13 }
 0x377   :  { %1570 = vmatpush1.bf16.msra.mxu0 %v4646_v45  ;;  %1611 = vmatpush1.bf16.msra.mxu1 %v4649_v47  ;;  %v4663_v45 = vld [vmem:[#allocation6 + $0xe0] ss:$16 sps:$4 sm:$0xff]   ;;  %v4666_v47 = vld [vmem:[#allocation6 + $0xe8] ss:$16 sps:$4 sm:$0xff]  }
 0x378   :  { %v3355_v39 = vpop.eup %3354  ;;  %1571 = vmatprep.subr.bf16.mxu0 %v4652_v13  ;;  %1612 = vmatprep.subr.bf16.mxu1 %v4655_v46 }
 0x379   :  { %v1384_v38 = vmul.f32 %v3355_v39, %v3353_v43 }
 0x37b   :  { %v4660_v42 = vsel %vm1389_vm13, %v1384_v38, %v4328_v51  ;;  %v1392_v44 = vsel %vm1389_vm13, %v1384_v38, 0.0  ;;  %1572 = vmatpush1.bf16.msra.mxu0 %v4663_v45  ;;  %1613 = vmatpush1.bf16.msra.mxu1 %v4666_v47 }
 0x37c   :  { %v1393_v13 = vpack.c.bf16 %v1392_v44, %v1392_v44  ;;  %v1556_v26 = vpack.c.bf16 %v4660_v42, %v4660_v42  ;;  %1711 = vmatprep.subr.bf16.mxu0 %v4336_v58  ;;  %1752 = vmatprep.subr.bf16.mxu1 %v4342_v0 }
 0x37e   :  { %3095 = vst [vmem:[%s5385_s6 + $0x5] sm:$0x1] %v1393_v13  ;;  %1590 = vmatmul.mubr.bf16.vlgmr.msra.gmra.mrb[28].mxu0 %v1556_v26  ;;  %1631 = vmatmul.mubr.bf16.vlgmr.msra.gmra.mrb[28].mxu1 %v1556_v26 }
 0x37f   :  { %1712 = vmatpush1.bf16.msra.mxu0 %v4351_v53  ;;  %1753 = vmatpush1.bf16.msra.mxu1 %v4357_v60 }
 0x380   :  { %1713 = vmatprep.subr.bf16.mxu0 %v4363_v29  ;;  %1754 = vmatprep.subr.bf16.mxu1 %v4369_v35 }
 0x381   :  { %1743 = vmatprep.mubr.bf16.mxu0 %v5515_v62  ;;  %1784 = vmatprep.mubr.bf16.mxu1 %v5515_v62 }
 0x383   :  { %1714 = vmatpush1.bf16.msra.mxu0 %v4377_v31  ;;  %1755 = vmatpush1.bf16.msra.mxu1 %v4383_v22 }
 0x384   :  { %1715 = vmatprep.subr.bf16.mxu0 %v4389_v59  ;;  %1756 = vmatprep.subr.bf16.mxu1 %v4395_v36 }
 0x387   :  { %1716 = vmatpush1.bf16.msra.mxu0 %v4401_v50  ;;  %1757 = vmatpush1.bf16.msra.mxu1 %v4407_v57 }
 0x388   :  { %1717 = vmatprep.subr.bf16.mxu0 %v4413_v1  ;;  %1758 = vmatprep.subr.bf16.mxu1 %v4419_v23 }
 0x38b   :  { %1718 = vmatpush1.bf16.msra.mxu0 %v4425_v63  ;;  %1759 = vmatpush1.bf16.msra.mxu1 %v4431_v32 }
 0x38c   :  { %1719 = vmatprep.subr.bf16.mxu0 %v4437_v2  ;;  %1760 = vmatprep.subr.bf16.mxu1 %v4443_v3 }
 0x38f   :  { %1720 = vmatpush1.bf16.msra.mxu0 %v4449_v4  ;;  %1761 = vmatpush1.bf16.msra.mxu1 %v4455_v5 }
 0x390   :  { %1721 = vmatprep.subr.bf16.mxu0 %v4461_v6  ;;  %1762 = vmatprep.subr.bf16.mxu1 %v4467_v7 }
 0x393   :  { %1722 = vmatpush1.bf16.msra.mxu0 %v4473_v8  ;;  %1763 = vmatpush1.bf16.msra.mxu1 %v4479_v9 }
 0x394   :  { %1723 = vmatprep.subr.bf16.mxu0 %v4485_v10  ;;  %1764 = vmatprep.subr.bf16.mxu1 %v4491_v11 }
 0x397   :  { %1724 = vmatpush1.bf16.msra.mxu0 %v4497_v12  ;;  %1765 = vmatpush1.bf16.msra.mxu1 %v4503_v14 }
 0x398   :  { %1725 = vmatprep.subr.bf16.mxu0 %v4509_v27  ;;  %1766 = vmatprep.subr.bf16.mxu1 %v4515_v15 }
 0x39b   :  { %1726 = vmatpush1.bf16.msra.mxu0 %v4521_v16  ;;  %1767 = vmatpush1.bf16.msra.mxu1 %v4527_v17  ;;  %v1401_v16 = vunpack.c.h.bf16 %v4539_v61 }
 0x39c   :  { %1865 = vmatprep.subr.bf16.mxu0 %v4530_v18  ;;  %1906 = vmatprep.subr.bf16.mxu1 %v4533_v19 }
 0x431   :  { %v1437_v51 = vpop.f32.mrb[24].mxu0  ;;  %v1478_v44 = vpop.f32.mrb[24].mxu1 }
 0x432   :  { %v1439_v49 = vpop.f32.mrb[25].mxu0  ;;  %v1480_v26 = vpop.f32.mrb[25].mxu1 }
 0x433   :  { %v1489_v39 = vcombine.low %v1437_v51, %v1439_v49  ;;  %v1490_v43 = vcombine.low %v1478_v44, %v1480_v26  ;;  %v1441_v13 = vpop.f32.mrb[26].mxu0  ;;  %v1482_v38 = vpop.f32.mrb[26].mxu1 }
 0x434   :  { %v1442_v14 = vpop.f32.mrb[27].mxu0  ;;  %v1483_v27 = vpop.f32.mrb[27].mxu1 }
 0x435   :  { %v1497_v15 = vrot.slane %v1489_v39, %v4156_v30  ;;  %v1504_v17 = vrot.slane %v1490_v43, %v4156_v30 }
 0x437   :  { %v1505_v12 = vcombine.low %v1497_v15, %v1504_v17 }
 0x439   :  { %v1507_v18 = vadd.f32 %v1505_v12, %v1401_v16 }
 0x43b   :  { %v3098_v11 = vmul.f32 -1.442695, %v1507_v18  ;;  %v1515_v19 = vrot.slane %v1507_v18, 2  ;;  %v1526_v9 = vrot.slane %v1507_v18, 6  ;;  %v1523_v49 = vrot.slane %v1507_v18, 4 }
 0x43d   :  { %3356 = vpow2.f32 %v3098_v11  ;;  %v3099_v10 = vmul.f32 -1.442695, %v1515_v19  ;;  %v3100_v51 = vmul.f32 -1.442695, %v1526_v9 }
 0x43f   :  { %3358 = vpow2.f32 %v3099_v10 }
 0x440   :  { %3360 = vpow2.f32 %v3100_v51  ;;  %v1555_v51 = vunpack.c.l.bf16 %v4547_v24 }
 0x447   :  { %v3357_v44 = vpop.eup %3356 }
 0x448   :  { %v1511_v26 = vadd.f32 1.0, %v3357_v44 }
 0x449   :  { %v3359_v14 = vpop.eup %3358 }
 0x44a   :  { %3362 = vrcp.f32 %v1511_v26  ;;  %v1520_v27 = vadd.f32 1.0, %v3359_v14  ;;  %v3361_v16 = vpop.eup %3360 }
 0x44b   :  { %3364 = vtanh.f32 %v1523_v49  ;;  %v1531_v26 = vadd.f32 1.0, %v3361_v16 }
 0x44c   :  { %3366 = vrcp.f32 %v1520_v27 }
 0x44d   :  { %3368 = vrcp.f32 %v1531_v26 }
 0x451   :  { %v1591_v61 = vpop.f32.mrb[28].mxu0  ;;  %v1632_v39 = vpop.f32.mrb[28].mxu1 }
 0x452   :  { %v1593_v15 = vpop.f32.mrb[29].mxu0  ;;  %v1634_v12 = vpop.f32.mrb[29].mxu1 }
 0x453   :  { %v1643_v17 = vcombine.low %v1591_v61, %v1593_v15  ;;  %v1644_v11 = vcombine.low %v1632_v39, %v1634_v12  ;;  %v1595_v19 = vpop.f32.mrb[30].mxu0  ;;  %v1636_v10 = vpop.f32.mrb[30].mxu1 }
 0x454   :  { %v3363_v43 = vpop.eup %3362  ;;  %v1596_v9 = vpop.f32.mrb[31].mxu0 }
 0x455   :  { %v1637_v13 = vpop.f32.mrb[31].mxu1  ;;  %v3365_v18 = vpop.eup %3364  ;;  %v1651_v38 = vrot.slane %v1643_v17, %v4156_v30  ;;  %v1658_v44 = vrot.slane %v1644_v11, %v4156_v30 }
 0x456   :  { %v3367_v49 = vpop.eup %3366  ;;  %v1535_v14 = vmul.f32 %v3365_v18, %v3363_v43  ;;  %v1542_v15 = vpop.permute.xlu0 %1541 }
 0x457   :  { %v1659_v27 = vcombine.low %v1651_v38, %v1658_v44  ;;  %v1534_v8 = vmul.f32 %v3367_v49, %v4555_v21  ;;  %vm1543_vm14 = vcmp.eq.s32.totalorder %v1542_v15, 1  ;;  %v3369_v11 = vpop.eup %3368  ;;  %v5573_v15 = vld [vmem:[#allocation15_spill] sm:$0xff] }
 0x459   :  { %v1661_v61 = vadd.f32 %v1659_v27, %v1555_v51  ;;  %v1536_v39 = vadd.f32 %v1535_v14, %v1534_v8 }
 0x45b   :  { %v3104_v12 = vmul.f32 -1.442695, %v1661_v61  ;;  %v1669_v19 = vrot.slane %v1661_v61, 2  ;;  %3370 = vtanh.f32 %v1536_v39  ;;  %v4719_v17 = vsel %vm1543_vm14, %v1536_v39, %v4555_v21 }
 0x45c   :  { %v1680_v16 = vrot.slane %v1661_v61, 6  ;;  %v1677_v13 = vrot.slane %v1661_v61, 4 }
 0x45d   :  { %3372 = vpow2.f32 %v3104_v12  ;;  %v3105_v24 = vmul.f32 -1.442695, %v1669_v19  ;;  %v5574_v12 = vld [vmem:[#allocation16_spill] sm:$0xff] }
 0x45e   :  { %v3106_v10 = vmul.f32 -1.442695, %v1680_v16  ;;  %v1696_v16 = vpop.permute.xlu1 %1695 }
 0x45f   :  { %3374 = vpow2.f32 %v3105_v24  ;;  %vm1697_vm15 = vcmp.eq.s32.totalorder %v1696_v16, 1 }
 0x460   :  { %3376 = vpow2.f32 %v3106_v10 }
 0x465   :  { %v3371_v43 = vpop.eup %3370 }
 0x466   :  { %v1538_v8 = vmul.f32 %v3371_v43, %v3369_v11  ;;  %v5575_v11 = vld [vmem:[#allocation17_spill] sm:$0xff]  ;;  %v5576_v43 = vld [vmem:[#allocation18_spill] sm:$0xff] }
 0x467   :  { %v3373_v9 = vpop.eup %3372 }
 0x468   :  { %v1665_v18 = vadd.f32 1.0, %v3373_v9  ;;  %v4723_v51 = vsel %vm1543_vm14, %v1538_v8, %v4559_v48  ;;  %v1546_v21 = vsel %vm1543_vm14, %v1538_v8, 0.0  ;;  %v5577_v9 = vld [vmem:[#allocation19_spill] sm:$0xff]  ;;  %v5578_v8 = vld [vmem:[#allocation20_spill] sm:$0xff] }
 0x469   :  { %v3375_v38 = vpop.eup %3374  ;;  %v1547_v49 = vpack.c.bf16 %v1546_v21, %v1546_v21  ;;  %v1710_v26 = vpack.c.bf16 %v4723_v51, %v4723_v51  ;;  %v5581_v21 = vld [vmem:[#allocation23_spill] sm:$0xff] }
 0x46a   :  { %3378 = vrcp.f32 %v1665_v18  ;;  %v1674_v44 = vadd.f32 1.0, %v3375_v38  ;;  %v3377_v48 = vpop.eup %3376  ;;  %v5579_v18 = vld [vmem:[#allocation21_spill] sm:$0xff]  ;;  %v5580_v38 = vld [vmem:[#allocation22_spill] sm:$0xff] }
 0x46b   :  { %3380 = vtanh.f32 %v1677_v13  ;;  %3101 = vst [vmem:[%s5384_s5 + $0x3] sm:$0x1] %v1547_v49  ;;  %1744 = vmatmul.mubr.bf16.vlgmr.msra.gmra.mrb[32].mxu0 %v1710_v26  ;;  %1785 = vmatmul.mubr.bf16.vlgmr.msra.gmra.mrb[32].mxu1 %v1710_v26  ;;  %v1685_v39 = vadd.f32 1.0, %v3377_v48  ;;  %v5583_v49 = vld [vmem:[#allocation25_spill] sm:$0xff]  ;;  %v5584_v26 = vld [vmem:[#allocation26_spill] sm:$0xff]  ;;  %v5585_v48 = vld [vmem:[#allocation27_spill] sm:$0xff] }
 0x46c   :  { %3382 = vrcp.f32 %v1674_v44  ;;  %1866 = vmatpush1.bf16.msra.mxu0 %v4567_v54  ;;  %1907 = vmatpush1.bf16.msra.mxu1 %v4570_v34  ;;  %v5582_v44 = vld [vmem:[#allocation24_spill] sm:$0xff] }
 0x46d   :  { %1867 = vmatprep.subr.bf16.mxu0 %v4573_v20  ;;  %1908 = vmatprep.subr.bf16.mxu1 %v4576_v52  ;;  %3384 = vrcp.f32 %v1685_v39  ;;  %v5588_v39 = vld [vmem:[#allocation42_spill] sm:$0xff] }
 0x46e   :  { %1897 = vmatprep.mubr.bf16.mxu0 %v5515_v62  ;;  %1938 = vmatprep.mubr.bf16.mxu1 %v5515_v62 }
 0x470   :  { %1868 = vmatpush1.bf16.msra.mxu0 %v4581_v55  ;;  %1909 = vmatpush1.bf16.msra.mxu1 %v4584_v25 }
 0x471   :  { %1869 = vmatprep.subr.bf16.mxu0 %v4587_v56  ;;  %1910 = vmatprep.subr.bf16.mxu1 %v4590_v33 }
 0x474   :  { %v3379_v14 = vpop.eup %3378  ;;  %1870 = vmatpush1.bf16.msra.mxu0 %v4593_v40  ;;  %1911 = vmatpush1.bf16.msra.mxu1 %v4596_v41 }
 0x475   :  { %v3381_v27 = vpop.eup %3380  ;;  %1871 = vmatprep.subr.bf16.mxu0 %v5573_v15  ;;  %1912 = vmatprep.subr.bf16.mxu1 %v5574_v12 }
 0x476   :  { %v3383_v61 = vpop.eup %3382  ;;  %v1689_v19 = vmul.f32 %v3381_v27, %v3379_v14 }
 0x477   :  { %v1688_v24 = vmul.f32 %v3383_v61, %v4620_v28  ;;  %v3385_v14 = vpop.eup %3384  ;;  %v5587_v61 = vld [vmem:[#allocation29_spill] sm:$0xff] }
 0x478   :  { %1872 = vmatpush1.bf16.msra.mxu0 %v4606_v37  ;;  %1913 = vmatpush1.bf16.msra.mxu1 %v5575_v11 }
 0x479   :  { %v1690_v10 = vadd.f32 %v1689_v19, %v1688_v24  ;;  %1873 = vmatprep.subr.bf16.mxu0 %v5576_v43  ;;  %1914 = vmatprep.subr.bf16.mxu1 %v5577_v9 }
 0x47b   :  { %3386 = vtanh.f32 %v1690_v10  ;;  %v4752_v13 = vsel %vm1697_vm15, %v1690_v10, %v4620_v28  ;;  %v5586_v28 = vld [vmem:[#allocation28_spill] sm:$0xff] }
 0x47c   :  { %1874 = vmatpush1.bf16.msra.mxu0 %v5578_v8  ;;  %1915 = vmatpush1.bf16.msra.mxu1 %v5579_v18 }
 0x47d   :  { %1875 = vmatprep.subr.bf16.mxu0 %v5580_v38  ;;  %1916 = vmatprep.subr.bf16.mxu1 %v5581_v21 }
 0x480   :  { %1876 = vmatpush1.bf16.msra.mxu0 %v5582_v44  ;;  %1917 = vmatpush1.bf16.msra.mxu1 %v5583_v49 }
 0x481   :  { %1877 = vmatprep.subr.bf16.mxu0 %v5584_v26  ;;  %1918 = vmatprep.subr.bf16.mxu1 %v5585_v48 }
 0x484   :  { %1878 = vmatpush1.bf16.msra.mxu0 %v5586_v28  ;;  %1919 = vmatpush1.bf16.msra.mxu1 %v5587_v61 }
 0x485   :  { %v3387_v27 = vpop.eup %3386  ;;  %1879 = vmatprep.subr.bf16.mxu0 %v5588_v39  ;;  %1920 = vmatprep.subr.bf16.mxu1 %v4655_v46 }
 0x486   :  { %v1692_v19 = vmul.f32 %v3387_v27, %v3385_v14 }
 0x488   :  { %v4768_v24 = vsel %vm1697_vm15, %v1692_v19, %v4660_v42  ;;  %v1700_v10 = vsel %vm1697_vm15, %v1692_v19, 0.0  ;;  %1880 = vmatpush1.bf16.msra.mxu0 %v4663_v45  ;;  %1921 = vmatpush1.bf16.msra.mxu1 %v4666_v47 }
 0x489   :  { %v1701_v48 = vpack.c.bf16 %v1700_v10, %v1700_v10  ;;  %v1864_v28 = vpack.c.bf16 %v4768_v24, %v4768_v24  ;;  %2019 = vmatprep.subr.bf16.mxu0 %v4336_v58  ;;  %2060 = vmatprep.subr.bf16.mxu1 %v4342_v0  ;;  %v5589_v58 = vld [vmem:[#allocation30_spill] sm:$0xff]  ;;  %v5590_v0 = vld [vmem:[#allocation31_spill] sm:$0xff] }
 0x48b   :  { %3107 = vst [vmem:[%s5385_s6 + $0x4] sm:$0x1] %v1701_v48  ;;  %1898 = vmatmul.mubr.bf16.vlgmr.msra.gmra.mrb[36].mxu0 %v1864_v28  ;;  %1939 = vmatmul.mubr.bf16.vlgmr.msra.gmra.mrb[36].mxu1 %v1864_v28 }
 0x48c   :  { %2020 = vmatpush1.bf16.msra.mxu0 %v4351_v53  ;;  %2061 = vmatpush1.bf16.msra.mxu1 %v4357_v60  ;;  %v5591_v53 = vld [vmem:[#allocation32_spill] sm:$0xff]  ;;  %v5592_v60 = vld [vmem:[#allocation33_spill] sm:$0xff] }
 0x48d   :  { %2021 = vmatprep.subr.bf16.mxu0 %v4363_v29  ;;  %2062 = vmatprep.subr.bf16.mxu1 %v4369_v35  ;;  %v5593_v29 = vld [vmem:[#allocation34_spill] sm:$0xff]  ;;  %v5594_v35 = vld [vmem:[#allocation35_spill] sm:$0xff] }
 0x48e   :  { %2051 = vmatprep.mubr.bf16.mxu0 %v5515_v62  ;;  %2092 = vmatprep.mubr.bf16.mxu1 %v5515_v62 }
 0x490   :  { %2022 = vmatpush1.bf16.msra.mxu0 %v4377_v31  ;;  %2063 = vmatpush1.bf16.msra.mxu1 %v4383_v22  ;;  %v5595_v31 = vld [vmem:[#allocation36_spill] sm:$0xff]  ;;  %v5596_v22 = vld [vmem:[#allocation37_spill] sm:$0xff] }
 0x491   :  { %2023 = vmatprep.subr.bf16.mxu0 %v4389_v59  ;;  %2064 = vmatprep.subr.bf16.mxu1 %v4395_v36  ;;  %v5597_v59 = vld [vmem:[#allocation38_spill] sm:$0xff]  ;;  %v5598_v36 = vld [vmem:[#allocation39_spill] sm:$0xff] }
 0x494   :  { %2024 = vmatpush1.bf16.msra.mxu0 %v4401_v50  ;;  %2065 = vmatpush1.bf16.msra.mxu1 %v4407_v57  ;;  %v5599_v50 = vld [vmem:[#allocation40_spill] sm:$0xff]  ;;  %v5600_v57 = vld [vmem:[#allocation41_spill] sm:$0xff] }
 0x495   :  { %2025 = vmatprep.subr.bf16.mxu0 %v4413_v1  ;;  %2066 = vmatprep.subr.bf16.mxu1 %v4419_v23 }
 0x498   :  { %2026 = vmatpush1.bf16.msra.mxu0 %v4425_v63  ;;  %2067 = vmatpush1.bf16.msra.mxu1 %v4431_v32  ;;  %v4817_v32 = vld [vmem:[%s5379_s0 + $0x10] sm:$0xff]  }
 0x499   :  { %2027 = vmatprep.subr.bf16.mxu0 %v4437_v2  ;;  %2068 = vmatprep.subr.bf16.mxu1 %v4443_v3  ;;  %v1709_v48 = vunpack.c.l.bf16 %v4817_v32 }
 0x49c   :  { %2028 = vmatpush1.bf16.msra.mxu0 %v4449_v4  ;;  %2069 = vmatpush1.bf16.msra.mxu1 %v4455_v5 }
 0x49d   :  { %2029 = vmatprep.subr.bf16.mxu0 %v4461_v6  ;;  %2070 = vmatprep.subr.bf16.mxu1 %v4467_v7 }
 0x4a0   :  { %2030 = vmatpush1.bf16.msra.mxu0 %v5589_v58  ;;  %2071 = vmatpush1.bf16.msra.mxu1 %v5590_v0 }
 0x4a1   :  { %2031 = vmatprep.subr.bf16.mxu0 %v5591_v53  ;;  %2072 = vmatprep.subr.bf16.mxu1 %v5592_v60 }
 0x4a4   :  { %2032 = vmatpush1.bf16.msra.mxu0 %v5593_v29  ;;  %2073 = vmatpush1.bf16.msra.mxu1 %v5594_v35 }
 0x4a5   :  { %2033 = vmatprep.subr.bf16.mxu0 %v5595_v31  ;;  %2074 = vmatprep.subr.bf16.mxu1 %v5596_v22 }
 0x4a8   :  { %2034 = vmatpush1.bf16.msra.mxu0 %v5597_v59  ;;  %2075 = vmatpush1.bf16.msra.mxu1 %v5598_v36 }
 0x4a9   :  { %2173 = vmatprep.subr.bf16.mxu0 %v5599_v50  ;;  %2214 = vmatprep.subr.bf16.mxu1 %v5600_v57  ;;  %v4825_v57 = vld [vmem:[%s5380_s1 + $0x8] sm:$0xff]  }
 0x53e   :  { %v1745_v1 = vpop.f32.mrb[32].mxu0  ;;  %v1786_v23 = vpop.f32.mrb[32].mxu1 }
 0x53f   :  { %v1747_v63 = vpop.f32.mrb[33].mxu0  ;;  %v1788_v2 = vpop.f32.mrb[33].mxu1 }
 0x540   :  { %v1797_v3 = vcombine.low %v1745_v1, %v1747_v63  ;;  %v1798_v4 = vcombine.low %v1786_v23, %v1788_v2  ;;  %v1749_v5 = vpop.f32.mrb[34].mxu0  ;;  %v1790_v6 = vpop.f32.mrb[34].mxu1 }
 0x541   :  { %v1750_v7 = vpop.f32.mrb[35].mxu0  ;;  %v1791_v42 = vpop.f32.mrb[35].mxu1 }
 0x542   :  { %v1805_v16 = vrot.slane %v1797_v3, %v4156_v30  ;;  %v1812_v14 = vrot.slane %v1798_v4, %v4156_v30 }
 0x544   :  { %v1813_v27 = vcombine.low %v1805_v16, %v1812_v14 }
 0x546   :  { %v1815_v28 = vadd.f32 %v1813_v27, %v1709_v48  ;;  %v1863_v48 = vunpack.c.h.bf16 %v4825_v57 }
 0x548   :  { %v3110_v19 = vmul.f32 -1.442695, %v1815_v28  ;;  %v1823_v10 = vrot.slane %v1815_v28, 2  ;;  %v1834_v0 = vrot.slane %v1815_v28, 6  ;;  %v1831_v29 = vrot.slane %v1815_v28, 4 }
 0x54a   :  { %3388 = vpow2.f32 %v3110_v19  ;;  %v3111_v58 = vmul.f32 -1.442695, %v1823_v10  ;;  %v3112_v53 = vmul.f32 -1.442695, %v1834_v0 }
 0x54c   :  { %3390 = vpow2.f32 %v3111_v58 }
 0x54d   :  { %3392 = vpow2.f32 %v3112_v53 }
 0x554   :  { %v3389_v60 = vpop.eup %3388 }
 0x555   :  { %v1819_v35 = vadd.f32 1.0, %v3389_v60  ;;  %v1850_v60 = vpop.permute.xlu0 %1849 }
 0x556   :  { %v3391_v31 = vpop.eup %3390  ;;  %vm1851_vm0 = vcmp.eq.s32.totalorder %v1850_v60, 1  ;;  %v5029_v60 = vld [vmem:[%s5382_s3 + $0xa0] ss:$16 sps:$4 sm:$0xff]  }
 0x557   :  { %3394 = vrcp.f32 %v1819_v35  ;;  %v1828_v22 = vadd.f32 1.0, %v3391_v31  ;;  %v3393_v23 = vpop.eup %3392 }
 0x558   :  { %3396 = vtanh.f32 %v1831_v29  ;;  %v1839_v28 = vadd.f32 1.0, %v3393_v23 }
 0x559   :  { %3398 = vrcp.f32 %v1828_v22 }
 0x55a   :  { %3400 = vrcp.f32 %v1839_v28  ;;  %v4993_v28 = vld [vmem:[%s5382_s3 + $0x84] ss:$16 sps:$4 sm:$0xff]  }
 0x55e   :  { %v1899_v59 = vpop.f32.mrb[36].mxu0  ;;  %v1940_v36 = vpop.f32.mrb[36].mxu1 }
 0x55f   :  { %v1901_v50 = vpop.f32.mrb[37].mxu0  ;;  %v1942_v1 = vpop.f32.mrb[37].mxu1 }
 0x560   :  { %v1951_v63 = vcombine.low %v1899_v59, %v1901_v50  ;;  %v1952_v2 = vcombine.low %v1940_v36, %v1942_v1  ;;  %v1903_v3 = vpop.f32.mrb[38].mxu0  ;;  %v1944_v4 = vpop.f32.mrb[38].mxu1 }
 0x561   :  { %v3395_v5 = vpop.eup %3394  ;;  %v1904_v6 = vpop.f32.mrb[39].mxu0 }
 0x562   :  { %v1945_v7 = vpop.f32.mrb[39].mxu1  ;;  %v3397_v42 = vpop.eup %3396  ;;  %v1959_v16 = vrot.slane %v1951_v63, %v4156_v30  ;;  %v1966_v14 = vrot.slane %v1952_v2, %v4156_v30 }
 0x563   :  { %v3399_v27 = vpop.eup %3398  ;;  %v1843_v19 = vmul.f32 %v3397_v42, %v3395_v5 }
 0x564   :  { %v1967_v10 = vcombine.low %v1959_v16, %v1966_v14  ;;  %v1842_v58 = vmul.f32 %v3399_v27, %v4719_v17  ;;  %v3401_v36 = vpop.eup %3400  ;;  %v4981_v14 = vld [vmem:[%s5382_s3 + $0x60] ss:$16 sps:$4 sm:$0xff]   ;;  %v4987_v27 = vld [vmem:[%s5382_s3 + $0x68] ss:$16 sps:$4 sm:$0xff]  }
 0x566   :  { %v1969_v0 = vadd.f32 %v1967_v10, %v1863_v48  ;;  %v1844_v53 = vadd.f32 %v1843_v19, %v1842_v58  ;;  %v4975_v48 = vld [vmem:[%s5382_s3 + $0x6c] ss:$16 sps:$4 sm:$0xff]   ;;  %v5005_v10 = vld [vmem:[%s5382_s3 + $0x80] ss:$16 sps:$4 sm:$0xff]   ;;  %v5011_v58 = vld [vmem:[%s5382_s3 + $0x88] ss:$16 sps:$4 sm:$0xff]  }
 0x567   :  { %v4999_v19 = vld [vmem:[%s5382_s3 + $0x8c] ss:$16 sps:$4 sm:$0xff]  }
 0x568   :  { %v3116_v29 = vmul.f32 -1.442695, %v1969_v0  ;;  %v1977_v35 = vrot.slane %v1969_v0, 2  ;;  %3402 = vtanh.f32 %v1844_v53  ;;  %v4833_v31 = vsel %vm1851_vm0, %v1844_v53, %v4719_v17  ;;  %v5023_v53 = vld [vmem:[%s5382_s3 + $0xac] ss:$16 sps:$4 sm:$0xff]  }
 0x569   :  { %v1988_v59 = vrot.slane %v1969_v0, 6  ;;  %v1985_v63 = vrot.slane %v1969_v0, 4  ;;  %v5017_v0 = vld [vmem:[%s5382_s3 + $0xa4] ss:$16 sps:$4 sm:$0xff]  }
 0x56a   :  { %3404 = vpow2.f32 %v3116_v29  ;;  %v3117_v22 = vmul.f32 -1.442695, %v1977_v35  ;;  %v5035_v29 = vld [vmem:[%s5382_s3 + $0xa8] ss:$16 sps:$4 sm:$0xff]   ;;  %v5041_v35 = vld [vmem:[%s5382_s3 + $0xc4] ss:$16 sps:$4 sm:$0xff]  }
 0x56b   :  { %v3118_v50 = vmul.f32 -1.442695, %v1988_v59  ;;  %v5053_v59 = vld [vmem:[%s5382_s3 + $0xc0] ss:$16 sps:$4 sm:$0xff]  }
 0x56c   :  { %3406 = vpow2.f32 %v3117_v22  ;;  %v5047_v22 = vld [vmem:[%s5382_s3 + $0xcc] ss:$16 sps:$4 sm:$0xff]  }
 0x56d   :  { %3408 = vpow2.f32 %v3118_v50  ;;  %v5065_v50 = vld [vmem:[%s5382_s3 + $0xe4] ss:$16 sps:$4 sm:$0xff]  }
 0x572   :  { %v3403_v1 = vpop.eup %3402 }
 0x573   :  { %v1846_v2 = vmul.f32 %v3403_v1, %v3401_v36  ;;  %v5059_v36 = vld [vmem:[%s5382_s3 + $0xc8] ss:$16 sps:$4 sm:$0xff]   ;;  %v5071_v1 = vld [vmem:[%s5382_s3 + $0xec] ss:$16 sps:$4 sm:$0xff]  }
 0x574   :  { %v3405_v23 = vpop.eup %3404 }
 0x575   :  { %v1973_v3 = vadd.f32 1.0, %v3405_v23  ;;  %v4837_v5 = vsel %vm1851_vm0, %v1846_v2, %v4723_v51  ;;  %v1854_v17 = vsel %vm1851_vm0, %v1846_v2, 0.0  ;;  %v5077_v23 = vld [vmem:[%s5382_s3 + $0xe0] ss:$16 sps:$4 sm:$0xff]   ;;  %v5086_v2 = vld [vmem:[#allocation6 + $0x4] ss:$16 sps:$4 sm:$0xff]  }
 0x576   :  { %v3407_v4 = vpop.eup %3406  ;;  %v1855_v7 = vpack.c.bf16 %v1854_v17, %v1854_v17  ;;  %v2018_v42 = vpack.c.bf16 %v4837_v5, %v4837_v5 }
 0x577   :  { %3410 = vrcp.f32 %v1973_v3  ;;  %v1982_v6 = vadd.f32 1.0, %v3407_v4  ;;  %v3409_v51 = vpop.eup %3408  ;;  %v5089_v3 = vld [vmem:[#allocation6 + $0xc] ss:$16 sps:$4 sm:$0xff]  }
 0x578   :  { %3412 = vtanh.f32 %v1985_v63  ;;  %3113 = vst [vmem:[%s5384_s5 + $0x4] sm:$0x1] %v1855_v7  ;;  %2052 = vmatmul.mubr.bf16.vlgmr.msra.gmra.mrb[40].mxu0 %v2018_v42  ;;  %2093 = vmatmul.mubr.bf16.vlgmr.msra.gmra.mrb[40].mxu1 %v2018_v42  ;;  %v5083_v63 = vld [vmem:[%s5382_s3 + $0xe8] ss:$16 sps:$4 sm:$0xff]  }
 0x579   :  { %3414 = vrcp.f32 %v1982_v6  ;;  %2174 = vmatpush1.bf16.msra.mxu0 %v4567_v54  ;;  %2215 = vmatpush1.bf16.msra.mxu1 %v4570_v34 }
 0x57a   :  { %2175 = vmatprep.subr.bf16.mxu0 %v4573_v20  ;;  %2216 = vmatprep.subr.bf16.mxu1 %v4576_v52  ;;  %v1993_v20 = vadd.f32 1.0, %v3409_v51 }
 0x57b   :  { %2205 = vmatprep.mubr.bf16.mxu0 %v5515_v62  ;;  %2246 = vmatprep.mubr.bf16.mxu1 %v5515_v62 }
 0x57c   :  { %3416 = vrcp.f32 %v1993_v20 }
 0x57d   :  { %2176 = vmatpush1.bf16.msra.mxu0 %v4581_v55  ;;  %2217 = vmatpush1.bf16.msra.mxu1 %v4584_v25  ;;  %v2004_v25 = vpop.permute.xlu1 %2003 }
 0x57e   :  { %2177 = vmatprep.subr.bf16.mxu0 %v4587_v56  ;;  %2218 = vmatprep.subr.bf16.mxu1 %v4590_v33  ;;  %vm2005_vm1 = vcmp.eq.s32.totalorder %v2004_v25, 1 }
 0x581   :  { %v3411_v54 = vpop.eup %3410  ;;  %2178 = vmatpush1.bf16.msra.mxu0 %v4593_v40  ;;  %2219 = vmatpush1.bf16.msra.mxu1 %v4596_v41  ;;  %v5601_v40 = vld [vmem:[#allocation27_spill] sm:$0xff] }
 0x582   :  { %v3413_v16 = vpop.eup %3412  ;;  %2179 = vmatprep.subr.bf16.mxu0 %v5573_v15  ;;  %2220 = vmatprep.subr.bf16.mxu1 %v5574_v12  ;;  %v5602_v15 = vld [vmem:[#allocation28_spill] sm:$0xff] }
 0x583   :  { %v3415_v34 = vpop.eup %3414  ;;  %v1997_v52 = vmul.f32 %v3413_v16, %v3411_v54 }
 0x584   :  { %v1996_v55 = vmul.f32 %v3415_v34, %v4752_v13 }
 0x585   :  { %2180 = vmatpush1.bf16.msra.mxu0 %v4606_v37  ;;  %2221 = vmatpush1.bf16.msra.mxu1 %v5575_v11 }
 0x586   :  { %v1998_v56 = vadd.f32 %v1997_v52, %v1996_v55  ;;  %2181 = vmatprep.subr.bf16.mxu0 %v5576_v43  ;;  %2222 = vmatprep.subr.bf16.mxu1 %v5577_v9  ;;  %v3417_v41 = vpop.eup %3416  ;;  %v2017_v55 = vunpack.c.h.bf16 %v4817_v32 }
 0x588   :  { %3418 = vtanh.f32 %v1998_v56  ;;  %v4866_v33 = vsel %vm2005_vm1, %v1998_v56, %v4752_v13 }
 0x589   :  { %2182 = vmatpush1.bf16.msra.mxu0 %v5578_v8  ;;  %2223 = vmatpush1.bf16.msra.mxu1 %v5579_v18  ;;  %v4892_v8 = vld [vmem:[%s5382_s3 + $0x4] ss:$16 sps:$4 sm:$0xff]  }
 0x58a   :  { %2183 = vmatprep.subr.bf16.mxu0 %v5580_v38  ;;  %2224 = vmatprep.subr.bf16.mxu1 %v5581_v21  ;;  %v4919_v18 = vld [vmem:[%s5382_s3 + $0x24] ss:$16 sps:$4 sm:$0xff]   ;;  %v4925_v38 = vld [vmem:[%s5382_s3 + $0x2c] ss:$16 sps:$4 sm:$0xff]   ;;  %v4933_v21 = vld [vmem:[%s5382_s3 + $0x20] ss:$16 sps:$4 sm:$0xff]  }
 0x58d   :  { %2184 = vmatpush1.bf16.msra.mxu0 %v5582_v44  ;;  %2225 = vmatpush1.bf16.msra.mxu1 %v5583_v49  ;;  %v4939_v44 = vld [vmem:[%s5382_s3 + $0x28] ss:$16 sps:$4 sm:$0xff]   ;;  %v4945_v49 = vld [vmem:[%s5382_s3 + $0x44] ss:$16 sps:$4 sm:$0xff]  }
 0x58e   :  { %2185 = vmatprep.subr.bf16.mxu0 %v5584_v26  ;;  %2226 = vmatprep.subr.bf16.mxu1 %v5601_v40  ;;  %v4951_v26 = vld [vmem:[%s5382_s3 + $0x4c] ss:$16 sps:$4 sm:$0xff]  }
 0x591   :  { %2186 = vmatpush1.bf16.msra.mxu0 %v5602_v15  ;;  %2227 = vmatpush1.bf16.msra.mxu1 %v5587_v61  ;;  %v4957_v61 = vld [vmem:[%s5382_s3 + $0x40] ss:$16 sps:$4 sm:$0xff]  }
 0x592   :  { %v3419_v37 = vpop.eup %3418  ;;  %2187 = vmatprep.subr.bf16.mxu0 %v5588_v39  ;;  %2228 = vmatprep.subr.bf16.mxu1 %v4655_v46  ;;  %v4898_v46 = vld [vmem:[%s5382_s3 + $0xc] ss:$16 sps:$4 sm:$0xff]   ;;  %v4963_v39 = vld [vmem:[%s5382_s3 + $0x48] ss:$16 sps:$4 sm:$0xff]  }
 0x593   :  { %v2000_v12 = vmul.f32 %v3419_v37, %v3417_v41 }
 0x595   :  { %v4882_v11 = vsel %vm2005_vm1, %v2000_v12, %v4768_v24  ;;  %v2008_v43 = vsel %vm2005_vm1, %v2000_v12, 0.0  ;;  %2188 = vmatpush1.bf16.msra.mxu0 %v4663_v45  ;;  %2229 = vmatpush1.bf16.msra.mxu1 %v4666_v47  ;;  %v4907_v45 = vld [vmem:[%s5382_s3] ss:$16 sps:$4 sm:$0xff]   ;;  %v4913_v47 = vld [vmem:[%s5382_s3 + $0x8] ss:$16 sps:$4 sm:$0xff]  }
 0x596   :  { %v2009_v9 = vpack.c.bf16 %v2008_v43, %v2008_v43  ;;  %v2172_v13 = vpack.c.bf16 %v4882_v11, %v4882_v11  ;;  %2327 = vmatprep.subr.bf16.mxu0 %v4892_v8  ;;  %2368 = vmatprep.subr.bf16.mxu1 %v4898_v46  ;;  %v4969_v24 = vld [vmem:[%s5382_s3 + $0x64] ss:$16 sps:$4 sm:$0xff]  }
 0x598   :  { %3119 = vst [vmem:[%s5385_s6 + $0x3] sm:$0x1] %v2009_v9  ;;  %2206 = vmatmul.mubr.bf16.vlgmr.msra.gmra.mrb[44].mxu0 %v2172_v13  ;;  %2247 = vmatmul.mubr.bf16.vlgmr.msra.gmra.mrb[44].mxu1 %v2172_v13 }
 0x599   :  { %2328 = vmatpush1.bf16.msra.mxu0 %v4907_v45  ;;  %2369 = vmatpush1.bf16.msra.mxu1 %v4913_v47 }
 0x59a   :  { %2329 = vmatprep.subr.bf16.mxu0 %v4919_v18  ;;  %2370 = vmatprep.subr.bf16.mxu1 %v4925_v38 }
 0x59b   :  { %2359 = vmatprep.mubr.bf16.mxu0 %v5515_v62  ;;  %2400 = vmatprep.mubr.bf16.mxu1 %v5515_v62 }
 0x59d   :  { %2330 = vmatpush1.bf16.msra.mxu0 %v4933_v21  ;;  %2371 = vmatpush1.bf16.msra.mxu1 %v4939_v44 }
 0x59e   :  { %2331 = vmatprep.subr.bf16.mxu0 %v4945_v49  ;;  %2372 = vmatprep.subr.bf16.mxu1 %v4951_v26 }
 0x5a1   :  { %2332 = vmatpush1.bf16.msra.mxu0 %v4957_v61  ;;  %2373 = vmatpush1.bf16.msra.mxu1 %v4963_v39 }
 0x5a2   :  { %2333 = vmatprep.subr.bf16.mxu0 %v4969_v24  ;;  %2374 = vmatprep.subr.bf16.mxu1 %v4975_v48 }
 0x5a5   :  { %2334 = vmatpush1.bf16.msra.mxu0 %v4981_v14  ;;  %2375 = vmatpush1.bf16.msra.mxu1 %v4987_v27 }
 0x5a6   :  { %2335 = vmatprep.subr.bf16.mxu0 %v4993_v28  ;;  %2376 = vmatprep.subr.bf16.mxu1 %v4999_v19 }
 0x5a9   :  { %2336 = vmatpush1.bf16.msra.mxu0 %v5005_v10  ;;  %2377 = vmatpush1.bf16.msra.mxu1 %v5011_v58 }
 0x5aa   :  { %2337 = vmatprep.subr.bf16.mxu0 %v5017_v0  ;;  %2378 = vmatprep.subr.bf16.mxu1 %v5023_v53 }
 0x5ad   :  { %2338 = vmatpush1.bf16.msra.mxu0 %v5029_v60  ;;  %2379 = vmatpush1.bf16.msra.mxu1 %v5035_v29 }
 0x5ae   :  { %2339 = vmatprep.subr.bf16.mxu0 %v5041_v35  ;;  %2380 = vmatprep.subr.bf16.mxu1 %v5047_v22 }
 0x5b1   :  { %2340 = vmatpush1.bf16.msra.mxu0 %v5053_v59  ;;  %2381 = vmatpush1.bf16.msra.mxu1 %v5059_v36 }
 0x5b2   :  { %2341 = vmatprep.subr.bf16.mxu0 %v5065_v50  ;;  %2382 = vmatprep.subr.bf16.mxu1 %v5071_v1 }
 0x5b5   :  { %2342 = vmatpush1.bf16.msra.mxu0 %v5077_v23  ;;  %2383 = vmatpush1.bf16.msra.mxu1 %v5083_v63 }
 0x5b6   :  { %2481 = vmatprep.subr.bf16.mxu0 %v5086_v2  ;;  %2522 = vmatprep.subr.bf16.mxu1 %v5089_v3 }
 0x64b   :  { %v2053_v4 = vpop.f32.mrb[40].mxu0  ;;  %v2094_v17 = vpop.f32.mrb[40].mxu1 }
 0x64c   :  { %v2055_v6 = vpop.f32.mrb[41].mxu0  ;;  %v2096_v7 = vpop.f32.mrb[41].mxu1 }
 0x64d   :  { %v2105_v42 = vcombine.low %v2053_v4, %v2055_v6  ;;  %v2106_v51 = vcombine.low %v2094_v17, %v2096_v7  ;;  %v2057_v54 = vpop.f32.mrb[42].mxu0  ;;  %v2098_v16 = vpop.f32.mrb[42].mxu1 }
 0x64e   :  { %v2058_v34 = vpop.f32.mrb[43].mxu0  ;;  %v2099_v20 = vpop.f32.mrb[43].mxu1 }
 0x64f   :  { %v2113_v52 = vrot.slane %v2105_v42, %v4156_v30  ;;  %v2120_v25 = vrot.slane %v2106_v51, %v4156_v30 }
 0x651   :  { %v2121_v56 = vcombine.low %v2113_v52, %v2120_v25 }
 0x653   :  { %v2123_v40 = vadd.f32 %v2121_v56, %v2017_v55 }
 0x655   :  { %v3122_v41 = vmul.f32 -1.442695, %v2123_v40  ;;  %v2131_v37 = vrot.slane %v2123_v40, 2  ;;  %v2142_v12 = vrot.slane %v2123_v40, 6  ;;  %v2139_v13 = vrot.slane %v2123_v40, 4 }
 0x657   :  { %3420 = vpow2.f32 %v3122_v41  ;;  %v3123_v15 = vmul.f32 -1.442695, %v2131_v37  ;;  %v3124_v43 = vmul.f32 -1.442695, %v2142_v12  ;;  %v2171_v37 = vunpack.c.l.bf16 %v4825_v57 }
 0x659   :  { %3422 = vpow2.f32 %v3123_v15 }
 0x65a   :  { %3424 = vpow2.f32 %v3124_v43 }
 0x661   :  { %v3421_v9 = vpop.eup %3420 }
 0x662   :  { %v2127_v4 = vadd.f32 1.0, %v3421_v9 }
 0x663   :  { %v3423_v17 = vpop.eup %3422 }
 0x664   :  { %3426 = vrcp.f32 %v2127_v4  ;;  %v2136_v6 = vadd.f32 1.0, %v3423_v17  ;;  %v3425_v54 = vpop.eup %3424 }
 0x665   :  { %3428 = vtanh.f32 %v2139_v13  ;;  %v2147_v43 = vadd.f32 1.0, %v3425_v54 }
 0x666   :  { %3430 = vrcp.f32 %v2136_v6 }
 0x667   :  { %3432 = vrcp.f32 %v2147_v43  ;;  %v5113_v43 = vld [vmem:[#allocation6] ss:$16 sps:$4 sm:$0xff]  }
 0x66b   :  { %v2207_v32 = vpop.f32.mrb[44].mxu0  ;;  %v2248_v7 = vpop.f32.mrb[44].mxu1 }
 0x66c   :  { %v2209_v42 = vpop.f32.mrb[45].mxu0  ;;  %v2250_v51 = vpop.f32.mrb[45].mxu1 }
 0x66d   :  { %v2259_v16 = vcombine.low %v2207_v32, %v2209_v42  ;;  %v2260_v34 = vcombine.low %v2248_v7, %v2250_v51  ;;  %v2211_v20 = vpop.f32.mrb[46].mxu0  ;;  %v2252_v52 = vpop.f32.mrb[46].mxu1 }
 0x66e   :  { %v3427_v55 = vpop.eup %3426  ;;  %v2212_v25 = vpop.f32.mrb[47].mxu0 }
 0x66f   :  { %v2253_v56 = vpop.f32.mrb[47].mxu1  ;;  %v3429_v40 = vpop.eup %3428  ;;  %v2267_v41 = vrot.slane %v2259_v16, %v4156_v30  ;;  %v2274_v15 = vrot.slane %v2260_v34, %v4156_v30 }
 0x670   :  { %v3431_v12 = vpop.eup %3430  ;;  %v2151_v9 = vmul.f32 %v3429_v40, %v3427_v55  ;;  %v2158_v32 = vpop.permute.xlu0 %2157 }
 0x671   :  { %v2275_v13 = vcombine.low %v2267_v41, %v2274_v15  ;;  %v2150_v4 = vmul.f32 %v3431_v12, %v4833_v31  ;;  %vm2159_vm2 = vcmp.eq.s32.totalorder %v2158_v32, 1  ;;  %v3433_v16 = vpop.eup %3432  ;;  %v5136_v32 = vld [vmem:[#allocation6 + $0x4c] ss:$16 sps:$4 sm:$0xff]  }
 0x673   :  { %v2277_v17 = vadd.f32 %v2275_v13, %v2171_v37  ;;  %v2152_v6 = vadd.f32 %v2151_v9, %v2150_v4  ;;  %v5119_v9 = vld [vmem:[#allocation6 + $0x24] ss:$16 sps:$4 sm:$0xff]   ;;  %v5122_v13 = vld [vmem:[#allocation6 + $0x2c] ss:$16 sps:$4 sm:$0xff]   ;;  %v5127_v4 = vld [vmem:[#allocation6 + $0x20] ss:$16 sps:$4 sm:$0xff]  }
 0x675   :  { %v3128_v7 = vmul.f32 -1.442695, %v2277_v17  ;;  %v2285_v42 = vrot.slane %v2277_v17, 2  ;;  %3434 = vtanh.f32 %v2152_v6  ;;  %v5101_v51 = vsel %vm2159_vm2, %v2152_v6, %v4833_v31  ;;  %v5133_v6 = vld [vmem:[#allocation6 + $0x44] ss:$16 sps:$4 sm:$0xff]  }
 0x676   :  { %v2296_v54 = vrot.slane %v2277_v17, 6  ;;  %v2293_v55 = vrot.slane %v2277_v17, 4  ;;  %v5130_v17 = vld [vmem:[#allocation6 + $0x28] ss:$16 sps:$4 sm:$0xff]  }
 0x677   :  { %3436 = vpow2.f32 %v3128_v7  ;;  %v3129_v57 = vmul.f32 -1.442695, %v2285_v42 }
 0x678   :  { %v3130_v34 = vmul.f32 -1.442695, %v2296_v54  ;;  %v5139_v54 = vld [vmem:[#allocation6 + $0x40] ss:$16 sps:$4 sm:$0xff]  }
 0x679   :  { %3438 = vpow2.f32 %v3129_v57 }
 0x67a   :  { %3440 = vpow2.f32 %v3130_v34 }
 0x67f   :  { %v3435_v20 = vpop.eup %3434 }
 0x680   :  { %v2154_v25 = vmul.f32 %v3435_v20, %v3433_v16  ;;  %v5142_v16 = vld [vmem:[#allocation6 + $0x48] ss:$16 sps:$4 sm:$0xff]  }
 0x681   :  { %v3437_v52 = vpop.eup %3436 }
 0x682   :  { %v2281_v56 = vadd.f32 1.0, %v3437_v52  ;;  %v5105_v41 = vsel %vm2159_vm2, %v2154_v25, %v4837_v5  ;;  %v2162_v31 = vsel %vm2159_vm2, %v2154_v25, 0.0  ;;  %v5116_v5 = vld [vmem:[#allocation6 + $0x8] ss:$16 sps:$4 sm:$0xff]   ;;  %v5145_v52 = vld [vmem:[#allocation6 + $0x64] ss:$16 sps:$4 sm:$0xff]  }
 0x683   :  { %v3439_v40 = vpop.eup %3438  ;;  %v2163_v15 = vpack.c.bf16 %v2162_v31, %v2162_v31  ;;  %v2326_v12 = vpack.c.bf16 %v5105_v41, %v5105_v41  ;;  %v5152_v31 = vld [vmem:[#allocation6 + $0x60] ss:$16 sps:$4 sm:$0xff]  }
 0x684   :  { %3442 = vrcp.f32 %v2281_v56  ;;  %v2290_v37 = vadd.f32 1.0, %v3439_v40  ;;  %v3441_v7 = vpop.eup %3440  ;;  %v2312_v40 = vpop.permute.xlu1 %2311 }
 0x685   :  { %3444 = vtanh.f32 %v2293_v55  ;;  %3125 = vst [vmem:[%s5384_s5 + $0x5] sm:$0x1] %v2163_v15  ;;  %2360 = vmatmul.mubr.bf16.vlgmr.msra.gmra.mrb[48].mxu0 %v2326_v12  ;;  %2401 = vmatmul.mubr.bf16.vlgmr.msra.gmra.mrb[48].mxu1 %v2326_v12  ;;  %v2301_v20 = vadd.f32 1.0, %v3441_v7  ;;  %v5148_v55 = vld [vmem:[#allocation6 + $0x6c] ss:$16 sps:$4 sm:$0xff]   ;;  %vm2313_vm3 = vcmp.eq.s32.totalorder %v2312_v40, 1 }
 0x686   :  { %3446 = vrcp.f32 %v2290_v37  ;;  %2482 = vmatpush1.bf16.msra.mxu0 %v5113_v43  ;;  %2523 = vmatpush1.bf16.msra.mxu1 %v5116_v5  ;;  %v5155_v37 = vld [vmem:[#allocation6 + $0x68] ss:$16 sps:$4 sm:$0xff]   ;;  %v5158_v12 = vld [vmem:[#allocation6 + $0x84] ss:$16 sps:$4 sm:$0xff]   ;;  %v5161_v7 = vld [vmem:[#allocation6 + $0x8c] ss:$16 sps:$4 sm:$0xff]  }
 0x687   :  { %2483 = vmatprep.subr.bf16.mxu0 %v5119_v9  ;;  %2524 = vmatprep.subr.bf16.mxu1 %v5122_v13  ;;  %5603 = vst [vmem:[#allocation15_spill] sm:$0xff] %v5155_v37  ;;  %3448 = vrcp.f32 %v2301_v20  ;;  %5604 = vst [vmem:[#allocation16_spill] sm:$0xff] %v5158_v12  ;;  %v5174_v20 = vld [vmem:[#allocation6 + $0xa4] ss:$16 sps:$4 sm:$0xff]  }
 0x688   :  { %2513 = vmatprep.mubr.bf16.mxu0 %v5515_v62  ;;  %2554 = vmatprep.mubr.bf16.mxu1 %v5515_v62  ;;  %5605 = vst [vmem:[#allocation17_spill] sm:$0xff] %v5161_v7  ;;  %5608 = vst [vmem:[#allocation20_spill] sm:$0xff] %v5174_v20 }
 0x68a   :  { %2484 = vmatpush1.bf16.msra.mxu0 %v5127_v4  ;;  %2525 = vmatpush1.bf16.msra.mxu1 %v5130_v17 }
 0x68b   :  { %2485 = vmatprep.subr.bf16.mxu0 %v5133_v6  ;;  %2526 = vmatprep.subr.bf16.mxu1 %v5136_v32 }
 0x68e   :  { %v3443_v42 = vpop.eup %3442  ;;  %2486 = vmatpush1.bf16.msra.mxu0 %v5139_v54  ;;  %2527 = vmatpush1.bf16.msra.mxu1 %v5142_v16 }
 0x68f   :  { %v3445_v57 = vpop.eup %3444  ;;  %2487 = vmatprep.subr.bf16.mxu0 %v5145_v52  ;;  %2528 = vmatprep.subr.bf16.mxu1 %v5148_v55 }
 0x690   :  { %v3447_v34 = vpop.eup %3446  ;;  %v2305_v25 = vmul.f32 %v3445_v57, %v3443_v42  ;;  %v5168_v57 = vld [vmem:[#allocation6 + $0x80] ss:$16 sps:$4 sm:$0xff]  }
 0x691   :  { %v2304_v56 = vmul.f32 %v3447_v34, %v4866_v33  ;;  %5606 = vst [vmem:[#allocation18_spill] sm:$0xff] %v5168_v57  ;;  %v5171_v34 = vld [vmem:[#allocation6 + $0x88] ss:$16 sps:$4 sm:$0xff]  }
 0x692   :  { %2488 = vmatpush1.bf16.msra.mxu0 %v5152_v31  ;;  %2529 = vmatpush1.bf16.msra.mxu1 %v5155_v37  ;;  %5607 = vst [vmem:[#allocation19_spill] sm:$0xff] %v5171_v34 }
 0x693   :  { %v2306_v15 = vadd.f32 %v2305_v25, %v2304_v56  ;;  %2489 = vmatprep.subr.bf16.mxu0 %v5158_v12  ;;  %2530 = vmatprep.subr.bf16.mxu1 %v5161_v7  ;;  %v5177_v25 = vld [vmem:[#allocation6 + $0xac] ss:$16 sps:$4 sm:$0xff]   ;;  %v5180_v56 = vld [vmem:[#allocation6 + $0xa0] ss:$16 sps:$4 sm:$0xff]  }
 0x694   :  { %5609 = vst [vmem:[#allocation21_spill] sm:$0xff] %v5177_v25  ;;  %5610 = vst [vmem:[#allocation22_spill] sm:$0xff] %v5180_v56  ;;  %v5192_v7 = vld [vmem:[#allocation6 + $0xc0] ss:$16 sps:$4 sm:$0xff]  }
 0x695   :  { %3450 = vtanh.f32 %v2306_v15  ;;  %v5166_v42 = vsel %vm2313_vm3, %v2306_v15, %v4866_v33  ;;  %v5183_v33 = vld [vmem:[#allocation6 + $0xa8] ss:$16 sps:$4 sm:$0xff]   ;;  %v5186_v15 = vld [vmem:[#allocation6 + $0xc4] ss:$16 sps:$4 sm:$0xff]   ;;  %5614 = vst [vmem:[#allocation26_spill] sm:$0xff] %v5192_v7 }
 0x696   :  { %2490 = vmatpush1.bf16.msra.mxu0 %v5168_v57  ;;  %2531 = vmatpush1.bf16.msra.mxu1 %v5171_v34  ;;  %5611 = vst [vmem:[#allocation23_spill] sm:$0xff] %v5183_v33  ;;  %5612 = vst [vmem:[#allocation24_spill] sm:$0xff] %v5186_v15  ;;  %v5189_v34 = vld [vmem:[#allocation6 + $0xcc] ss:$16 sps:$4 sm:$0xff]  }
 0x697   :  { %2491 = vmatprep.subr.bf16.mxu0 %v5174_v20  ;;  %2532 = vmatprep.subr.bf16.mxu1 %v5177_v25  ;;  %5613 = vst [vmem:[#allocation25_spill] sm:$0xff] %v5189_v34  ;;  %v3449_v20 = vpop.eup %3448  ;;  %v5195_v25 = vld [vmem:[#allocation6 + $0xc8] ss:$16 sps:$4 sm:$0xff]  }
 0x698   :  { %5615 = vst [vmem:[#allocation29_spill] sm:$0xff] %v5195_v25 }
 0x69a   :  { %2492 = vmatpush1.bf16.msra.mxu0 %v5180_v56  ;;  %2533 = vmatpush1.bf16.msra.mxu1 %v5183_v33  ;;  %v5198_v56 = vld [vmem:[#allocation6 + $0xe4] ss:$16 sps:$4 sm:$0xff]   ;;  %v5201_v33 = vld [vmem:[#allocation6 + $0xec] ss:$16 sps:$4 sm:$0xff]  }
 0x69b   :  { %2493 = vmatprep.subr.bf16.mxu0 %v5186_v15  ;;  %2534 = vmatprep.subr.bf16.mxu1 %v5189_v34  ;;  %5616 = vst [vmem:[#allocation42_spill] sm:$0xff] %v5198_v56 }
 0x69e   :  { %2494 = vmatpush1.bf16.msra.mxu0 %v5192_v7  ;;  %2535 = vmatpush1.bf16.msra.mxu1 %v5195_v25  ;;  %v5209_v7 = vld [vmem:[#allocation6 + $0xe0] ss:$16 sps:$4 sm:$0xff]   ;;  %v5212_v25 = vld [vmem:[#allocation6 + $0xe8] ss:$16 sps:$4 sm:$0xff]  }
 0x69f   :  { %v3451_v57 = vpop.eup %3450  ;;  %2495 = vmatprep.subr.bf16.mxu0 %v5198_v56  ;;  %2536 = vmatprep.subr.bf16.mxu1 %v5201_v33 }
 0x6a0   :  { %v2308_v15 = vmul.f32 %v3451_v57, %v3449_v20 }
 0x6a2   :  { %v5206_v34 = vsel %vm2313_vm3, %v2308_v15, %v4882_v11  ;;  %v2316_v12 = vsel %vm2313_vm3, %v2308_v15, 0.0  ;;  %2496 = vmatpush1.bf16.msra.mxu0 %v5209_v7  ;;  %2537 = vmatpush1.bf16.msra.mxu1 %v5212_v25 }
 0x6a3   :  { %v2317_v56 = vpack.c.bf16 %v2316_v12, %v2316_v12  ;;  %v2480_v37 = vpack.c.bf16 %v5206_v34, %v5206_v34  ;;  %2635 = vmatprep.subr.bf16.mxu0 %v4892_v8  ;;  %2676 = vmatprep.subr.bf16.mxu1 %v4898_v46 }
 0x6a5   :  { %3131 = vst [vmem:[%s5385_s6 + $0x2] sm:$0x1] %v2317_v56  ;;  %2514 = vmatmul.mubr.bf16.vlgmr.msra.gmra.mrb[52].mxu0 %v2480_v37  ;;  %2555 = vmatmul.mubr.bf16.vlgmr.msra.gmra.mrb[52].mxu1 %v2480_v37 }
 0x6a6   :  { %2636 = vmatpush1.bf16.msra.mxu0 %v4907_v45  ;;  %2677 = vmatpush1.bf16.msra.mxu1 %v4913_v47  ;;  %v5259_v45 = vld [vmem:[%s5379_s0 + $0x18] sm:$0xff]  }
 0x6a7   :  { %2637 = vmatprep.subr.bf16.mxu0 %v4919_v18  ;;  %2678 = vmatprep.subr.bf16.mxu1 %v4925_v38 }
 0x6a8   :  { %2667 = vmatprep.mubr.bf16.mxu0 %v5515_v62  ;;  %2708 = vmatprep.mubr.bf16.mxu1 %v5515_v62 }
 0x6aa   :  { %2638 = vmatpush1.bf16.msra.mxu0 %v4933_v21  ;;  %2679 = vmatpush1.bf16.msra.mxu1 %v4939_v44 }
 0x6ab   :  { %2639 = vmatprep.subr.bf16.mxu0 %v4945_v49  ;;  %2680 = vmatprep.subr.bf16.mxu1 %v4951_v26 }
 0x6ae   :  { %2640 = vmatpush1.bf16.msra.mxu0 %v4957_v61  ;;  %2681 = vmatpush1.bf16.msra.mxu1 %v4963_v39  ;;  %v2325_v39 = vunpack.c.l.bf16 %v5259_v45 }
 0x6af   :  { %2641 = vmatprep.subr.bf16.mxu0 %v4969_v24  ;;  %2682 = vmatprep.subr.bf16.mxu1 %v4975_v48 }
 0x6b2   :  { %2642 = vmatpush1.bf16.msra.mxu0 %v4981_v14  ;;  %2683 = vmatpush1.bf16.msra.mxu1 %v4987_v27 }
 0x6b3   :  { %2643 = vmatprep.subr.bf16.mxu0 %v4993_v28  ;;  %2684 = vmatprep.subr.bf16.mxu1 %v4999_v19 }
 0x6b6   :  { %2644 = vmatpush1.bf16.msra.mxu0 %v5005_v10  ;;  %2685 = vmatpush1.bf16.msra.mxu1 %v5011_v58 }
 0x6b7   :  { %2645 = vmatprep.subr.bf16.mxu0 %v5017_v0  ;;  %2686 = vmatprep.subr.bf16.mxu1 %v5023_v53 }
 0x6ba   :  { %2646 = vmatpush1.bf16.msra.mxu0 %v5029_v60  ;;  %2687 = vmatpush1.bf16.msra.mxu1 %v5035_v29 }
 0x6bb   :  { %2647 = vmatprep.subr.bf16.mxu0 %v5041_v35  ;;  %2688 = vmatprep.subr.bf16.mxu1 %v5047_v22 }
 0x6be   :  { %2648 = vmatpush1.bf16.msra.mxu0 %v5053_v59  ;;  %2689 = vmatpush1.bf16.msra.mxu1 %v5059_v36 }
 0x6bf   :  { %2649 = vmatprep.subr.bf16.mxu0 %v5065_v50  ;;  %2690 = vmatprep.subr.bf16.mxu1 %v5071_v1  ;;  %v5267_v50 = vld [vmem:[%s5380_s1] sm:$0xff]  }
 0x6c0   :  { %v2479_v15 = vunpack.c.h.bf16 %v5267_v50 }
 0x6c2   :  { %2650 = vmatpush1.bf16.msra.mxu0 %v5077_v23  ;;  %2691 = vmatpush1.bf16.msra.mxu1 %v5083_v63 }
 0x6c3   :  { %2787 = vmatprep.subr.bf16.mxu0 %v5086_v2  ;;  %2828 = vmatprep.subr.bf16.mxu1 %v5089_v3 }
 0x758   :  { %v2361_v11 = vpop.f32.mrb[48].mxu0  ;;  %v2402_v8 = vpop.f32.mrb[48].mxu1 }
 0x759   :  { %v2363_v46 = vpop.f32.mrb[49].mxu0  ;;  %v2404_v47 = vpop.f32.mrb[49].mxu1 }
 0x75a   :  { %v2413_v18 = vcombine.low %v2361_v11, %v2363_v46  ;;  %v2414_v38 = vcombine.low %v2402_v8, %v2404_v47  ;;  %v2365_v21 = vpop.f32.mrb[50].mxu0  ;;  %v2406_v44 = vpop.f32.mrb[50].mxu1 }
 0x75b   :  { %v2366_v49 = vpop.f32.mrb[51].mxu0  ;;  %v2407_v26 = vpop.f32.mrb[51].mxu1 }
 0x75c   :  { %v2421_v61 = vrot.slane %v2413_v18, %v4156_v30  ;;  %v2428_v24 = vrot.slane %v2414_v38, %v4156_v30  ;;  %v2466_v49 = vpop.permute.xlu0 %2465 }
 0x75d   :  { %vm2467_vm4 = vcmp.eq.s32.totalorder %v2466_v49, 1  ;;  %v2633_v49 = vunpack.c.h.bf16 %v5259_v45 }
 0x75e   :  { %v2429_v48 = vcombine.low %v2421_v61, %v2428_v24 }
 0x760   :  { %v2431_v14 = vadd.f32 %v2429_v48, %v2325_v39 }
 0x762   :  { %v3134_v27 = vmul.f32 -1.442695, %v2431_v14  ;;  %v2439_v28 = vrot.slane %v2431_v14, 2  ;;  %v2450_v10 = vrot.slane %v2431_v14, 6  ;;  %v2447_v53 = vrot.slane %v2431_v14, 4 }
 0x764   :  { %3452 = vpow2.f32 %v3134_v27  ;;  %v3135_v19 = vmul.f32 -1.442695, %v2439_v28  ;;  %v3136_v58 = vmul.f32 -1.442695, %v2450_v10 }
 0x766   :  { %3454 = vpow2.f32 %v3135_v19 }
 0x767   :  { %3456 = vpow2.f32 %v3136_v58 }
 0x76e   :  { %v3453_v0 = vpop.eup %3452 }
 0x76f   :  { %v2435_v60 = vadd.f32 1.0, %v3453_v0 }
 0x770   :  { %v3455_v29 = vpop.eup %3454 }
 0x771   :  { %3458 = vrcp.f32 %v2435_v60  ;;  %v2444_v35 = vadd.f32 1.0, %v3455_v29  ;;  %v3457_v23 = vpop.eup %3456 }
 0x772   :  { %3460 = vtanh.f32 %v2447_v53  ;;  %v2455_v46 = vadd.f32 1.0, %v3457_v23  ;;  %v5625_v23 = vld [vmem:[#allocation23_spill] sm:$0xff] }
 0x773   :  { %3462 = vrcp.f32 %v2444_v35 }
 0x774   :  { %3464 = vrcp.f32 %v2455_v46 }
 0x778   :  { %v2515_v22 = vpop.f32.mrb[52].mxu0  ;;  %v2556_v59 = vpop.f32.mrb[52].mxu1 }
 0x779   :  { %v2517_v36 = vpop.f32.mrb[53].mxu0  ;;  %v2558_v1 = vpop.f32.mrb[53].mxu1 }
 0x77a   :  { %v2567_v63 = vcombine.low %v2515_v22, %v2517_v36  ;;  %v2568_v2 = vcombine.low %v2556_v59, %v2558_v1  ;;  %v2519_v3 = vpop.f32.mrb[54].mxu0  ;;  %v2560_v40 = vpop.f32.mrb[54].mxu1  ;;  %v5622_v36 = vld [vmem:[#allocation20_spill] sm:$0xff]  ;;  %v5624_v1 = vld [vmem:[#allocation22_spill] sm:$0xff] }
 0x77b   :  { %v3459_v37 = vpop.eup %3458  ;;  %v2520_v12 = vpop.f32.mrb[55].mxu0 }
 0x77c   :  { %v2561_v57 = vpop.f32.mrb[55].mxu1  ;;  %v3461_v20 = vpop.eup %3460  ;;  %v2575_v56 = vrot.slane %v2567_v63, %v4156_v30  ;;  %v2582_v11 = vrot.slane %v2568_v2, %v4156_v30  ;;  %v5626_v63 = vld [vmem:[#allocation24_spill] sm:$0xff]  ;;  %v5627_v2 = vld [vmem:[#allocation25_spill] sm:$0xff]  ;;  %v5630_v12 = vld [vmem:[#allocation42_spill] sm:$0xff] }
 0x77d   :  { %v3463_v8 = vpop.eup %3462  ;;  %v2459_v47 = vmul.f32 %v3461_v20, %v3459_v37  ;;  %v5629_v37 = vld [vmem:[#allocation29_spill] sm:$0xff] }
 0x77e   :  { %v2583_v18 = vcombine.low %v2575_v56, %v2582_v11  ;;  %v2458_v38 = vmul.f32 %v3463_v8, %v5101_v51  ;;  %v3465_v14 = vpop.eup %3464 }
 0x780   :  { %v2585_v21 = vadd.f32 %v2583_v18, %v2479_v15  ;;  %v2460_v44 = vadd.f32 %v2459_v47, %v2458_v38 }
 0x782   :  { %v3140_v26 = vmul.f32 -1.442695, %v2585_v21  ;;  %v2593_v61 = vrot.slane %v2585_v21, 2  ;;  %3466 = vtanh.f32 %v2460_v44  ;;  %v5275_v39 = vsel %vm2467_vm4, %v2460_v44, %v5101_v51 }
 0x783   :  { %v2604_v48 = vrot.slane %v2585_v21, 6  ;;  %v2601_v10 = vrot.slane %v2585_v21, 4 }
 0x784   :  { %3468 = vpow2.f32 %v3140_v26  ;;  %v3141_v24 = vmul.f32 -1.442695, %v2593_v61 }
 0x785   :  { %v3142_v27 = vmul.f32 -1.442695, %v2604_v48 }
 0x786   :  { %3470 = vpow2.f32 %v3141_v24 }
 0x787   :  { %3472 = vpow2.f32 %v3142_v27 }
 0x78c   :  { %v3467_v28 = vpop.eup %3466 }
 0x78d   :  { %v2462_v58 = vmul.f32 %v3467_v28, %v3465_v14 }
 0x78e   :  { %v3469_v19 = vpop.eup %3468 }
 0x78f   :  { %v2589_v0 = vadd.f32 1.0, %v3469_v19  ;;  %v5279_v60 = vsel %vm2467_vm4, %v2462_v58, %v5105_v41  ;;  %v2470_v51 = vsel %vm2467_vm4, %v2462_v58, 0.0 }
 0x790   :  { %v3471_v53 = vpop.eup %3470  ;;  %v2471_v35 = vpack.c.bf16 %v2470_v51, %v2470_v51  ;;  %v2634_v22 = vpack.c.bf16 %v5279_v60, %v5279_v60 }
 0x791   :  { %3474 = vrcp.f32 %v2589_v0  ;;  %v2598_v29 = vadd.f32 1.0, %v3471_v53  ;;  %v3473_v41 = vpop.eup %3472 }
 0x792   :  { %3476 = vtanh.f32 %v2601_v10  ;;  %3137 = vst [vmem:[%s5384_s5 + $0x6] sm:$0x1] %v2471_v35  ;;  %2668 = vmatmul.mubr.bf16.vlgmr.msra.gmra.mrb[56].mxu0 %v2634_v22  ;;  %2709 = vmatmul.mubr.bf16.vlgmr.msra.gmra.mrb[56].mxu1 %v2634_v22 }
 0x793   :  { %3478 = vrcp.f32 %v2598_v29  ;;  %2788 = vmatpush1.bf16.msra.mxu0 %v5113_v43  ;;  %2829 = vmatpush1.bf16.msra.mxu1 %v5116_v5 }
 0x794   :  { %2789 = vmatprep.subr.bf16.mxu0 %v5119_v9  ;;  %2830 = vmatprep.subr.bf16.mxu1 %v5122_v13  ;;  %v2609_v9 = vadd.f32 1.0, %v3473_v41 }
 0x795   :  { %2819 = vmatprep.mubr.bf16.mxu0 %v5515_v62  ;;  %2860 = vmatprep.mubr.bf16.mxu1 %v5515_v62 }
 0x796   :  { %3480 = vrcp.f32 %v2609_v9 }
 0x797   :  { %2790 = vmatpush1.bf16.msra.mxu0 %v5127_v4  ;;  %2831 = vmatpush1.bf16.msra.mxu1 %v5130_v17  ;;  %v2620_v4 = vpop.permute.xlu1 %2619  ;;  %v5617_v17 = vld [vmem:[#allocation15_spill] sm:$0xff] }
 0x798   :  { %2791 = vmatprep.subr.bf16.mxu0 %v5133_v6  ;;  %2832 = vmatprep.subr.bf16.mxu1 %v5136_v32  ;;  %vm2621_vm5 = vcmp.eq.s32.totalorder %v2620_v4, 1  ;;  %v5618_v32 = vld [vmem:[#allocation16_spill] sm:$0xff] }
 0x79b   :  { %v3475_v43 = vpop.eup %3474  ;;  %2792 = vmatpush1.bf16.msra.mxu0 %v5139_v54  ;;  %2833 = vmatpush1.bf16.msra.mxu1 %v5142_v16  ;;  %v5619_v54 = vld [vmem:[#allocation17_spill] sm:$0xff] }
 0x79c   :  { %v3477_v59 = vpop.eup %3476  ;;  %2793 = vmatprep.subr.bf16.mxu0 %v5145_v52  ;;  %2834 = vmatprep.subr.bf16.mxu1 %v5148_v55  ;;  %v5620_v52 = vld [vmem:[#allocation18_spill] sm:$0xff]  ;;  %v5621_v55 = vld [vmem:[#allocation19_spill] sm:$0xff] }
 0x79d   :  { %v3479_v5 = vpop.eup %3478  ;;  %v2613_v62 = vmul.f32 %v3477_v59, %v3475_v43 }
 0x79e   :  { %v2612_v13 = vmul.f32 %v3479_v5, %v5166_v42 }
 0x79f   :  { %2794 = vmatpush1.bf16.msra.mxu0 %v5152_v31  ;;  %2835 = vmatpush1.bf16.msra.mxu1 %v5617_v17  ;;  %v5623_v31 = vld [vmem:[#allocation21_spill] sm:$0xff] }
 0x7a0   :  { %v2614_v6 = vadd.f32 %v2613_v62, %v2612_v13  ;;  %2795 = vmatprep.subr.bf16.mxu0 %v5618_v32  ;;  %2836 = vmatprep.subr.bf16.mxu1 %v5619_v54  ;;  %v3481_v3 = vpop.eup %3480  ;;  %v2785_v32 = vunpack.c.l.bf16 %v5267_v50 }
 0x7a2   :  { %3482 = vtanh.f32 %v2614_v6  ;;  %v5308_v16 = vsel %vm2621_vm5, %v2614_v6, %v5166_v42  ;;  %v5628_v42 = vld [vmem:[#allocation26_spill] sm:$0xff] }
 0x7a3   :  { %2796 = vmatpush1.bf16.msra.mxu0 %v5620_v52  ;;  %2837 = vmatpush1.bf16.msra.mxu1 %v5621_v55 }
 0x7a4   :  { %2797 = vmatprep.subr.bf16.mxu0 %v5622_v36  ;;  %2838 = vmatprep.subr.bf16.mxu1 %v5623_v31 }
 0x7a7   :  { %2798 = vmatpush1.bf16.msra.mxu0 %v5624_v1  ;;  %2839 = vmatpush1.bf16.msra.mxu1 %v5625_v23  ;;  %v2774_v23 = vpop.permute.xlu0 %2773 }
 0x7a8   :  { %2799 = vmatprep.subr.bf16.mxu0 %v5626_v63  ;;  %2840 = vmatprep.subr.bf16.mxu1 %v5627_v2  ;;  %vm2775_vm6 = vcmp.eq.s32.totalorder %v2774_v23, 1 }
 0x7ab   :  { %2800 = vmatpush1.bf16.msra.mxu0 %v5628_v42  ;;  %2841 = vmatpush1.bf16.msra.mxu1 %v5629_v37 }
 0x7ac   :  { %v3483_v40 = vpop.eup %3482  ;;  %2801 = vmatprep.subr.bf16.mxu0 %v5630_v12  ;;  %2842 = vmatprep.subr.bf16.mxu1 %v5201_v33 }
 0x7ad   :  { %v2616_v57 = vmul.f32 %v3483_v40, %v3481_v3 }
 0x7af   :  { %v5324_v20 = vsel %vm2621_vm5, %v2616_v57, %v5206_v34  ;;  %v2624_v56 = vsel %vm2621_vm5, %v2616_v57, 0.0  ;;  %2802 = vmatpush1.bf16.msra.mxu0 %v5209_v7  ;;  %2843 = vmatpush1.bf16.msra.mxu1 %v5212_v25 }
 0x7b0   :  { %v2625_v15 = vpack.c.bf16 %v2624_v56, %v2624_v56  ;;  %v2786_v11 = vpack.c.bf16 %v5324_v20, %v5324_v20 }
 0x7b2   :  { %3143 = vst [vmem:[%s5385_s6 + $0x1] sm:$0x1] %v2625_v15  ;;  %2820 = vmatmul.mubr.bf16.vlgmr.msra.gmra.mrb[60].mxu0 %v2786_v11  ;;  %2861 = vmatmul.mubr.bf16.vlgmr.msra.gmra.mrb[60].mxu1 %v2786_v11 }
 0x865   :  { %v2669_v33 = vpop.f32.mrb[56].mxu0  ;;  %v2710_v8 = vpop.f32.mrb[56].mxu1 }
 0x866   :  { %v2671_v34 = vpop.f32.mrb[57].mxu0  ;;  %v2712_v46 = vpop.f32.mrb[57].mxu1 }
 0x867   :  { %v2721_v47 = vcombine.low %v2669_v33, %v2671_v34  ;;  %v2722_v18 = vcombine.low %v2710_v8, %v2712_v46  ;;  %v2673_v38 = vpop.f32.mrb[58].mxu0  ;;  %v2714_v7 = vpop.f32.mrb[58].mxu1 }
 0x868   :  { %v2674_v21 = vpop.f32.mrb[59].mxu0  ;;  %v2715_v25 = vpop.f32.mrb[59].mxu1 }
 0x869   :  { %v2729_v44 = vrot.slane %v2721_v47, %v4156_v30  ;;  %v2736_v26 = vrot.slane %v2722_v18, %v4156_v30 }
 0x86b   :  { %v2737_v61 = vcombine.low %v2729_v44, %v2736_v26 }
 0x86d   :  { %v2739_v24 = vadd.f32 %v2737_v61, %v2633_v49 }
 0x86f   :  { %v3146_v48 = vmul.f32 -1.442695, %v2739_v24  ;;  %v2747_v14 = vrot.slane %v2739_v24, 2  ;;  %v2758_v28 = vrot.slane %v2739_v24, 6  ;;  %v2755_v58 = vrot.slane %v2739_v24, 4 }
 0x871   :  { %3484 = vpow2.f32 %v3146_v48  ;;  %v3147_v27 = vmul.f32 -1.442695, %v2747_v14  ;;  %v3148_v19 = vmul.f32 -1.442695, %v2758_v28 }
 0x873   :  { %3486 = vpow2.f32 %v3147_v27 }
 0x874   :  { %3488 = vpow2.f32 %v3148_v19 }
 0x87b   :  { %v3485_v10 = vpop.eup %3484 }
 0x87c   :  { %v2743_v0 = vadd.f32 1.0, %v3485_v10 }
 0x87d   :  { %v3487_v53 = vpop.eup %3486 }
 0x87e   :  { %3490 = vrcp.f32 %v2743_v0  ;;  %v2752_v51 = vadd.f32 1.0, %v3487_v53  ;;  %v3489_v41 = vpop.eup %3488 }
 0x87f   :  { %3492 = vtanh.f32 %v2755_v58  ;;  %v2763_v55 = vadd.f32 1.0, %v3489_v41 }
 0x880   :  { %3494 = vrcp.f32 %v2752_v51 }
 0x881   :  { %3496 = vrcp.f32 %v2763_v55 }
 0x885   :  { %v2821_v45 = vpop.f32.mrb[60].mxu0  ;;  %v2862_v29 = vpop.f32.mrb[60].mxu1 }
 0x886   :  { %v2823_v35 = vpop.f32.mrb[61].mxu0  ;;  %v2864_v22 = vpop.f32.mrb[61].mxu1 }
 0x887   :  { %v2873_v43 = vcombine.low %v2821_v45, %v2823_v35  ;;  %v2874_v59 = vcombine.low %v2862_v29, %v2864_v22  ;;  %v2825_v5 = vpop.f32.mrb[62].mxu0  ;;  %v2866_v9 = vpop.f32.mrb[62].mxu1 }
 0x888   :  { %v3491_v62 = vpop.eup %3490  ;;  %v2826_v13 = vpop.f32.mrb[63].mxu0 }
 0x889   :  { %v2867_v4 = vpop.f32.mrb[63].mxu1  ;;  %v3493_v17 = vpop.eup %3492  ;;  %v2881_v6 = vrot.slane %v2873_v43, %v4156_v30  ;;  %v2888_v54 = vrot.slane %v2874_v59, %v4156_v30 }
 0x88a   :  { %v3495_v52 = vpop.eup %3494  ;;  %v2767_v1 = vmul.f32 %v3493_v17, %v3491_v62 }
 0x88b   :  { %v2889_v36 = vcombine.low %v2881_v6, %v2888_v54  ;;  %v2766_v31 = vmul.f32 %v3495_v52, %v5275_v39  ;;  %v3497_v37 = vpop.eup %3496 }
 0x88d   :  { %v2891_v63 = vadd.f32 %v2889_v36, %v2785_v32  ;;  %v2768_v2 = vadd.f32 %v2767_v1, %v2766_v31 }
 0x88f   :  { %v3151_v3 = vmul.f32 -1.442695, %v2891_v63  ;;  %v2899_v40 = vrot.slane %v2891_v63, 2  ;;  %3498 = vtanh.f32 %v2768_v2  ;;  %v2777_v42 = vsel %vm2775_vm6, %v2768_v2, %v5275_v39 }
 0x890   :  { %2934 = vst [vmem:[#allocation3] sm:$0x3] %v2777_v42  ;;  %v2910_v30 = vrot.slane %v2891_v63, 6  ;;  %v2907_v15 = vrot.slane %v2891_v63, 4 }
 0x891   :  { %3500 = vpow2.f32 %v3151_v3  ;;  %v3152_v50 = vmul.f32 -1.442695, %v2899_v40 }
 0x892   :  { %v3153_v12 = vmul.f32 -1.442695, %v2910_v30 }
 0x893   :  { %3502 = vpow2.f32 %v3152_v50 }
 0x894   :  { %3504 = vpow2.f32 %v3153_v12 }
 0x899   :  { %v3499_v57 = vpop.eup %3498 }
 0x89a   :  { %v2770_v11 = vmul.f32 %v3499_v57, %v3497_v37 }
 0x89b   :  { %v3501_v56 = vpop.eup %3500 }
 0x89c   :  { %v2895_v33 = vadd.f32 1.0, %v3501_v56  ;;  %v2776_v39 = vsel %vm2775_vm6, %v2770_v11, %v5279_v60  ;;  %v2778_v34 = vsel %vm2775_vm6, %v2770_v11, 0.0 }
 0x89d   :  { %v3503_v8 = vpop.eup %3502  ;;  %v2779_v47 = vpack.c.bf16 %v2778_v34, %v2778_v34  ;;  %2933 = vst [vmem:[#allocation2] sm:$0x3] %v2776_v39  ;;  %2937 = vst [vmem:[#allocation9] sm:$0x3] %v2776_v39 }
 0x89e   :  { %3506 = vrcp.f32 %v2895_v33  ;;  %v2904_v46 = vadd.f32 1.0, %v3503_v8 }
 0x89f   :  { %3508 = vtanh.f32 %v2907_v15 }
 0x8a0   :  { %3677 = shalt.err (!%p3674_p12)
}
 0x8a1   :  { %s3678_s4 = scalar_lea.hbm %s5386_s7, 32 }
 0x8a2   :  { %p3679_p13 = scmp.ne.s32.totalorder %s5386_s7, %s3678_s4  ;;  %p3682_p0 = scmp.lt.u32.totalorder %s3678_s4, %s5386_s7 }
 0x8a4   :  { %p3684_p1 = pnand %p3682_p0, %p3679_p13 }
 0x8a6   :  { %3687 = shalt.err (!%p3684_p1)
}
 0x8a7   :  { %2959 = dma.vmem_to_hbm [thread:$0]  %s2957_s17, 32, %s5386_s7, [#allocation8]   ;;  %3510 = vrcp.f32 %v2904_v46  ;;  %3149 = vst [vmem:[%s5384_s5 + $0x7] sm:$0x1] %v2779_v47  ;;  %v3505_v60 = vpop.eup %3504  ;;  %v2926_v25 = vpop.permute.xlu1 %2925 }
 0x8a8   :  { %v3507_v18 = vpop.eup %3506  ;;  %v2915_v21 = vadd.f32 1.0, %v3505_v60  ;;  %vm2927_vm7 = vcmp.eq.s32.totalorder %v2926_v25, 1  ;;  %s3723_s7 = smov [#allocation10]  }
 0x8a9   :  { %v3509_v38 = vpop.eup %3508  ;;  %s2966_s29 = sshll.u32 %s3723_s7, 4  ;;  %s2967_s29 = int_to_ptr.vmem [resolvable:$true] %s2966_s29 }
 0x8aa   :  { %v2919_v49 = vmul.f32 %v3509_v38, %v3507_v18  ;;  %3512 = vrcp.f32 %v2915_v21  ;;  %s3688_s5 = scalar_lea.vmem %s2967_s29, 32  ;;  %p3693_p3 = scmp.lt.s32.totalorder %s2967_s29, %s2967_s29 }
 0x8ab   :  { %p3689_p2 = scmp.ne.s32.totalorder %s2967_s29, %s3688_s5  ;;  %p3694_p4 = scmp.lt.s32.totalorder %s3688_s5, %s3688_s5 }
 0x8ad   :  { %p3695_p5 = por %p3694_p4, %p3693_p3 }
 0x8af   :  { %p3696_p6 = pnand %p3695_p5, %p3689_p2 }
 0x8b1   :  { %v3511_v7 = vpop.eup %3510 }
 0x8b2   :  { %v2918_v44 = vmul.f32 %v3511_v7, %v5308_v16 }
 0x8b4   :  { %v2920_v26 = vadd.f32 %v2919_v49, %v2918_v44  ;;  %v3513_v24 = vpop.eup %3512 }
 0x8b6   :  { %3514 = vtanh.f32 %v2920_v26  ;;  %v2929_v61 = vsel %vm2927_vm7, %v2920_v26, %v5308_v16 }
 0x8b7   :  { %2936 = vst [vmem:[#allocation5] sm:$0x3] %v2929_v61 }
 0x8c0   :  { %v3515_v48 = vpop.eup %3514 }
 0x8c1   :  { %v2922_v14 = vmul.f32 %v3515_v48, %v3513_v24 }
 0x8c3   :  { %v2928_v27 = vsel %vm2927_vm7, %v2922_v14, %v5324_v20  ;;  %v2930_v28 = vsel %vm2927_vm7, %v2922_v14, 0.0 }
 0x8c4   :  { %v2931_v19 = vpack.c.bf16 %v2930_v28, %v2930_v28  ;;  %2935 = vst [vmem:[#allocation4] sm:$0x3] %v2928_v27  ;;  %2938 = vst [vmem:[#allocation10] sm:$0x3] %v2928_v27 }
 0x8c5   :  { %3699 = shalt.err (!%p3696_p6)
}
 0x8c6   :  { %s3700_s9 = scalar_lea.hbm %s5387_s8, 32 }
 0x8c7   :  { %p3701_p7 = scmp.ne.s32.totalorder %s5387_s8, %s3700_s9  ;;  %p3704_p8 = scmp.lt.u32.totalorder %s3700_s9, %s5387_s8 }
 0x8c9   :  { %p3706_p9 = pnand %p3704_p8, %p3701_p7 }
 0x8cb   :  { %3709 = shalt.err (!%p3706_p9)
}
 0x8cc   :  { %2969 = dma.vmem_to_hbm [thread:$0]  %s2967_s29, 32, %s5387_s8, [#allocation11]   ;;  %2932 = vst [vmem:[%s5385_s6] sm:$0x1] %v2931_v19 }
 0x8cd   :  { %3712 = dma.done.wait [#allocation8], 32  }
 0x8ce   :  { %3713 = vsyncadd [#allocation8], 4294967264 }
 0x8cf   :  { %3714 = dma.done.wait [#allocation11], 32  }
 0x8d0   :  { %3715 = vsyncadd [#allocation11], 4294967264 }
 0x8d1   :  { %2985 = vsyncpa [#allocation7], 1 }
 0x8d2   :  { %2986 = vsyncpa [#allocation8], 1 }
 0x8d3   :  { %2987 = vsyncpa [#allocation11], 1 }

// kernel: lstm_classifier_forward.7
= control target key start
LH: loop header
LB: loop body
LE: loop exit
PB: predicated region body
PF: predicated region fallthrough
CT: control target
= control target key end

     0   :  { %14 = vsyncpa [#allocation7], 0  ;;  %v5563_v2 = vmov 0   ;;  %v3647_v3 = vmov 0.0   ;;  %s5548_s0 = inlined_call_operand.vmem [shape: bf16[8,2,512], index: 0, kind: input, shape index: {}]   ;;  %s5549_s1 = inlined_call_operand.vmem [shape: bf16[8,2,512], index: 1, kind: input, shape index: {}]   ;;  %s5550_s2 = inlined_call_operand.vmem [shape: s32[2,1], index: 2, kind: input, shape index: {}]   ;;  %s5551_s3 = inlined_call_operand.vmem [shape: bf16[128,512], index: 3, kind: input, shape index: {}]   ;;  %s5552_s4 = inlined_call_operand.vmem [shape: bf16[128,512], index: 4, kind: input, shape index: {}]   ;;  %s5553_s5 = inlined_call_operand.hbm [shape: bf16[8,2,128], index: 5, kind: output, shape index: {0}]   ;;  %s5554_s6 = inlined_call_operand.hbm [shape: bf16[8,2,128], index: 6, kind: output, shape index: {1}]   ;;  %s5555_s7 = inlined_call_operand.vmem [shape: f32[2,128], index: 7, kind: output, shape index: {2}]   ;;  %s5556_s8 = inlined_call_operand.vmem [shape: f32[2,128], index: 8, kind: output, shape index: {3}]  }
   0x1   :  { %v3701_v0 = vld [vmem:[%s5551_s3 + $0x4] ss:$16 sps:$4 sm:$0xff]   ;;  %v3706_v1 = vld [vmem:[%s5551_s3 + $0xc] ss:$16 sps:$4 sm:$0xff]   ;;  %328 = vmatprep.mubr.bf16.mxu0 %v5563_v2  ;;  %369 = vmatprep.mubr.bf16.mxu1 %v5563_v2  ;;  %55 = vst [vmem:[#allocation2] sm:$0x3] %v3647_v3 }
   0x2   :  { %58 = vst [vmem:[#allocation5] sm:$0x3] %v3647_v3  ;;  %56 = vst [vmem:[#allocation3] sm:$0x3] %v3647_v3  ;;  %296 = vmatprep.subr.bf16.mxu0 %v3701_v0  ;;  %v3714_v4 = vld [vmem:[%s5551_s3] ss:$16 sps:$4 sm:$0xff]   ;;  %3116 = vset.pattern.permute.xlu0 %v5563_v2 }
   0x3   :  { %57 = vst [vmem:[#allocation4] sm:$0x3] %v3647_v3  ;;  %v3719_v5 = vld [vmem:[%s5551_s3 + $0x8] ss:$16 sps:$4 sm:$0xff]   ;;  %337 = vmatprep.subr.bf16.mxu1 %v3706_v1  ;;  %v3726_v6 = vld [vmem:[%s5551_s3 + $0x24] ss:$16 sps:$4 sm:$0xff]   ;;  %3117 = vset.pattern.permute.xlu1 %v5563_v2 }
   0x4   :  { %297 = vmatpush1.bf16.msra.mxu0 %v3714_v4  ;;  %338 = vmatpush1.bf16.msra.mxu1 %v3719_v5  ;;  %v3734_v7 = vld [vmem:[%s5551_s3 + $0x2c] ss:$16 sps:$4 sm:$0xff]   ;;  %v3739_v8 = vld [vmem:[%s5551_s3 + $0x20] ss:$16 sps:$4 sm:$0xff]   ;;  %v3745_v9 = vld [vmem:[%s5551_s3 + $0x28] ss:$16 sps:$4 sm:$0xff]  }
   0x5   :  { %298 = vmatprep.subr.bf16.mxu0 %v3726_v6  ;;  %339 = vmatprep.subr.bf16.mxu1 %v3734_v7  ;;  %v3751_v10 = vld [vmem:[%s5551_s3 + $0x44] ss:$16 sps:$4 sm:$0xff]   ;;  %v3756_v11 = vld [vmem:[%s5551_s3 + $0x4c] ss:$16 sps:$4 sm:$0xff]   ;;  %v3761_v12 = vld [vmem:[%s5551_s3 + $0x40] ss:$16 sps:$4 sm:$0xff]  }
   0x6   :  { %v3766_v13 = vld [vmem:[%s5551_s3 + $0x48] ss:$16 sps:$4 sm:$0xff]   ;;  %v3773_v14 = vld [vmem:[%s5551_s3 + $0x64] ss:$16 sps:$4 sm:$0xff]   ;;  %v3780_v15 = vld [vmem:[%s5551_s3 + $0x6c] ss:$16 sps:$4 sm:$0xff]  }
   0x7   :  { %v3785_v16 = vld [vmem:[%s5551_s3 + $0x60] ss:$16 sps:$4 sm:$0xff]   ;;  %v3792_v17 = vld [vmem:[%s5551_s3 + $0x68] ss:$16 sps:$4 sm:$0xff]   ;;  %v3797_v18 = vld [vmem:[%s5551_s3 + $0x84] ss:$16 sps:$4 sm:$0xff]  }
   0x8   :  { %299 = vmatpush1.bf16.msra.mxu0 %v3739_v8  ;;  %340 = vmatpush1.bf16.msra.mxu1 %v3745_v9  ;;  %v3804_v19 = vld [vmem:[%s5551_s3 + $0x8c] ss:$16 sps:$4 sm:$0xff]   ;;  %v3809_v20 = vld [vmem:[%s5551_s3 + $0x80] ss:$16 sps:$4 sm:$0xff]   ;;  %v3814_v21 = vld [vmem:[%s5551_s3 + $0x88] ss:$16 sps:$4 sm:$0xff]  }
   0x9   :  { %300 = vmatprep.subr.bf16.mxu0 %v3751_v10  ;;  %341 = vmatprep.subr.bf16.mxu1 %v3756_v11  ;;  %5653 = vst [vmem:[#allocation12_spill] sm:$0xff] %v3814_v21  ;;  %v3821_v22 = vld [vmem:[%s5551_s3 + $0xa4] ss:$16 sps:$4 sm:$0xff]   ;;  %v3828_v23 = vld [vmem:[%s5551_s3 + $0xac] ss:$16 sps:$4 sm:$0xff]  }
   0xa   :  { %5654 = vst [vmem:[#allocation13_spill] sm:$0xff] %v3821_v22  ;;  %5655 = vst [vmem:[#allocation14_spill] sm:$0xff] %v3828_v23  ;;  %v3835_v24 = vld [vmem:[%s5551_s3 + $0xa0] ss:$16 sps:$4 sm:$0xff]   ;;  %v3840_v25 = vld [vmem:[%s5551_s3 + $0xa8] ss:$16 sps:$4 sm:$0xff]  }
   0xb   :  { %5656 = vst [vmem:[#allocation15_spill] sm:$0xff] %v3835_v24  ;;  %5657 = vst [vmem:[#allocation16_spill] sm:$0xff] %v3840_v25  ;;  %v3847_v26 = vld [vmem:[%s5551_s3 + $0xc4] ss:$16 sps:$4 sm:$0xff]   ;;  %v3852_v27 = vld [vmem:[%s5551_s3 + $0xcc] ss:$16 sps:$4 sm:$0xff]  }
   0xc   :  { %301 = vmatpush1.bf16.msra.mxu0 %v3761_v12  ;;  %342 = vmatpush1.bf16.msra.mxu1 %v3766_v13  ;;  %5658 = vst [vmem:[#allocation17_spill] sm:$0xff] %v3847_v26  ;;  %5659 = vst [vmem:[#allocation18_spill] sm:$0xff] %v3852_v27  ;;  %v3857_v28 = vld [vmem:[%s5551_s3 + $0xc0] ss:$16 sps:$4 sm:$0xff]   ;;  %v3862_v29 = vld [vmem:[%s5551_s3 + $0xc8] ss:$16 sps:$4 sm:$0xff]  }
   0xd   :  { %302 = vmatprep.subr.bf16.mxu0 %v3773_v14  ;;  %343 = vmatprep.subr.bf16.mxu1 %v3780_v15  ;;  %5660 = vst [vmem:[#allocation19_spill] sm:$0xff] %v3857_v28  ;;  %5661 = vst [vmem:[#allocation20_spill] sm:$0xff] %v3862_v29  ;;  %v3869_v30 = vld [vmem:[%s5551_s3 + $0xe4] ss:$16 sps:$4 sm:$0xff]   ;;  %v3876_v31 = vld [vmem:[%s5551_s3 + $0xec] ss:$16 sps:$4 sm:$0xff]  }
   0xe   :  { %5662 = vst [vmem:[#allocation21_spill] sm:$0xff] %v3869_v30  ;;  %5663 = vst [vmem:[#allocation22_spill] sm:$0xff] %v3876_v31  ;;  %v3881_v32 = vld [vmem:[%s5551_s3 + $0xe0] ss:$16 sps:$4 sm:$0xff]   ;;  %v3886_v33 = vld [vmem:[%s5551_s3 + $0xe8] ss:$16 sps:$4 sm:$0xff]  }
   0xf   :  { %5664 = vst [vmem:[#allocation23_spill] sm:$0xff] %v3881_v32  ;;  %5665 = vst [vmem:[#allocation24_spill] sm:$0xff] %v3886_v33  ;;  %v3890_v34 = vld [vmem:[#allocation2] sm:$0x3]  ;;  %v3897_v35 = vld [vmem:[%s5552_s4 + $0x4] ss:$16 sps:$4 sm:$0xff]  }
  0x10   :  { %303 = vmatpush1.bf16.msra.mxu0 %v3785_v16  ;;  %344 = vmatpush1.bf16.msra.mxu1 %v3792_v17  ;;  %5666 = vst [vmem:[#allocation25_spill] sm:$0xff] %v3897_v35  ;;  %v3902_v36 = vld [vmem:[%s5552_s4 + $0xc] ss:$16 sps:$4 sm:$0xff]   ;;  %v135_v37 = vpack.c.bf16 %v3890_v34, %v3890_v34  ;;  %v3909_v38 = vld [vmem:[%s5552_s4] ss:$16 sps:$4 sm:$0xff]  }
  0x11   :  { %304 = vmatprep.subr.bf16.mxu0 %v3797_v18  ;;  %345 = vmatprep.subr.bf16.mxu1 %v3804_v19  ;;  %5667 = vst [vmem:[#allocation26_spill] sm:$0xff] %v3902_v36  ;;  %v3914_v39 = vld [vmem:[%s5552_s4 + $0x8] ss:$16 sps:$4 sm:$0xff]   ;;  %v3921_v40 = vld [vmem:[%s5552_s4 + $0x24] ss:$16 sps:$4 sm:$0xff]  }
  0x12   :  { %v3928_v41 = vld [vmem:[%s5552_s4 + $0x2c] ss:$16 sps:$4 sm:$0xff]   ;;  %v3933_v42 = vld [vmem:[%s5552_s4 + $0x20] ss:$16 sps:$4 sm:$0xff]   ;;  %v3940_v43 = vld [vmem:[%s5552_s4 + $0x28] ss:$16 sps:$4 sm:$0xff]  }
  0x13   :  { %v3947_v44 = vld [vmem:[%s5552_s4 + $0x44] ss:$16 sps:$4 sm:$0xff]   ;;  %v3952_v45 = vld [vmem:[%s5552_s4 + $0x4c] ss:$16 sps:$4 sm:$0xff]   ;;  %v3959_v46 = vld [vmem:[%s5552_s4 + $0x40] ss:$16 sps:$4 sm:$0xff]  }
  0x14   :  { %305 = vmatpush1.bf16.msra.mxu0 %v3809_v20  ;;  %346 = vmatpush1.bf16.msra.mxu1 %v3814_v21  ;;  %v3964_v47 = vld [vmem:[%s5552_s4 + $0x48] ss:$16 sps:$4 sm:$0xff]   ;;  %v3971_v48 = vld [vmem:[%s5552_s4 + $0x64] ss:$16 sps:$4 sm:$0xff]   ;;  %v3978_v49 = vld [vmem:[%s5552_s4 + $0x6c] ss:$16 sps:$4 sm:$0xff]  }
  0x15   :  { %306 = vmatprep.subr.bf16.mxu0 %v3821_v22  ;;  %347 = vmatprep.subr.bf16.mxu1 %v3828_v23  ;;  %v3983_v50 = vld [vmem:[%s5550_s2] sm:$0x3] }
  0x18   :  { %307 = vmatpush1.bf16.msra.mxu0 %v3835_v24  ;;  %348 = vmatpush1.bf16.msra.mxu1 %v3840_v25 }
  0x19   :  { %308 = vmatprep.subr.bf16.mxu0 %v3847_v26  ;;  %349 = vmatprep.subr.bf16.mxu1 %v3852_v27 }
  0x1c   :  { %309 = vmatpush1.bf16.msra.mxu0 %v3857_v28  ;;  %350 = vmatpush1.bf16.msra.mxu1 %v3862_v29 }
  0x1d   :  { %310 = vmatprep.subr.bf16.mxu0 %v3869_v30  ;;  %351 = vmatprep.subr.bf16.mxu1 %v3876_v31 }
  0x20   :  { %311 = vmatpush1.bf16.msra.mxu0 %v3881_v32  ;;  %352 = vmatpush1.bf16.msra.mxu1 %v3886_v33 }
  0x21   :  { %609 = vmatprep.subr.bf16.mxu0 %v3897_v35  ;;  %650 = vmatprep.subr.bf16.mxu1 %v3902_v36 }
  0x23   :  { %329 = vmatmul.mubr.bf16.vlgmr.msra.gmra.mrb[0].mxu0 %v135_v37  ;;  %370 = vmatmul.mubr.bf16.vlgmr.msra.gmra.mrb[0].mxu1 %v135_v37 }
  0x24   :  { %610 = vmatpush1.bf16.msra.mxu0 %v3909_v38  ;;  %651 = vmatpush1.bf16.msra.mxu1 %v3914_v39 }
  0x25   :  { %611 = vmatprep.subr.bf16.mxu0 %v3921_v40  ;;  %652 = vmatprep.subr.bf16.mxu1 %v3928_v41 }
  0x26   :  { %641 = vmatprep.mubr.bf16.mxu0 %v5563_v2  ;;  %682 = vmatprep.mubr.bf16.mxu1 %v5563_v2 }
  0x28   :  { %612 = vmatpush1.bf16.msra.mxu0 %v3933_v42  ;;  %653 = vmatpush1.bf16.msra.mxu1 %v3940_v43 }
  0x29   :  { %613 = vmatprep.subr.bf16.mxu0 %v3947_v44  ;;  %654 = vmatprep.subr.bf16.mxu1 %v3952_v45 }
  0x2a   :  { %15 = vsyncpa [#allocation9], 0  ;;  %v3990_v51 = vld [vmem:[%s5552_s4 + $0x60] ss:$16 sps:$4 sm:$0xff]   ;;  %v3995_v52 = vld [vmem:[%s5552_s4 + $0x68] ss:$16 sps:$4 sm:$0xff]  }
  0x2b   :  { %vm2967_vm0 = vcmp.gt.s32.totalorder %v3983_v50, 0  ;;  %vm3003_vm1 = vcmp.gt.s32.totalorder %v3983_v50, 7  ;;  %v4004_v53 = vld [vmem:[%s5552_s4 + $0x84] ss:$16 sps:$4 sm:$0xff]   ;;  %v4009_v54 = vld [vmem:[%s5552_s4 + $0x8c] ss:$16 sps:$4 sm:$0xff]  }
  0x2c   :  { %614 = vmatpush1.bf16.msra.mxu0 %v3959_v46  ;;  %655 = vmatpush1.bf16.msra.mxu1 %v3964_v47  ;;  %5668 = vst [vmem:[#allocation27_spill] sm:$0xff] %v4004_v53  ;;  %5669 = vst [vmem:[#allocation28_spill] sm:$0xff] %v4009_v54  ;;  %v4012_v55 = vsel %vm2967_vm0, 1, %v5563_v2  ;;  %v4016_v56 = vsel %vm3003_vm1, 1, %v5563_v2  ;;  %v4023_v57 = vld [vmem:[%s5552_s4 + $0x80] ss:$16 sps:$4 sm:$0xff]  }
  0x2d   :  { %615 = vmatprep.subr.bf16.mxu0 %v3971_v48  ;;  %656 = vmatprep.subr.bf16.mxu1 %v3978_v49  ;;  %5670 = vst [vmem:[#allocation29_spill] sm:$0xff] %v4023_v57  ;;  %v4028_v58 = vld [vmem:[%s5552_s4 + $0x88] ss:$16 sps:$4 sm:$0xff]   ;;  %vm3050_vm2 = vcmp.gt.s32.totalorder %v3983_v50, 2  ;;  %v4036_v59 = vld [vmem:[%s5552_s4 + $0xa4] ss:$16 sps:$4 sm:$0xff]  }
  0x2e   :  { %434 = vperm.xlu0 %3116, %v4012_v55   ;;  %5671 = vst [vmem:[#allocation30_spill] sm:$0xff] %v4028_v58  ;;  %5672 = vst [vmem:[#allocation31_spill] sm:$0xff] %v4036_v59  ;;  %v4041_v60 = vld [vmem:[%s5552_s4 + $0xac] ss:$16 sps:$4 sm:$0xff]   ;;  %v4045_v61 = vsel %vm3050_vm2, 1, %v5563_v2  ;;  %vm3060_vm3 = vcmp.gt.s32.totalorder %v3983_v50, 3 }
  0x2f   :  { %5673 = vst [vmem:[#allocation32_spill] sm:$0xff] %v4041_v60  ;;  %v4052_v62 = vld [vmem:[%s5552_s4 + $0xa0] ss:$16 sps:$4 sm:$0xff]   ;;  %v4057_v63 = vld [vmem:[%s5552_s4 + $0xa8] ss:$16 sps:$4 sm:$0xff]   ;;  %vm3065_vm4 = vcmp.gt.s32.totalorder %v3983_v50, 4 }
  0x30   :  { %616 = vmatpush1.bf16.msra.mxu0 %v3990_v51  ;;  %657 = vmatpush1.bf16.msra.mxu1 %v3995_v52  ;;  %5674 = vst [vmem:[#allocation33_spill] sm:$0xff] %v4052_v62  ;;  %5675 = vst [vmem:[#allocation34_spill] sm:$0xff] %v4057_v63  ;;  %v4065_v3 = vld [vmem:[%s5552_s4 + $0xc4] ss:$16 sps:$4 sm:$0xff]   ;;  %v4070_v37 = vld [vmem:[%s5552_s4 + $0xcc] ss:$16 sps:$4 sm:$0xff]  }
  0x31   :  { %617 = vmatprep.subr.bf16.mxu0 %v4004_v53  ;;  %658 = vmatprep.subr.bf16.mxu1 %v4009_v54  ;;  %5676 = vst [vmem:[#allocation35_spill] sm:$0xff] %v4065_v3  ;;  %5677 = vst [vmem:[#allocation36_spill] sm:$0xff] %v4070_v37  ;;  %v4115_v54 = vld [vmem:[#allocation4] sm:$0x3]  ;;  %vm3055_vm5 = vcmp.gt.s32.totalorder %v3983_v50, 5  ;;  %vm3045_vm6 = vcmp.gt.s32.totalorder %v3983_v50, 6 }
  0x32   :  { %747 = vperm.xlu0 %3116, %v4016_v56   ;;  %v448_v53 = vpack.c.bf16 %v4115_v54, %v4115_v54  ;;  %vm3040_vm7 = vcmp.gt.s32.totalorder %v3983_v50, 1 }
  0x34   :  { %618 = vmatpush1.bf16.msra.mxu0 %v4023_v57  ;;  %659 = vmatpush1.bf16.msra.mxu1 %v4028_v58  ;;  %v4074_v58 = vsel %vm3060_vm3, 1, %v5563_v2  ;;  %v4094_v2 = vld [vmem:[%s5552_s4 + $0xe4] ss:$16 sps:$4 sm:$0xff]  }
  0x35   :  { %619 = vmatprep.subr.bf16.mxu0 %v4036_v59  ;;  %660 = vmatprep.subr.bf16.mxu1 %v4041_v60  ;;  %v4081_v60 = vld [vmem:[%s5552_s4 + $0xc0] ss:$16 sps:$4 sm:$0xff]   ;;  %v4086_v59 = vld [vmem:[%s5552_s4 + $0xc8] ss:$16 sps:$4 sm:$0xff]  }
  0x36   :  { %1209 = vperm.xlu0 %3116, %v4045_v61   ;;  %5678 = vst [vmem:[#allocation37_spill] sm:$0xff] %v4081_v60 }
  0x38   :  { %620 = vmatpush1.bf16.msra.mxu0 %v4052_v62  ;;  %661 = vmatpush1.bf16.msra.mxu1 %v4057_v63  ;;  %v4099_v63 = vld [vmem:[%s5552_s4 + $0xec] ss:$16 sps:$4 sm:$0xff]   ;;  %v4105_v62 = vld [vmem:[%s5552_s4 + $0xe0] ss:$16 sps:$4 sm:$0xff]  }
  0x39   :  { %621 = vmatprep.subr.bf16.mxu0 %v4065_v3  ;;  %662 = vmatprep.subr.bf16.mxu1 %v4070_v37  ;;  %5679 = vst [vmem:[#allocation38_spill] sm:$0xff] %v4099_v63  ;;  %v5680_v3 = vmov 0   ;;  %v4113_v37 = vld [vmem:[%s5552_s4 + $0xe8] ss:$16 sps:$4 sm:$0xff]  }
  0x3a   :  { %1517 = vperm.xlu0 %3116, %v4074_v58   ;;  %v1669_v57 = vsel %vm3065_vm4, 1, %v5680_v3 }
  0x3c   :  { %622 = vmatpush1.bf16.msra.mxu0 %v4081_v60  ;;  %663 = vmatpush1.bf16.msra.mxu1 %v4086_v59  ;;  %v1361_v60 = vsel %vm3055_vm5, 1, %v5680_v3 }
  0x3d   :  { %623 = vmatprep.subr.bf16.mxu0 %v4094_v2  ;;  %664 = vmatprep.subr.bf16.mxu1 %v4099_v63  ;;  %v1053_v63 = vsel %vm3045_vm6, 1, %v5680_v3 }
  0x3e   :  { %1825 = vperm.xlu0 %3116, %v1669_v57  }
  0x40   :  { %624 = vmatpush1.bf16.msra.mxu0 %v4105_v62  ;;  %665 = vmatpush1.bf16.msra.mxu1 %v4113_v37 }
  0x41   :  { %763 = vmatprep.subr.bf16.mxu0 %v3701_v0  ;;  %804 = vmatprep.subr.bf16.mxu1 %v3706_v1 }
  0x42   :  { %2133 = vperm.xlu0 %3116, %v1361_v60  }
  0x43   :  { %642 = vmatmul.mubr.bf16.vlgmr.msra.gmra.mrb[4].mxu0 %v448_v53  ;;  %683 = vmatmul.mubr.bf16.vlgmr.msra.gmra.mrb[4].mxu1 %v448_v53  ;;  %v899_v53 = vsel %vm3040_vm7, 1, %v5680_v3 }
  0x44   :  { %764 = vmatpush1.bf16.msra.mxu0 %v3714_v4  ;;  %805 = vmatpush1.bf16.msra.mxu1 %v3719_v5 }
  0x45   :  { %765 = vmatprep.subr.bf16.mxu0 %v3726_v6  ;;  %806 = vmatprep.subr.bf16.mxu1 %v3734_v7 }
  0x46   :  { %2441 = vperm.xlu0 %3116, %v1053_v63   ;;  %795 = vmatprep.mubr.bf16.mxu0 %v5680_v3 }
  0x47   :  { %836 = vmatprep.mubr.bf16.mxu1 %v5680_v3  ;;  %901 = vperm.xlu1 %3117, %v899_v53  }
  0x48   :  { %766 = vmatpush1.bf16.msra.mxu0 %v3739_v8  ;;  %807 = vmatpush1.bf16.msra.mxu1 %v3745_v9 }
  0x49   :  { %767 = vmatprep.subr.bf16.mxu0 %v3751_v10  ;;  %808 = vmatprep.subr.bf16.mxu1 %v3756_v11 }
  0x4a   :  { %2749 = vperm.xlu0 %3116, %v4016_v56   ;;  %v3648_v56 = vmov 1983009808  }
  0x4b   :  { %1055 = vperm.xlu1 %3117, %v1053_v63  }
  0x4c   :  { %768 = vmatpush1.bf16.msra.mxu0 %v3761_v12  ;;  %809 = vmatpush1.bf16.msra.mxu1 %v3766_v13 }
  0x4d   :  { %769 = vmatprep.subr.bf16.mxu0 %v3773_v14  ;;  %810 = vmatprep.subr.bf16.mxu1 %v3780_v15 }
  0x4f   :  { %1363 = vperm.xlu1 %3117, %v1361_v60  }
  0x50   :  { %770 = vmatpush1.bf16.msra.mxu0 %v3785_v16  ;;  %811 = vmatpush1.bf16.msra.mxu1 %v3792_v17 }
  0x51   :  { %771 = vmatprep.subr.bf16.mxu0 %v3797_v18  ;;  %812 = vmatprep.subr.bf16.mxu1 %v3804_v19 }
  0x53   :  { %1671 = vperm.xlu1 %3117, %v1669_v57   ;;  %v4174_v57 = vld [vmem:[%s5548_s0] sm:$0xff]  }
  0x54   :  { %772 = vmatpush1.bf16.msra.mxu0 %v3809_v20  ;;  %813 = vmatpush1.bf16.msra.mxu1 %v3814_v21  ;;  %5681 = vst [vmem:[#allocation39_spill] sm:$0xff] %v4174_v57 }
  0x55   :  { %773 = vmatprep.subr.bf16.mxu0 %v3821_v22  ;;  %814 = vmatprep.subr.bf16.mxu1 %v3828_v23 }
  0x57   :  { %1979 = vperm.xlu1 %3117, %v4074_v58  }
  0x58   :  { %774 = vmatpush1.bf16.msra.mxu0 %v3835_v24  ;;  %815 = vmatpush1.bf16.msra.mxu1 %v3840_v25 }
  0x59   :  { %775 = vmatprep.subr.bf16.mxu0 %v3847_v26  ;;  %816 = vmatprep.subr.bf16.mxu1 %v3852_v27 }
  0x5b   :  { %2287 = vperm.xlu1 %3117, %v4045_v61  }
  0x5c   :  { %776 = vmatpush1.bf16.msra.mxu0 %v3857_v28  ;;  %817 = vmatpush1.bf16.msra.mxu1 %v3862_v29 }
  0x5d   :  { %777 = vmatprep.subr.bf16.mxu0 %v3869_v30  ;;  %818 = vmatprep.subr.bf16.mxu1 %v3876_v31 }
  0x5f   :  { %2595 = vperm.xlu1 %3117, %v899_v53  }
  0x60   :  { %778 = vmatpush1.bf16.msra.mxu0 %v3881_v32  ;;  %819 = vmatpush1.bf16.msra.mxu1 %v3886_v33  ;;  %v385_v32 = vunpack.c.l.s4 %v3648_v56  ;;  %v387_v33 = vlaneseq }
  0x61   :  { %917 = vmatprep.subr.bf16.mxu0 %v3897_v35  ;;  %958 = vmatprep.subr.bf16.mxu1 %v3902_v36 }
  0x62   :  { %v386_v35 = vunpack.c.0.s8 %v385_v32  ;;  %v388_v36 = vshrl.u32 %v387_v33, 7  ;;  %v134_v33 = vunpack.c.l.bf16 %v4174_v57 }
  0x63   :  { %2901 = vperm.xlu1 %3117, %v4012_v55  }
  0x64   :  { %v4169_v30 = vsub.s32 %v386_v35, %v388_v36 }
  0xad   :  { %v435_v23 = vpop.permute.xlu0 %434 }
  0xae   :  { %vm436_vm8 = vcmp.eq.s32.totalorder %v435_v23, 1 }
  0xf6   :  { %v330_v31 = vpop.f32.mrb[0].mxu0  ;;  %v371_v50 = vpop.f32.mrb[0].mxu1 }
  0xf7   :  { %v332_v29 = vpop.f32.mrb[1].mxu0  ;;  %v373_v58 = vpop.f32.mrb[1].mxu1 }
  0xf8   :  { %v382_v60 = vcombine.low %v330_v31, %v332_v29  ;;  %v383_v61 = vcombine.low %v371_v50, %v373_v58  ;;  %v334_v63 = vpop.f32.mrb[2].mxu0  ;;  %v375_v53 = vpop.f32.mrb[2].mxu1 }
  0xf9   :  { %v335_v56 = vpop.f32.mrb[3].mxu0  ;;  %v376_v28 = vpop.f32.mrb[3].mxu1 }
  0xfa   :  { %v390_v32 = vrot.slane %v382_v60, %v4169_v30  ;;  %v397_v35 = vrot.slane %v383_v61, %v4169_v30 }
  0xfc   :  { %v398_v36 = vcombine.low %v390_v32, %v397_v35 }
  0xfe   :  { %v400_v55 = vadd.f32 %v398_v36, %v134_v33  ;;  %v128_v36 = vld [vmem:[#allocation3] sm:$0x3] }
 0x100   :  { %v3000_v27 = vmul.f32 -1.442695, %v400_v55  ;;  %v408_v26 = vrot.slane %v400_v55, 2  ;;  %v419_v24 = vrot.slane %v400_v55, 6  ;;  %v416_v50 = vrot.slane %v400_v55, 4 }
 0x102   :  { %3214 = vpow2.f32 %v3000_v27  ;;  %v3001_v25 = vmul.f32 -1.442695, %v408_v26  ;;  %v3002_v29 = vmul.f32 -1.442695, %v419_v24  ;;  %v4182_v27 = vld [vmem:[%s5549_s1 + $0x18] sm:$0xff]  }
 0x104   :  { %3216 = vpow2.f32 %v3001_v25 }
 0x105   :  { %3218 = vpow2.f32 %v3002_v29 }
 0x10c   :  { %v3215_v31 = vpop.eup %3214 }
 0x10d   :  { %v404_v58 = vadd.f32 1.0, %v3215_v31 }
 0x10e   :  { %v3217_v63 = vpop.eup %3216 }
 0x10f   :  { %3220 = vrcp.f32 %v404_v58  ;;  %v413_v28 = vadd.f32 1.0, %v3217_v63  ;;  %v3219_v26 = vpop.eup %3218  ;;  %v447_v58 = vunpack.c.h.bf16 %v4182_v27 }
 0x110   :  { %3222 = vtanh.f32 %v416_v50  ;;  %v424_v57 = vadd.f32 1.0, %v3219_v26 }
 0x111   :  { %3224 = vrcp.f32 %v413_v28 }
 0x112   :  { %3226 = vrcp.f32 %v424_v57 }
 0x116   :  { %v643_v60 = vpop.f32.mrb[4].mxu0  ;;  %v684_v61 = vpop.f32.mrb[4].mxu1 }
 0x117   :  { %v645_v53 = vpop.f32.mrb[5].mxu0  ;;  %v686_v25 = vpop.f32.mrb[5].mxu1 }
 0x118   :  { %v695_v24 = vcombine.low %v643_v60, %v645_v53  ;;  %v696_v56 = vcombine.low %v684_v61, %v686_v25  ;;  %v647_v32 = vpop.f32.mrb[6].mxu0  ;;  %v688_v33 = vpop.f32.mrb[6].mxu1 }
 0x119   :  { %v3221_v35 = vpop.eup %3220  ;;  %v648_v55 = vpop.f32.mrb[7].mxu0 }
 0x11a   :  { %v689_v29 = vpop.f32.mrb[7].mxu1  ;;  %v3223_v31 = vpop.eup %3222  ;;  %v703_v50 = vrot.slane %v695_v24, %v4169_v30  ;;  %v710_v63 = vrot.slane %v696_v56, %v4169_v30 }
 0x11b   :  { %v3225_v28 = vpop.eup %3224  ;;  %v428_v21 = vmul.f32 %v3223_v31, %v3221_v35 }
 0x11c   :  { %v427_v22 = vmul.f32 %v3225_v28, %v128_v36  ;;  %v711_v60 = vcombine.low %v703_v50, %v710_v63  ;;  %v3227_v55 = vpop.eup %3226 }
 0x11e   :  { %v429_v61 = vadd.f32 %v428_v21, %v427_v22  ;;  %v713_v53 = vadd.f32 %v711_v60, %v447_v58  ;;  %v130_v60 = vld [vmem:[#allocation5] sm:$0x3] }
 0x120   :  { %3228 = vtanh.f32 %v429_v61  ;;  %v4188_v25 = vsel %vm436_vm8, %v429_v61, %v128_v36  ;;  %v3037_v32 = vmul.f32 -1.442695, %v713_v53  ;;  %v721_v24 = vrot.slane %v713_v53, 2 }
 0x121   :  { %v732_v56 = vrot.slane %v713_v53, 6  ;;  %v729_v31 = vrot.slane %v713_v53, 4 }
 0x122   :  { %3230 = vpow2.f32 %v3037_v32  ;;  %v3038_v33 = vmul.f32 -1.442695, %v721_v24 }
 0x123   :  { %v3039_v29 = vmul.f32 -1.442695, %v732_v56  ;;  %v748_v56 = vpop.permute.xlu0 %747 }
 0x124   :  { %3232 = vpow2.f32 %v3038_v33  ;;  %vm749_vm9 = vcmp.eq.s32.totalorder %v748_v56, 1 }
 0x125   :  { %3234 = vpow2.f32 %v3039_v29 }
 0x12a   :  { %v3229_v26 = vpop.eup %3228 }
 0x12b   :  { %v431_v28 = vmul.f32 %v3229_v26, %v3227_v55  ;;  %v5682_v55 = vld [vmem:[#allocation27_spill] sm:$0xff]  ;;  %v5683_v26 = vld [vmem:[#allocation28_spill] sm:$0xff] }
 0x12c   :  { %v3231_v35 = vpop.eup %3230 }
 0x12d   :  { %v4192_v21 = vsel %vm436_vm8, %v431_v28, %v3890_v34  ;;  %v439_v22 = vsel %vm436_vm8, %v431_v28, 0.0  ;;  %v717_v57 = vadd.f32 1.0, %v3231_v35  ;;  %v5684_v35 = vld [vmem:[#allocation29_spill] sm:$0xff] }
 0x12e   :  { %v3233_v36 = vpop.eup %3232  ;;  %v440_v50 = vpack.c.bf16 %v439_v22, %v439_v22  ;;  %v762_v58 = vpack.c.bf16 %v4192_v21, %v4192_v21  ;;  %v5686_v22 = vld [vmem:[#allocation31_spill] sm:$0xff] }
 0x12f   :  { %3236 = vrcp.f32 %v717_v57  ;;  %v726_v63 = vadd.f32 1.0, %v3233_v36  ;;  %v3235_v23 = vpop.eup %3234  ;;  %v5687_v57 = vld [vmem:[#allocation32_spill] sm:$0xff]  ;;  %v5688_v36 = vld [vmem:[#allocation33_spill] sm:$0xff] }
 0x130   :  { %441 = vst [vmem:[#allocation6] sm:$0x1] %v440_v50  ;;  %3238 = vtanh.f32 %v729_v31  ;;  %796 = vmatmul.mubr.bf16.vlgmr.msra.gmra.mrb[8].mxu0 %v762_v58  ;;  %837 = vmatmul.mubr.bf16.vlgmr.msra.gmra.mrb[8].mxu1 %v762_v58  ;;  %v737_v32 = vadd.f32 1.0, %v3235_v23  ;;  %v5685_v31 = vld [vmem:[#allocation30_spill] sm:$0xff]  ;;  %v5690_v58 = vld [vmem:[#allocation35_spill] sm:$0xff] }
 0x131   :  { %3240 = vrcp.f32 %v726_v63  ;;  %918 = vmatpush1.bf16.msra.mxu0 %v3909_v38  ;;  %959 = vmatpush1.bf16.msra.mxu1 %v3914_v39  ;;  %v5689_v50 = vld [vmem:[#allocation34_spill] sm:$0xff]  ;;  %v5691_v63 = vld [vmem:[#allocation36_spill] sm:$0xff] }
 0x132   :  { %919 = vmatprep.subr.bf16.mxu0 %v3921_v40  ;;  %960 = vmatprep.subr.bf16.mxu1 %v3928_v41  ;;  %3242 = vrcp.f32 %v737_v32 }
 0x133   :  { %949 = vmatprep.mubr.bf16.mxu0 %v5680_v3  ;;  %990 = vmatprep.mubr.bf16.mxu1 %v5680_v3 }
 0x135   :  { %920 = vmatpush1.bf16.msra.mxu0 %v3933_v42  ;;  %961 = vmatpush1.bf16.msra.mxu1 %v3940_v43 }
 0x136   :  { %921 = vmatprep.subr.bf16.mxu0 %v3947_v44  ;;  %962 = vmatprep.subr.bf16.mxu1 %v3952_v45 }
 0x139   :  { %v3237_v34 = vpop.eup %3236  ;;  %922 = vmatpush1.bf16.msra.mxu0 %v3959_v46  ;;  %963 = vmatpush1.bf16.msra.mxu1 %v3964_v47 }
 0x13a   :  { %v3239_v61 = vpop.eup %3238  ;;  %923 = vmatprep.subr.bf16.mxu0 %v3971_v48  ;;  %964 = vmatprep.subr.bf16.mxu1 %v3978_v49 }
 0x13b   :  { %v3241_v53 = vpop.eup %3240  ;;  %v741_v24 = vmul.f32 %v3239_v61, %v3237_v34  ;;  %v5692_v34 = vld [vmem:[#allocation37_spill] sm:$0xff]  ;;  %v5693_v61 = vld [vmem:[#allocation38_spill] sm:$0xff] }
 0x13c   :  { %v740_v33 = vmul.f32 %v3241_v53, %v130_v60  ;;  %v3243_v23 = vpop.eup %3242 }
 0x13d   :  { %924 = vmatpush1.bf16.msra.mxu0 %v3990_v51  ;;  %965 = vmatpush1.bf16.msra.mxu1 %v3995_v52 }
 0x13e   :  { %925 = vmatprep.subr.bf16.mxu0 %v5682_v55  ;;  %966 = vmatprep.subr.bf16.mxu1 %v5683_v26  ;;  %v742_v29 = vadd.f32 %v741_v24, %v740_v33 }
 0x140   :  { %3244 = vtanh.f32 %v742_v29  ;;  %v4216_v28 = vsel %vm749_vm9, %v742_v29, %v130_v60 }
 0x141   :  { %926 = vmatpush1.bf16.msra.mxu0 %v5684_v35  ;;  %967 = vmatpush1.bf16.msra.mxu1 %v5685_v31 }
 0x142   :  { %927 = vmatprep.subr.bf16.mxu0 %v5686_v22  ;;  %968 = vmatprep.subr.bf16.mxu1 %v5687_v57 }
 0x145   :  { %928 = vmatpush1.bf16.msra.mxu0 %v5688_v36  ;;  %969 = vmatpush1.bf16.msra.mxu1 %v5689_v50 }
 0x146   :  { %929 = vmatprep.subr.bf16.mxu0 %v5690_v58  ;;  %970 = vmatprep.subr.bf16.mxu1 %v5691_v63 }
 0x149   :  { %930 = vmatpush1.bf16.msra.mxu0 %v5692_v34  ;;  %971 = vmatpush1.bf16.msra.mxu1 %v4086_v59 }
 0x14a   :  { %v3245_v60 = vpop.eup %3244  ;;  %931 = vmatprep.subr.bf16.mxu0 %v4094_v2  ;;  %972 = vmatprep.subr.bf16.mxu1 %v5693_v61 }
 0x14b   :  { %v744_v53 = vmul.f32 %v3245_v60, %v3243_v23 }
 0x14d   :  { %932 = vmatpush1.bf16.msra.mxu0 %v4105_v62  ;;  %973 = vmatpush1.bf16.msra.mxu1 %v4113_v37  ;;  %v4234_v32 = vsel %vm749_vm9, %v744_v53, %v4115_v54  ;;  %v752_v24 = vsel %vm749_vm9, %v744_v53, 0.0 }
 0x14e   :  { %v753_v33 = vpack.c.bf16 %v752_v24, %v752_v24  ;;  %v916_v29 = vpack.c.bf16 %v4234_v32, %v4234_v32  ;;  %1071 = vmatprep.subr.bf16.mxu0 %v3701_v0  ;;  %1112 = vmatprep.subr.bf16.mxu1 %v3706_v1  ;;  %v5694_v0 = vld [vmem:[#allocation12_spill] sm:$0xff]  ;;  %v5695_v1 = vld [vmem:[#allocation13_spill] sm:$0xff] }
 0x150   :  { %755 = vst [vmem:[#allocation8 + $0x7] sm:$0x1] %v753_v33  ;;  %950 = vmatmul.mubr.bf16.vlgmr.msra.gmra.mrb[12].mxu0 %v916_v29  ;;  %991 = vmatmul.mubr.bf16.vlgmr.msra.gmra.mrb[12].mxu1 %v916_v29  ;;  %v5709_v29 = vld [vmem:[#allocation39_spill] sm:$0xff] }
 0x151   :  { %1072 = vmatpush1.bf16.msra.mxu0 %v3714_v4  ;;  %1113 = vmatpush1.bf16.msra.mxu1 %v3719_v5  ;;  %v5696_v4 = vld [vmem:[#allocation14_spill] sm:$0xff]  ;;  %v5697_v5 = vld [vmem:[#allocation15_spill] sm:$0xff] }
 0x152   :  { %1073 = vmatprep.subr.bf16.mxu0 %v3726_v6  ;;  %1114 = vmatprep.subr.bf16.mxu1 %v3734_v7  ;;  %v5698_v6 = vld [vmem:[#allocation16_spill] sm:$0xff]  ;;  %v5699_v7 = vld [vmem:[#allocation17_spill] sm:$0xff] }
 0x153   :  { %1103 = vmatprep.mubr.bf16.mxu0 %v5680_v3  ;;  %1144 = vmatprep.mubr.bf16.mxu1 %v5680_v3 }
 0x155   :  { %1074 = vmatpush1.bf16.msra.mxu0 %v3739_v8  ;;  %1115 = vmatpush1.bf16.msra.mxu1 %v3745_v9  ;;  %v5700_v8 = vld [vmem:[#allocation18_spill] sm:$0xff]  ;;  %v5701_v9 = vld [vmem:[#allocation19_spill] sm:$0xff] }
 0x156   :  { %1075 = vmatprep.subr.bf16.mxu0 %v3751_v10  ;;  %1116 = vmatprep.subr.bf16.mxu1 %v3756_v11  ;;  %v5702_v10 = vld [vmem:[#allocation20_spill] sm:$0xff]  ;;  %v5703_v11 = vld [vmem:[#allocation21_spill] sm:$0xff] }
 0x159   :  { %1076 = vmatpush1.bf16.msra.mxu0 %v3761_v12  ;;  %1117 = vmatpush1.bf16.msra.mxu1 %v3766_v13  ;;  %v5704_v12 = vld [vmem:[#allocation22_spill] sm:$0xff]  ;;  %v5705_v13 = vld [vmem:[#allocation23_spill] sm:$0xff] }
 0x15a   :  { %1077 = vmatprep.subr.bf16.mxu0 %v3773_v14  ;;  %1118 = vmatprep.subr.bf16.mxu1 %v3780_v15  ;;  %v5706_v14 = vld [vmem:[#allocation24_spill] sm:$0xff]  ;;  %v5707_v15 = vld [vmem:[#allocation25_spill] sm:$0xff] }
 0x15d   :  { %1078 = vmatpush1.bf16.msra.mxu0 %v3785_v16  ;;  %1119 = vmatpush1.bf16.msra.mxu1 %v3792_v17  ;;  %v5708_v16 = vld [vmem:[#allocation26_spill] sm:$0xff] }
 0x15e   :  { %1079 = vmatprep.subr.bf16.mxu0 %v3797_v18  ;;  %1120 = vmatprep.subr.bf16.mxu1 %v3804_v19 }
 0x161   :  { %1080 = vmatpush1.bf16.msra.mxu0 %v3809_v20  ;;  %1121 = vmatpush1.bf16.msra.mxu1 %v5694_v0  ;;  %v761_v0 = vunpack.c.h.bf16 %v5709_v29 }
 0x162   :  { %1081 = vmatprep.subr.bf16.mxu0 %v5695_v1  ;;  %1122 = vmatprep.subr.bf16.mxu1 %v5696_v4 }
 0x165   :  { %1082 = vmatpush1.bf16.msra.mxu0 %v5697_v5  ;;  %1123 = vmatpush1.bf16.msra.mxu1 %v5698_v6 }
 0x166   :  { %1083 = vmatprep.subr.bf16.mxu0 %v5699_v7  ;;  %1124 = vmatprep.subr.bf16.mxu1 %v5700_v8 }
 0x169   :  { %1084 = vmatpush1.bf16.msra.mxu0 %v5701_v9  ;;  %1125 = vmatpush1.bf16.msra.mxu1 %v5702_v10 }
 0x16a   :  { %1085 = vmatprep.subr.bf16.mxu0 %v5703_v11  ;;  %1126 = vmatprep.subr.bf16.mxu1 %v5704_v12 }
 0x16d   :  { %1086 = vmatpush1.bf16.msra.mxu0 %v5705_v13  ;;  %1127 = vmatpush1.bf16.msra.mxu1 %v5706_v14 }
 0x16e   :  { %1225 = vmatprep.subr.bf16.mxu0 %v5707_v15  ;;  %1266 = vmatprep.subr.bf16.mxu1 %v5708_v16 }
 0x203   :  { %v797_v17 = vpop.f32.mrb[8].mxu0  ;;  %v838_v18 = vpop.f32.mrb[8].mxu1 }
 0x204   :  { %v799_v19 = vpop.f32.mrb[9].mxu0  ;;  %v840_v20 = vpop.f32.mrb[9].mxu1 }
 0x205   :  { %v849_v54 = vcombine.low %v797_v17, %v799_v19  ;;  %v850_v56 = vcombine.low %v838_v18, %v840_v20  ;;  %v801_v23 = vpop.f32.mrb[10].mxu0  ;;  %v842_v60 = vpop.f32.mrb[10].mxu1 }
 0x206   :  { %v802_v53 = vpop.f32.mrb[11].mxu0  ;;  %v843_v24 = vpop.f32.mrb[11].mxu1 }
 0x207   :  { %v857_v33 = vrot.slane %v849_v54, %v4169_v30  ;;  %v864_v1 = vrot.slane %v850_v56, %v4169_v30 }
 0x209   :  { %v865_v4 = vcombine.low %v857_v33, %v864_v1  ;;  %v915_v1 = vunpack.c.l.bf16 %v4182_v27 }
 0x20b   :  { %v867_v5 = vadd.f32 %v865_v4, %v761_v0 }
 0x20d   :  { %v3042_v6 = vmul.f32 -1.442695, %v867_v5  ;;  %v875_v7 = vrot.slane %v867_v5, 2  ;;  %v886_v9 = vrot.slane %v867_v5, 6  ;;  %v883_v12 = vrot.slane %v867_v5, 4 }
 0x20f   :  { %3246 = vpow2.f32 %v3042_v6  ;;  %v3043_v8 = vmul.f32 -1.442695, %v875_v7  ;;  %v3044_v10 = vmul.f32 -1.442695, %v886_v9  ;;  %v902_v7 = vpop.permute.xlu1 %901 }
 0x210   :  { %vm903_vm10 = vcmp.eq.s32.totalorder %v902_v7, 1  ;;  %v4468_v7 = vld [vmem:[%s5551_s3 + $0xac] ss:$16 sps:$4 sm:$0xff]  }
 0x211   :  { %3248 = vpow2.f32 %v3043_v8  ;;  %5711 = vst [vmem:[#allocation28_spill] sm:$0xff] %v4468_v7 }
 0x212   :  { %3250 = vpow2.f32 %v3044_v10 }
 0x219   :  { %v3247_v11 = vpop.eup %3246 }
 0x21a   :  { %v871_v13 = vadd.f32 1.0, %v3247_v11 }
 0x21b   :  { %v3249_v14 = vpop.eup %3248 }
 0x21c   :  { %3252 = vrcp.f32 %v871_v13  ;;  %v880_v15 = vadd.f32 1.0, %v3249_v14  ;;  %v3251_v20 = vpop.eup %3250 }
 0x21d   :  { %3254 = vtanh.f32 %v883_v12  ;;  %v891_v6 = vadd.f32 1.0, %v3251_v20 }
 0x21e   :  { %3256 = vrcp.f32 %v880_v15 }
 0x21f   :  { %3258 = vrcp.f32 %v891_v6  ;;  %v4462_v6 = vld [vmem:[%s5551_s3 + $0xa4] ss:$16 sps:$4 sm:$0xff]  }
 0x220   :  { %5710 = vst [vmem:[#allocation27_spill] sm:$0xff] %v4462_v6 }
 0x223   :  { %v951_v16 = vpop.f32.mrb[12].mxu0  ;;  %v992_v17 = vpop.f32.mrb[12].mxu1 }
 0x224   :  { %v953_v18 = vpop.f32.mrb[13].mxu0  ;;  %v994_v19 = vpop.f32.mrb[13].mxu1 }
 0x225   :  { %v1003_v54 = vcombine.low %v951_v16, %v953_v18  ;;  %v1004_v56 = vcombine.low %v992_v17, %v994_v19  ;;  %v955_v23 = vpop.f32.mrb[14].mxu0  ;;  %v996_v60 = vpop.f32.mrb[14].mxu1 }
 0x226   :  { %v3253_v53 = vpop.eup %3252  ;;  %v956_v24 = vpop.f32.mrb[15].mxu0 }
 0x227   :  { %v997_v33 = vpop.f32.mrb[15].mxu1  ;;  %v3255_v29 = vpop.eup %3254  ;;  %v1011_v0 = vrot.slane %v1003_v54, %v4169_v30  ;;  %v1018_v4 = vrot.slane %v1004_v56, %v4169_v30 }
 0x228   :  { %v3257_v5 = vpop.eup %3256  ;;  %v895_v9 = vmul.f32 %v3255_v29, %v3253_v53 }
 0x229   :  { %v894_v8 = vmul.f32 %v3257_v5, %v4188_v25  ;;  %v1019_v10 = vcombine.low %v1011_v0, %v1018_v4  ;;  %v3259_v17 = vpop.eup %3258  ;;  %v4438_v0 = vld [vmem:[%s5551_s3 + $0x84] ss:$16 sps:$4 sm:$0xff]   ;;  %v4450_v4 = vld [vmem:[%s5551_s3 + $0x80] ss:$16 sps:$4 sm:$0xff]   ;;  %v4456_v5 = vld [vmem:[%s5551_s3 + $0x88] ss:$16 sps:$4 sm:$0xff]  }
 0x22b   :  { %v896_v11 = vadd.f32 %v895_v9, %v894_v8  ;;  %v1021_v12 = vadd.f32 %v1019_v10, %v915_v1  ;;  %v4444_v1 = vld [vmem:[%s5551_s3 + $0x8c] ss:$16 sps:$4 sm:$0xff]   ;;  %v4474_v8 = vld [vmem:[%s5551_s3 + $0xa0] ss:$16 sps:$4 sm:$0xff]   ;;  %v4480_v9 = vld [vmem:[%s5551_s3 + $0xa8] ss:$16 sps:$4 sm:$0xff]  }
 0x22c   :  { %5712 = vst [vmem:[#allocation29_spill] sm:$0xff] %v4474_v8  ;;  %5713 = vst [vmem:[#allocation30_spill] sm:$0xff] %v4480_v9  ;;  %v4486_v10 = vld [vmem:[%s5551_s3 + $0xc4] ss:$16 sps:$4 sm:$0xff]  }
 0x22d   :  { %3260 = vtanh.f32 %v896_v11  ;;  %v4284_v13 = vsel %vm903_vm10, %v896_v11, %v4188_v25  ;;  %v3047_v14 = vmul.f32 -1.442695, %v1021_v12  ;;  %v1029_v27 = vrot.slane %v1021_v12, 2  ;;  %5714 = vst [vmem:[#allocation31_spill] sm:$0xff] %v4486_v10  ;;  %v4492_v11 = vld [vmem:[%s5551_s3 + $0xcc] ss:$16 sps:$4 sm:$0xff]  }
 0x22e   :  { %v1040_v16 = vrot.slane %v1021_v12, 6  ;;  %v1037_v56 = vrot.slane %v1021_v12, 4  ;;  %5715 = vst [vmem:[#allocation32_spill] sm:$0xff] %v4492_v11  ;;  %v4498_v12 = vld [vmem:[%s5551_s3 + $0xc0] ss:$16 sps:$4 sm:$0xff]  }
 0x22f   :  { %3262 = vpow2.f32 %v3047_v14  ;;  %v3048_v15 = vmul.f32 -1.442695, %v1029_v27  ;;  %5716 = vst [vmem:[#allocation33_spill] sm:$0xff] %v4498_v12  ;;  %v4504_v14 = vld [vmem:[%s5551_s3 + $0xc8] ss:$16 sps:$4 sm:$0xff]  }
 0x230   :  { %v3049_v19 = vmul.f32 -1.442695, %v1040_v16  ;;  %5717 = vst [vmem:[#allocation34_spill] sm:$0xff] %v4504_v14  ;;  %v4510_v27 = vld [vmem:[%s5551_s3 + $0xe4] ss:$16 sps:$4 sm:$0xff]  }
 0x231   :  { %3264 = vpow2.f32 %v3048_v15  ;;  %5718 = vst [vmem:[#allocation35_spill] sm:$0xff] %v4510_v27  ;;  %v4516_v15 = vld [vmem:[%s5551_s3 + $0xec] ss:$16 sps:$4 sm:$0xff]   ;;  %v4522_v16 = vld [vmem:[%s5551_s3 + $0xe0] ss:$16 sps:$4 sm:$0xff]  }
 0x232   :  { %3266 = vpow2.f32 %v3049_v19  ;;  %5719 = vst [vmem:[#allocation36_spill] sm:$0xff] %v4516_v15  ;;  %5720 = vst [vmem:[#allocation37_spill] sm:$0xff] %v4522_v16  ;;  %v4540_v19 = vld [vmem:[%s5552_s4 + $0xc] ss:$16 sps:$4 sm:$0xff]  }
 0x233   :  { %5723 = vst [vmem:[#allocation13_spill] sm:$0xff] %v4540_v19 }
 0x237   :  { %v3261_v18 = vpop.eup %3260 }
 0x238   :  { %v898_v20 = vmul.f32 %v3261_v18, %v3259_v17  ;;  %v4528_v17 = vld [vmem:[%s5551_s3 + $0xe8] ss:$16 sps:$4 sm:$0xff]   ;;  %v4534_v18 = vld [vmem:[%s5552_s4 + $0x4] ss:$16 sps:$4 sm:$0xff]  }
 0x239   :  { %v3263_v54 = vpop.eup %3262  ;;  %5721 = vst [vmem:[#allocation38_spill] sm:$0xff] %v4528_v17  ;;  %5722 = vst [vmem:[#allocation12_spill] sm:$0xff] %v4534_v18 }
 0x23a   :  { %v4288_v23 = vsel %vm903_vm10, %v898_v20, %v4192_v21  ;;  %v906_v60 = vsel %vm903_vm10, %v898_v20, 0.0  ;;  %v1025_v25 = vadd.f32 1.0, %v3263_v54 }
 0x23b   :  { %v3265_v53 = vpop.eup %3264  ;;  %v907_v24 = vpack.c.bf16 %v906_v60, %v906_v60  ;;  %v1070_v33 = vpack.c.bf16 %v4288_v23, %v4288_v23  ;;  %v4546_v60 = vld [vmem:[%s5548_s0 + $0x8] sm:$0xff]  }
 0x23c   :  { %3268 = vrcp.f32 %v1025_v25  ;;  %v1034_v29 = vadd.f32 1.0, %v3265_v53  ;;  %v3267_v21 = vpop.eup %3266 }
 0x23d   :  { %909 = vst [vmem:[#allocation6 + $0x1] sm:$0x1] %v907_v24  ;;  %3270 = vtanh.f32 %v1037_v56  ;;  %1104 = vmatmul.mubr.bf16.vlgmr.msra.gmra.mrb[16].mxu0 %v1070_v33  ;;  %1145 = vmatmul.mubr.bf16.vlgmr.msra.gmra.mrb[16].mxu1 %v1070_v33 }
 0x23e   :  { %3272 = vrcp.f32 %v1034_v29  ;;  %1226 = vmatpush1.bf16.msra.mxu0 %v3909_v38  ;;  %1267 = vmatpush1.bf16.msra.mxu1 %v3914_v39 }
 0x23f   :  { %1227 = vmatprep.subr.bf16.mxu0 %v3921_v40  ;;  %1268 = vmatprep.subr.bf16.mxu1 %v3928_v41  ;;  %v1045_v41 = vadd.f32 1.0, %v3267_v21 }
 0x240   :  { %1257 = vmatprep.mubr.bf16.mxu0 %v5680_v3  ;;  %1298 = vmatprep.mubr.bf16.mxu1 %v5680_v3 }
 0x241   :  { %3274 = vrcp.f32 %v1045_v41 }
 0x242   :  { %1228 = vmatpush1.bf16.msra.mxu0 %v3933_v42  ;;  %1269 = vmatpush1.bf16.msra.mxu1 %v3940_v43 }
 0x243   :  { %1229 = vmatprep.subr.bf16.mxu0 %v3947_v44  ;;  %1270 = vmatprep.subr.bf16.mxu1 %v3952_v45  ;;  %v1056_v44 = vpop.permute.xlu1 %1055 }
 0x244   :  { %vm1057_vm11 = vcmp.eq.s32.totalorder %v1056_v44, 1 }
 0x246   :  { %v3269_v38 = vpop.eup %3268  ;;  %1230 = vmatpush1.bf16.msra.mxu0 %v3959_v46  ;;  %1271 = vmatpush1.bf16.msra.mxu1 %v3964_v47 }
 0x247   :  { %v3271_v39 = vpop.eup %3270  ;;  %1231 = vmatprep.subr.bf16.mxu0 %v3971_v48  ;;  %1272 = vmatprep.subr.bf16.mxu1 %v3978_v49 }
 0x248   :  { %v3273_v40 = vpop.eup %3272  ;;  %v1049_v42 = vmul.f32 %v3271_v39, %v3269_v38 }
 0x249   :  { %v1048_v43 = vmul.f32 %v3273_v40, %v4216_v28  ;;  %v1069_v40 = vunpack.c.l.bf16 %v4546_v60 }
 0x24a   :  { %1232 = vmatpush1.bf16.msra.mxu0 %v3990_v51  ;;  %1273 = vmatpush1.bf16.msra.mxu1 %v3995_v52 }
 0x24b   :  { %1233 = vmatprep.subr.bf16.mxu0 %v5682_v55  ;;  %1274 = vmatprep.subr.bf16.mxu1 %v5683_v26  ;;  %v1050_v45 = vadd.f32 %v1049_v42, %v1048_v43  ;;  %v3275_v47 = vpop.eup %3274  ;;  %v4358_v26 = vld [vmem:[%s5551_s3 + $0x8] ss:$16 sps:$4 sm:$0xff]  }
 0x24d   :  { %3276 = vtanh.f32 %v1050_v45  ;;  %v4314_v46 = vsel %vm1057_vm11, %v1050_v45, %v4216_v28  ;;  %v4364_v28 = vld [vmem:[%s5551_s3 + $0x24] ss:$16 sps:$4 sm:$0xff]  }
 0x24e   :  { %1234 = vmatpush1.bf16.msra.mxu0 %v5684_v35  ;;  %1275 = vmatpush1.bf16.msra.mxu1 %v5685_v31  ;;  %v4370_v35 = vld [vmem:[%s5551_s3 + $0x2c] ss:$16 sps:$4 sm:$0xff]   ;;  %v4378_v31 = vld [vmem:[%s5551_s3 + $0x20] ss:$16 sps:$4 sm:$0xff]  }
 0x24f   :  { %1235 = vmatprep.subr.bf16.mxu0 %v5686_v22  ;;  %1276 = vmatprep.subr.bf16.mxu1 %v5687_v57  ;;  %v4384_v22 = vld [vmem:[%s5551_s3 + $0x28] ss:$16 sps:$4 sm:$0xff]   ;;  %v4390_v57 = vld [vmem:[%s5551_s3 + $0x44] ss:$16 sps:$4 sm:$0xff]  }
 0x252   :  { %1236 = vmatpush1.bf16.msra.mxu0 %v5688_v36  ;;  %1277 = vmatpush1.bf16.msra.mxu1 %v5689_v50  ;;  %v4396_v36 = vld [vmem:[%s5551_s3 + $0x4c] ss:$16 sps:$4 sm:$0xff]   ;;  %v4402_v50 = vld [vmem:[%s5551_s3 + $0x40] ss:$16 sps:$4 sm:$0xff]  }
 0x253   :  { %1237 = vmatprep.subr.bf16.mxu0 %v5690_v58  ;;  %1278 = vmatprep.subr.bf16.mxu1 %v5691_v63  ;;  %v4408_v58 = vld [vmem:[%s5551_s3 + $0x48] ss:$16 sps:$4 sm:$0xff]   ;;  %v4414_v63 = vld [vmem:[%s5551_s3 + $0x64] ss:$16 sps:$4 sm:$0xff]  }
 0x256   :  { %1238 = vmatpush1.bf16.msra.mxu0 %v5692_v34  ;;  %1279 = vmatpush1.bf16.msra.mxu1 %v4086_v59  ;;  %v4420_v34 = vld [vmem:[%s5551_s3 + $0x6c] ss:$16 sps:$4 sm:$0xff]  }
 0x257   :  { %v3277_v48 = vpop.eup %3276  ;;  %1239 = vmatprep.subr.bf16.mxu0 %v4094_v2  ;;  %1280 = vmatprep.subr.bf16.mxu1 %v5693_v61  ;;  %v4340_v2 = vld [vmem:[%s5551_s3 + $0x4] ss:$16 sps:$4 sm:$0xff]   ;;  %v4426_v61 = vld [vmem:[%s5551_s3 + $0x60] ss:$16 sps:$4 sm:$0xff]  }
 0x258   :  { %v1052_v49 = vmul.f32 %v3277_v48, %v3275_v47 }
 0x25a   :  { %1240 = vmatpush1.bf16.msra.mxu0 %v4105_v62  ;;  %1281 = vmatpush1.bf16.msra.mxu1 %v4113_v37  ;;  %v4332_v51 = vsel %vm1057_vm11, %v1052_v49, %v4234_v32  ;;  %v1060_v52 = vsel %vm1057_vm11, %v1052_v49, 0.0  ;;  %v4346_v62 = vld [vmem:[%s5551_s3 + $0xc] ss:$16 sps:$4 sm:$0xff]   ;;  %v4352_v37 = vld [vmem:[%s5551_s3] ss:$16 sps:$4 sm:$0xff]  }
 0x25b   :  { %v1061_v55 = vpack.c.bf16 %v1060_v52, %v1060_v52  ;;  %v1224_v59 = vpack.c.bf16 %v4332_v51, %v4332_v51  ;;  %1379 = vmatprep.subr.bf16.mxu0 %v4340_v2  ;;  %1420 = vmatprep.subr.bf16.mxu1 %v4346_v62  ;;  %v4432_v32 = vld [vmem:[%s5551_s3 + $0x68] ss:$16 sps:$4 sm:$0xff]  }
 0x25d   :  { %1063 = vst [vmem:[#allocation8 + $0x6] sm:$0x1] %v1061_v55  ;;  %1258 = vmatmul.mubr.bf16.vlgmr.msra.gmra.mrb[20].mxu0 %v1224_v59  ;;  %1299 = vmatmul.mubr.bf16.vlgmr.msra.gmra.mrb[20].mxu1 %v1224_v59 }
 0x25e   :  { %1380 = vmatpush1.bf16.msra.mxu0 %v4352_v37  ;;  %1421 = vmatpush1.bf16.msra.mxu1 %v4358_v26 }
 0x25f   :  { %1381 = vmatprep.subr.bf16.mxu0 %v4364_v28  ;;  %1422 = vmatprep.subr.bf16.mxu1 %v4370_v35 }
 0x260   :  { %1411 = vmatprep.mubr.bf16.mxu0 %v5680_v3  ;;  %1452 = vmatprep.mubr.bf16.mxu1 %v5680_v3 }
 0x262   :  { %1382 = vmatpush1.bf16.msra.mxu0 %v4378_v31  ;;  %1423 = vmatpush1.bf16.msra.mxu1 %v4384_v22 }
 0x263   :  { %1383 = vmatprep.subr.bf16.mxu0 %v4390_v57  ;;  %1424 = vmatprep.subr.bf16.mxu1 %v4396_v36 }
 0x266   :  { %1384 = vmatpush1.bf16.msra.mxu0 %v4402_v50  ;;  %1425 = vmatpush1.bf16.msra.mxu1 %v4408_v58 }
 0x267   :  { %1385 = vmatprep.subr.bf16.mxu0 %v4414_v63  ;;  %1426 = vmatprep.subr.bf16.mxu1 %v4420_v34 }
 0x26a   :  { %1386 = vmatpush1.bf16.msra.mxu0 %v4426_v61  ;;  %1427 = vmatpush1.bf16.msra.mxu1 %v4432_v32 }
 0x26b   :  { %1387 = vmatprep.subr.bf16.mxu0 %v4438_v0  ;;  %1428 = vmatprep.subr.bf16.mxu1 %v4444_v1 }
 0x26e   :  { %1388 = vmatpush1.bf16.msra.mxu0 %v4450_v4  ;;  %1429 = vmatpush1.bf16.msra.mxu1 %v4456_v5 }
 0x26f   :  { %1389 = vmatprep.subr.bf16.mxu0 %v4462_v6  ;;  %1430 = vmatprep.subr.bf16.mxu1 %v4468_v7 }
 0x272   :  { %1390 = vmatpush1.bf16.msra.mxu0 %v4474_v8  ;;  %1431 = vmatpush1.bf16.msra.mxu1 %v4480_v9 }
 0x273   :  { %1391 = vmatprep.subr.bf16.mxu0 %v4486_v10  ;;  %1432 = vmatprep.subr.bf16.mxu1 %v4492_v11 }
 0x276   :  { %1392 = vmatpush1.bf16.msra.mxu0 %v4498_v12  ;;  %1433 = vmatpush1.bf16.msra.mxu1 %v4504_v14 }
 0x277   :  { %1393 = vmatprep.subr.bf16.mxu0 %v4510_v27  ;;  %1434 = vmatprep.subr.bf16.mxu1 %v4516_v15 }
 0x27a   :  { %1394 = vmatpush1.bf16.msra.mxu0 %v4522_v16  ;;  %1435 = vmatpush1.bf16.msra.mxu1 %v4528_v17 }
 0x27b   :  { %1533 = vmatprep.subr.bf16.mxu0 %v4534_v18  ;;  %1574 = vmatprep.subr.bf16.mxu1 %v4540_v19 }
 0x310   :  { %v1105_v20 = vpop.f32.mrb[16].mxu0  ;;  %v1146_v54 = vpop.f32.mrb[16].mxu1 }
 0x311   :  { %v1107_v56 = vpop.f32.mrb[17].mxu0  ;;  %v1148_v25 = vpop.f32.mrb[17].mxu1 }
 0x312   :  { %v1157_v53 = vcombine.low %v1105_v20, %v1107_v56  ;;  %v1158_v24 = vcombine.low %v1146_v54, %v1148_v25  ;;  %v1109_v33 = vpop.f32.mrb[18].mxu0  ;;  %v1150_v29 = vpop.f32.mrb[18].mxu1 }
 0x313   :  { %v1110_v21 = vpop.f32.mrb[19].mxu0  ;;  %v1151_v38 = vpop.f32.mrb[19].mxu1 }
 0x314   :  { %v1165_v39 = vrot.slane %v1157_v53, %v4169_v30  ;;  %v1172_v41 = vrot.slane %v1158_v24, %v4169_v30  ;;  %v4554_v24 = vld [vmem:[%s5549_s1 + $0x10] sm:$0xff]  }
 0x316   :  { %v1173_v42 = vcombine.low %v1165_v39, %v1172_v41 }
 0x318   :  { %v1175_v43 = vadd.f32 %v1173_v42, %v1069_v40 }
 0x31a   :  { %v3052_v44 = vmul.f32 -1.442695, %v1175_v43  ;;  %v1183_v45 = vrot.slane %v1175_v43, 2  ;;  %v1194_v48 = vrot.slane %v1175_v43, 6  ;;  %v1191_v55 = vrot.slane %v1175_v43, 4 }
 0x31c   :  { %3278 = vpow2.f32 %v3052_v44  ;;  %v3053_v47 = vmul.f32 -1.442695, %v1183_v45  ;;  %v3054_v49 = vmul.f32 -1.442695, %v1194_v48 }
 0x31e   :  { %3280 = vpow2.f32 %v3053_v47  ;;  %v1223_v47 = vunpack.c.h.bf16 %v4554_v24 }
 0x31f   :  { %3282 = vpow2.f32 %v3054_v49 }
 0x326   :  { %v3279_v52 = vpop.eup %3278 }
 0x327   :  { %v1179_v59 = vadd.f32 1.0, %v3279_v52 }
 0x328   :  { %v3281_v20 = vpop.eup %3280 }
 0x329   :  { %3284 = vrcp.f32 %v1179_v59  ;;  %v1188_v54 = vadd.f32 1.0, %v3281_v20  ;;  %v3283_v29 = vpop.eup %3282 }
 0x32a   :  { %3286 = vtanh.f32 %v1191_v55  ;;  %v1199_v52 = vadd.f32 1.0, %v3283_v29 }
 0x32b   :  { %3288 = vrcp.f32 %v1188_v54 }
 0x32c   :  { %3290 = vrcp.f32 %v1199_v52 }
 0x330   :  { %v1259_v56 = vpop.f32.mrb[20].mxu0  ;;  %v1300_v25 = vpop.f32.mrb[20].mxu1 }
 0x331   :  { %v1261_v53 = vpop.f32.mrb[21].mxu0  ;;  %v1302_v33 = vpop.f32.mrb[21].mxu1 }
 0x332   :  { %v1311_v21 = vcombine.low %v1259_v56, %v1261_v53  ;;  %v1312_v38 = vcombine.low %v1300_v25, %v1302_v33  ;;  %v1263_v39 = vpop.f32.mrb[22].mxu0  ;;  %v1304_v40 = vpop.f32.mrb[22].mxu1 }
 0x333   :  { %v3285_v41 = vpop.eup %3284  ;;  %v1264_v42 = vpop.f32.mrb[23].mxu0 }
 0x334   :  { %v1305_v43 = vpop.f32.mrb[23].mxu1  ;;  %v3287_v44 = vpop.eup %3286  ;;  %v1319_v45 = vrot.slane %v1311_v21, %v4169_v30  ;;  %v1326_v48 = vrot.slane %v1312_v38, %v4169_v30 }
 0x335   :  { %v3289_v49 = vpop.eup %3288  ;;  %v1203_v55 = vmul.f32 %v3287_v44, %v3285_v41  ;;  %v1210_v25 = vpop.permute.xlu0 %1209 }
 0x336   :  { %v1327_v59 = vcombine.low %v1319_v45, %v1326_v48  ;;  %v1202_v20 = vmul.f32 %v3289_v49, %v4284_v13  ;;  %vm1211_vm12 = vcmp.eq.s32.totalorder %v1210_v25, 1  ;;  %v3291_v39 = vpop.eup %3290  ;;  %v4606_v25 = vld [vmem:[%s5552_s4 + $0x28] ss:$16 sps:$4 sm:$0xff]  }
 0x338   :  { %v1329_v54 = vadd.f32 %v1327_v59, %v1223_v47  ;;  %v1204_v56 = vadd.f32 %v1203_v55, %v1202_v20  ;;  %v4574_v59 = vld [vmem:[%s5552_s4] ss:$16 sps:$4 sm:$0xff]   ;;  %v4586_v20 = vld [vmem:[%s5552_s4 + $0x24] ss:$16 sps:$4 sm:$0xff]  }
 0x33a   :  { %v3057_v53 = vmul.f32 -1.442695, %v1329_v54  ;;  %v1337_v33 = vrot.slane %v1329_v54, 2  ;;  %3292 = vtanh.f32 %v1204_v56  ;;  %v4562_v21 = vsel %vm1211_vm12, %v1204_v56, %v4284_v13  ;;  %v4600_v56 = vld [vmem:[%s5552_s4 + $0x20] ss:$16 sps:$4 sm:$0xff]  }
 0x33b   :  { %v1348_v29 = vrot.slane %v1329_v54, 6  ;;  %v1345_v43 = vrot.slane %v1329_v54, 4  ;;  %v4592_v54 = vld [vmem:[%s5552_s4 + $0x2c] ss:$16 sps:$4 sm:$0xff]  }
 0x33c   :  { %3294 = vpow2.f32 %v3057_v53  ;;  %v3058_v38 = vmul.f32 -1.442695, %v1337_v33  ;;  %v4612_v53 = vld [vmem:[%s5552_s4 + $0x44] ss:$16 sps:$4 sm:$0xff]   ;;  %v4618_v33 = vld [vmem:[%s5552_s4 + $0x4c] ss:$16 sps:$4 sm:$0xff]  }
 0x33d   :  { %v3059_v40 = vmul.f32 -1.442695, %v1348_v29 }
 0x33e   :  { %3296 = vpow2.f32 %v3058_v38 }
 0x33f   :  { %3298 = vpow2.f32 %v3059_v40  ;;  %v4624_v40 = vld [vmem:[%s5552_s4 + $0x40] ss:$16 sps:$4 sm:$0xff]  }
 0x344   :  { %v3293_v41 = vpop.eup %3292 }
 0x345   :  { %v1206_v44 = vmul.f32 %v3293_v41, %v3291_v39  ;;  %v4630_v41 = vld [vmem:[%s5552_s4 + $0x48] ss:$16 sps:$4 sm:$0xff]  }
 0x346   :  { %v3295_v42 = vpop.eup %3294 }
 0x347   :  { %v1333_v45 = vadd.f32 1.0, %v3295_v42  ;;  %v4566_v48 = vsel %vm1211_vm12, %v1206_v44, %v4288_v23  ;;  %v1214_v13 = vsel %vm1211_vm12, %v1206_v44, 0.0  ;;  %v4580_v23 = vld [vmem:[%s5552_s4 + $0x8] ss:$16 sps:$4 sm:$0xff]   ;;  %v4636_v44 = vld [vmem:[%s5552_s4 + $0x64] ss:$16 sps:$4 sm:$0xff]  }
 0x348   :  { %v3297_v47 = vpop.eup %3296  ;;  %v1215_v52 = vpack.c.bf16 %v1214_v13, %v1214_v13  ;;  %v1378_v55 = vpack.c.bf16 %v4566_v48, %v4566_v48 }
 0x349   :  { %3300 = vrcp.f32 %v1333_v45  ;;  %v1342_v49 = vadd.f32 1.0, %v3297_v47  ;;  %v3299_v38 = vpop.eup %3298  ;;  %v4642_v45 = vld [vmem:[%s5552_s4 + $0x6c] ss:$16 sps:$4 sm:$0xff]  }
 0x34a   :  { %3302 = vtanh.f32 %v1345_v43  ;;  %1217 = vst [vmem:[#allocation6 + $0x2] sm:$0x1] %v1215_v52  ;;  %1412 = vmatmul.mubr.bf16.vlgmr.msra.gmra.mrb[24].mxu0 %v1378_v55  ;;  %1453 = vmatmul.mubr.bf16.vlgmr.msra.gmra.mrb[24].mxu1 %v1378_v55  ;;  %v1353_v43 = vadd.f32 1.0, %v3299_v38  ;;  %v4649_v52 = vld [vmem:[%s5552_s4 + $0x60] ss:$16 sps:$4 sm:$0xff]  }
 0x34b   :  { %3304 = vrcp.f32 %v1342_v49  ;;  %1534 = vmatpush1.bf16.msra.mxu0 %v4574_v59  ;;  %1575 = vmatpush1.bf16.msra.mxu1 %v4580_v23  ;;  %v1364_v49 = vpop.permute.xlu1 %1363  ;;  %v4655_v55 = vld [vmem:[%s5552_s4 + $0x68] ss:$16 sps:$4 sm:$0xff]  }
 0x34c   :  { %1535 = vmatprep.subr.bf16.mxu0 %v4586_v20  ;;  %1576 = vmatprep.subr.bf16.mxu1 %v4592_v54  ;;  %5724 = vst [vmem:[#allocation14_spill] sm:$0xff] %v4655_v55  ;;  %vm1365_vm13 = vcmp.eq.s32.totalorder %v1364_v49, 1  ;;  %3306 = vrcp.f32 %v1353_v43  ;;  %v4677_v43 = vld [vmem:[%s5552_s4 + $0x80] ss:$16 sps:$4 sm:$0xff]  }
 0x34d   :  { %1565 = vmatprep.mubr.bf16.mxu0 %v5680_v3  ;;  %1606 = vmatprep.mubr.bf16.mxu1 %v5680_v3  ;;  %5727 = vst [vmem:[#allocation17_spill] sm:$0xff] %v4677_v43 }
 0x34f   :  { %1536 = vmatpush1.bf16.msra.mxu0 %v4600_v56  ;;  %1577 = vmatpush1.bf16.msra.mxu1 %v4606_v25 }
 0x350   :  { %1537 = vmatprep.subr.bf16.mxu0 %v4612_v53  ;;  %1578 = vmatprep.subr.bf16.mxu1 %v4618_v33 }
 0x353   :  { %v3301_v29 = vpop.eup %3300  ;;  %1538 = vmatpush1.bf16.msra.mxu0 %v4624_v40  ;;  %1579 = vmatpush1.bf16.msra.mxu1 %v4630_v41 }
 0x354   :  { %v3303_v39 = vpop.eup %3302  ;;  %1539 = vmatprep.subr.bf16.mxu0 %v4636_v44  ;;  %1580 = vmatprep.subr.bf16.mxu1 %v4642_v45 }
 0x355   :  { %v3305_v42 = vpop.eup %3304  ;;  %v1357_v47 = vmul.f32 %v3303_v39, %v3301_v29  ;;  %v4661_v29 = vld [vmem:[%s5552_s4 + $0x84] ss:$16 sps:$4 sm:$0xff]   ;;  %v4667_v39 = vld [vmem:[%s5552_s4 + $0x8c] ss:$16 sps:$4 sm:$0xff]  }
 0x356   :  { %v1356_v13 = vmul.f32 %v3305_v42, %v4314_v46  ;;  %5725 = vst [vmem:[#allocation15_spill] sm:$0xff] %v4661_v29  ;;  %5726 = vst [vmem:[#allocation16_spill] sm:$0xff] %v4667_v39 }
 0x357   :  { %1540 = vmatpush1.bf16.msra.mxu0 %v4649_v52  ;;  %1581 = vmatpush1.bf16.msra.mxu1 %v4655_v55  ;;  %v4754_v55 = vld [vmem:[%s5552_s4 + $0xe0] ss:$16 sps:$4 sm:$0xff]  }
 0x358   :  { %v1358_v38 = vadd.f32 %v1357_v47, %v1356_v13  ;;  %1541 = vmatprep.subr.bf16.mxu0 %v4661_v29  ;;  %1582 = vmatprep.subr.bf16.mxu1 %v4667_v39  ;;  %v4683_v47 = vld [vmem:[%s5552_s4 + $0x88] ss:$16 sps:$4 sm:$0xff]   ;;  %v4689_v13 = vld [vmem:[%s5552_s4 + $0xa4] ss:$16 sps:$4 sm:$0xff]   ;;  %v4743_v39 = vld [vmem:[%s5552_s4 + $0xec] ss:$16 sps:$4 sm:$0xff]  }
 0x359   :  { %5728 = vst [vmem:[#allocation18_spill] sm:$0xff] %v4683_v47  ;;  %5729 = vst [vmem:[#allocation19_spill] sm:$0xff] %v4689_v13 }
 0x35a   :  { %3308 = vtanh.f32 %v1358_v38  ;;  %v4672_v42 = vsel %vm1365_vm13, %v1358_v38, %v4314_v46  ;;  %v4695_v46 = vld [vmem:[%s5552_s4 + $0xac] ss:$16 sps:$4 sm:$0xff]   ;;  %v4701_v38 = vld [vmem:[%s5552_s4 + $0xa0] ss:$16 sps:$4 sm:$0xff]  }
 0x35b   :  { %1542 = vmatpush1.bf16.msra.mxu0 %v4677_v43  ;;  %1583 = vmatpush1.bf16.msra.mxu1 %v4683_v47  ;;  %5730 = vst [vmem:[#allocation20_spill] sm:$0xff] %v4695_v46  ;;  %5731 = vst [vmem:[#allocation21_spill] sm:$0xff] %v4701_v38  ;;  %v4707_v47 = vld [vmem:[%s5552_s4 + $0xa8] ss:$16 sps:$4 sm:$0xff]  }
 0x35c   :  { %1543 = vmatprep.subr.bf16.mxu0 %v4689_v13  ;;  %1584 = vmatprep.subr.bf16.mxu1 %v4695_v46  ;;  %5732 = vst [vmem:[#allocation22_spill] sm:$0xff] %v4707_v47  ;;  %v4713_v13 = vld [vmem:[%s5552_s4 + $0xc4] ss:$16 sps:$4 sm:$0xff]   ;;  %v4719_v46 = vld [vmem:[%s5552_s4 + $0xcc] ss:$16 sps:$4 sm:$0xff]  }
 0x35d   :  { %5733 = vst [vmem:[#allocation23_spill] sm:$0xff] %v4713_v13  ;;  %5734 = vst [vmem:[#allocation24_spill] sm:$0xff] %v4719_v46 }
 0x35f   :  { %1544 = vmatpush1.bf16.msra.mxu0 %v4701_v38  ;;  %1585 = vmatpush1.bf16.msra.mxu1 %v4707_v47  ;;  %v3307_v38 = vpop.eup %3306  ;;  %v4725_v47 = vld [vmem:[%s5552_s4 + $0xc0] ss:$16 sps:$4 sm:$0xff]  }
 0x360   :  { %1545 = vmatprep.subr.bf16.mxu0 %v4713_v13  ;;  %1586 = vmatprep.subr.bf16.mxu1 %v4719_v46  ;;  %5735 = vst [vmem:[#allocation25_spill] sm:$0xff] %v4725_v47  ;;  %v4731_v13 = vld [vmem:[%s5552_s4 + $0xc8] ss:$16 sps:$4 sm:$0xff]   ;;  %v4737_v46 = vld [vmem:[%s5552_s4 + $0xe4] ss:$16 sps:$4 sm:$0xff]  }
 0x361   :  { %5736 = vst [vmem:[#allocation26_spill] sm:$0xff] %v4731_v13  ;;  %5737 = vst [vmem:[#allocation39_spill] sm:$0xff] %v4737_v46 }
 0x363   :  { %1546 = vmatpush1.bf16.msra.mxu0 %v4725_v47  ;;  %1587 = vmatpush1.bf16.msra.mxu1 %v4731_v13 }
 0x364   :  { %v3309_v43 = vpop.eup %3308  ;;  %1547 = vmatprep.subr.bf16.mxu0 %v4737_v46  ;;  %1588 = vmatprep.subr.bf16.mxu1 %v4743_v39  ;;  %v4760_v46 = vld [vmem:[%s5552_s4 + $0xe8] ss:$16 sps:$4 sm:$0xff]  }
 0x365   :  { %v1360_v47 = vmul.f32 %v3309_v43, %v3307_v38 }
 0x367   :  { %v4748_v29 = vsel %vm1365_vm13, %v1360_v47, %v4332_v51  ;;  %v1368_v13 = vsel %vm1365_vm13, %v1360_v47, 0.0  ;;  %1548 = vmatpush1.bf16.msra.mxu0 %v4754_v55  ;;  %1589 = vmatpush1.bf16.msra.mxu1 %v4760_v46 }
 0x368   :  { %v1369_v43 = vpack.c.bf16 %v1368_v13, %v1368_v13  ;;  %v1532_v51 = vpack.c.bf16 %v4748_v29, %v4748_v29  ;;  %1687 = vmatprep.subr.bf16.mxu0 %v4340_v2  ;;  %1728 = vmatprep.subr.bf16.mxu1 %v4346_v62 }
 0x36a   :  { %1371 = vst [vmem:[#allocation8 + $0x5] sm:$0x1] %v1369_v43  ;;  %1566 = vmatmul.mubr.bf16.vlgmr.msra.gmra.mrb[28].mxu0 %v1532_v51  ;;  %1607 = vmatmul.mubr.bf16.vlgmr.msra.gmra.mrb[28].mxu1 %v1532_v51 }
 0x36b   :  { %1688 = vmatpush1.bf16.msra.mxu0 %v4352_v37  ;;  %1729 = vmatpush1.bf16.msra.mxu1 %v4358_v26 }
 0x36c   :  { %1689 = vmatprep.subr.bf16.mxu0 %v4364_v28  ;;  %1730 = vmatprep.subr.bf16.mxu1 %v4370_v35 }
 0x36d   :  { %1719 = vmatprep.mubr.bf16.mxu0 %v5680_v3  ;;  %1760 = vmatprep.mubr.bf16.mxu1 %v5680_v3 }
 0x36f   :  { %1690 = vmatpush1.bf16.msra.mxu0 %v4378_v31  ;;  %1731 = vmatpush1.bf16.msra.mxu1 %v4384_v22 }
 0x370   :  { %1691 = vmatprep.subr.bf16.mxu0 %v4390_v57  ;;  %1732 = vmatprep.subr.bf16.mxu1 %v4396_v36 }
 0x373   :  { %1692 = vmatpush1.bf16.msra.mxu0 %v4402_v50  ;;  %1733 = vmatpush1.bf16.msra.mxu1 %v4408_v58 }
 0x374   :  { %1693 = vmatprep.subr.bf16.mxu0 %v4414_v63  ;;  %1734 = vmatprep.subr.bf16.mxu1 %v4420_v34 }
 0x377   :  { %1694 = vmatpush1.bf16.msra.mxu0 %v4426_v61  ;;  %1735 = vmatpush1.bf16.msra.mxu1 %v4432_v32 }
 0x378   :  { %1695 = vmatprep.subr.bf16.mxu0 %v4438_v0  ;;  %1736 = vmatprep.subr.bf16.mxu1 %v4444_v1 }
 0x37b   :  { %1696 = vmatpush1.bf16.msra.mxu0 %v4450_v4  ;;  %1737 = vmatpush1.bf16.msra.mxu1 %v4456_v5 }
 0x37c   :  { %1697 = vmatprep.subr.bf16.mxu0 %v4462_v6  ;;  %1738 = vmatprep.subr.bf16.mxu1 %v4468_v7 }
 0x37f   :  { %1698 = vmatpush1.bf16.msra.mxu0 %v4474_v8  ;;  %1739 = vmatpush1.bf16.msra.mxu1 %v4480_v9 }
 0x380   :  { %1699 = vmatprep.subr.bf16.mxu0 %v4486_v10  ;;  %1740 = vmatprep.subr.bf16.mxu1 %v4492_v11 }
 0x383   :  { %1700 = vmatpush1.bf16.msra.mxu0 %v4498_v12  ;;  %1741 = vmatpush1.bf16.msra.mxu1 %v4504_v14 }
 0x384   :  { %1701 = vmatprep.subr.bf16.mxu0 %v4510_v27  ;;  %1742 = vmatprep.subr.bf16.mxu1 %v4516_v15 }
 0x387   :  { %1702 = vmatpush1.bf16.msra.mxu0 %v4522_v16  ;;  %1743 = vmatpush1.bf16.msra.mxu1 %v4528_v17  ;;  %v1377_v16 = vunpack.c.h.bf16 %v4546_v60 }
 0x388   :  { %1841 = vmatprep.subr.bf16.mxu0 %v4534_v18  ;;  %1882 = vmatprep.subr.bf16.mxu1 %v4540_v19 }
 0x41d   :  { %v1413_v49 = vpop.f32.mrb[24].mxu0  ;;  %v1454_v47 = vpop.f32.mrb[24].mxu1 }
 0x41e   :  { %v1415_v13 = vpop.f32.mrb[25].mxu0  ;;  %v1456_v38 = vpop.f32.mrb[25].mxu1 }
 0x41f   :  { %v1465_v43 = vcombine.low %v1413_v49, %v1415_v13  ;;  %v1466_v51 = vcombine.low %v1454_v47, %v1456_v38  ;;  %v1417_v12 = vpop.f32.mrb[26].mxu0  ;;  %v1458_v14 = vpop.f32.mrb[26].mxu1 }
 0x420   :  { %v1418_v11 = vpop.f32.mrb[27].mxu0  ;;  %v1459_v27 = vpop.f32.mrb[27].mxu1 }
 0x421   :  { %v1473_v15 = vrot.slane %v1465_v43, %v4169_v30  ;;  %v1480_v17 = vrot.slane %v1466_v51, %v4169_v30 }
 0x423   :  { %v1481_v10 = vcombine.low %v1473_v15, %v1480_v17 }
 0x425   :  { %v1483_v18 = vadd.f32 %v1481_v10, %v1377_v16 }
 0x427   :  { %v3062_v9 = vmul.f32 -1.442695, %v1483_v18  ;;  %v1491_v19 = vrot.slane %v1483_v18, 2  ;;  %v1502_v7 = vrot.slane %v1483_v18, 6  ;;  %v1499_v12 = vrot.slane %v1483_v18, 4 }
 0x429   :  { %3310 = vpow2.f32 %v3062_v9  ;;  %v3063_v8 = vmul.f32 -1.442695, %v1491_v19  ;;  %v3064_v49 = vmul.f32 -1.442695, %v1502_v7 }
 0x42b   :  { %3312 = vpow2.f32 %v3063_v8 }
 0x42c   :  { %3314 = vpow2.f32 %v3064_v49  ;;  %v1531_v49 = vunpack.c.l.bf16 %v4554_v24 }
 0x433   :  { %v3311_v47 = vpop.eup %3310 }
 0x434   :  { %v1487_v14 = vadd.f32 1.0, %v3311_v47 }
 0x435   :  { %v3313_v11 = vpop.eup %3312 }
 0x436   :  { %3316 = vrcp.f32 %v1487_v14  ;;  %v1496_v27 = vadd.f32 1.0, %v3313_v11  ;;  %v3315_v16 = vpop.eup %3314 }
 0x437   :  { %3318 = vtanh.f32 %v1499_v12  ;;  %v1507_v14 = vadd.f32 1.0, %v3315_v16 }
 0x438   :  { %3320 = vrcp.f32 %v1496_v27 }
 0x439   :  { %3322 = vrcp.f32 %v1507_v14 }
 0x43d   :  { %v1567_v60 = vpop.f32.mrb[28].mxu0  ;;  %v1608_v13 = vpop.f32.mrb[28].mxu1 }
 0x43e   :  { %v1569_v15 = vpop.f32.mrb[29].mxu0  ;;  %v1610_v10 = vpop.f32.mrb[29].mxu1 }
 0x43f   :  { %v1619_v17 = vcombine.low %v1567_v60, %v1569_v15  ;;  %v1620_v9 = vcombine.low %v1608_v13, %v1610_v10  ;;  %v1571_v19 = vpop.f32.mrb[30].mxu0  ;;  %v1612_v8 = vpop.f32.mrb[30].mxu1 }
 0x440   :  { %v3317_v38 = vpop.eup %3316  ;;  %v1572_v7 = vpop.f32.mrb[31].mxu0 }
 0x441   :  { %v1613_v43 = vpop.f32.mrb[31].mxu1  ;;  %v3319_v18 = vpop.eup %3318  ;;  %v1627_v51 = vrot.slane %v1619_v17, %v4169_v30  ;;  %v1634_v47 = vrot.slane %v1620_v9, %v4169_v30 }
 0x442   :  { %v3321_v12 = vpop.eup %3320  ;;  %v1511_v11 = vmul.f32 %v3319_v18, %v3317_v38  ;;  %v1518_v15 = vpop.permute.xlu0 %1517 }
 0x443   :  { %v1635_v27 = vcombine.low %v1627_v51, %v1634_v47  ;;  %v1510_v6 = vmul.f32 %v3321_v12, %v4562_v21  ;;  %vm1519_vm14 = vcmp.eq.s32.totalorder %v1518_v15, 1  ;;  %v3323_v9 = vpop.eup %3322 }
 0x445   :  { %v1637_v60 = vadd.f32 %v1635_v27, %v1531_v49  ;;  %v1512_v13 = vadd.f32 %v1511_v11, %v1510_v6 }
 0x447   :  { %v3067_v10 = vmul.f32 -1.442695, %v1637_v60  ;;  %v1645_v19 = vrot.slane %v1637_v60, 2  ;;  %3324 = vtanh.f32 %v1512_v13  ;;  %v4810_v17 = vsel %vm1519_vm14, %v1512_v13, %v4562_v21 }
 0x448   :  { %v1656_v16 = vrot.slane %v1637_v60, 6  ;;  %v1653_v43 = vrot.slane %v1637_v60, 4 }
 0x449   :  { %3326 = vpow2.f32 %v3067_v10  ;;  %v3068_v24 = vmul.f32 -1.442695, %v1645_v19  ;;  %v1672_v19 = vpop.permute.xlu1 %1671 }
 0x44a   :  { %v3069_v8 = vmul.f32 -1.442695, %v1656_v16  ;;  %vm1673_vm15 = vcmp.eq.s32.totalorder %v1672_v19, 1 }
 0x44b   :  { %3328 = vpow2.f32 %v3068_v24  ;;  %v5738_v24 = vld [vmem:[#allocation14_spill] sm:$0xff] }
 0x44c   :  { %3330 = vpow2.f32 %v3069_v8  ;;  %v5740_v8 = vld [vmem:[#allocation16_spill] sm:$0xff] }
 0x451   :  { %v3325_v38 = vpop.eup %3324 }
 0x452   :  { %v1514_v6 = vmul.f32 %v3325_v38, %v3323_v9  ;;  %v5739_v9 = vld [vmem:[#allocation15_spill] sm:$0xff] }
 0x453   :  { %v3327_v7 = vpop.eup %3326 }
 0x454   :  { %v1641_v18 = vadd.f32 1.0, %v3327_v7  ;;  %v4814_v49 = vsel %vm1519_vm14, %v1514_v6, %v4566_v48  ;;  %v1522_v21 = vsel %vm1519_vm14, %v1514_v6, 0.0  ;;  %v5741_v7 = vld [vmem:[#allocation17_spill] sm:$0xff]  ;;  %v5743_v6 = vld [vmem:[#allocation19_spill] sm:$0xff] }
 0x455   :  { %v3329_v51 = vpop.eup %3328  ;;  %v1523_v12 = vpack.c.bf16 %v1522_v21, %v1522_v21  ;;  %v1686_v14 = vpack.c.bf16 %v4814_v49, %v4814_v49  ;;  %v5746_v21 = vld [vmem:[#allocation22_spill] sm:$0xff] }
 0x456   :  { %3332 = vrcp.f32 %v1641_v18  ;;  %v1650_v47 = vadd.f32 1.0, %v3329_v51  ;;  %v3331_v48 = vpop.eup %3330  ;;  %v5744_v18 = vld [vmem:[#allocation20_spill] sm:$0xff]  ;;  %v5745_v51 = vld [vmem:[#allocation21_spill] sm:$0xff] }
 0x457   :  { %3334 = vtanh.f32 %v1653_v43  ;;  %1525 = vst [vmem:[#allocation6 + $0x3] sm:$0x1] %v1523_v12  ;;  %1720 = vmatmul.mubr.bf16.vlgmr.msra.gmra.mrb[32].mxu0 %v1686_v14  ;;  %1761 = vmatmul.mubr.bf16.vlgmr.msra.gmra.mrb[32].mxu1 %v1686_v14  ;;  %v1661_v13 = vadd.f32 1.0, %v3331_v48  ;;  %v5742_v43 = vld [vmem:[#allocation18_spill] sm:$0xff]  ;;  %v5748_v12 = vld [vmem:[#allocation24_spill] sm:$0xff] }
 0x458   :  { %3336 = vrcp.f32 %v1650_v47  ;;  %1842 = vmatpush1.bf16.msra.mxu0 %v4574_v59  ;;  %1883 = vmatpush1.bf16.msra.mxu1 %v4580_v23  ;;  %v5747_v47 = vld [vmem:[#allocation23_spill] sm:$0xff] }
 0x459   :  { %1843 = vmatprep.subr.bf16.mxu0 %v4586_v20  ;;  %1884 = vmatprep.subr.bf16.mxu1 %v4592_v54  ;;  %3338 = vrcp.f32 %v1661_v13 }
 0x45a   :  { %1873 = vmatprep.mubr.bf16.mxu0 %v5680_v3  ;;  %1914 = vmatprep.mubr.bf16.mxu1 %v5680_v3 }
 0x45c   :  { %1844 = vmatpush1.bf16.msra.mxu0 %v4600_v56  ;;  %1885 = vmatpush1.bf16.msra.mxu1 %v4606_v25 }
 0x45d   :  { %1845 = vmatprep.subr.bf16.mxu0 %v4612_v53  ;;  %1886 = vmatprep.subr.bf16.mxu1 %v4618_v33 }
 0x460   :  { %v3333_v11 = vpop.eup %3332  ;;  %1846 = vmatpush1.bf16.msra.mxu0 %v4624_v40  ;;  %1887 = vmatpush1.bf16.msra.mxu1 %v4630_v41 }
 0x461   :  { %v3335_v27 = vpop.eup %3334  ;;  %1847 = vmatprep.subr.bf16.mxu0 %v4636_v44  ;;  %1888 = vmatprep.subr.bf16.mxu1 %v4642_v45 }
 0x462   :  { %v3337_v60 = vpop.eup %3336  ;;  %v1665_v15 = vmul.f32 %v3335_v27, %v3333_v11  ;;  %v5750_v11 = vld [vmem:[#allocation26_spill] sm:$0xff]  ;;  %v5751_v27 = vld [vmem:[#allocation39_spill] sm:$0xff] }
 0x463   :  { %v1664_v10 = vmul.f32 %v3337_v60, %v4672_v42  ;;  %v3339_v14 = vpop.eup %3338 }
 0x464   :  { %1848 = vmatpush1.bf16.msra.mxu0 %v4649_v52  ;;  %1889 = vmatpush1.bf16.msra.mxu1 %v5738_v24 }
 0x465   :  { %v1666_v16 = vadd.f32 %v1665_v15, %v1664_v10  ;;  %1849 = vmatprep.subr.bf16.mxu0 %v5739_v9  ;;  %1890 = vmatprep.subr.bf16.mxu1 %v5740_v8 }
 0x467   :  { %3340 = vtanh.f32 %v1666_v16  ;;  %v4840_v38 = vsel %vm1673_vm15, %v1666_v16, %v4672_v42  ;;  %v5749_v42 = vld [vmem:[#allocation25_spill] sm:$0xff] }
 0x468   :  { %1850 = vmatpush1.bf16.msra.mxu0 %v5741_v7  ;;  %1891 = vmatpush1.bf16.msra.mxu1 %v5742_v43 }
 0x469   :  { %1851 = vmatprep.subr.bf16.mxu0 %v5743_v6  ;;  %1892 = vmatprep.subr.bf16.mxu1 %v5744_v18 }
 0x46c   :  { %1852 = vmatpush1.bf16.msra.mxu0 %v5745_v51  ;;  %1893 = vmatpush1.bf16.msra.mxu1 %v5746_v21 }
 0x46d   :  { %1853 = vmatprep.subr.bf16.mxu0 %v5747_v47  ;;  %1894 = vmatprep.subr.bf16.mxu1 %v5748_v12 }
 0x470   :  { %1854 = vmatpush1.bf16.msra.mxu0 %v5749_v42  ;;  %1895 = vmatpush1.bf16.msra.mxu1 %v5750_v11 }
 0x471   :  { %v3341_v48 = vpop.eup %3340  ;;  %1855 = vmatprep.subr.bf16.mxu0 %v5751_v27  ;;  %1896 = vmatprep.subr.bf16.mxu1 %v4743_v39 }
 0x472   :  { %v1668_v60 = vmul.f32 %v3341_v48, %v3339_v14 }
 0x474   :  { %v4856_v13 = vsel %vm1673_vm15, %v1668_v60, %v4748_v29  ;;  %v1676_v15 = vsel %vm1673_vm15, %v1668_v60, 0.0  ;;  %1856 = vmatpush1.bf16.msra.mxu0 %v4754_v55  ;;  %1897 = vmatpush1.bf16.msra.mxu1 %v4760_v46 }
 0x475   :  { %v1677_v10 = vpack.c.bf16 %v1676_v15, %v1676_v15  ;;  %v1840_v16 = vpack.c.bf16 %v4856_v13, %v4856_v13  ;;  %1995 = vmatprep.subr.bf16.mxu0 %v4340_v2  ;;  %2036 = vmatprep.subr.bf16.mxu1 %v4346_v62  ;;  %v5752_v2 = vld [vmem:[#allocation27_spill] sm:$0xff]  ;;  %v5753_v62 = vld [vmem:[#allocation28_spill] sm:$0xff] }
 0x477   :  { %1679 = vst [vmem:[#allocation8 + $0x4] sm:$0x1] %v1677_v10  ;;  %1874 = vmatmul.mubr.bf16.vlgmr.msra.gmra.mrb[36].mxu0 %v1840_v16  ;;  %1915 = vmatmul.mubr.bf16.vlgmr.msra.gmra.mrb[36].mxu1 %v1840_v16 }
 0x478   :  { %1996 = vmatpush1.bf16.msra.mxu0 %v4352_v37  ;;  %2037 = vmatpush1.bf16.msra.mxu1 %v4358_v26  ;;  %v5754_v37 = vld [vmem:[#allocation29_spill] sm:$0xff]  ;;  %v5755_v26 = vld [vmem:[#allocation30_spill] sm:$0xff] }
 0x479   :  { %1997 = vmatprep.subr.bf16.mxu0 %v4364_v28  ;;  %2038 = vmatprep.subr.bf16.mxu1 %v4370_v35  ;;  %v5756_v28 = vld [vmem:[#allocation31_spill] sm:$0xff]  ;;  %v5757_v35 = vld [vmem:[#allocation32_spill] sm:$0xff] }
 0x47a   :  { %2027 = vmatprep.mubr.bf16.mxu0 %v5680_v3  ;;  %2068 = vmatprep.mubr.bf16.mxu1 %v5680_v3 }
 0x47c   :  { %1998 = vmatpush1.bf16.msra.mxu0 %v4378_v31  ;;  %2039 = vmatpush1.bf16.msra.mxu1 %v4384_v22  ;;  %v5758_v31 = vld [vmem:[#allocation33_spill] sm:$0xff]  ;;  %v5759_v22 = vld [vmem:[#allocation34_spill] sm:$0xff] }
 0x47d   :  { %1999 = vmatprep.subr.bf16.mxu0 %v4390_v57  ;;  %2040 = vmatprep.subr.bf16.mxu1 %v4396_v36  ;;  %v5760_v57 = vld [vmem:[#allocation35_spill] sm:$0xff]  ;;  %v5761_v36 = vld [vmem:[#allocation36_spill] sm:$0xff] }
 0x480   :  { %2000 = vmatpush1.bf16.msra.mxu0 %v4402_v50  ;;  %2041 = vmatpush1.bf16.msra.mxu1 %v4408_v58  ;;  %v5762_v50 = vld [vmem:[#allocation37_spill] sm:$0xff]  ;;  %v5763_v58 = vld [vmem:[#allocation38_spill] sm:$0xff] }
 0x481   :  { %2001 = vmatprep.subr.bf16.mxu0 %v4414_v63  ;;  %2042 = vmatprep.subr.bf16.mxu1 %v4420_v34  ;;  %v5764_v63 = vld [vmem:[#allocation12_spill] sm:$0xff]  ;;  %v5765_v34 = vld [vmem:[#allocation13_spill] sm:$0xff] }
 0x484   :  { %2002 = vmatpush1.bf16.msra.mxu0 %v4426_v61  ;;  %2043 = vmatpush1.bf16.msra.mxu1 %v4432_v32 }
 0x485   :  { %2003 = vmatprep.subr.bf16.mxu0 %v4438_v0  ;;  %2044 = vmatprep.subr.bf16.mxu1 %v4444_v1  ;;  %v4902_v1 = vld [vmem:[%s5548_s0 + $0x10] sm:$0xff]  }
 0x486   :  { %v1685_v10 = vunpack.c.l.bf16 %v4902_v1 }
 0x488   :  { %2004 = vmatpush1.bf16.msra.mxu0 %v4450_v4  ;;  %2045 = vmatpush1.bf16.msra.mxu1 %v4456_v5 }
 0x489   :  { %2005 = vmatprep.subr.bf16.mxu0 %v5752_v2  ;;  %2046 = vmatprep.subr.bf16.mxu1 %v5753_v62 }
 0x48c   :  { %2006 = vmatpush1.bf16.msra.mxu0 %v5754_v37  ;;  %2047 = vmatpush1.bf16.msra.mxu1 %v5755_v26 }
 0x48d   :  { %2007 = vmatprep.subr.bf16.mxu0 %v5756_v28  ;;  %2048 = vmatprep.subr.bf16.mxu1 %v5757_v35 }
 0x490   :  { %2008 = vmatpush1.bf16.msra.mxu0 %v5758_v31  ;;  %2049 = vmatpush1.bf16.msra.mxu1 %v5759_v22 }
 0x491   :  { %2009 = vmatprep.subr.bf16.mxu0 %v5760_v57  ;;  %2050 = vmatprep.subr.bf16.mxu1 %v5761_v36 }
 0x494   :  { %2010 = vmatpush1.bf16.msra.mxu0 %v5762_v50  ;;  %2051 = vmatpush1.bf16.msra.mxu1 %v5763_v58 }
 0x495   :  { %2149 = vmatprep.subr.bf16.mxu0 %v5764_v63  ;;  %2190 = vmatprep.subr.bf16.mxu1 %v5765_v34 }
 0x52a   :  { %v1721_v61 = vpop.f32.mrb[32].mxu0  ;;  %v1762_v32 = vpop.f32.mrb[32].mxu1 }
 0x52b   :  { %v1723_v0 = vpop.f32.mrb[33].mxu0  ;;  %v1764_v4 = vpop.f32.mrb[33].mxu1 }
 0x52c   :  { %v1773_v5 = vcombine.low %v1721_v61, %v1723_v0  ;;  %v1774_v29 = vcombine.low %v1762_v32, %v1764_v4  ;;  %v1725_v19 = vpop.f32.mrb[34].mxu0  ;;  %v1766_v14 = vpop.f32.mrb[34].mxu1  ;;  %v4910_v32 = vld [vmem:[%s5549_s1 + $0x8] sm:$0xff]  }
 0x52d   :  { %v1726_v48 = vpop.f32.mrb[35].mxu0  ;;  %v1767_v60 = vpop.f32.mrb[35].mxu1 }
 0x52e   :  { %v1781_v15 = vrot.slane %v1773_v5, %v4169_v30  ;;  %v1788_v16 = vrot.slane %v1774_v29, %v4169_v30 }
 0x530   :  { %v1789_v2 = vcombine.low %v1781_v15, %v1788_v16 }
 0x532   :  { %v1791_v62 = vadd.f32 %v1789_v2, %v1685_v10  ;;  %v1839_v2 = vunpack.c.h.bf16 %v4910_v32 }
 0x534   :  { %v3072_v37 = vmul.f32 -1.442695, %v1791_v62  ;;  %v1799_v26 = vrot.slane %v1791_v62, 2  ;;  %v1810_v35 = vrot.slane %v1791_v62, 6  ;;  %v1807_v57 = vrot.slane %v1791_v62, 4 }
 0x536   :  { %3342 = vpow2.f32 %v3072_v37  ;;  %v3073_v28 = vmul.f32 -1.442695, %v1799_v26  ;;  %v3074_v31 = vmul.f32 -1.442695, %v1810_v35 }
 0x538   :  { %3344 = vpow2.f32 %v3073_v28 }
 0x539   :  { %3346 = vpow2.f32 %v3074_v31 }
 0x540   :  { %v3343_v22 = vpop.eup %3342 }
 0x541   :  { %v1795_v36 = vadd.f32 1.0, %v3343_v22 }
 0x542   :  { %v3345_v50 = vpop.eup %3344 }
 0x543   :  { %3348 = vrcp.f32 %v1795_v36  ;;  %v1804_v58 = vadd.f32 1.0, %v3345_v50  ;;  %v3347_v4 = vpop.eup %3346  ;;  %v1826_v36 = vpop.permute.xlu0 %1825 }
 0x544   :  { %3350 = vtanh.f32 %v1807_v57  ;;  %v1815_v26 = vadd.f32 1.0, %v3347_v4  ;;  %vm1827_vm0 = vcmp.eq.s32.totalorder %v1826_v36, 1  ;;  %v5120_v36 = vld [vmem:[%s5551_s3 + $0xc4] ss:$16 sps:$4 sm:$0xff]  }
 0x545   :  { %3352 = vrcp.f32 %v1804_v58 }
 0x546   :  { %3354 = vrcp.f32 %v1815_v26  ;;  %v5084_v26 = vld [vmem:[%s5551_s3 + $0x80] ss:$16 sps:$4 sm:$0xff]  }
 0x54a   :  { %v1875_v63 = vpop.f32.mrb[36].mxu0  ;;  %v1916_v34 = vpop.f32.mrb[36].mxu1 }
 0x54b   :  { %v1877_v61 = vpop.f32.mrb[37].mxu0  ;;  %v1918_v0 = vpop.f32.mrb[37].mxu1 }
 0x54c   :  { %v1927_v5 = vcombine.low %v1875_v63, %v1877_v61  ;;  %v1928_v29 = vcombine.low %v1916_v34, %v1918_v0  ;;  %v1879_v19 = vpop.f32.mrb[38].mxu0  ;;  %v1920_v14 = vpop.f32.mrb[38].mxu1 }
 0x54d   :  { %v3349_v48 = vpop.eup %3348  ;;  %v1880_v60 = vpop.f32.mrb[39].mxu0 }
 0x54e   :  { %v1921_v15 = vpop.f32.mrb[39].mxu1  ;;  %v3351_v10 = vpop.eup %3350  ;;  %v1935_v16 = vrot.slane %v1927_v5, %v4169_v30  ;;  %v1942_v62 = vrot.slane %v1928_v29, %v4169_v30 }
 0x54f   :  { %v3353_v37 = vpop.eup %3352  ;;  %v1819_v28 = vmul.f32 %v3351_v10, %v3349_v48 }
 0x550   :  { %v1943_v35 = vcombine.low %v1935_v16, %v1942_v62  ;;  %v1818_v31 = vmul.f32 %v3353_v37, %v4810_v17  ;;  %v3355_v0 = vpop.eup %3354  ;;  %v5078_v37 = vld [vmem:[%s5551_s3 + $0x8c] ss:$16 sps:$4 sm:$0xff]  }
 0x552   :  { %v1945_v22 = vadd.f32 %v1943_v35, %v1839_v2  ;;  %v1820_v57 = vadd.f32 %v1819_v28, %v1818_v31  ;;  %v5090_v28 = vld [vmem:[%s5551_s3 + $0x88] ss:$16 sps:$4 sm:$0xff]   ;;  %v5096_v35 = vld [vmem:[%s5551_s3 + $0xa4] ss:$16 sps:$4 sm:$0xff]   ;;  %v5102_v31 = vld [vmem:[%s5551_s3 + $0xac] ss:$16 sps:$4 sm:$0xff]  }
 0x554   :  { %v3077_v50 = vmul.f32 -1.442695, %v1945_v22  ;;  %v1953_v58 = vrot.slane %v1945_v22, 2  ;;  %3356 = vtanh.f32 %v1820_v57  ;;  %v4918_v63 = vsel %vm1827_vm0, %v1820_v57, %v4810_v17  ;;  %v5114_v57 = vld [vmem:[%s5551_s3 + $0xa8] ss:$16 sps:$4 sm:$0xff]  }
 0x555   :  { %v1964_v61 = vrot.slane %v1945_v22, 6  ;;  %v1961_v19 = vrot.slane %v1945_v22, 4  ;;  %v5108_v22 = vld [vmem:[%s5551_s3 + $0xa0] ss:$16 sps:$4 sm:$0xff]  }
 0x556   :  { %3358 = vpow2.f32 %v3077_v50  ;;  %v3078_v34 = vmul.f32 -1.442695, %v1953_v58  ;;  %v5126_v50 = vld [vmem:[%s5551_s3 + $0xcc] ss:$16 sps:$4 sm:$0xff]   ;;  %v5132_v58 = vld [vmem:[%s5551_s3 + $0xc0] ss:$16 sps:$4 sm:$0xff]  }
 0x557   :  { %v3079_v4 = vmul.f32 -1.442695, %v1964_v61  ;;  %v5144_v61 = vld [vmem:[%s5551_s3 + $0xe4] ss:$16 sps:$4 sm:$0xff]  }
 0x558   :  { %3360 = vpow2.f32 %v3078_v34  ;;  %v5138_v34 = vld [vmem:[%s5551_s3 + $0xc8] ss:$16 sps:$4 sm:$0xff]  }
 0x559   :  { %3362 = vpow2.f32 %v3079_v4  ;;  %v5156_v4 = vld [vmem:[%s5551_s3 + $0xe0] ss:$16 sps:$4 sm:$0xff]  }
 0x55e   :  { %v3357_v5 = vpop.eup %3356 }
 0x55f   :  { %v1822_v14 = vmul.f32 %v3357_v5, %v3355_v0  ;;  %v5150_v0 = vld [vmem:[%s5551_s3 + $0xec] ss:$16 sps:$4 sm:$0xff]   ;;  %v5162_v5 = vld [vmem:[%s5551_s3 + $0xe8] ss:$16 sps:$4 sm:$0xff]  }
 0x560   :  { %v3359_v29 = vpop.eup %3358 }
 0x561   :  { %v1949_v48 = vadd.f32 1.0, %v3359_v29  ;;  %v4922_v15 = vsel %vm1827_vm0, %v1822_v14, %v4814_v49  ;;  %v1830_v17 = vsel %vm1827_vm0, %v1822_v14, 0.0  ;;  %v5168_v29 = vld [vmem:[%s5552_s4 + $0x4] ss:$16 sps:$4 sm:$0xff]  }
 0x562   :  { %v3361_v60 = vpop.eup %3360  ;;  %v1831_v16 = vpack.c.bf16 %v1830_v17, %v1830_v17  ;;  %v1994_v2 = vpack.c.bf16 %v4922_v15, %v4922_v15 }
 0x563   :  { %3364 = vrcp.f32 %v1949_v48  ;;  %v1958_v10 = vadd.f32 1.0, %v3361_v60  ;;  %v3363_v49 = vpop.eup %3362 }
 0x564   :  { %3366 = vtanh.f32 %v1961_v19  ;;  %1833 = vst [vmem:[#allocation6 + $0x4] sm:$0x1] %v1831_v16  ;;  %2028 = vmatmul.mubr.bf16.vlgmr.msra.gmra.mrb[40].mxu0 %v1994_v2  ;;  %2069 = vmatmul.mubr.bf16.vlgmr.msra.gmra.mrb[40].mxu1 %v1994_v2  ;;  %v5174_v19 = vld [vmem:[%s5552_s4 + $0xc] ss:$16 sps:$4 sm:$0xff]  }
 0x565   :  { %3368 = vrcp.f32 %v1958_v10  ;;  %2150 = vmatpush1.bf16.msra.mxu0 %v4574_v59  ;;  %2191 = vmatpush1.bf16.msra.mxu1 %v4580_v23 }
 0x566   :  { %2151 = vmatprep.subr.bf16.mxu0 %v4586_v20  ;;  %2192 = vmatprep.subr.bf16.mxu1 %v4592_v54  ;;  %v1969_v20 = vadd.f32 1.0, %v3363_v49 }
 0x567   :  { %2181 = vmatprep.mubr.bf16.mxu0 %v5680_v3  ;;  %2222 = vmatprep.mubr.bf16.mxu1 %v5680_v3 }
 0x568   :  { %3370 = vrcp.f32 %v1969_v20  ;;  %v1993_v20 = vunpack.c.h.bf16 %v4902_v1 }
 0x569   :  { %2152 = vmatpush1.bf16.msra.mxu0 %v4600_v56  ;;  %2193 = vmatpush1.bf16.msra.mxu1 %v4606_v25  ;;  %v1980_v25 = vpop.permute.xlu1 %1979 }
 0x56a   :  { %2153 = vmatprep.subr.bf16.mxu0 %v4612_v53  ;;  %2194 = vmatprep.subr.bf16.mxu1 %v4618_v33  ;;  %vm1981_vm1 = vcmp.eq.s32.totalorder %v1980_v25, 1 }
 0x56d   :  { %v3365_v59 = vpop.eup %3364  ;;  %2154 = vmatpush1.bf16.msra.mxu0 %v4624_v40  ;;  %2195 = vmatpush1.bf16.msra.mxu1 %v4630_v41 }
 0x56e   :  { %v3367_v62 = vpop.eup %3366  ;;  %2155 = vmatprep.subr.bf16.mxu0 %v4636_v44  ;;  %2196 = vmatprep.subr.bf16.mxu1 %v4642_v45 }
 0x56f   :  { %v3369_v23 = vpop.eup %3368  ;;  %v1973_v54 = vmul.f32 %v3367_v62, %v3365_v59 }
 0x570   :  { %v1972_v56 = vmul.f32 %v3369_v23, %v4840_v38 }
 0x571   :  { %2156 = vmatpush1.bf16.msra.mxu0 %v4649_v52  ;;  %2197 = vmatpush1.bf16.msra.mxu1 %v5738_v24 }
 0x572   :  { %v1974_v53 = vadd.f32 %v1973_v54, %v1972_v56  ;;  %2157 = vmatprep.subr.bf16.mxu0 %v5739_v9  ;;  %2198 = vmatprep.subr.bf16.mxu1 %v5740_v8  ;;  %v3371_v40 = vpop.eup %3370  ;;  %v4974_v8 = vld [vmem:[%s5551_s3 + $0x4] ss:$16 sps:$4 sm:$0xff]  }
 0x574   :  { %3372 = vtanh.f32 %v1974_v53  ;;  %v4948_v33 = vsel %vm1981_vm1, %v1974_v53, %v4840_v38  ;;  %v4998_v38 = vld [vmem:[%s5551_s3 + $0x24] ss:$16 sps:$4 sm:$0xff]  }
 0x575   :  { %2158 = vmatpush1.bf16.msra.mxu0 %v5741_v7  ;;  %2199 = vmatpush1.bf16.msra.mxu1 %v5742_v43  ;;  %v5004_v7 = vld [vmem:[%s5551_s3 + $0x2c] ss:$16 sps:$4 sm:$0xff]   ;;  %v5012_v43 = vld [vmem:[%s5551_s3 + $0x20] ss:$16 sps:$4 sm:$0xff]  }
 0x576   :  { %2159 = vmatprep.subr.bf16.mxu0 %v5743_v6  ;;  %2200 = vmatprep.subr.bf16.mxu1 %v5744_v18  ;;  %v5018_v6 = vld [vmem:[%s5551_s3 + $0x28] ss:$16 sps:$4 sm:$0xff]   ;;  %v5024_v18 = vld [vmem:[%s5551_s3 + $0x44] ss:$16 sps:$4 sm:$0xff]  }
 0x579   :  { %2160 = vmatpush1.bf16.msra.mxu0 %v5745_v51  ;;  %2201 = vmatpush1.bf16.msra.mxu1 %v5746_v21  ;;  %v5030_v51 = vld [vmem:[%s5551_s3 + $0x4c] ss:$16 sps:$4 sm:$0xff]   ;;  %v5036_v21 = vld [vmem:[%s5551_s3 + $0x40] ss:$16 sps:$4 sm:$0xff]  }
 0x57a   :  { %2161 = vmatprep.subr.bf16.mxu0 %v5747_v47  ;;  %2202 = vmatprep.subr.bf16.mxu1 %v5748_v12  ;;  %v5042_v47 = vld [vmem:[%s5551_s3 + $0x48] ss:$16 sps:$4 sm:$0xff]   ;;  %v5048_v12 = vld [vmem:[%s5551_s3 + $0x64] ss:$16 sps:$4 sm:$0xff]  }
 0x57d   :  { %2162 = vmatpush1.bf16.msra.mxu0 %v5749_v42  ;;  %2203 = vmatpush1.bf16.msra.mxu1 %v5750_v11  ;;  %v5054_v42 = vld [vmem:[%s5551_s3 + $0x6c] ss:$16 sps:$4 sm:$0xff]   ;;  %v5060_v11 = vld [vmem:[%s5551_s3 + $0x60] ss:$16 sps:$4 sm:$0xff]  }
 0x57e   :  { %v3373_v41 = vpop.eup %3372  ;;  %2163 = vmatprep.subr.bf16.mxu0 %v5751_v27  ;;  %2204 = vmatprep.subr.bf16.mxu1 %v4743_v39  ;;  %v4980_v39 = vld [vmem:[%s5551_s3 + $0xc] ss:$16 sps:$4 sm:$0xff]   ;;  %v5066_v27 = vld [vmem:[%s5551_s3 + $0x68] ss:$16 sps:$4 sm:$0xff]  }
 0x57f   :  { %v1976_v44 = vmul.f32 %v3373_v41, %v3371_v40 }
 0x581   :  { %v4964_v45 = vsel %vm1981_vm1, %v1976_v44, %v4856_v13  ;;  %v1984_v52 = vsel %vm1981_vm1, %v1976_v44, 0.0  ;;  %2164 = vmatpush1.bf16.msra.mxu0 %v4754_v55  ;;  %2205 = vmatpush1.bf16.msra.mxu1 %v4760_v46  ;;  %v4986_v55 = vld [vmem:[%s5551_s3] ss:$16 sps:$4 sm:$0xff]   ;;  %v4992_v46 = vld [vmem:[%s5551_s3 + $0x8] ss:$16 sps:$4 sm:$0xff]  }
 0x582   :  { %v1985_v24 = vpack.c.bf16 %v1984_v52, %v1984_v52  ;;  %v2148_v9 = vpack.c.bf16 %v4964_v45, %v4964_v45  ;;  %2303 = vmatprep.subr.bf16.mxu0 %v4974_v8  ;;  %2344 = vmatprep.subr.bf16.mxu1 %v4980_v39  ;;  %v5072_v13 = vld [vmem:[%s5551_s3 + $0x84] ss:$16 sps:$4 sm:$0xff]  }
 0x584   :  { %1987 = vst [vmem:[#allocation8 + $0x3] sm:$0x1] %v1985_v24  ;;  %2182 = vmatmul.mubr.bf16.vlgmr.msra.gmra.mrb[44].mxu0 %v2148_v9  ;;  %2223 = vmatmul.mubr.bf16.vlgmr.msra.gmra.mrb[44].mxu1 %v2148_v9 }
 0x585   :  { %2304 = vmatpush1.bf16.msra.mxu0 %v4986_v55  ;;  %2345 = vmatpush1.bf16.msra.mxu1 %v4992_v46 }
 0x586   :  { %2305 = vmatprep.subr.bf16.mxu0 %v4998_v38  ;;  %2346 = vmatprep.subr.bf16.mxu1 %v5004_v7 }
 0x587   :  { %2335 = vmatprep.mubr.bf16.mxu0 %v5680_v3  ;;  %2376 = vmatprep.mubr.bf16.mxu1 %v5680_v3 }
 0x589   :  { %2306 = vmatpush1.bf16.msra.mxu0 %v5012_v43  ;;  %2347 = vmatpush1.bf16.msra.mxu1 %v5018_v6 }
 0x58a   :  { %2307 = vmatprep.subr.bf16.mxu0 %v5024_v18  ;;  %2348 = vmatprep.subr.bf16.mxu1 %v5030_v51 }
 0x58d   :  { %2308 = vmatpush1.bf16.msra.mxu0 %v5036_v21  ;;  %2349 = vmatpush1.bf16.msra.mxu1 %v5042_v47 }
 0x58e   :  { %2309 = vmatprep.subr.bf16.mxu0 %v5048_v12  ;;  %2350 = vmatprep.subr.bf16.mxu1 %v5054_v42 }
 0x591   :  { %2310 = vmatpush1.bf16.msra.mxu0 %v5060_v11  ;;  %2351 = vmatpush1.bf16.msra.mxu1 %v5066_v27 }
 0x592   :  { %2311 = vmatprep.subr.bf16.mxu0 %v5072_v13  ;;  %2352 = vmatprep.subr.bf16.mxu1 %v5078_v37 }
 0x595   :  { %2312 = vmatpush1.bf16.msra.mxu0 %v5084_v26  ;;  %2353 = vmatpush1.bf16.msra.mxu1 %v5090_v28 }
 0x596   :  { %2313 = vmatprep.subr.bf16.mxu0 %v5096_v35  ;;  %2354 = vmatprep.subr.bf16.mxu1 %v5102_v31 }
 0x599   :  { %2314 = vmatpush1.bf16.msra.mxu0 %v5108_v22  ;;  %2355 = vmatpush1.bf16.msra.mxu1 %v5114_v57 }
 0x59a   :  { %2315 = vmatprep.subr.bf16.mxu0 %v5120_v36  ;;  %2356 = vmatprep.subr.bf16.mxu1 %v5126_v50 }
 0x59d   :  { %2316 = vmatpush1.bf16.msra.mxu0 %v5132_v58  ;;  %2357 = vmatpush1.bf16.msra.mxu1 %v5138_v34 }
 0x59e   :  { %2317 = vmatprep.subr.bf16.mxu0 %v5144_v61  ;;  %2358 = vmatprep.subr.bf16.mxu1 %v5150_v0 }
 0x5a1   :  { %2318 = vmatpush1.bf16.msra.mxu0 %v5156_v4  ;;  %2359 = vmatpush1.bf16.msra.mxu1 %v5162_v5 }
 0x5a2   :  { %2457 = vmatprep.subr.bf16.mxu0 %v5168_v29  ;;  %2498 = vmatprep.subr.bf16.mxu1 %v5174_v19 }
 0x637   :  { %v2029_v14 = vpop.f32.mrb[40].mxu0  ;;  %v2070_v48 = vpop.f32.mrb[40].mxu1 }
 0x638   :  { %v2031_v60 = vpop.f32.mrb[41].mxu0  ;;  %v2072_v17 = vpop.f32.mrb[41].mxu1 }
 0x639   :  { %v2081_v10 = vcombine.low %v2029_v14, %v2031_v60  ;;  %v2082_v16 = vcombine.low %v2070_v48, %v2072_v17  ;;  %v2033_v2 = vpop.f32.mrb[42].mxu0  ;;  %v2074_v49 = vpop.f32.mrb[42].mxu1 }
 0x63a   :  { %v2034_v59 = vpop.f32.mrb[43].mxu0  ;;  %v2075_v62 = vpop.f32.mrb[43].mxu1 }
 0x63b   :  { %v2089_v23 = vrot.slane %v2081_v10, %v4169_v30  ;;  %v2096_v54 = vrot.slane %v2082_v16, %v4169_v30 }
 0x63d   :  { %v2097_v56 = vcombine.low %v2089_v23, %v2096_v54 }
 0x63f   :  { %v2099_v25 = vadd.f32 %v2097_v56, %v1993_v20 }
 0x641   :  { %v3082_v53 = vmul.f32 -1.442695, %v2099_v25  ;;  %v2107_v40 = vrot.slane %v2099_v25, 2  ;;  %v2118_v44 = vrot.slane %v2099_v25, 6  ;;  %v2115_v9 = vrot.slane %v2099_v25, 4 }
 0x643   :  { %3374 = vpow2.f32 %v3082_v53  ;;  %v3083_v41 = vmul.f32 -1.442695, %v2107_v40  ;;  %v3084_v52 = vmul.f32 -1.442695, %v2118_v44  ;;  %v2147_v40 = vunpack.c.l.bf16 %v4910_v32 }
 0x645   :  { %3376 = vpow2.f32 %v3083_v41 }
 0x646   :  { %3378 = vpow2.f32 %v3084_v52 }
 0x64d   :  { %v3375_v24 = vpop.eup %3374 }
 0x64e   :  { %v2103_v14 = vadd.f32 1.0, %v3375_v24 }
 0x64f   :  { %v3377_v48 = vpop.eup %3376 }
 0x650   :  { %3380 = vrcp.f32 %v2103_v14  ;;  %v2112_v60 = vadd.f32 1.0, %v3377_v48  ;;  %v3379_v2 = vpop.eup %3378 }
 0x651   :  { %3382 = vtanh.f32 %v2115_v9  ;;  %v2123_v52 = vadd.f32 1.0, %v3379_v2 }
 0x652   :  { %3384 = vrcp.f32 %v2112_v60 }
 0x653   :  { %3386 = vrcp.f32 %v2123_v52  ;;  %v5198_v52 = vld [vmem:[%s5552_s4] ss:$16 sps:$4 sm:$0xff]  }
 0x657   :  { %v2183_v1 = vpop.f32.mrb[44].mxu0  ;;  %v2224_v17 = vpop.f32.mrb[44].mxu1 }
 0x658   :  { %v2185_v10 = vpop.f32.mrb[45].mxu0  ;;  %v2226_v16 = vpop.f32.mrb[45].mxu1 }
 0x659   :  { %v2235_v49 = vcombine.low %v2183_v1, %v2185_v10  ;;  %v2236_v59 = vcombine.low %v2224_v17, %v2226_v16  ;;  %v2187_v62 = vpop.f32.mrb[46].mxu0  ;;  %v2228_v23 = vpop.f32.mrb[46].mxu1 }
 0x65a   :  { %v3381_v20 = vpop.eup %3380  ;;  %v2188_v54 = vpop.f32.mrb[47].mxu0 }
 0x65b   :  { %v2229_v56 = vpop.f32.mrb[47].mxu1  ;;  %v3383_v25 = vpop.eup %3382  ;;  %v2243_v53 = vrot.slane %v2235_v49, %v4169_v30  ;;  %v2250_v41 = vrot.slane %v2236_v59, %v4169_v30 }
 0x65c   :  { %v3385_v44 = vpop.eup %3384  ;;  %v2127_v24 = vmul.f32 %v3383_v25, %v3381_v20  ;;  %v2134_v1 = vpop.permute.xlu0 %2133 }
 0x65d   :  { %v2251_v9 = vcombine.low %v2243_v53, %v2250_v41  ;;  %v2126_v14 = vmul.f32 %v3385_v44, %v4918_v63  ;;  %vm2135_vm2 = vcmp.eq.s32.totalorder %v2134_v1, 1  ;;  %v3387_v49 = vpop.eup %3386  ;;  %v5242_v1 = vld [vmem:[%s5552_s4 + $0x4c] ss:$16 sps:$4 sm:$0xff]  }
 0x65f   :  { %v2253_v48 = vadd.f32 %v2251_v9, %v2147_v40  ;;  %v2128_v60 = vadd.f32 %v2127_v24, %v2126_v14  ;;  %v5210_v24 = vld [vmem:[%s5552_s4 + $0x24] ss:$16 sps:$4 sm:$0xff]   ;;  %v5216_v9 = vld [vmem:[%s5552_s4 + $0x2c] ss:$16 sps:$4 sm:$0xff]   ;;  %v5224_v14 = vld [vmem:[%s5552_s4 + $0x20] ss:$16 sps:$4 sm:$0xff]  }
 0x661   :  { %v3087_v17 = vmul.f32 -1.442695, %v2253_v48  ;;  %v2261_v10 = vrot.slane %v2253_v48, 2  ;;  %3388 = vtanh.f32 %v2128_v60  ;;  %v5186_v16 = vsel %vm2135_vm2, %v2128_v60, %v4918_v63  ;;  %v5236_v60 = vld [vmem:[%s5552_s4 + $0x44] ss:$16 sps:$4 sm:$0xff]  }
 0x662   :  { %v2272_v2 = vrot.slane %v2253_v48, 6  ;;  %v2269_v20 = vrot.slane %v2253_v48, 4  ;;  %v5230_v48 = vld [vmem:[%s5552_s4 + $0x28] ss:$16 sps:$4 sm:$0xff]  }
 0x663   :  { %3390 = vpow2.f32 %v3087_v17  ;;  %v3088_v32 = vmul.f32 -1.442695, %v2261_v10 }
 0x664   :  { %v3089_v59 = vmul.f32 -1.442695, %v2272_v2  ;;  %v5248_v2 = vld [vmem:[%s5552_s4 + $0x40] ss:$16 sps:$4 sm:$0xff]  }
 0x665   :  { %3392 = vpow2.f32 %v3088_v32 }
 0x666   :  { %3394 = vpow2.f32 %v3089_v59 }
 0x66b   :  { %v3389_v62 = vpop.eup %3388 }
 0x66c   :  { %v2130_v54 = vmul.f32 %v3389_v62, %v3387_v49  ;;  %v5254_v49 = vld [vmem:[%s5552_s4 + $0x48] ss:$16 sps:$4 sm:$0xff]  }
 0x66d   :  { %v3391_v23 = vpop.eup %3390 }
 0x66e   :  { %v2257_v56 = vadd.f32 1.0, %v3391_v23  ;;  %v5190_v53 = vsel %vm2135_vm2, %v2130_v54, %v4922_v15  ;;  %v2138_v63 = vsel %vm2135_vm2, %v2130_v54, 0.0  ;;  %v5204_v15 = vld [vmem:[%s5552_s4 + $0x8] ss:$16 sps:$4 sm:$0xff]   ;;  %v5260_v23 = vld [vmem:[%s5552_s4 + $0x64] ss:$16 sps:$4 sm:$0xff]  }
 0x66f   :  { %v3393_v25 = vpop.eup %3392  ;;  %v2139_v41 = vpack.c.bf16 %v2138_v63, %v2138_v63  ;;  %v2302_v44 = vpack.c.bf16 %v5190_v53, %v5190_v53  ;;  %v5273_v63 = vld [vmem:[%s5552_s4 + $0x60] ss:$16 sps:$4 sm:$0xff]  }
 0x670   :  { %3396 = vrcp.f32 %v2257_v56  ;;  %v2266_v40 = vadd.f32 1.0, %v3393_v25  ;;  %v3395_v17 = vpop.eup %3394  ;;  %v2288_v25 = vpop.permute.xlu1 %2287 }
 0x671   :  { %3398 = vtanh.f32 %v2269_v20  ;;  %2141 = vst [vmem:[#allocation6 + $0x5] sm:$0x1] %v2139_v41  ;;  %2336 = vmatmul.mubr.bf16.vlgmr.msra.gmra.mrb[48].mxu0 %v2302_v44  ;;  %2377 = vmatmul.mubr.bf16.vlgmr.msra.gmra.mrb[48].mxu1 %v2302_v44  ;;  %v2277_v62 = vadd.f32 1.0, %v3395_v17  ;;  %v5266_v20 = vld [vmem:[%s5552_s4 + $0x6c] ss:$16 sps:$4 sm:$0xff]   ;;  %vm2289_vm3 = vcmp.eq.s32.totalorder %v2288_v25, 1 }
 0x672   :  { %3400 = vrcp.f32 %v2266_v40  ;;  %2458 = vmatpush1.bf16.msra.mxu0 %v5198_v52  ;;  %2499 = vmatpush1.bf16.msra.mxu1 %v5204_v15  ;;  %v5279_v40 = vld [vmem:[%s5552_s4 + $0x68] ss:$16 sps:$4 sm:$0xff]   ;;  %v5285_v44 = vld [vmem:[%s5552_s4 + $0x84] ss:$16 sps:$4 sm:$0xff]   ;;  %v5291_v17 = vld [vmem:[%s5552_s4 + $0x8c] ss:$16 sps:$4 sm:$0xff]  }
 0x673   :  { %2459 = vmatprep.subr.bf16.mxu0 %v5210_v24  ;;  %2500 = vmatprep.subr.bf16.mxu1 %v5216_v9  ;;  %3402 = vrcp.f32 %v2277_v62  ;;  %5766 = vst [vmem:[#allocation14_spill] sm:$0xff] %v5291_v17  ;;  %v5313_v62 = vld [vmem:[%s5552_s4 + $0xa4] ss:$16 sps:$4 sm:$0xff]  }
 0x674   :  { %2489 = vmatprep.mubr.bf16.mxu0 %v5680_v3  ;;  %2530 = vmatprep.mubr.bf16.mxu1 %v5680_v3  ;;  %5769 = vst [vmem:[#allocation17_spill] sm:$0xff] %v5313_v62 }
 0x676   :  { %2460 = vmatpush1.bf16.msra.mxu0 %v5224_v14  ;;  %2501 = vmatpush1.bf16.msra.mxu1 %v5230_v48 }
 0x677   :  { %2461 = vmatprep.subr.bf16.mxu0 %v5236_v60  ;;  %2502 = vmatprep.subr.bf16.mxu1 %v5242_v1 }
 0x67a   :  { %v3397_v10 = vpop.eup %3396  ;;  %2462 = vmatpush1.bf16.msra.mxu0 %v5248_v2  ;;  %2503 = vmatpush1.bf16.msra.mxu1 %v5254_v49 }
 0x67b   :  { %v3399_v32 = vpop.eup %3398  ;;  %2463 = vmatprep.subr.bf16.mxu0 %v5260_v23  ;;  %2504 = vmatprep.subr.bf16.mxu1 %v5266_v20 }
 0x67c   :  { %v3401_v59 = vpop.eup %3400  ;;  %v2281_v54 = vmul.f32 %v3399_v32, %v3397_v10  ;;  %v5301_v32 = vld [vmem:[%s5552_s4 + $0x80] ss:$16 sps:$4 sm:$0xff]  }
 0x67d   :  { %v2280_v56 = vmul.f32 %v3401_v59, %v4948_v33  ;;  %5767 = vst [vmem:[#allocation15_spill] sm:$0xff] %v5301_v32  ;;  %v5307_v59 = vld [vmem:[%s5552_s4 + $0x88] ss:$16 sps:$4 sm:$0xff]  }
 0x67e   :  { %2464 = vmatpush1.bf16.msra.mxu0 %v5273_v63  ;;  %2505 = vmatpush1.bf16.msra.mxu1 %v5279_v40  ;;  %5768 = vst [vmem:[#allocation16_spill] sm:$0xff] %v5307_v59 }
 0x67f   :  { %v2282_v41 = vadd.f32 %v2281_v54, %v2280_v56  ;;  %2465 = vmatprep.subr.bf16.mxu0 %v5285_v44  ;;  %2506 = vmatprep.subr.bf16.mxu1 %v5291_v17  ;;  %v5325_v54 = vld [vmem:[%s5552_s4 + $0xa0] ss:$16 sps:$4 sm:$0xff]   ;;  %v5331_v56 = vld [vmem:[%s5552_s4 + $0xa8] ss:$16 sps:$4 sm:$0xff]  }
 0x680   :  { %5771 = vst [vmem:[#allocation19_spill] sm:$0xff] %v5325_v54  ;;  %5772 = vst [vmem:[#allocation20_spill] sm:$0xff] %v5331_v56  ;;  %v5378_v17 = vld [vmem:[%s5552_s4 + $0xe0] ss:$16 sps:$4 sm:$0xff]  }
 0x681   :  { %3404 = vtanh.f32 %v2282_v41  ;;  %v5296_v10 = vsel %vm2289_vm3, %v2282_v41, %v4948_v33  ;;  %v5319_v33 = vld [vmem:[%s5552_s4 + $0xac] ss:$16 sps:$4 sm:$0xff]   ;;  %v5337_v41 = vld [vmem:[%s5552_s4 + $0xc4] ss:$16 sps:$4 sm:$0xff]  }
 0x682   :  { %2466 = vmatpush1.bf16.msra.mxu0 %v5301_v32  ;;  %2507 = vmatpush1.bf16.msra.mxu1 %v5307_v59  ;;  %5770 = vst [vmem:[#allocation18_spill] sm:$0xff] %v5319_v33  ;;  %5773 = vst [vmem:[#allocation21_spill] sm:$0xff] %v5337_v41  ;;  %v5367_v59 = vld [vmem:[%s5552_s4 + $0xec] ss:$16 sps:$4 sm:$0xff]  }
 0x683   :  { %2467 = vmatprep.subr.bf16.mxu0 %v5313_v62  ;;  %2508 = vmatprep.subr.bf16.mxu1 %v5319_v33  ;;  %v5343_v33 = vld [vmem:[%s5552_s4 + $0xcc] ss:$16 sps:$4 sm:$0xff]  }
 0x684   :  { %5774 = vst [vmem:[#allocation22_spill] sm:$0xff] %v5343_v33 }
 0x686   :  { %2468 = vmatpush1.bf16.msra.mxu0 %v5325_v54  ;;  %2509 = vmatpush1.bf16.msra.mxu1 %v5331_v56  ;;  %v3403_v54 = vpop.eup %3402  ;;  %v5349_v56 = vld [vmem:[%s5552_s4 + $0xc0] ss:$16 sps:$4 sm:$0xff]  }
 0x687   :  { %2469 = vmatprep.subr.bf16.mxu0 %v5337_v41  ;;  %2510 = vmatprep.subr.bf16.mxu1 %v5343_v33  ;;  %5775 = vst [vmem:[#allocation23_spill] sm:$0xff] %v5349_v56  ;;  %v5355_v41 = vld [vmem:[%s5552_s4 + $0xc8] ss:$16 sps:$4 sm:$0xff]   ;;  %v5361_v33 = vld [vmem:[%s5552_s4 + $0xe4] ss:$16 sps:$4 sm:$0xff]  }
 0x688   :  { %5776 = vst [vmem:[#allocation24_spill] sm:$0xff] %v5355_v41  ;;  %5777 = vst [vmem:[#allocation25_spill] sm:$0xff] %v5361_v33 }
 0x68a   :  { %2470 = vmatpush1.bf16.msra.mxu0 %v5349_v56  ;;  %2511 = vmatpush1.bf16.msra.mxu1 %v5355_v41 }
 0x68b   :  { %v3405_v62 = vpop.eup %3404  ;;  %2471 = vmatprep.subr.bf16.mxu0 %v5361_v33  ;;  %2512 = vmatprep.subr.bf16.mxu1 %v5367_v59  ;;  %v5384_v33 = vld [vmem:[%s5552_s4 + $0xe8] ss:$16 sps:$4 sm:$0xff]  }
 0x68c   :  { %v2284_v56 = vmul.f32 %v3405_v62, %v3403_v54 }
 0x68e   :  { %v5372_v32 = vsel %vm2289_vm3, %v2284_v56, %v4964_v45  ;;  %v2292_v41 = vsel %vm2289_vm3, %v2284_v56, 0.0  ;;  %2472 = vmatpush1.bf16.msra.mxu0 %v5378_v17  ;;  %2513 = vmatpush1.bf16.msra.mxu1 %v5384_v33 }
 0x68f   :  { %v2293_v62 = vpack.c.bf16 %v2292_v41, %v2292_v41  ;;  %v2456_v45 = vpack.c.bf16 %v5372_v32, %v5372_v32  ;;  %2611 = vmatprep.subr.bf16.mxu0 %v4974_v8  ;;  %2652 = vmatprep.subr.bf16.mxu1 %v4980_v39 }
 0x691   :  { %2295 = vst [vmem:[#allocation8 + $0x2] sm:$0x1] %v2293_v62  ;;  %2490 = vmatmul.mubr.bf16.vlgmr.msra.gmra.mrb[52].mxu0 %v2456_v45  ;;  %2531 = vmatmul.mubr.bf16.vlgmr.msra.gmra.mrb[52].mxu1 %v2456_v45 }
 0x692   :  { %2612 = vmatpush1.bf16.msra.mxu0 %v4986_v55  ;;  %2653 = vmatpush1.bf16.msra.mxu1 %v4992_v46  ;;  %v5428_v46 = vld [vmem:[%s5548_s0 + $0x18] sm:$0xff]  }
 0x693   :  { %2613 = vmatprep.subr.bf16.mxu0 %v4998_v38  ;;  %2654 = vmatprep.subr.bf16.mxu1 %v5004_v7 }
 0x694   :  { %2643 = vmatprep.mubr.bf16.mxu0 %v5680_v3  ;;  %2684 = vmatprep.mubr.bf16.mxu1 %v5680_v3 }
 0x696   :  { %2614 = vmatpush1.bf16.msra.mxu0 %v5012_v43  ;;  %2655 = vmatpush1.bf16.msra.mxu1 %v5018_v6 }
 0x697   :  { %2615 = vmatprep.subr.bf16.mxu0 %v5024_v18  ;;  %2656 = vmatprep.subr.bf16.mxu1 %v5030_v51 }
 0x69a   :  { %2616 = vmatpush1.bf16.msra.mxu0 %v5036_v21  ;;  %2657 = vmatpush1.bf16.msra.mxu1 %v5042_v47 }
 0x69b   :  { %2617 = vmatprep.subr.bf16.mxu0 %v5048_v12  ;;  %2658 = vmatprep.subr.bf16.mxu1 %v5054_v42  ;;  %v2301_v12 = vunpack.c.l.bf16 %v5428_v46 }
 0x69e   :  { %2618 = vmatpush1.bf16.msra.mxu0 %v5060_v11  ;;  %2659 = vmatpush1.bf16.msra.mxu1 %v5066_v27 }
 0x69f   :  { %2619 = vmatprep.subr.bf16.mxu0 %v5072_v13  ;;  %2660 = vmatprep.subr.bf16.mxu1 %v5078_v37 }
 0x6a2   :  { %2620 = vmatpush1.bf16.msra.mxu0 %v5084_v26  ;;  %2661 = vmatpush1.bf16.msra.mxu1 %v5090_v28 }
 0x6a3   :  { %2621 = vmatprep.subr.bf16.mxu0 %v5096_v35  ;;  %2662 = vmatprep.subr.bf16.mxu1 %v5102_v31 }
 0x6a6   :  { %2622 = vmatpush1.bf16.msra.mxu0 %v5108_v22  ;;  %2663 = vmatpush1.bf16.msra.mxu1 %v5114_v57 }
 0x6a7   :  { %2623 = vmatprep.subr.bf16.mxu0 %v5120_v36  ;;  %2664 = vmatprep.subr.bf16.mxu1 %v5126_v50 }
 0x6aa   :  { %2624 = vmatpush1.bf16.msra.mxu0 %v5132_v58  ;;  %2665 = vmatpush1.bf16.msra.mxu1 %v5138_v34 }
 0x6ab   :  { %2625 = vmatprep.subr.bf16.mxu0 %v5144_v61  ;;  %2666 = vmatprep.subr.bf16.mxu1 %v5150_v0  ;;  %v5436_v0 = vld [vmem:[%s5549_s1] sm:$0xff]   ;;  %s3649_s1 = smov [#allocation6]  }
 0x6ac   :  { %s2920_s2 = sshll.u32 %s3649_s1, 4  ;;  %s2921_s2 = int_to_ptr.vmem [resolvable:$true] %s2920_s2 }
 0x6ad   :  { %s3598_s17 = scalar_lea.vmem %s2921_s2, 128  ;;  %p3603_p1 = scmp.lt.s32.totalorder %s2921_s2, %s2921_s2 }
 0x6ae   :  { %2626 = vmatpush1.bf16.msra.mxu0 %v5156_v4  ;;  %2667 = vmatpush1.bf16.msra.mxu1 %v5162_v5  ;;  %p3599_p0 = scmp.ne.s32.totalorder %s2921_s2, %s3598_s17  ;;  %p3604_p2 = scmp.lt.s32.totalorder %s3598_s17, %s3598_s17 }
 0x6af   :  { %2763 = vmatprep.subr.bf16.mxu0 %v5168_v29  ;;  %2804 = vmatprep.subr.bf16.mxu1 %v5174_v19 }
 0x6b0   :  { %p3605_p3 = por %p3604_p2, %p3603_p1 }
 0x6b2   :  { %p3606_p4 = pnand %p3605_p3, %p3599_p0 }
 0x744   :  { %v2337_v8 = vpop.f32.mrb[48].mxu0  ;;  %v2378_v39 = vpop.f32.mrb[48].mxu1 }
 0x745   :  { %v2339_v55 = vpop.f32.mrb[49].mxu0  ;;  %v2380_v38 = vpop.f32.mrb[49].mxu1 }
 0x746   :  { %v2389_v7 = vcombine.low %v2337_v8, %v2339_v55  ;;  %v2390_v43 = vcombine.low %v2378_v39, %v2380_v38  ;;  %v2341_v6 = vpop.f32.mrb[50].mxu0  ;;  %v2382_v18 = vpop.f32.mrb[50].mxu1  ;;  %v2455_v39 = vunpack.c.h.bf16 %v5436_v0 }
 0x747   :  { %v2342_v51 = vpop.f32.mrb[51].mxu0  ;;  %v2383_v21 = vpop.f32.mrb[51].mxu1 }
 0x748   :  { %v2397_v47 = vrot.slane %v2389_v7, %v4169_v30  ;;  %v2404_v42 = vrot.slane %v2390_v43, %v4169_v30 }
 0x74a   :  { %v2405_v11 = vcombine.low %v2397_v47, %v2404_v42  ;;  %v2442_v47 = vpop.permute.xlu0 %2441 }
 0x74b   :  { %vm2443_vm4 = vcmp.eq.s32.totalorder %v2442_v47, 1 }
 0x74c   :  { %v2407_v27 = vadd.f32 %v2405_v11, %v2301_v12 }
 0x74e   :  { %v3092_v13 = vmul.f32 -1.442695, %v2407_v27  ;;  %v2415_v37 = vrot.slane %v2407_v27, 2  ;;  %v2426_v28 = vrot.slane %v2407_v27, 6  ;;  %v2423_v22 = vrot.slane %v2407_v27, 4 }
 0x750   :  { %3406 = vpow2.f32 %v3092_v13  ;;  %v3093_v26 = vmul.f32 -1.442695, %v2415_v37  ;;  %v3094_v35 = vmul.f32 -1.442695, %v2426_v28 }
 0x752   :  { %3408 = vpow2.f32 %v3093_v26 }
 0x753   :  { %3410 = vpow2.f32 %v3094_v35 }
 0x75a   :  { %v3407_v31 = vpop.eup %3406 }
 0x75b   :  { %v2411_v57 = vadd.f32 1.0, %v3407_v31 }
 0x75c   :  { %v3409_v36 = vpop.eup %3408 }
 0x75d   :  { %3412 = vrcp.f32 %v2411_v57  ;;  %v2420_v50 = vadd.f32 1.0, %v3409_v36  ;;  %v3411_v5 = vpop.eup %3410 }
 0x75e   :  { %3414 = vtanh.f32 %v2423_v22  ;;  %v2431_v7 = vadd.f32 1.0, %v3411_v5  ;;  %v5786_v5 = vld [vmem:[#allocation22_spill] sm:$0xff] }
 0x75f   :  { %3416 = vrcp.f32 %v2420_v50 }
 0x760   :  { %3418 = vrcp.f32 %v2431_v7 }
 0x764   :  { %v2491_v58 = vpop.f32.mrb[52].mxu0  ;;  %v2532_v34 = vpop.f32.mrb[52].mxu1 }
 0x765   :  { %v2493_v61 = vpop.f32.mrb[53].mxu0  ;;  %v2534_v4 = vpop.f32.mrb[53].mxu1 }
 0x766   :  { %v2543_v29 = vcombine.low %v2491_v58, %v2493_v61  ;;  %v2544_v19 = vcombine.low %v2532_v34, %v2534_v4  ;;  %v2495_v25 = vpop.f32.mrb[54].mxu0  ;;  %v2536_v54 = vpop.f32.mrb[54].mxu1 }
 0x767   :  { %v3413_v56 = vpop.eup %3412  ;;  %v2496_v41 = vpop.f32.mrb[55].mxu0  ;;  %v5788_v25 = vld [vmem:[#allocation24_spill] sm:$0xff]  ;;  %v5789_v54 = vld [vmem:[#allocation25_spill] sm:$0xff] }
 0x768   :  { %v2537_v62 = vpop.f32.mrb[55].mxu1  ;;  %v3415_v45 = vpop.eup %3414  ;;  %v2551_v8 = vrot.slane %v2543_v29, %v4169_v30  ;;  %v2558_v55 = vrot.slane %v2544_v19, %v4169_v30 }
 0x769   :  { %v3417_v38 = vpop.eup %3416  ;;  %v2435_v43 = vmul.f32 %v3415_v45, %v3413_v56 }
 0x76a   :  { %v2559_v6 = vcombine.low %v2551_v8, %v2558_v55  ;;  %v2434_v18 = vmul.f32 %v3417_v38, %v5186_v16  ;;  %v3419_v37 = vpop.eup %3418 }
 0x76c   :  { %v2561_v51 = vadd.f32 %v2559_v6, %v2455_v39  ;;  %v2436_v21 = vadd.f32 %v2435_v43, %v2434_v18 }
 0x76e   :  { %v3097_v12 = vmul.f32 -1.442695, %v2561_v51  ;;  %v2569_v42 = vrot.slane %v2561_v51, 2  ;;  %3420 = vtanh.f32 %v2436_v21  ;;  %v5444_v11 = vsel %vm2443_vm4, %v2436_v21, %v5186_v16 }
 0x76f   :  { %v2580_v13 = vrot.slane %v2561_v51, 6  ;;  %v2577_v31 = vrot.slane %v2561_v51, 4 }
 0x770   :  { %3422 = vpow2.f32 %v3097_v12  ;;  %v3098_v27 = vmul.f32 -1.442695, %v2569_v42 }
 0x771   :  { %v3099_v26 = vmul.f32 -1.442695, %v2580_v13 }
 0x772   :  { %3424 = vpow2.f32 %v3098_v27 }
 0x773   :  { %3426 = vpow2.f32 %v3099_v26 }
 0x778   :  { %v3421_v28 = vpop.eup %3420 }
 0x779   :  { %v2438_v22 = vmul.f32 %v3421_v28, %v3419_v37 }
 0x77a   :  { %v3423_v35 = vpop.eup %3422 }
 0x77b   :  { %v2565_v57 = vadd.f32 1.0, %v3423_v35  ;;  %v5448_v50 = vsel %vm2443_vm4, %v2438_v22, %v5190_v53  ;;  %v2446_v16 = vsel %vm2443_vm4, %v2438_v22, 0.0 }
 0x77c   :  { %v3425_v36 = vpop.eup %3424  ;;  %v2447_v34 = vpack.c.bf16 %v2446_v16, %v2446_v16  ;;  %v2610_v61 = vpack.c.bf16 %v5448_v50, %v5448_v50 }
 0x77d   :  { %3428 = vrcp.f32 %v2565_v57  ;;  %v2574_v58 = vadd.f32 1.0, %v3425_v36  ;;  %v3427_v53 = vpop.eup %3426 }
 0x77e   :  { %3430 = vtanh.f32 %v2577_v31  ;;  %2449 = vst [vmem:[#allocation6 + $0x6] sm:$0x1] %v2447_v34  ;;  %2644 = vmatmul.mubr.bf16.vlgmr.msra.gmra.mrb[56].mxu0 %v2610_v61  ;;  %2685 = vmatmul.mubr.bf16.vlgmr.msra.gmra.mrb[56].mxu1 %v2610_v61 }
 0x77f   :  { %3432 = vrcp.f32 %v2574_v58  ;;  %2764 = vmatpush1.bf16.msra.mxu0 %v5198_v52  ;;  %2805 = vmatpush1.bf16.msra.mxu1 %v5204_v15 }
 0x780   :  { %2765 = vmatprep.subr.bf16.mxu0 %v5210_v24  ;;  %2806 = vmatprep.subr.bf16.mxu1 %v5216_v9  ;;  %v2585_v24 = vadd.f32 1.0, %v3427_v53 }
 0x781   :  { %2795 = vmatprep.mubr.bf16.mxu0 %v5680_v3  ;;  %2836 = vmatprep.mubr.bf16.mxu1 %v5680_v3 }
 0x782   :  { %3434 = vrcp.f32 %v2585_v24 }
 0x783   :  { %2766 = vmatpush1.bf16.msra.mxu0 %v5224_v14  ;;  %2807 = vmatpush1.bf16.msra.mxu1 %v5230_v48  ;;  %v2596_v14 = vpop.permute.xlu1 %2595 }
 0x784   :  { %2767 = vmatprep.subr.bf16.mxu0 %v5236_v60  ;;  %2808 = vmatprep.subr.bf16.mxu1 %v5242_v1  ;;  %vm2597_vm5 = vcmp.eq.s32.totalorder %v2596_v14, 1  ;;  %v5778_v60 = vld [vmem:[#allocation14_spill] sm:$0xff] }
 0x787   :  { %v3429_v52 = vpop.eup %3428  ;;  %2768 = vmatpush1.bf16.msra.mxu0 %v5248_v2  ;;  %2809 = vmatpush1.bf16.msra.mxu1 %v5254_v49  ;;  %v5779_v2 = vld [vmem:[#allocation15_spill] sm:$0xff]  ;;  %v5780_v49 = vld [vmem:[#allocation16_spill] sm:$0xff] }
 0x788   :  { %v3431_v4 = vpop.eup %3430  ;;  %2769 = vmatprep.subr.bf16.mxu0 %v5260_v23  ;;  %2810 = vmatprep.subr.bf16.mxu1 %v5266_v20  ;;  %v5781_v23 = vld [vmem:[#allocation17_spill] sm:$0xff]  ;;  %v5782_v20 = vld [vmem:[#allocation18_spill] sm:$0xff] }
 0x789   :  { %v3433_v15 = vpop.eup %3432  ;;  %v2589_v3 = vmul.f32 %v3431_v4, %v3429_v52 }
 0x78a   :  { %v2588_v9 = vmul.f32 %v3433_v15, %v5296_v10 }
 0x78b   :  { %2770 = vmatpush1.bf16.msra.mxu0 %v5273_v63  ;;  %2811 = vmatpush1.bf16.msra.mxu1 %v5279_v40  ;;  %v5783_v63 = vld [vmem:[#allocation19_spill] sm:$0xff]  ;;  %v5784_v40 = vld [vmem:[#allocation20_spill] sm:$0xff] }
 0x78c   :  { %v2590_v48 = vadd.f32 %v2589_v3, %v2588_v9  ;;  %2771 = vmatprep.subr.bf16.mxu0 %v5285_v44  ;;  %2812 = vmatprep.subr.bf16.mxu1 %v5778_v60  ;;  %v5785_v44 = vld [vmem:[#allocation21_spill] sm:$0xff]  ;;  %v3435_v29 = vpop.eup %3434 }
 0x78e   :  { %3436 = vtanh.f32 %v2590_v48  ;;  %v5474_v1 = vsel %vm2597_vm5, %v2590_v48, %v5296_v10  ;;  %v5787_v10 = vld [vmem:[#allocation23_spill] sm:$0xff]  ;;  %v2761_v48 = vunpack.c.l.bf16 %v5436_v0 }
 0x78f   :  { %2772 = vmatpush1.bf16.msra.mxu0 %v5779_v2  ;;  %2813 = vmatpush1.bf16.msra.mxu1 %v5780_v49 }
 0x790   :  { %2773 = vmatprep.subr.bf16.mxu0 %v5781_v23  ;;  %2814 = vmatprep.subr.bf16.mxu1 %v5782_v20  ;;  %v2750_v23 = vpop.permute.xlu0 %2749 }
 0x791   :  { %vm2751_vm6 = vcmp.eq.s32.totalorder %v2750_v23, 1 }
 0x793   :  { %2774 = vmatpush1.bf16.msra.mxu0 %v5783_v63  ;;  %2815 = vmatpush1.bf16.msra.mxu1 %v5784_v40 }
 0x794   :  { %2775 = vmatprep.subr.bf16.mxu0 %v5785_v44  ;;  %2816 = vmatprep.subr.bf16.mxu1 %v5786_v5 }
 0x797   :  { %2776 = vmatpush1.bf16.msra.mxu0 %v5787_v10  ;;  %2817 = vmatpush1.bf16.msra.mxu1 %v5788_v25 }
 0x798   :  { %v3437_v19 = vpop.eup %3436  ;;  %2777 = vmatprep.subr.bf16.mxu0 %v5789_v54  ;;  %2818 = vmatprep.subr.bf16.mxu1 %v5367_v59 }
 0x799   :  { %v2592_v56 = vmul.f32 %v3437_v19, %v3435_v29 }
 0x79b   :  { %v5490_v41 = vsel %vm2597_vm5, %v2592_v56, %v5372_v32  ;;  %v2600_v62 = vsel %vm2597_vm5, %v2592_v56, 0.0  ;;  %2778 = vmatpush1.bf16.msra.mxu0 %v5378_v17  ;;  %2819 = vmatpush1.bf16.msra.mxu1 %v5384_v33  ;;  %v2609_v33 = vunpack.c.h.bf16 %v5428_v46 }
 0x79c   :  { %v2601_v45 = vpack.c.bf16 %v2600_v62, %v2600_v62  ;;  %v2762_v8 = vpack.c.bf16 %v5490_v41, %v5490_v41 }
 0x79e   :  { %2603 = vst [vmem:[#allocation8 + $0x1] sm:$0x1] %v2601_v45  ;;  %2796 = vmatmul.mubr.bf16.vlgmr.msra.gmra.mrb[60].mxu0 %v2762_v8  ;;  %2837 = vmatmul.mubr.bf16.vlgmr.msra.gmra.mrb[60].mxu1 %v2762_v8 }
 0x851   :  { %v2645_v39 = vpop.f32.mrb[56].mxu0  ;;  %v2686_v59 = vpop.f32.mrb[56].mxu1 }
 0x852   :  { %v2647_v55 = vpop.f32.mrb[57].mxu0  ;;  %v2688_v38 = vpop.f32.mrb[57].mxu1 }
 0x853   :  { %v2697_v7 = vcombine.low %v2645_v39, %v2647_v55  ;;  %v2698_v32 = vcombine.low %v2686_v59, %v2688_v38  ;;  %v2649_v43 = vpop.f32.mrb[58].mxu0  ;;  %v2690_v6 = vpop.f32.mrb[58].mxu1 }
 0x854   :  { %v2650_v18 = vpop.f32.mrb[59].mxu0  ;;  %v2691_v51 = vpop.f32.mrb[59].mxu1 }
 0x855   :  { %v2705_v17 = vrot.slane %v2697_v7, %v4169_v30  ;;  %v2712_v21 = vrot.slane %v2698_v32, %v4169_v30 }
 0x857   :  { %v2713_v47 = vcombine.low %v2705_v17, %v2712_v21 }
 0x859   :  { %v2715_v12 = vadd.f32 %v2713_v47, %v2609_v33 }
 0x85b   :  { %v3102_v42 = vmul.f32 -1.442695, %v2715_v12  ;;  %v2723_v27 = vrot.slane %v2715_v12, 2  ;;  %v2734_v37 = vrot.slane %v2715_v12, 6  ;;  %v2731_v35 = vrot.slane %v2715_v12, 4 }
 0x85d   :  { %3438 = vpow2.f32 %v3102_v42  ;;  %v3103_v13 = vmul.f32 -1.442695, %v2723_v27  ;;  %v3104_v26 = vmul.f32 -1.442695, %v2734_v37 }
 0x85f   :  { %3440 = vpow2.f32 %v3103_v13 }
 0x860   :  { %3442 = vpow2.f32 %v3104_v26 }
 0x867   :  { %v3439_v28 = vpop.eup %3438 }
 0x868   :  { %v2719_v31 = vadd.f32 1.0, %v3439_v28 }
 0x869   :  { %v3441_v22 = vpop.eup %3440 }
 0x86a   :  { %3444 = vrcp.f32 %v2719_v31  ;;  %v2728_v57 = vadd.f32 1.0, %v3441_v22  ;;  %v3443_v34 = vpop.eup %3442 }
 0x86b   :  { %3446 = vtanh.f32 %v2731_v35  ;;  %v2739_v49 = vadd.f32 1.0, %v3443_v34 }
 0x86c   :  { %3448 = vrcp.f32 %v2728_v57 }
 0x86d   :  { %3450 = vrcp.f32 %v2739_v49 }
 0x871   :  { %v2797_v46 = vpop.f32.mrb[60].mxu0  ;;  %v2838_v36 = vpop.f32.mrb[60].mxu1 }
 0x872   :  { %v2799_v16 = vpop.f32.mrb[61].mxu0  ;;  %v2840_v58 = vpop.f32.mrb[61].mxu1 }
 0x873   :  { %v2849_v61 = vcombine.low %v2797_v46, %v2799_v16  ;;  %v2850_v53 = vcombine.low %v2838_v36, %v2840_v58  ;;  %v2801_v52 = vpop.f32.mrb[62].mxu0  ;;  %v2842_v4 = vpop.f32.mrb[62].mxu1 }
 0x874   :  { %v3445_v15 = vpop.eup %3444  ;;  %v2802_v24 = vpop.f32.mrb[63].mxu0 }
 0x875   :  { %v2843_v3 = vpop.f32.mrb[63].mxu1  ;;  %v3447_v9 = vpop.eup %3446  ;;  %v2857_v14 = vrot.slane %v2849_v61, %v4169_v30  ;;  %v2864_v60 = vrot.slane %v2850_v53, %v4169_v30 }
 0x876   :  { %v3449_v2 = vpop.eup %3448  ;;  %v2743_v63 = vmul.f32 %v3447_v9, %v3445_v15 }
 0x877   :  { %v2742_v20 = vmul.f32 %v3449_v2, %v5444_v11  ;;  %v2865_v40 = vcombine.low %v2857_v14, %v2864_v60  ;;  %v3451_v25 = vpop.eup %3450 }
 0x879   :  { %v2744_v44 = vadd.f32 %v2743_v63, %v2742_v20  ;;  %v2867_v5 = vadd.f32 %v2865_v40, %v2761_v48 }
 0x87b   :  { %3452 = vtanh.f32 %v2744_v44  ;;  %v2753_v29 = vsel %vm2751_vm6, %v2744_v44, %v5444_v11  ;;  %v3106_v19 = vmul.f32 -1.442695, %v2867_v5  ;;  %v2875_v10 = vrot.slane %v2867_v5, 2 }
 0x87c   :  { %2910 = vst [vmem:[#allocation3] sm:$0x3] %v2753_v29  ;;  %v2886_v0 = vrot.slane %v2867_v5, 6  ;;  %v2883_v8 = vrot.slane %v2867_v5, 4 }
 0x87d   :  { %3454 = vpow2.f32 %v3106_v19  ;;  %v3107_v30 = vmul.f32 -1.442695, %v2875_v10 }
 0x87e   :  { %v3108_v56 = vmul.f32 -1.442695, %v2886_v0 }
 0x87f   :  { %3456 = vpow2.f32 %v3107_v30 }
 0x880   :  { %3458 = vpow2.f32 %v3108_v56 }
 0x885   :  { %v3453_v54 = vpop.eup %3452 }
 0x886   :  { %v2746_v62 = vmul.f32 %v3453_v54, %v3451_v25 }
 0x887   :  { %v3455_v45 = vpop.eup %3454 }
 0x888   :  { %v2752_v39 = vsel %vm2751_vm6, %v2746_v62, %v5448_v50  ;;  %v2871_v59 = vadd.f32 1.0, %v3455_v45  ;;  %v2754_v11 = vsel %vm2751_vm6, %v2746_v62, 0.0 }
 0x889   :  { %v3457_v55 = vpop.eup %3456  ;;  %2909 = vst [vmem:[#allocation2] sm:$0x3] %v2752_v39  ;;  %2913 = vst [vmem:[%s5555_s7] sm:$0x3] %v2752_v39  ;;  %v2755_v38 = vpack.c.bf16 %v2754_v11, %v2754_v11 }
 0x88a   :  { %3460 = vrcp.f32 %v2871_v59  ;;  %v2880_v7 = vadd.f32 1.0, %v3457_v55 }
 0x88b   :  { %3462 = vtanh.f32 %v2883_v8  ;;  %2757 = vst [vmem:[#allocation6 + $0x7] sm:$0x1] %v2755_v38 }
 0x88c   :  { %3464 = vrcp.f32 %v2880_v7 }
 0x88d   :  { %3609 = shalt.err (!%p3606_p4)
}
 0x88e   :  { %s3610_s20 = scalar_lea.hbm %s5553_s5, 128 }
 0x88f   :  { %p3611_p5 = scmp.ne.s32.totalorder %s5553_s5, %s3610_s20  ;;  %p3614_p6 = scmp.lt.u32.totalorder %s3610_s20, %s5553_s5 }
 0x891   :  { %p3616_p7 = pnand %p3614_p6, %p3611_p5 }
 0x893   :  { %3619 = shalt.err (!%p3616_p7)
}
 0x894   :  { %s3650_s3 = smov 16   ;;  %s3651_s24 = smov 1   ;;  %v3459_v50 = vpop.eup %3458  ;;  %v2902_v51 = vpop.permute.xlu1 %2901 }
 0x895   :  { %2926 = dma.vmem_to_hbm [thread:$0]  %s2921_s2, 128, %s5553_s5, [#allocation7], %s3650_s3, %s3650_s3, %s3651_s24   ;;  %v3461_v32 = vpop.eup %3460  ;;  %v2891_v18 = vadd.f32 1.0, %v3459_v50  ;;  %vm2903_vm7 = vcmp.eq.s32.totalorder %v2902_v51, 1 }
 0x896   :  { %v3463_v43 = vpop.eup %3462  ;;  %s3652_s5 = smov [#allocation8]  }
 0x897   :  { %v3465_v6 = vpop.eup %3464  ;;  %v2895_v33 = vmul.f32 %v3463_v43, %v3461_v32  ;;  %3466 = vrcp.f32 %v2891_v18  ;;  %s2936_s27 = sshll.u32 %s3652_s5, 4  ;;  %s2937_s27 = int_to_ptr.vmem [resolvable:$true] %s2936_s27 }
 0x898   :  { %v2894_v17 = vmul.f32 %v3465_v6, %v5474_v1  ;;  %s3620_s30 = scalar_lea.vmem %s2937_s27, 128  ;;  %p3625_p9 = scmp.lt.s32.totalorder %s2937_s27, %s2937_s27 }
 0x899   :  { %p3621_p8 = scmp.ne.s32.totalorder %s2937_s27, %s3620_s30  ;;  %p3626_p10 = scmp.lt.s32.totalorder %s3620_s30, %s3620_s30 }
 0x89a   :  { %v2896_v21 = vadd.f32 %v2895_v33, %v2894_v17 }
 0x89b   :  { %p3627_p11 = por %p3626_p10, %p3625_p9 }
 0x89c   :  { %3468 = vtanh.f32 %v2896_v21  ;;  %v2905_v47 = vsel %vm2903_vm7, %v2896_v21, %v5474_v1 }
 0x89d   :  { %2912 = vst [vmem:[#allocation5] sm:$0x3] %v2905_v47  ;;  %p3628_p12 = pnand %p3627_p11, %p3621_p8 }
 0x8a1   :  { %v3467_v12 = vpop.eup %3466 }
 0x8a6   :  { %v3469_v42 = vpop.eup %3468 }
 0x8a7   :  { %v2898_v27 = vmul.f32 %v3469_v42, %v3467_v12 }
 0x8a9   :  { %v2904_v13 = vsel %vm2903_vm7, %v2898_v27, %v5490_v41  ;;  %v2906_v37 = vsel %vm2903_vm7, %v2898_v27, 0.0 }
 0x8aa   :  { %v2907_v26 = vpack.c.bf16 %v2906_v37, %v2906_v37  ;;  %2911 = vst [vmem:[#allocation4] sm:$0x3] %v2904_v13  ;;  %2914 = vst [vmem:[%s5556_s8] sm:$0x3] %v2904_v13 }
 0x8ac   :  { %2908 = vst [vmem:[#allocation8] sm:$0x1] %v2907_v26 }
 0x8ad   :  { %3631 = shalt.err (!%p3628_p12)
}
 0x8ae   :  { %s3632_s11 = scalar_lea.hbm %s5554_s6, 128 }
 0x8af   :  { %p3633_p13 = scmp.ne.s32.totalorder %s5554_s6, %s3632_s11  ;;  %p3636_p0 = scmp.lt.u32.totalorder %s3632_s11, %s5554_s6 }
 0x8b1   :  { %p3638_p1 = pnand %p3636_p0, %p3633_p13 }
 0x8b3   :  { %3641 = shalt.err (!%p3638_p1)
}
 0x8b4   :  { %2942 = dma.vmem_to_hbm [thread:$0]  %s2937_s27, 128, %s5554_s6, [#allocation9], %s3650_s3, %s3650_s3, %s3651_s24  }
 0x8b5   :  { %3642 = dma.done.wait [#allocation7], 128  }
 0x8b6   :  { %3643 = vsyncadd [#allocation7], 4294967168 }
 0x8b7   :  { %3644 = dma.done.wait [#allocation9], 128  }
 0x8b8   :  { %3645 = vsyncadd [#allocation9], 4294967168 }
 0x8b9   :  { %2957 = vsyncpa [#allocation7], 1 }
 0x8ba   :  { %2958 = vsyncpa [#allocation9], 1 }

</bundles_post_ra>
